<compile_context>
chip_gen: v7x
topology: tpu7x:2x2x1
jax: 0.10.0
libtpu: 0.0.40
codegen_flags: <defaults>
</compile_context>

<pallas_src>
import functools

import jax
import jax.numpy as jnp
from jax import lax
from jax.experimental import pallas as pl
from jax.experimental.pallas import tpu as pltpu


def _make_conv3x3_kernel(use_refl: bool):
    def kernel(x_ref, w_ref, b_ref, out_ref, xpad_ref):
        """One batch element per grid step.

        x_ref   : (1, Cin, H, W)      VMEM input tile (NCHW, W on lanes)
        w_ref   : (Cout*Cin*9,)       SMEM flattened conv weights (f32)
        b_ref   : (Cout,)             SMEM bias (f32)
        out_ref : (1, Cout, H, W)     VMEM output tile
        xpad_ref: (Cin, H+2, W+2)     VMEM scratch: haloed input
        """
        Cin = x_ref.shape[1]
        H = x_ref.shape[2]
        W = x_ref.shape[3]
        Cout = out_ref.shape[1]

        x = x_ref[0].astype(jnp.float32)                      # (Cin, H, W)

        # ---- build the 1-pixel halo in VMEM (no HBM pad) ----
        xpad_ref[:, 1:H + 1, 1:W + 1] = x                     # interior
        if use_refl:
            # ReflectionPad2d(1): pad row -1 := row 1, pad row H := row H-2.
            xpad_ref[:, 0:1, 1:W + 1] = x[:, 1:2, :]
            xpad_ref[:, H + 1:H + 2, 1:W + 1] = x[:, H - 2:H - 1, :]
            # Columns (corners come out right by reflecting the already
            # row-padded columns 2 and W-1).
            xpad_ref[:, :, 0:1] = xpad_ref[:, :, 2:3]
            xpad_ref[:, :, W + 1:W + 2] = xpad_ref[:, :, W - 1:W]
        else:
            zrow = jnp.zeros((Cin, 1, W + 2), jnp.float32)
            zcol = jnp.zeros((Cin, H + 2, 1), jnp.float32)
            xpad_ref[:, 0:1, :] = zrow
            xpad_ref[:, H + 1:H + 2, :] = zrow
            xpad_ref[:, :, 0:1] = zcol
            xpad_ref[:, :, W + 1:W + 2] = zcol

        # ---- 3x3 conv as VPU scalar FMAs (tiny channel counts) ----
        # f32 accumulators, one (H, W) tile per output channel, bias-initialized.
        accs = [jnp.zeros((H, W), jnp.float32) + b_ref[co] for co in range(Cout)]

        for dy in range(3):
            for dx in range(3):
                win = xpad_ref[:, dy:dy + H, dx:dx + W]       # (Cin, H, W)
                for ci in range(Cin):
                    p = win[ci]                               # (H, W)
                    base = ci * 9 + dy * 3 + dx
                    for co in range(Cout):
                        accs[co] = accs[co] + w_ref[co * Cin * 9 + base] * p

        out_ref[0] = jnp.stack(accs, axis=0).astype(out_ref.dtype)

    return kernel


def conv3x3_pallas(x, weight, bias, use_refl=True):
    """x: (B, Cin, H, W) NCHW; weight: (Cout, Cin, 3, 3); bias: (Cout,)."""
    B, Cin, H, W = x.shape
    Cout = weight.shape[0]

    # Weights/bias go to SMEM as flat f32 scalar tables (C-order flatten:
    # idx = co*Cin*9 + ci*9 + dy*3 + dx).
    w_flat = weight.reshape(-1).astype(jnp.float32)
    b_flat = bias.reshape(-1).astype(jnp.float32)

    kernel = _make_conv3x3_kernel(bool(use_refl))

    out = pl.pallas_call(
        kernel,
        out_shape=jax.ShapeDtypeStruct((B, Cout, H, W), x.dtype),
        grid_spec=pltpu.PrefetchScalarGridSpec(
            num_scalar_prefetch=0,
            grid=(B,),
            in_specs=[
                pl.BlockSpec((1, Cin, H, W), lambda b: (b, 0, 0, 0)),
                pl.BlockSpec(memory_space=pltpu.MemorySpace.SMEM),
                pl.BlockSpec(memory_space=pltpu.MemorySpace.SMEM),
            ],
            out_specs=pl.BlockSpec((1, Cout, H, W), lambda b: (b, 0, 0, 0)),
            scratch_shapes=[pltpu.VMEM((Cin, H + 2, W + 2), jnp.float32)],
        ),
        compiler_params=pltpu.CompilerParams(
            dimension_semantics=("parallel",),
            vmem_limit_bytes=32 * 1024 * 1024,
        ),
    )(x, w_flat, b_flat)
    return out


def conv3x3_reference(x_nchw, weight, bias, use_refl=True):
    """Pure-JAX reference matching the PyTorch module."""
    mode = "reflect" if use_refl else "constant"
    xpad = jnp.pad(x_nchw, ((0, 0), (0, 0), (1, 1), (1, 1)), mode=mode)
    out = lax.conv_general_dilated(
        xpad, weight, window_strides=(1, 1), padding="VALID",
        dimension_numbers=("NCHW", "OIHW", "NCHW"),
    )
    return out + bias[None, :, None, None]


if __name__ == "__main__":
    # Small shapes consistent with Conv3x3(in_channels=4, out_channels=8).
    B, Cin, H, W = 2, 4, 16, 16
    Cout = 8

    key = jax.random.PRNGKey(0)
    kx, kw, kb = jax.random.split(key, 3)

    x = jax.random.normal(kx, (B, Cin, H, W), dtype=jnp.float32)
    # Deterministic init mimicking PyTorch's uniform bound 1/sqrt(fan_in).
    fan_in = Cin * 3 * 3
    bound = 1.0 / jnp.sqrt(float(fan_in))
    weight = jax.random.uniform(kw, (Cout, Cin, 3, 3), jnp.float32, -bound, bound)
    bias = jax.random.uniform(kb, (Cout,), jnp.float32, -bound, bound)

    # Reflection-pad path (module default).
    out = conv3x3_pallas(x, weight, bias, use_refl=True)
    out = jax.block_until_ready(out)
    ref = conv3x3_reference(x, weight, bias, use_refl=True)
    assert out.shape == (B, Cout, H, W)
    assert jnp.allclose(out, ref, atol=1e-5, rtol=1e-5)

    # Zero-pad path.
    out0 = jax.block_until_ready(conv3x3_pallas(x, weight, bias, use_refl=False))
    ref0 = conv3x3_reference(x, weight, bias, use_refl=False)
    assert jnp.allclose(out0, ref0, atol=1e-5, rtol=1e-5)

    print("KERNEL_OK")
</pallas_src>

<mosaic_0001>
module attributes {stable_mosaic.version = 11 : i64} {
  func.func @kernel(%arg0: i32, %arg1: memref<1x4x16x16xf32, #tpu.memory_space<vmem>>, %arg2: memref<288xf32, #tpu.memory_space<smem>>, %arg3: memref<8xf32, #tpu.memory_space<smem>>, %arg4: memref<1x8x16x16xf32, #tpu.memory_space<vmem>>, %arg5: memref<4x18x18xf32, #tpu.memory_space<vmem>>) attributes {dimension_semantics = [#tpu.dimension_semantics<parallel>], iteration_bounds = array<i64: 2>, scalar_prefetch = 0 : i64, scratch_operands = 1 : i64, tpu.core_type = #tpu.core_type<tc>, window_params = [{transform_indices = @transform_0, window_bounds = array<i64: 1, 4, 16, 16>}, {transform_indices = @transform_1, window_bounds = array<i64: 288>}, {transform_indices = @transform_2, window_bounds = array<i64: 8>}, {transform_indices = @transform_3, window_bounds = array<i64: 1, 8, 16, 16>}]} {
    %c0 = arith.constant 0 : index
    %c0_0 = arith.constant 0 : index
    %c0_1 = arith.constant 0 : index
    %c0_2 = arith.constant 0 : index
    %0 = vector.load %arg1[%c0, %c0_0, %c0_1, %c0_2] : memref<1x4x16x16xf32, #tpu.memory_space<vmem>>, vector<1x4x16x16xf32>
    %1 = vector.shape_cast %0 : vector<1x4x16x16xf32> to vector<4x16x16xf32>
    %c0_3 = arith.constant 0 : index
    %c1 = arith.constant 1 : index
    %c1_4 = arith.constant 1 : index
    %2 = vector.load %arg5[%c0_3, %c1, %c1_4] : memref<4x18x18xf32, #tpu.memory_space<vmem>>, vector<4x16x16xf32>
    tpu.vector_store %arg5[%c0_3, %c1, %c1_4], %1 {strides = array<i32>} : memref<4x18x18xf32, #tpu.memory_space<vmem>>, vector<4x16x16xf32>,
    %3 = vector.extract_strided_slice %1 {offsets = [0, 1, 0], sizes = [4, 1, 16], strides = [1, 1, 1]} : vector<4x16x16xf32> to vector<4x1x16xf32>
    %c0_5 = arith.constant 0 : index
    %c0_6 = arith.constant 0 : index
    %c1_7 = arith.constant 1 : index
    %4 = vector.load %arg5[%c0_5, %c0_6, %c1_7] : memref<4x18x18xf32, #tpu.memory_space<vmem>>, vector<4x1x16xf32>
    tpu.vector_store %arg5[%c0_5, %c0_6, %c1_7], %3 {strides = array<i32>} : memref<4x18x18xf32, #tpu.memory_space<vmem>>, vector<4x1x16xf32>,
    %5 = vector.extract_strided_slice %1 {offsets = [0, 14, 0], sizes = [4, 1, 16], strides = [1, 1, 1]} : vector<4x16x16xf32> to vector<4x1x16xf32>
    %c0_8 = arith.constant 0 : index
    %c17 = arith.constant 17 : index
    %c1_9 = arith.constant 1 : index
    %6 = vector.load %arg5[%c0_8, %c17, %c1_9] : memref<4x18x18xf32, #tpu.memory_space<vmem>>, vector<4x1x16xf32>
    tpu.vector_store %arg5[%c0_8, %c17, %c1_9], %5 {strides = array<i32>} : memref<4x18x18xf32, #tpu.memory_space<vmem>>, vector<4x1x16xf32>,
    %c0_10 = arith.constant 0 : index
    %c0_11 = arith.constant 0 : index
    %c2 = arith.constant 2 : index
    %7 = vector.load %arg5[%c0_10, %c0_11, %c2] : memref<4x18x18xf32, #tpu.memory_space<vmem>>, vector<4x18x1xf32>
    %c0_12 = arith.constant 0 : index
    %c0_13 = arith.constant 0 : index
    %c0_14 = arith.constant 0 : index
    %8 = vector.load %arg5[%c0_12, %c0_13, %c0_14] : memref<4x18x18xf32, #tpu.memory_space<vmem>>, vector<4x18x1xf32>
    tpu.vector_store %arg5[%c0_12, %c0_13, %c0_14], %7 {strides = array<i32>} : memref<4x18x18xf32, #tpu.memory_space<vmem>>, vector<4x18x1xf32>,
    %c0_15 = arith.constant 0 : index
    %c0_16 = arith.constant 0 : index
    %c15 = arith.constant 15 : index
    %9 = vector.load %arg5[%c0_15, %c0_16, %c15] : memref<4x18x18xf32, #tpu.memory_space<vmem>>, vector<4x18x1xf32>
    %c0_17 = arith.constant 0 : index
    %c0_18 = arith.constant 0 : index
    %c17_19 = arith.constant 17 : index
    %10 = vector.load %arg5[%c0_17, %c0_18, %c17_19] : memref<4x18x18xf32, #tpu.memory_space<vmem>>, vector<4x18x1xf32>
    tpu.vector_store %arg5[%c0_17, %c0_18, %c17_19], %9 {strides = array<i32>} : memref<4x18x18xf32, #tpu.memory_space<vmem>>, vector<4x18x1xf32>,
    %cst = arith.constant 0.000000e+00 : f32
    %11 = vector.broadcast %cst : f32 to vector<16x16xf32>
    %c0_20 = arith.constant 0 : index
    %12 = memref.load %arg3[%c0_20] : memref<8xf32, #tpu.memory_space<smem>>
    %13 = vector.broadcast %12 : f32 to vector<16x16xf32>
    %14 = arith.addf %11, %13 : vector<16x16xf32>
    %cst_21 = arith.constant 0.000000e+00 : f32
    %15 = vector.broadcast %cst_21 : f32 to vector<16x16xf32>
    %c1_22 = arith.constant 1 : index
    %16 = memref.load %arg3[%c1_22] : memref<8xf32, #tpu.memory_space<smem>>
    %17 = vector.broadcast %16 : f32 to vector<16x16xf32>
    %18 = arith.addf %15, %17 : vector<16x16xf32>
    %cst_23 = arith.constant 0.000000e+00 : f32
    %19 = vector.broadcast %cst_23 : f32 to vector<16x16xf32>
    %c2_24 = arith.constant 2 : index
    %20 = memref.load %arg3[%c2_24] : memref<8xf32, #tpu.memory_space<smem>>
    %21 = vector.broadcast %20 : f32 to vector<16x16xf32>
    %22 = arith.addf %19, %21 : vector<16x16xf32>
    %cst_25 = arith.constant 0.000000e+00 : f32
    %23 = vector.broadcast %cst_25 : f32 to vector<16x16xf32>
    %c3 = arith.constant 3 : index
    %24 = memref.load %arg3[%c3] : memref<8xf32, #tpu.memory_space<smem>>
    %25 = vector.broadcast %24 : f32 to vector<16x16xf32>
    %26 = arith.addf %23, %25 : vector<16x16xf32>
    %cst_26 = arith.constant 0.000000e+00 : f32
    %27 = vector.broadcast %cst_26 : f32 to vector<16x16xf32>
    %c4 = arith.constant 4 : index
    %28 = memref.load %arg3[%c4] : memref<8xf32, #tpu.memory_space<smem>>
    %29 = vector.broadcast %28 : f32 to vector<16x16xf32>
    %30 = arith.addf %27, %29 : vector<16x16xf32>
    %cst_27 = arith.constant 0.000000e+00 : f32
    %31 = vector.broadcast %cst_27 : f32 to vector<16x16xf32>
    %c5 = arith.constant 5 : index
    %32 = memref.load %arg3[%c5] : memref<8xf32, #tpu.memory_space<smem>>
    %33 = vector.broadcast %32 : f32 to vector<16x16xf32>
    %34 = arith.addf %31, %33 : vector<16x16xf32>
    %cst_28 = arith.constant 0.000000e+00 : f32
    %35 = vector.broadcast %cst_28 : f32 to vector<16x16xf32>
    %c6 = arith.constant 6 : index
    %36 = memref.load %arg3[%c6] : memref<8xf32, #tpu.memory_space<smem>>
    %37 = vector.broadcast %36 : f32 to vector<16x16xf32>
    %38 = arith.addf %35, %37 : vector<16x16xf32>
    %cst_29 = arith.constant 0.000000e+00 : f32
    %39 = vector.broadcast %cst_29 : f32 to vector<16x16xf32>
    %c7 = arith.constant 7 : index
    %40 = memref.load %arg3[%c7] : memref<8xf32, #tpu.memory_space<smem>>
    %41 = vector.broadcast %40 : f32 to vector<16x16xf32>
    %42 = arith.addf %39, %41 : vector<16x16xf32>
    %c0_30 = arith.constant 0 : index
    %c0_31 = arith.constant 0 : index
    %c0_32 = arith.constant 0 : index
    %43 = vector.load %arg5[%c0_30, %c0_31, %c0_32] : memref<4x18x18xf32, #tpu.memory_space<vmem>>, vector<4x16x16xf32>
    %44 = vector.extract_strided_slice %43 {offsets = [0, 0, 0], sizes = [1, 16, 16], strides = [1, 1, 1]} : vector<4x16x16xf32> to vector<1x16x16xf32>
    %45 = vector.shape_cast %44 : vector<1x16x16xf32> to vector<16x16xf32>
    %c0_33 = arith.constant 0 : index
    %46 = memref.load %arg2[%c0_33] : memref<288xf32, #tpu.memory_space<smem>>
    %47 = vector.broadcast %46 : f32 to vector<16x16xf32>
    %48 = arith.mulf %47, %45 : vector<16x16xf32>
    %49 = arith.addf %14, %48 : vector<16x16xf32>
    %c36 = arith.constant 36 : index
    %50 = memref.load %arg2[%c36] : memref<288xf32, #tpu.memory_space<smem>>
    %51 = vector.broadcast %50 : f32 to vector<16x16xf32>
    %52 = arith.mulf %51, %45 : vector<16x16xf32>
    %53 = arith.addf %18, %52 : vector<16x16xf32>
    %c72 = arith.constant 72 : index
    %54 = memref.load %arg2[%c72] : memref<288xf32, #tpu.memory_space<smem>>
    %55 = vector.broadcast %54 : f32 to vector<16x16xf32>
    %56 = arith.mulf %55, %45 : vector<16x16xf32>
    %57 = arith.addf %22, %56 : vector<16x16xf32>
    %c108 = arith.constant 108 : index
    %58 = memref.load %arg2[%c108] : memref<288xf32, #tpu.memory_space<smem>>
    %59 = vector.broadcast %58 : f32 to vector<16x16xf32>
    %60 = arith.mulf %59, %45 : vector<16x16xf32>
    %61 = arith.addf %26, %60 : vector<16x16xf32>
    %c144 = arith.constant 144 : index
    %62 = memref.load %arg2[%c144] : memref<288xf32, #tpu.memory_space<smem>>
    %63 = vector.broadcast %62 : f32 to vector<16x16xf32>
    %64 = arith.mulf %63, %45 : vector<16x16xf32>
    %65 = arith.addf %30, %64 : vector<16x16xf32>
    %c180 = arith.constant 180 : index
    %66 = memref.load %arg2[%c180] : memref<288xf32, #tpu.memory_space<smem>>
    %67 = vector.broadcast %66 : f32 to vector<16x16xf32>
    %68 = arith.mulf %67, %45 : vector<16x16xf32>
    %69 = arith.addf %34, %68 : vector<16x16xf32>
    %c216 = arith.constant 216 : index
    %70 = memref.load %arg2[%c216] : memref<288xf32, #tpu.memory_space<smem>>
    %71 = vector.broadcast %70 : f32 to vector<16x16xf32>
    %72 = arith.mulf %71, %45 : vector<16x16xf32>
    %73 = arith.addf %38, %72 : vector<16x16xf32>
    %c252 = arith.constant 252 : index
    %74 = memref.load %arg2[%c252] : memref<288xf32, #tpu.memory_space<smem>>
    %75 = vector.broadcast %74 : f32 to vector<16x16xf32>
    %76 = arith.mulf %75, %45 : vector<16x16xf32>
    %77 = arith.addf %42, %76 : vector<16x16xf32>
    %78 = vector.extract_strided_slice %43 {offsets = [1, 0, 0], sizes = [1, 16, 16], strides = [1, 1, 1]} : vector<4x16x16xf32> to vector<1x16x16xf32>
    %79 = vector.shape_cast %78 : vector<1x16x16xf32> to vector<16x16xf32>
    %c9 = arith.constant 9 : index
    %80 = memref.load %arg2[%c9] : memref<288xf32, #tpu.memory_space<smem>>
    %81 = vector.broadcast %80 : f32 to vector<16x16xf32>
    %82 = arith.mulf %81, %79 : vector<16x16xf32>
    %83 = arith.addf %49, %82 : vector<16x16xf32>
    %c45 = arith.constant 45 : index
    %84 = memref.load %arg2[%c45] : memref<288xf32, #tpu.memory_space<smem>>
    %85 = vector.broadcast %84 : f32 to vector<16x16xf32>
    %86 = arith.mulf %85, %79 : vector<16x16xf32>
    %87 = arith.addf %53, %86 : vector<16x16xf32>
    %c81 = arith.constant 81 : index
    %88 = memref.load %arg2[%c81] : memref<288xf32, #tpu.memory_space<smem>>
    %89 = vector.broadcast %88 : f32 to vector<16x16xf32>
    %90 = arith.mulf %89, %79 : vector<16x16xf32>
    %91 = arith.addf %57, %90 : vector<16x16xf32>
    %c117 = arith.constant 117 : index
    %92 = memref.load %arg2[%c117] : memref<288xf32, #tpu.memory_space<smem>>
    %93 = vector.broadcast %92 : f32 to vector<16x16xf32>
    %94 = arith.mulf %93, %79 : vector<16x16xf32>
    %95 = arith.addf %61, %94 : vector<16x16xf32>
    %c153 = arith.constant 153 : index
    %96 = memref.load %arg2[%c153] : memref<288xf32, #tpu.memory_space<smem>>
    %97 = vector.broadcast %96 : f32 to vector<16x16xf32>
    %98 = arith.mulf %97, %79 : vector<16x16xf32>
    %99 = arith.addf %65, %98 : vector<16x16xf32>
    %c189 = arith.constant 189 : index
    %100 = memref.load %arg2[%c189] : memref<288xf32, #tpu.memory_space<smem>>
    %101 = vector.broadcast %100 : f32 to vector<16x16xf32>
    %102 = arith.mulf %101, %79 : vector<16x16xf32>
    %103 = arith.addf %69, %102 : vector<16x16xf32>
    %c225 = arith.constant 225 : index
    %104 = memref.load %arg2[%c225] : memref<288xf32, #tpu.memory_space<smem>>
    %105 = vector.broadcast %104 : f32 to vector<16x16xf32>
    %106 = arith.mulf %105, %79 : vector<16x16xf32>
    %107 = arith.addf %73, %106 : vector<16x16xf32>
    %c261 = arith.constant 261 : index
    %108 = memref.load %arg2[%c261] : memref<288xf32, #tpu.memory_space<smem>>
    %109 = vector.broadcast %108 : f32 to vector<16x16xf32>
    %110 = arith.mulf %109, %79 : vector<16x16xf32>
    %111 = arith.addf %77, %110 : vector<16x16xf32>
    %112 = vector.extract_strided_slice %43 {offsets = [2, 0, 0], sizes = [1, 16, 16], strides = [1, 1, 1]} : vector<4x16x16xf32> to vector<1x16x16xf32>
    %113 = vector.shape_cast %112 : vector<1x16x16xf32> to vector<16x16xf32>
    %c18 = arith.constant 18 : index
    %114 = memref.load %arg2[%c18] : memref<288xf32, #tpu.memory_space<smem>>
    %115 = vector.broadcast %114 : f32 to vector<16x16xf32>
    %116 = arith.mulf %115, %113 : vector<16x16xf32>
    %117 = arith.addf %83, %116 : vector<16x16xf32>
    %c54 = arith.constant 54 : index
    %118 = memref.load %arg2[%c54] : memref<288xf32, #tpu.memory_space<smem>>
    %119 = vector.broadcast %118 : f32 to vector<16x16xf32>
    %120 = arith.mulf %119, %113 : vector<16x16xf32>
    %121 = arith.addf %87, %120 : vector<16x16xf32>
    %c90 = arith.constant 90 : index
    %122 = memref.load %arg2[%c90] : memref<288xf32, #tpu.memory_space<smem>>
    %123 = vector.broadcast %122 : f32 to vector<16x16xf32>
    %124 = arith.mulf %123, %113 : vector<16x16xf32>
    %125 = arith.addf %91, %124 : vector<16x16xf32>
    %c126 = arith.constant 126 : index
    %126 = memref.load %arg2[%c126] : memref<288xf32, #tpu.memory_space<smem>>
    %127 = vector.broadcast %126 : f32 to vector<16x16xf32>
    %128 = arith.mulf %127, %113 : vector<16x16xf32>
    %129 = arith.addf %95, %128 : vector<16x16xf32>
    %c162 = arith.constant 162 : index
    %130 = memref.load %arg2[%c162] : memref<288xf32, #tpu.memory_space<smem>>
    %131 = vector.broadcast %130 : f32 to vector<16x16xf32>
    %132 = arith.mulf %131, %113 : vector<16x16xf32>
    %133 = arith.addf %99, %132 : vector<16x16xf32>
    %c198 = arith.constant 198 : index
    %134 = memref.load %arg2[%c198] : memref<288xf32, #tpu.memory_space<smem>>
    %135 = vector.broadcast %134 : f32 to vector<16x16xf32>
    %136 = arith.mulf %135, %113 : vector<16x16xf32>
    %137 = arith.addf %103, %136 : vector<16x16xf32>
    %c234 = arith.constant 234 : index
    %138 = memref.load %arg2[%c234] : memref<288xf32, #tpu.memory_space<smem>>
    %139 = vector.broadcast %138 : f32 to vector<16x16xf32>
    %140 = arith.mulf %139, %113 : vector<16x16xf32>
    %141 = arith.addf %107, %140 : vector<16x16xf32>
    %c270 = arith.constant 270 : index
    %142 = memref.load %arg2[%c270] : memref<288xf32, #tpu.memory_space<smem>>
    %143 = vector.broadcast %142 : f32 to vector<16x16xf32>
    %144 = arith.mulf %143, %113 : vector<16x16xf32>
    %145 = arith.addf %111, %144 : vector<16x16xf32>
    %146 = vector.extract_strided_slice %43 {offsets = [3, 0, 0], sizes = [1, 16, 16], strides = [1, 1, 1]} : vector<4x16x16xf32> to vector<1x16x16xf32>
    %147 = vector.shape_cast %146 : vector<1x16x16xf32> to vector<16x16xf32>
    %c27 = arith.constant 27 : index
    %148 = memref.load %arg2[%c27] : memref<288xf32, #tpu.memory_space<smem>>
    %149 = vector.broadcast %148 : f32 to vector<16x16xf32>
    %150 = arith.mulf %149, %147 : vector<16x16xf32>
    %151 = arith.addf %117, %150 : vector<16x16xf32>
    %c63 = arith.constant 63 : index
    %152 = memref.load %arg2[%c63] : memref<288xf32, #tpu.memory_space<smem>>
    %153 = vector.broadcast %152 : f32 to vector<16x16xf32>
    %154 = arith.mulf %153, %147 : vector<16x16xf32>
    %155 = arith.addf %121, %154 : vector<16x16xf32>
    %c99 = arith.constant 99 : index
    %156 = memref.load %arg2[%c99] : memref<288xf32, #tpu.memory_space<smem>>
    %157 = vector.broadcast %156 : f32 to vector<16x16xf32>
    %158 = arith.mulf %157, %147 : vector<16x16xf32>
    %159 = arith.addf %125, %158 : vector<16x16xf32>
    %c135 = arith.constant 135 : index
    %160 = memref.load %arg2[%c135] : memref<288xf32, #tpu.memory_space<smem>>
    %161 = vector.broadcast %160 : f32 to vector<16x16xf32>
    %162 = arith.mulf %161, %147 : vector<16x16xf32>
    %163 = arith.addf %129, %162 : vector<16x16xf32>
    %c171 = arith.constant 171 : index
    %164 = memref.load %arg2[%c171] : memref<288xf32, #tpu.memory_space<smem>>
    %165 = vector.broadcast %164 : f32 to vector<16x16xf32>
    %166 = arith.mulf %165, %147 : vector<16x16xf32>
    %167 = arith.addf %133, %166 : vector<16x16xf32>
    %c207 = arith.constant 207 : index
    %168 = memref.load %arg2[%c207] : memref<288xf32, #tpu.memory_space<smem>>
    %169 = vector.broadcast %168 : f32 to vector<16x16xf32>
    %170 = arith.mulf %169, %147 : vector<16x16xf32>
    %171 = arith.addf %137, %170 : vector<16x16xf32>
    %c243 = arith.constant 243 : index
    %172 = memref.load %arg2[%c243] : memref<288xf32, #tpu.memory_space<smem>>
    %173 = vector.broadcast %172 : f32 to vector<16x16xf32>
    %174 = arith.mulf %173, %147 : vector<16x16xf32>
    %175 = arith.addf %141, %174 : vector<16x16xf32>
    %c279 = arith.constant 279 : index
    %176 = memref.load %arg2[%c279] : memref<288xf32, #tpu.memory_space<smem>>
    %177 = vector.broadcast %176 : f32 to vector<16x16xf32>
    %178 = arith.mulf %177, %147 : vector<16x16xf32>
    %179 = arith.addf %145, %178 : vector<16x16xf32>
    %c0_34 = arith.constant 0 : index
    %c0_35 = arith.constant 0 : index
    %c1_36 = arith.constant 1 : index
    %180 = vector.load %arg5[%c0_34, %c0_35, %c1_36] : memref<4x18x18xf32, #tpu.memory_space<vmem>>, vector<4x16x16xf32>
    %181 = vector.extract_strided_slice %180 {offsets = [0, 0, 0], sizes = [1, 16, 16], strides = [1, 1, 1]} : vector<4x16x16xf32> to vector<1x16x16xf32>
    %182 = vector.shape_cast %181 : vector<1x16x16xf32> to vector<16x16xf32>
    %c1_37 = arith.constant 1 : index
    %183 = memref.load %arg2[%c1_37] : memref<288xf32, #tpu.memory_space<smem>>
    %184 = vector.broadcast %183 : f32 to vector<16x16xf32>
    %185 = arith.mulf %184, %182 : vector<16x16xf32>
    %186 = arith.addf %151, %185 : vector<16x16xf32>
    %c37 = arith.constant 37 : index
    %187 = memref.load %arg2[%c37] : memref<288xf32, #tpu.memory_space<smem>>
    %188 = vector.broadcast %187 : f32 to vector<16x16xf32>
    %189 = arith.mulf %188, %182 : vector<16x16xf32>
    %190 = arith.addf %155, %189 : vector<16x16xf32>
    %c73 = arith.constant 73 : index
    %191 = memref.load %arg2[%c73] : memref<288xf32, #tpu.memory_space<smem>>
    %192 = vector.broadcast %191 : f32 to vector<16x16xf32>
    %193 = arith.mulf %192, %182 : vector<16x16xf32>
    %194 = arith.addf %159, %193 : vector<16x16xf32>
    %c109 = arith.constant 109 : index
    %195 = memref.load %arg2[%c109] : memref<288xf32, #tpu.memory_space<smem>>
    %196 = vector.broadcast %195 : f32 to vector<16x16xf32>
    %197 = arith.mulf %196, %182 : vector<16x16xf32>
    %198 = arith.addf %163, %197 : vector<16x16xf32>
    %c145 = arith.constant 145 : index
    %199 = memref.load %arg2[%c145] : memref<288xf32, #tpu.memory_space<smem>>
    %200 = vector.broadcast %199 : f32 to vector<16x16xf32>
    %201 = arith.mulf %200, %182 : vector<16x16xf32>
    %202 = arith.addf %167, %201 : vector<16x16xf32>
    %c181 = arith.constant 181 : index
    %203 = memref.load %arg2[%c181] : memref<288xf32, #tpu.memory_space<smem>>
    %204 = vector.broadcast %203 : f32 to vector<16x16xf32>
    %205 = arith.mulf %204, %182 : vector<16x16xf32>
    %206 = arith.addf %171, %205 : vector<16x16xf32>
    %c217 = arith.constant 217 : index
    %207 = memref.load %arg2[%c217] : memref<288xf32, #tpu.memory_space<smem>>
    %208 = vector.broadcast %207 : f32 to vector<16x16xf32>
    %209 = arith.mulf %208, %182 : vector<16x16xf32>
    %210 = arith.addf %175, %209 : vector<16x16xf32>
    %c253 = arith.constant 253 : index
    %211 = memref.load %arg2[%c253] : memref<288xf32, #tpu.memory_space<smem>>
    %212 = vector.broadcast %211 : f32 to vector<16x16xf32>
    %213 = arith.mulf %212, %182 : vector<16x16xf32>
    %214 = arith.addf %179, %213 : vector<16x16xf32>
    %215 = vector.extract_strided_slice %180 {offsets = [1, 0, 0], sizes = [1, 16, 16], strides = [1, 1, 1]} : vector<4x16x16xf32> to vector<1x16x16xf32>
    %216 = vector.shape_cast %215 : vector<1x16x16xf32> to vector<16x16xf32>
    %c10 = arith.constant 10 : index
    %217 = memref.load %arg2[%c10] : memref<288xf32, #tpu.memory_space<smem>>
    %218 = vector.broadcast %217 : f32 to vector<16x16xf32>
    %219 = arith.mulf %218, %216 : vector<16x16xf32>
    %220 = arith.addf %186, %219 : vector<16x16xf32>
    %c46 = arith.constant 46 : index
    %221 = memref.load %arg2[%c46] : memref<288xf32, #tpu.memory_space<smem>>
    %222 = vector.broadcast %221 : f32 to vector<16x16xf32>
    %223 = arith.mulf %222, %216 : vector<16x16xf32>
    %224 = arith.addf %190, %223 : vector<16x16xf32>
    %c82 = arith.constant 82 : index
    %225 = memref.load %arg2[%c82] : memref<288xf32, #tpu.memory_space<smem>>
    %226 = vector.broadcast %225 : f32 to vector<16x16xf32>
    %227 = arith.mulf %226, %216 : vector<16x16xf32>
    %228 = arith.addf %194, %227 : vector<16x16xf32>
    %c118 = arith.constant 118 : index
    %229 = memref.load %arg2[%c118] : memref<288xf32, #tpu.memory_space<smem>>
    %230 = vector.broadcast %229 : f32 to vector<16x16xf32>
    %231 = arith.mulf %230, %216 : vector<16x16xf32>
    %232 = arith.addf %198, %231 : vector<16x16xf32>
    %c154 = arith.constant 154 : index
    %233 = memref.load %arg2[%c154] : memref<288xf32, #tpu.memory_space<smem>>
    %234 = vector.broadcast %233 : f32 to vector<16x16xf32>
    %235 = arith.mulf %234, %216 : vector<16x16xf32>
    %236 = arith.addf %202, %235 : vector<16x16xf32>
    %c190 = arith.constant 190 : index
    %237 = memref.load %arg2[%c190] : memref<288xf32, #tpu.memory_space<smem>>
    %238 = vector.broadcast %237 : f32 to vector<16x16xf32>
    %239 = arith.mulf %238, %216 : vector<16x16xf32>
    %240 = arith.addf %206, %239 : vector<16x16xf32>
    %c226 = arith.constant 226 : index
    %241 = memref.load %arg2[%c226] : memref<288xf32, #tpu.memory_space<smem>>
    %242 = vector.broadcast %241 : f32 to vector<16x16xf32>
    %243 = arith.mulf %242, %216 : vector<16x16xf32>
    %244 = arith.addf %210, %243 : vector<16x16xf32>
    %c262 = arith.constant 262 : index
    %245 = memref.load %arg2[%c262] : memref<288xf32, #tpu.memory_space<smem>>
    %246 = vector.broadcast %245 : f32 to vector<16x16xf32>
    %247 = arith.mulf %246, %216 : vector<16x16xf32>
    %248 = arith.addf %214, %247 : vector<16x16xf32>
    %249 = vector.extract_strided_slice %180 {offsets = [2, 0, 0], sizes = [1, 16, 16], strides = [1, 1, 1]} : vector<4x16x16xf32> to vector<1x16x16xf32>
    %250 = vector.shape_cast %249 : vector<1x16x16xf32> to vector<16x16xf32>
    %c19 = arith.constant 19 : index
    %251 = memref.load %arg2[%c19] : memref<288xf32, #tpu.memory_space<smem>>
    %252 = vector.broadcast %251 : f32 to vector<16x16xf32>
    %253 = arith.mulf %252, %250 : vector<16x16xf32>
    %254 = arith.addf %220, %253 : vector<16x16xf32>
    %c55 = arith.constant 55 : index
    %255 = memref.load %arg2[%c55] : memref<288xf32, #tpu.memory_space<smem>>
    %256 = vector.broadcast %255 : f32 to vector<16x16xf32>
    %257 = arith.mulf %256, %250 : vector<16x16xf32>
    %258 = arith.addf %224, %257 : vector<16x16xf32>
    %c91 = arith.constant 91 : index
    %259 = memref.load %arg2[%c91] : memref<288xf32, #tpu.memory_space<smem>>
    %260 = vector.broadcast %259 : f32 to vector<16x16xf32>
    %261 = arith.mulf %260, %250 : vector<16x16xf32>
    %262 = arith.addf %228, %261 : vector<16x16xf32>
    %c127 = arith.constant 127 : index
    %263 = memref.load %arg2[%c127] : memref<288xf32, #tpu.memory_space<smem>>
    %264 = vector.broadcast %263 : f32 to vector<16x16xf32>
    %265 = arith.mulf %264, %250 : vector<16x16xf32>
    %266 = arith.addf %232, %265 : vector<16x16xf32>
    %c163 = arith.constant 163 : index
    %267 = memref.load %arg2[%c163] : memref<288xf32, #tpu.memory_space<smem>>
    %268 = vector.broadcast %267 : f32 to vector<16x16xf32>
    %269 = arith.mulf %268, %250 : vector<16x16xf32>
    %270 = arith.addf %236, %269 : vector<16x16xf32>
    %c199 = arith.constant 199 : index
    %271 = memref.load %arg2[%c199] : memref<288xf32, #tpu.memory_space<smem>>
    %272 = vector.broadcast %271 : f32 to vector<16x16xf32>
    %273 = arith.mulf %272, %250 : vector<16x16xf32>
    %274 = arith.addf %240, %273 : vector<16x16xf32>
    %c235 = arith.constant 235 : index
    %275 = memref.load %arg2[%c235] : memref<288xf32, #tpu.memory_space<smem>>
    %276 = vector.broadcast %275 : f32 to vector<16x16xf32>
    %277 = arith.mulf %276, %250 : vector<16x16xf32>
    %278 = arith.addf %244, %277 : vector<16x16xf32>
    %c271 = arith.constant 271 : index
    %279 = memref.load %arg2[%c271] : memref<288xf32, #tpu.memory_space<smem>>
    %280 = vector.broadcast %279 : f32 to vector<16x16xf32>
    %281 = arith.mulf %280, %250 : vector<16x16xf32>
    %282 = arith.addf %248, %281 : vector<16x16xf32>
    %283 = vector.extract_strided_slice %180 {offsets = [3, 0, 0], sizes = [1, 16, 16], strides = [1, 1, 1]} : vector<4x16x16xf32> to vector<1x16x16xf32>
    %284 = vector.shape_cast %283 : vector<1x16x16xf32> to vector<16x16xf32>
    %c28 = arith.constant 28 : index
    %285 = memref.load %arg2[%c28] : memref<288xf32, #tpu.memory_space<smem>>
    %286 = vector.broadcast %285 : f32 to vector<16x16xf32>
    %287 = arith.mulf %286, %284 : vector<16x16xf32>
    %288 = arith.addf %254, %287 : vector<16x16xf32>
    %c64 = arith.constant 64 : index
    %289 = memref.load %arg2[%c64] : memref<288xf32, #tpu.memory_space<smem>>
    %290 = vector.broadcast %289 : f32 to vector<16x16xf32>
    %291 = arith.mulf %290, %284 : vector<16x16xf32>
    %292 = arith.addf %258, %291 : vector<16x16xf32>
    %c100 = arith.constant 100 : index
    %293 = memref.load %arg2[%c100] : memref<288xf32, #tpu.memory_space<smem>>
    %294 = vector.broadcast %293 : f32 to vector<16x16xf32>
    %295 = arith.mulf %294, %284 : vector<16x16xf32>
    %296 = arith.addf %262, %295 : vector<16x16xf32>
    %c136 = arith.constant 136 : index
    %297 = memref.load %arg2[%c136] : memref<288xf32, #tpu.memory_space<smem>>
    %298 = vector.broadcast %297 : f32 to vector<16x16xf32>
    %299 = arith.mulf %298, %284 : vector<16x16xf32>
    %300 = arith.addf %266, %299 : vector<16x16xf32>
    %c172 = arith.constant 172 : index
    %301 = memref.load %arg2[%c172] : memref<288xf32, #tpu.memory_space<smem>>
    %302 = vector.broadcast %301 : f32 to vector<16x16xf32>
    %303 = arith.mulf %302, %284 : vector<16x16xf32>
    %304 = arith.addf %270, %303 : vector<16x16xf32>
    %c208 = arith.constant 208 : index
    %305 = memref.load %arg2[%c208] : memref<288xf32, #tpu.memory_space<smem>>
    %306 = vector.broadcast %305 : f32 to vector<16x16xf32>
    %307 = arith.mulf %306, %284 : vector<16x16xf32>
    %308 = arith.addf %274, %307 : vector<16x16xf32>
    %c244 = arith.constant 244 : index
    %309 = memref.load %arg2[%c244] : memref<288xf32, #tpu.memory_space<smem>>
    %310 = vector.broadcast %309 : f32 to vector<16x16xf32>
    %311 = arith.mulf %310, %284 : vector<16x16xf32>
    %312 = arith.addf %278, %311 : vector<16x16xf32>
    %c280 = arith.constant 280 : index
    %313 = memref.load %arg2[%c280] : memref<288xf32, #tpu.memory_space<smem>>
    %314 = vector.broadcast %313 : f32 to vector<16x16xf32>
    %315 = arith.mulf %314, %284 : vector<16x16xf32>
    %316 = arith.addf %282, %315 : vector<16x16xf32>
    %c0_38 = arith.constant 0 : index
    %c0_39 = arith.constant 0 : index
    %c2_40 = arith.constant 2 : index
    %317 = vector.load %arg5[%c0_38, %c0_39, %c2_40] : memref<4x18x18xf32, #tpu.memory_space<vmem>>, vector<4x16x16xf32>
    %318 = vector.extract_strided_slice %317 {offsets = [0, 0, 0], sizes = [1, 16, 16], strides = [1, 1, 1]} : vector<4x16x16xf32> to vector<1x16x16xf32>
    %319 = vector.shape_cast %318 : vector<1x16x16xf32> to vector<16x16xf32>
    %c2_41 = arith.constant 2 : index
    %320 = memref.load %arg2[%c2_41] : memref<288xf32, #tpu.memory_space<smem>>
    %321 = vector.broadcast %320 : f32 to vector<16x16xf32>
    %322 = arith.mulf %321, %319 : vector<16x16xf32>
    %323 = arith.addf %288, %322 : vector<16x16xf32>
    %c38 = arith.constant 38 : index
    %324 = memref.load %arg2[%c38] : memref<288xf32, #tpu.memory_space<smem>>
    %325 = vector.broadcast %324 : f32 to vector<16x16xf32>
    %326 = arith.mulf %325, %319 : vector<16x16xf32>
    %327 = arith.addf %292, %326 : vector<16x16xf32>
    %c74 = arith.constant 74 : index
    %328 = memref.load %arg2[%c74] : memref<288xf32, #tpu.memory_space<smem>>
    %329 = vector.broadcast %328 : f32 to vector<16x16xf32>
    %330 = arith.mulf %329, %319 : vector<16x16xf32>
    %331 = arith.addf %296, %330 : vector<16x16xf32>
    %c110 = arith.constant 110 : index
    %332 = memref.load %arg2[%c110] : memref<288xf32, #tpu.memory_space<smem>>
    %333 = vector.broadcast %332 : f32 to vector<16x16xf32>
    %334 = arith.mulf %333, %319 : vector<16x16xf32>
    %335 = arith.addf %300, %334 : vector<16x16xf32>
    %c146 = arith.constant 146 : index
    %336 = memref.load %arg2[%c146] : memref<288xf32, #tpu.memory_space<smem>>
    %337 = vector.broadcast %336 : f32 to vector<16x16xf32>
    %338 = arith.mulf %337, %319 : vector<16x16xf32>
    %339 = arith.addf %304, %338 : vector<16x16xf32>
    %c182 = arith.constant 182 : index
    %340 = memref.load %arg2[%c182] : memref<288xf32, #tpu.memory_space<smem>>
    %341 = vector.broadcast %340 : f32 to vector<16x16xf32>
    %342 = arith.mulf %341, %319 : vector<16x16xf32>
    %343 = arith.addf %308, %342 : vector<16x16xf32>
    %c218 = arith.constant 218 : index
    %344 = memref.load %arg2[%c218] : memref<288xf32, #tpu.memory_space<smem>>
    %345 = vector.broadcast %344 : f32 to vector<16x16xf32>
    %346 = arith.mulf %345, %319 : vector<16x16xf32>
    %347 = arith.addf %312, %346 : vector<16x16xf32>
    %c254 = arith.constant 254 : index
    %348 = memref.load %arg2[%c254] : memref<288xf32, #tpu.memory_space<smem>>
    %349 = vector.broadcast %348 : f32 to vector<16x16xf32>
    %350 = arith.mulf %349, %319 : vector<16x16xf32>
    %351 = arith.addf %316, %350 : vector<16x16xf32>
    %352 = vector.extract_strided_slice %317 {offsets = [1, 0, 0], sizes = [1, 16, 16], strides = [1, 1, 1]} : vector<4x16x16xf32> to vector<1x16x16xf32>
    %353 = vector.shape_cast %352 : vector<1x16x16xf32> to vector<16x16xf32>
    %c11 = arith.constant 11 : index
    %354 = memref.load %arg2[%c11] : memref<288xf32, #tpu.memory_space<smem>>
    %355 = vector.broadcast %354 : f32 to vector<16x16xf32>
    %356 = arith.mulf %355, %353 : vector<16x16xf32>
    %357 = arith.addf %323, %356 : vector<16x16xf32>
    %c47 = arith.constant 47 : index
    %358 = memref.load %arg2[%c47] : memref<288xf32, #tpu.memory_space<smem>>
    %359 = vector.broadcast %358 : f32 to vector<16x16xf32>
    %360 = arith.mulf %359, %353 : vector<16x16xf32>
    %361 = arith.addf %327, %360 : vector<16x16xf32>
    %c83 = arith.constant 83 : index
    %362 = memref.load %arg2[%c83] : memref<288xf32, #tpu.memory_space<smem>>
    %363 = vector.broadcast %362 : f32 to vector<16x16xf32>
    %364 = arith.mulf %363, %353 : vector<16x16xf32>
    %365 = arith.addf %331, %364 : vector<16x16xf32>
    %c119 = arith.constant 119 : index
    %366 = memref.load %arg2[%c119] : memref<288xf32, #tpu.memory_space<smem>>
    %367 = vector.broadcast %366 : f32 to vector<16x16xf32>
    %368 = arith.mulf %367, %353 : vector<16x16xf32>
    %369 = arith.addf %335, %368 : vector<16x16xf32>
    %c155 = arith.constant 155 : index
    %370 = memref.load %arg2[%c155] : memref<288xf32, #tpu.memory_space<smem>>
    %371 = vector.broadcast %370 : f32 to vector<16x16xf32>
    %372 = arith.mulf %371, %353 : vector<16x16xf32>
    %373 = arith.addf %339, %372 : vector<16x16xf32>
    %c191 = arith.constant 191 : index
    %374 = memref.load %arg2[%c191] : memref<288xf32, #tpu.memory_space<smem>>
    %375 = vector.broadcast %374 : f32 to vector<16x16xf32>
    %376 = arith.mulf %375, %353 : vector<16x16xf32>
    %377 = arith.addf %343, %376 : vector<16x16xf32>
    %c227 = arith.constant 227 : index
    %378 = memref.load %arg2[%c227] : memref<288xf32, #tpu.memory_space<smem>>
    %379 = vector.broadcast %378 : f32 to vector<16x16xf32>
    %380 = arith.mulf %379, %353 : vector<16x16xf32>
    %381 = arith.addf %347, %380 : vector<16x16xf32>
    %c263 = arith.constant 263 : index
    %382 = memref.load %arg2[%c263] : memref<288xf32, #tpu.memory_space<smem>>
    %383 = vector.broadcast %382 : f32 to vector<16x16xf32>
    %384 = arith.mulf %383, %353 : vector<16x16xf32>
    %385 = arith.addf %351, %384 : vector<16x16xf32>
    %386 = vector.extract_strided_slice %317 {offsets = [2, 0, 0], sizes = [1, 16, 16], strides = [1, 1, 1]} : vector<4x16x16xf32> to vector<1x16x16xf32>
    %387 = vector.shape_cast %386 : vector<1x16x16xf32> to vector<16x16xf32>
    %c20 = arith.constant 20 : index
    %388 = memref.load %arg2[%c20] : memref<288xf32, #tpu.memory_space<smem>>
    %389 = vector.broadcast %388 : f32 to vector<16x16xf32>
    %390 = arith.mulf %389, %387 : vector<16x16xf32>
    %391 = arith.addf %357, %390 : vector<16x16xf32>
    %c56 = arith.constant 56 : index
    %392 = memref.load %arg2[%c56] : memref<288xf32, #tpu.memory_space<smem>>
    %393 = vector.broadcast %392 : f32 to vector<16x16xf32>
    %394 = arith.mulf %393, %387 : vector<16x16xf32>
    %395 = arith.addf %361, %394 : vector<16x16xf32>
    %c92 = arith.constant 92 : index
    %396 = memref.load %arg2[%c92] : memref<288xf32, #tpu.memory_space<smem>>
    %397 = vector.broadcast %396 : f32 to vector<16x16xf32>
    %398 = arith.mulf %397, %387 : vector<16x16xf32>
    %399 = arith.addf %365, %398 : vector<16x16xf32>
    %c128 = arith.constant 128 : index
    %400 = memref.load %arg2[%c128] : memref<288xf32, #tpu.memory_space<smem>>
    %401 = vector.broadcast %400 : f32 to vector<16x16xf32>
    %402 = arith.mulf %401, %387 : vector<16x16xf32>
    %403 = arith.addf %369, %402 : vector<16x16xf32>
    %c164 = arith.constant 164 : index
    %404 = memref.load %arg2[%c164] : memref<288xf32, #tpu.memory_space<smem>>
    %405 = vector.broadcast %404 : f32 to vector<16x16xf32>
    %406 = arith.mulf %405, %387 : vector<16x16xf32>
    %407 = arith.addf %373, %406 : vector<16x16xf32>
    %c200 = arith.constant 200 : index
    %408 = memref.load %arg2[%c200] : memref<288xf32, #tpu.memory_space<smem>>
    %409 = vector.broadcast %408 : f32 to vector<16x16xf32>
    %410 = arith.mulf %409, %387 : vector<16x16xf32>
    %411 = arith.addf %377, %410 : vector<16x16xf32>
    %c236 = arith.constant 236 : index
    %412 = memref.load %arg2[%c236] : memref<288xf32, #tpu.memory_space<smem>>
    %413 = vector.broadcast %412 : f32 to vector<16x16xf32>
    %414 = arith.mulf %413, %387 : vector<16x16xf32>
    %415 = arith.addf %381, %414 : vector<16x16xf32>
    %c272 = arith.constant 272 : index
    %416 = memref.load %arg2[%c272] : memref<288xf32, #tpu.memory_space<smem>>
    %417 = vector.broadcast %416 : f32 to vector<16x16xf32>
    %418 = arith.mulf %417, %387 : vector<16x16xf32>
    %419 = arith.addf %385, %418 : vector<16x16xf32>
    %420 = vector.extract_strided_slice %317 {offsets = [3, 0, 0], sizes = [1, 16, 16], strides = [1, 1, 1]} : vector<4x16x16xf32> to vector<1x16x16xf32>
    %421 = vector.shape_cast %420 : vector<1x16x16xf32> to vector<16x16xf32>
    %c29 = arith.constant 29 : index
    %422 = memref.load %arg2[%c29] : memref<288xf32, #tpu.memory_space<smem>>
    %423 = vector.broadcast %422 : f32 to vector<16x16xf32>
    %424 = arith.mulf %423, %421 : vector<16x16xf32>
    %425 = arith.addf %391, %424 : vector<16x16xf32>
    %c65 = arith.constant 65 : index
    %426 = memref.load %arg2[%c65] : memref<288xf32, #tpu.memory_space<smem>>
    %427 = vector.broadcast %426 : f32 to vector<16x16xf32>
    %428 = arith.mulf %427, %421 : vector<16x16xf32>
    %429 = arith.addf %395, %428 : vector<16x16xf32>
    %c101 = arith.constant 101 : index
    %430 = memref.load %arg2[%c101] : memref<288xf32, #tpu.memory_space<smem>>
    %431 = vector.broadcast %430 : f32 to vector<16x16xf32>
    %432 = arith.mulf %431, %421 : vector<16x16xf32>
    %433 = arith.addf %399, %432 : vector<16x16xf32>
    %c137 = arith.constant 137 : index
    %434 = memref.load %arg2[%c137] : memref<288xf32, #tpu.memory_space<smem>>
    %435 = vector.broadcast %434 : f32 to vector<16x16xf32>
    %436 = arith.mulf %435, %421 : vector<16x16xf32>
    %437 = arith.addf %403, %436 : vector<16x16xf32>
    %c173 = arith.constant 173 : index
    %438 = memref.load %arg2[%c173] : memref<288xf32, #tpu.memory_space<smem>>
    %439 = vector.broadcast %438 : f32 to vector<16x16xf32>
    %440 = arith.mulf %439, %421 : vector<16x16xf32>
    %441 = arith.addf %407, %440 : vector<16x16xf32>
    %c209 = arith.constant 209 : index
    %442 = memref.load %arg2[%c209] : memref<288xf32, #tpu.memory_space<smem>>
    %443 = vector.broadcast %442 : f32 to vector<16x16xf32>
    %444 = arith.mulf %443, %421 : vector<16x16xf32>
    %445 = arith.addf %411, %444 : vector<16x16xf32>
    %c245 = arith.constant 245 : index
    %446 = memref.load %arg2[%c245] : memref<288xf32, #tpu.memory_space<smem>>
    %447 = vector.broadcast %446 : f32 to vector<16x16xf32>
    %448 = arith.mulf %447, %421 : vector<16x16xf32>
    %449 = arith.addf %415, %448 : vector<16x16xf32>
    %c281 = arith.constant 281 : index
    %450 = memref.load %arg2[%c281] : memref<288xf32, #tpu.memory_space<smem>>
    %451 = vector.broadcast %450 : f32 to vector<16x16xf32>
    %452 = arith.mulf %451, %421 : vector<16x16xf32>
    %453 = arith.addf %419, %452 : vector<16x16xf32>
    %c0_42 = arith.constant 0 : index
    %c1_43 = arith.constant 1 : index
    %c0_44 = arith.constant 0 : index
    %454 = vector.load %arg5[%c0_42, %c1_43, %c0_44] : memref<4x18x18xf32, #tpu.memory_space<vmem>>, vector<4x16x16xf32>
    %455 = vector.extract_strided_slice %454 {offsets = [0, 0, 0], sizes = [1, 16, 16], strides = [1, 1, 1]} : vector<4x16x16xf32> to vector<1x16x16xf32>
    %456 = vector.shape_cast %455 : vector<1x16x16xf32> to vector<16x16xf32>
    %c3_45 = arith.constant 3 : index
    %457 = memref.load %arg2[%c3_45] : memref<288xf32, #tpu.memory_space<smem>>
    %458 = vector.broadcast %457 : f32 to vector<16x16xf32>
    %459 = arith.mulf %458, %456 : vector<16x16xf32>
    %460 = arith.addf %425, %459 : vector<16x16xf32>
    %c39 = arith.constant 39 : index
    %461 = memref.load %arg2[%c39] : memref<288xf32, #tpu.memory_space<smem>>
    %462 = vector.broadcast %461 : f32 to vector<16x16xf32>
    %463 = arith.mulf %462, %456 : vector<16x16xf32>
    %464 = arith.addf %429, %463 : vector<16x16xf32>
    %c75 = arith.constant 75 : index
    %465 = memref.load %arg2[%c75] : memref<288xf32, #tpu.memory_space<smem>>
    %466 = vector.broadcast %465 : f32 to vector<16x16xf32>
    %467 = arith.mulf %466, %456 : vector<16x16xf32>
    %468 = arith.addf %433, %467 : vector<16x16xf32>
    %c111 = arith.constant 111 : index
    %469 = memref.load %arg2[%c111] : memref<288xf32, #tpu.memory_space<smem>>
    %470 = vector.broadcast %469 : f32 to vector<16x16xf32>
    %471 = arith.mulf %470, %456 : vector<16x16xf32>
    %472 = arith.addf %437, %471 : vector<16x16xf32>
    %c147 = arith.constant 147 : index
    %473 = memref.load %arg2[%c147] : memref<288xf32, #tpu.memory_space<smem>>
    %474 = vector.broadcast %473 : f32 to vector<16x16xf32>
    %475 = arith.mulf %474, %456 : vector<16x16xf32>
    %476 = arith.addf %441, %475 : vector<16x16xf32>
    %c183 = arith.constant 183 : index
    %477 = memref.load %arg2[%c183] : memref<288xf32, #tpu.memory_space<smem>>
    %478 = vector.broadcast %477 : f32 to vector<16x16xf32>
    %479 = arith.mulf %478, %456 : vector<16x16xf32>
    %480 = arith.addf %445, %479 : vector<16x16xf32>
    %c219 = arith.constant 219 : index
    %481 = memref.load %arg2[%c219] : memref<288xf32, #tpu.memory_space<smem>>
    %482 = vector.broadcast %481 : f32 to vector<16x16xf32>
    %483 = arith.mulf %482, %456 : vector<16x16xf32>
    %484 = arith.addf %449, %483 : vector<16x16xf32>
    %c255 = arith.constant 255 : index
    %485 = memref.load %arg2[%c255] : memref<288xf32, #tpu.memory_space<smem>>
    %486 = vector.broadcast %485 : f32 to vector<16x16xf32>
    %487 = arith.mulf %486, %456 : vector<16x16xf32>
    %488 = arith.addf %453, %487 : vector<16x16xf32>
    %489 = vector.extract_strided_slice %454 {offsets = [1, 0, 0], sizes = [1, 16, 16], strides = [1, 1, 1]} : vector<4x16x16xf32> to vector<1x16x16xf32>
    %490 = vector.shape_cast %489 : vector<1x16x16xf32> to vector<16x16xf32>
    %c12 = arith.constant 12 : index
    %491 = memref.load %arg2[%c12] : memref<288xf32, #tpu.memory_space<smem>>
    %492 = vector.broadcast %491 : f32 to vector<16x16xf32>
    %493 = arith.mulf %492, %490 : vector<16x16xf32>
    %494 = arith.addf %460, %493 : vector<16x16xf32>
    %c48 = arith.constant 48 : index
    %495 = memref.load %arg2[%c48] : memref<288xf32, #tpu.memory_space<smem>>
    %496 = vector.broadcast %495 : f32 to vector<16x16xf32>
    %497 = arith.mulf %496, %490 : vector<16x16xf32>
    %498 = arith.addf %464, %497 : vector<16x16xf32>
    %c84 = arith.constant 84 : index
    %499 = memref.load %arg2[%c84] : memref<288xf32, #tpu.memory_space<smem>>
    %500 = vector.broadcast %499 : f32 to vector<16x16xf32>
    %501 = arith.mulf %500, %490 : vector<16x16xf32>
    %502 = arith.addf %468, %501 : vector<16x16xf32>
    %c120 = arith.constant 120 : index
    %503 = memref.load %arg2[%c120] : memref<288xf32, #tpu.memory_space<smem>>
    %504 = vector.broadcast %503 : f32 to vector<16x16xf32>
    %505 = arith.mulf %504, %490 : vector<16x16xf32>
    %506 = arith.addf %472, %505 : vector<16x16xf32>
    %c156 = arith.constant 156 : index
    %507 = memref.load %arg2[%c156] : memref<288xf32, #tpu.memory_space<smem>>
    %508 = vector.broadcast %507 : f32 to vector<16x16xf32>
    %509 = arith.mulf %508, %490 : vector<16x16xf32>
    %510 = arith.addf %476, %509 : vector<16x16xf32>
    %c192 = arith.constant 192 : index
    %511 = memref.load %arg2[%c192] : memref<288xf32, #tpu.memory_space<smem>>
    %512 = vector.broadcast %511 : f32 to vector<16x16xf32>
    %513 = arith.mulf %512, %490 : vector<16x16xf32>
    %514 = arith.addf %480, %513 : vector<16x16xf32>
    %c228 = arith.constant 228 : index
    %515 = memref.load %arg2[%c228] : memref<288xf32, #tpu.memory_space<smem>>
    %516 = vector.broadcast %515 : f32 to vector<16x16xf32>
    %517 = arith.mulf %516, %490 : vector<16x16xf32>
    %518 = arith.addf %484, %517 : vector<16x16xf32>
    %c264 = arith.constant 264 : index
    %519 = memref.load %arg2[%c264] : memref<288xf32, #tpu.memory_space<smem>>
    %520 = vector.broadcast %519 : f32 to vector<16x16xf32>
    %521 = arith.mulf %520, %490 : vector<16x16xf32>
    %522 = arith.addf %488, %521 : vector<16x16xf32>
    %523 = vector.extract_strided_slice %454 {offsets = [2, 0, 0], sizes = [1, 16, 16], strides = [1, 1, 1]} : vector<4x16x16xf32> to vector<1x16x16xf32>
    %524 = vector.shape_cast %523 : vector<1x16x16xf32> to vector<16x16xf32>
    %c21 = arith.constant 21 : index
    %525 = memref.load %arg2[%c21] : memref<288xf32, #tpu.memory_space<smem>>
    %526 = vector.broadcast %525 : f32 to vector<16x16xf32>
    %527 = arith.mulf %526, %524 : vector<16x16xf32>
    %528 = arith.addf %494, %527 : vector<16x16xf32>
    %c57 = arith.constant 57 : index
    %529 = memref.load %arg2[%c57] : memref<288xf32, #tpu.memory_space<smem>>
    %530 = vector.broadcast %529 : f32 to vector<16x16xf32>
    %531 = arith.mulf %530, %524 : vector<16x16xf32>
    %532 = arith.addf %498, %531 : vector<16x16xf32>
    %c93 = arith.constant 93 : index
    %533 = memref.load %arg2[%c93] : memref<288xf32, #tpu.memory_space<smem>>
    %534 = vector.broadcast %533 : f32 to vector<16x16xf32>
    %535 = arith.mulf %534, %524 : vector<16x16xf32>
    %536 = arith.addf %502, %535 : vector<16x16xf32>
    %c129 = arith.constant 129 : index
    %537 = memref.load %arg2[%c129] : memref<288xf32, #tpu.memory_space<smem>>
    %538 = vector.broadcast %537 : f32 to vector<16x16xf32>
    %539 = arith.mulf %538, %524 : vector<16x16xf32>
    %540 = arith.addf %506, %539 : vector<16x16xf32>
    %c165 = arith.constant 165 : index
    %541 = memref.load %arg2[%c165] : memref<288xf32, #tpu.memory_space<smem>>
    %542 = vector.broadcast %541 : f32 to vector<16x16xf32>
    %543 = arith.mulf %542, %524 : vector<16x16xf32>
    %544 = arith.addf %510, %543 : vector<16x16xf32>
    %c201 = arith.constant 201 : index
    %545 = memref.load %arg2[%c201] : memref<288xf32, #tpu.memory_space<smem>>
    %546 = vector.broadcast %545 : f32 to vector<16x16xf32>
    %547 = arith.mulf %546, %524 : vector<16x16xf32>
    %548 = arith.addf %514, %547 : vector<16x16xf32>
    %c237 = arith.constant 237 : index
    %549 = memref.load %arg2[%c237] : memref<288xf32, #tpu.memory_space<smem>>
    %550 = vector.broadcast %549 : f32 to vector<16x16xf32>
    %551 = arith.mulf %550, %524 : vector<16x16xf32>
    %552 = arith.addf %518, %551 : vector<16x16xf32>
    %c273 = arith.constant 273 : index
    %553 = memref.load %arg2[%c273] : memref<288xf32, #tpu.memory_space<smem>>
    %554 = vector.broadcast %553 : f32 to vector<16x16xf32>
    %555 = arith.mulf %554, %524 : vector<16x16xf32>
    %556 = arith.addf %522, %555 : vector<16x16xf32>
    %557 = vector.extract_strided_slice %454 {offsets = [3, 0, 0], sizes = [1, 16, 16], strides = [1, 1, 1]} : vector<4x16x16xf32> to vector<1x16x16xf32>
    %558 = vector.shape_cast %557 : vector<1x16x16xf32> to vector<16x16xf32>
    %c30 = arith.constant 30 : index
    %559 = memref.load %arg2[%c30] : memref<288xf32, #tpu.memory_space<smem>>
    %560 = vector.broadcast %559 : f32 to vector<16x16xf32>
    %561 = arith.mulf %560, %558 : vector<16x16xf32>
    %562 = arith.addf %528, %561 : vector<16x16xf32>
    %c66 = arith.constant 66 : index
    %563 = memref.load %arg2[%c66] : memref<288xf32, #tpu.memory_space<smem>>
    %564 = vector.broadcast %563 : f32 to vector<16x16xf32>
    %565 = arith.mulf %564, %558 : vector<16x16xf32>
    %566 = arith.addf %532, %565 : vector<16x16xf32>
    %c102 = arith.constant 102 : index
    %567 = memref.load %arg2[%c102] : memref<288xf32, #tpu.memory_space<smem>>
    %568 = vector.broadcast %567 : f32 to vector<16x16xf32>
    %569 = arith.mulf %568, %558 : vector<16x16xf32>
    %570 = arith.addf %536, %569 : vector<16x16xf32>
    %c138 = arith.constant 138 : index
    %571 = memref.load %arg2[%c138] : memref<288xf32, #tpu.memory_space<smem>>
    %572 = vector.broadcast %571 : f32 to vector<16x16xf32>
    %573 = arith.mulf %572, %558 : vector<16x16xf32>
    %574 = arith.addf %540, %573 : vector<16x16xf32>
    %c174 = arith.constant 174 : index
    %575 = memref.load %arg2[%c174] : memref<288xf32, #tpu.memory_space<smem>>
    %576 = vector.broadcast %575 : f32 to vector<16x16xf32>
    %577 = arith.mulf %576, %558 : vector<16x16xf32>
    %578 = arith.addf %544, %577 : vector<16x16xf32>
    %c210 = arith.constant 210 : index
    %579 = memref.load %arg2[%c210] : memref<288xf32, #tpu.memory_space<smem>>
    %580 = vector.broadcast %579 : f32 to vector<16x16xf32>
    %581 = arith.mulf %580, %558 : vector<16x16xf32>
    %582 = arith.addf %548, %581 : vector<16x16xf32>
    %c246 = arith.constant 246 : index
    %583 = memref.load %arg2[%c246] : memref<288xf32, #tpu.memory_space<smem>>
    %584 = vector.broadcast %583 : f32 to vector<16x16xf32>
    %585 = arith.mulf %584, %558 : vector<16x16xf32>
    %586 = arith.addf %552, %585 : vector<16x16xf32>
    %c282 = arith.constant 282 : index
    %587 = memref.load %arg2[%c282] : memref<288xf32, #tpu.memory_space<smem>>
    %588 = vector.broadcast %587 : f32 to vector<16x16xf32>
    %589 = arith.mulf %588, %558 : vector<16x16xf32>
    %590 = arith.addf %556, %589 : vector<16x16xf32>
    %c0_46 = arith.constant 0 : index
    %c1_47 = arith.constant 1 : index
    %c1_48 = arith.constant 1 : index
    %591 = vector.load %arg5[%c0_46, %c1_47, %c1_48] : memref<4x18x18xf32, #tpu.memory_space<vmem>>, vector<4x16x16xf32>
    %592 = vector.extract_strided_slice %591 {offsets = [0, 0, 0], sizes = [1, 16, 16], strides = [1, 1, 1]} : vector<4x16x16xf32> to vector<1x16x16xf32>
    %593 = vector.shape_cast %592 : vector<1x16x16xf32> to vector<16x16xf32>
    %c4_49 = arith.constant 4 : index
    %594 = memref.load %arg2[%c4_49] : memref<288xf32, #tpu.memory_space<smem>>
    %595 = vector.broadcast %594 : f32 to vector<16x16xf32>
    %596 = arith.mulf %595, %593 : vector<16x16xf32>
    %597 = arith.addf %562, %596 : vector<16x16xf32>
    %c40 = arith.constant 40 : index
    %598 = memref.load %arg2[%c40] : memref<288xf32, #tpu.memory_space<smem>>
    %599 = vector.broadcast %598 : f32 to vector<16x16xf32>
    %600 = arith.mulf %599, %593 : vector<16x16xf32>
    %601 = arith.addf %566, %600 : vector<16x16xf32>
    %c76 = arith.constant 76 : index
    %602 = memref.load %arg2[%c76] : memref<288xf32, #tpu.memory_space<smem>>
    %603 = vector.broadcast %602 : f32 to vector<16x16xf32>
    %604 = arith.mulf %603, %593 : vector<16x16xf32>
    %605 = arith.addf %570, %604 : vector<16x16xf32>
    %c112 = arith.constant 112 : index
    %606 = memref.load %arg2[%c112] : memref<288xf32, #tpu.memory_space<smem>>
    %607 = vector.broadcast %606 : f32 to vector<16x16xf32>
    %608 = arith.mulf %607, %593 : vector<16x16xf32>
    %609 = arith.addf %574, %608 : vector<16x16xf32>
    %c148 = arith.constant 148 : index
    %610 = memref.load %arg2[%c148] : memref<288xf32, #tpu.memory_space<smem>>
    %611 = vector.broadcast %610 : f32 to vector<16x16xf32>
    %612 = arith.mulf %611, %593 : vector<16x16xf32>
    %613 = arith.addf %578, %612 : vector<16x16xf32>
    %c184 = arith.constant 184 : index
    %614 = memref.load %arg2[%c184] : memref<288xf32, #tpu.memory_space<smem>>
    %615 = vector.broadcast %614 : f32 to vector<16x16xf32>
    %616 = arith.mulf %615, %593 : vector<16x16xf32>
    %617 = arith.addf %582, %616 : vector<16x16xf32>
    %c220 = arith.constant 220 : index
    %618 = memref.load %arg2[%c220] : memref<288xf32, #tpu.memory_space<smem>>
    %619 = vector.broadcast %618 : f32 to vector<16x16xf32>
    %620 = arith.mulf %619, %593 : vector<16x16xf32>
    %621 = arith.addf %586, %620 : vector<16x16xf32>
    %c256 = arith.constant 256 : index
    %622 = memref.load %arg2[%c256] : memref<288xf32, #tpu.memory_space<smem>>
    %623 = vector.broadcast %622 : f32 to vector<16x16xf32>
    %624 = arith.mulf %623, %593 : vector<16x16xf32>
    %625 = arith.addf %590, %624 : vector<16x16xf32>
    %626 = vector.extract_strided_slice %591 {offsets = [1, 0, 0], sizes = [1, 16, 16], strides = [1, 1, 1]} : vector<4x16x16xf32> to vector<1x16x16xf32>
    %627 = vector.shape_cast %626 : vector<1x16x16xf32> to vector<16x16xf32>
    %c13 = arith.constant 13 : index
    %628 = memref.load %arg2[%c13] : memref<288xf32, #tpu.memory_space<smem>>
    %629 = vector.broadcast %628 : f32 to vector<16x16xf32>
    %630 = arith.mulf %629, %627 : vector<16x16xf32>
    %631 = arith.addf %597, %630 : vector<16x16xf32>
    %c49 = arith.constant 49 : index
    %632 = memref.load %arg2[%c49] : memref<288xf32, #tpu.memory_space<smem>>
    %633 = vector.broadcast %632 : f32 to vector<16x16xf32>
    %634 = arith.mulf %633, %627 : vector<16x16xf32>
    %635 = arith.addf %601, %634 : vector<16x16xf32>
    %c85 = arith.constant 85 : index
    %636 = memref.load %arg2[%c85] : memref<288xf32, #tpu.memory_space<smem>>
    %637 = vector.broadcast %636 : f32 to vector<16x16xf32>
    %638 = arith.mulf %637, %627 : vector<16x16xf32>
    %639 = arith.addf %605, %638 : vector<16x16xf32>
    %c121 = arith.constant 121 : index
    %640 = memref.load %arg2[%c121] : memref<288xf32, #tpu.memory_space<smem>>
    %641 = vector.broadcast %640 : f32 to vector<16x16xf32>
    %642 = arith.mulf %641, %627 : vector<16x16xf32>
    %643 = arith.addf %609, %642 : vector<16x16xf32>
    %c157 = arith.constant 157 : index
    %644 = memref.load %arg2[%c157] : memref<288xf32, #tpu.memory_space<smem>>
    %645 = vector.broadcast %644 : f32 to vector<16x16xf32>
    %646 = arith.mulf %645, %627 : vector<16x16xf32>
    %647 = arith.addf %613, %646 : vector<16x16xf32>
    %c193 = arith.constant 193 : index
    %648 = memref.load %arg2[%c193] : memref<288xf32, #tpu.memory_space<smem>>
    %649 = vector.broadcast %648 : f32 to vector<16x16xf32>
    %650 = arith.mulf %649, %627 : vector<16x16xf32>
    %651 = arith.addf %617, %650 : vector<16x16xf32>
    %c229 = arith.constant 229 : index
    %652 = memref.load %arg2[%c229] : memref<288xf32, #tpu.memory_space<smem>>
    %653 = vector.broadcast %652 : f32 to vector<16x16xf32>
    %654 = arith.mulf %653, %627 : vector<16x16xf32>
    %655 = arith.addf %621, %654 : vector<16x16xf32>
    %c265 = arith.constant 265 : index
    %656 = memref.load %arg2[%c265] : memref<288xf32, #tpu.memory_space<smem>>
    %657 = vector.broadcast %656 : f32 to vector<16x16xf32>
    %658 = arith.mulf %657, %627 : vector<16x16xf32>
    %659 = arith.addf %625, %658 : vector<16x16xf32>
    %660 = vector.extract_strided_slice %591 {offsets = [2, 0, 0], sizes = [1, 16, 16], strides = [1, 1, 1]} : vector<4x16x16xf32> to vector<1x16x16xf32>
    %661 = vector.shape_cast %660 : vector<1x16x16xf32> to vector<16x16xf32>
    %c22 = arith.constant 22 : index
    %662 = memref.load %arg2[%c22] : memref<288xf32, #tpu.memory_space<smem>>
    %663 = vector.broadcast %662 : f32 to vector<16x16xf32>
    %664 = arith.mulf %663, %661 : vector<16x16xf32>
    %665 = arith.addf %631, %664 : vector<16x16xf32>
    %c58 = arith.constant 58 : index
    %666 = memref.load %arg2[%c58] : memref<288xf32, #tpu.memory_space<smem>>
    %667 = vector.broadcast %666 : f32 to vector<16x16xf32>
    %668 = arith.mulf %667, %661 : vector<16x16xf32>
    %669 = arith.addf %635, %668 : vector<16x16xf32>
    %c94 = arith.constant 94 : index
    %670 = memref.load %arg2[%c94] : memref<288xf32, #tpu.memory_space<smem>>
    %671 = vector.broadcast %670 : f32 to vector<16x16xf32>
    %672 = arith.mulf %671, %661 : vector<16x16xf32>
    %673 = arith.addf %639, %672 : vector<16x16xf32>
    %c130 = arith.constant 130 : index
    %674 = memref.load %arg2[%c130] : memref<288xf32, #tpu.memory_space<smem>>
    %675 = vector.broadcast %674 : f32 to vector<16x16xf32>
    %676 = arith.mulf %675, %661 : vector<16x16xf32>
    %677 = arith.addf %643, %676 : vector<16x16xf32>
    %c166 = arith.constant 166 : index
    %678 = memref.load %arg2[%c166] : memref<288xf32, #tpu.memory_space<smem>>
    %679 = vector.broadcast %678 : f32 to vector<16x16xf32>
    %680 = arith.mulf %679, %661 : vector<16x16xf32>
    %681 = arith.addf %647, %680 : vector<16x16xf32>
    %c202 = arith.constant 202 : index
    %682 = memref.load %arg2[%c202] : memref<288xf32, #tpu.memory_space<smem>>
    %683 = vector.broadcast %682 : f32 to vector<16x16xf32>
    %684 = arith.mulf %683, %661 : vector<16x16xf32>
    %685 = arith.addf %651, %684 : vector<16x16xf32>
    %c238 = arith.constant 238 : index
    %686 = memref.load %arg2[%c238] : memref<288xf32, #tpu.memory_space<smem>>
    %687 = vector.broadcast %686 : f32 to vector<16x16xf32>
    %688 = arith.mulf %687, %661 : vector<16x16xf32>
    %689 = arith.addf %655, %688 : vector<16x16xf32>
    %c274 = arith.constant 274 : index
    %690 = memref.load %arg2[%c274] : memref<288xf32, #tpu.memory_space<smem>>
    %691 = vector.broadcast %690 : f32 to vector<16x16xf32>
    %692 = arith.mulf %691, %661 : vector<16x16xf32>
    %693 = arith.addf %659, %692 : vector<16x16xf32>
    %694 = vector.extract_strided_slice %591 {offsets = [3, 0, 0], sizes = [1, 16, 16], strides = [1, 1, 1]} : vector<4x16x16xf32> to vector<1x16x16xf32>
    %695 = vector.shape_cast %694 : vector<1x16x16xf32> to vector<16x16xf32>
    %c31 = arith.constant 31 : index
    %696 = memref.load %arg2[%c31] : memref<288xf32, #tpu.memory_space<smem>>
    %697 = vector.broadcast %696 : f32 to vector<16x16xf32>
    %698 = arith.mulf %697, %695 : vector<16x16xf32>
    %699 = arith.addf %665, %698 : vector<16x16xf32>
    %c67 = arith.constant 67 : index
    %700 = memref.load %arg2[%c67] : memref<288xf32, #tpu.memory_space<smem>>
    %701 = vector.broadcast %700 : f32 to vector<16x16xf32>
    %702 = arith.mulf %701, %695 : vector<16x16xf32>
    %703 = arith.addf %669, %702 : vector<16x16xf32>
    %c103 = arith.constant 103 : index
    %704 = memref.load %arg2[%c103] : memref<288xf32, #tpu.memory_space<smem>>
    %705 = vector.broadcast %704 : f32 to vector<16x16xf32>
    %706 = arith.mulf %705, %695 : vector<16x16xf32>
    %707 = arith.addf %673, %706 : vector<16x16xf32>
    %c139 = arith.constant 139 : index
    %708 = memref.load %arg2[%c139] : memref<288xf32, #tpu.memory_space<smem>>
    %709 = vector.broadcast %708 : f32 to vector<16x16xf32>
    %710 = arith.mulf %709, %695 : vector<16x16xf32>
    %711 = arith.addf %677, %710 : vector<16x16xf32>
    %c175 = arith.constant 175 : index
    %712 = memref.load %arg2[%c175] : memref<288xf32, #tpu.memory_space<smem>>
    %713 = vector.broadcast %712 : f32 to vector<16x16xf32>
    %714 = arith.mulf %713, %695 : vector<16x16xf32>
    %715 = arith.addf %681, %714 : vector<16x16xf32>
    %c211 = arith.constant 211 : index
    %716 = memref.load %arg2[%c211] : memref<288xf32, #tpu.memory_space<smem>>
    %717 = vector.broadcast %716 : f32 to vector<16x16xf32>
    %718 = arith.mulf %717, %695 : vector<16x16xf32>
    %719 = arith.addf %685, %718 : vector<16x16xf32>
    %c247 = arith.constant 247 : index
    %720 = memref.load %arg2[%c247] : memref<288xf32, #tpu.memory_space<smem>>
    %721 = vector.broadcast %720 : f32 to vector<16x16xf32>
    %722 = arith.mulf %721, %695 : vector<16x16xf32>
    %723 = arith.addf %689, %722 : vector<16x16xf32>
    %c283 = arith.constant 283 : index
    %724 = memref.load %arg2[%c283] : memref<288xf32, #tpu.memory_space<smem>>
    %725 = vector.broadcast %724 : f32 to vector<16x16xf32>
    %726 = arith.mulf %725, %695 : vector<16x16xf32>
    %727 = arith.addf %693, %726 : vector<16x16xf32>
    %c0_50 = arith.constant 0 : index
    %c1_51 = arith.constant 1 : index
    %c2_52 = arith.constant 2 : index
    %728 = vector.load %arg5[%c0_50, %c1_51, %c2_52] : memref<4x18x18xf32, #tpu.memory_space<vmem>>, vector<4x16x16xf32>
    %729 = vector.extract_strided_slice %728 {offsets = [0, 0, 0], sizes = [1, 16, 16], strides = [1, 1, 1]} : vector<4x16x16xf32> to vector<1x16x16xf32>
    %730 = vector.shape_cast %729 : vector<1x16x16xf32> to vector<16x16xf32>
    %c5_53 = arith.constant 5 : index
    %731 = memref.load %arg2[%c5_53] : memref<288xf32, #tpu.memory_space<smem>>
    %732 = vector.broadcast %731 : f32 to vector<16x16xf32>
    %733 = arith.mulf %732, %730 : vector<16x16xf32>
    %734 = arith.addf %699, %733 : vector<16x16xf32>
    %c41 = arith.constant 41 : index
    %735 = memref.load %arg2[%c41] : memref<288xf32, #tpu.memory_space<smem>>
    %736 = vector.broadcast %735 : f32 to vector<16x16xf32>
    %737 = arith.mulf %736, %730 : vector<16x16xf32>
    %738 = arith.addf %703, %737 : vector<16x16xf32>
    %c77 = arith.constant 77 : index
    %739 = memref.load %arg2[%c77] : memref<288xf32, #tpu.memory_space<smem>>
    %740 = vector.broadcast %739 : f32 to vector<16x16xf32>
    %741 = arith.mulf %740, %730 : vector<16x16xf32>
    %742 = arith.addf %707, %741 : vector<16x16xf32>
    %c113 = arith.constant 113 : index
    %743 = memref.load %arg2[%c113] : memref<288xf32, #tpu.memory_space<smem>>
    %744 = vector.broadcast %743 : f32 to vector<16x16xf32>
    %745 = arith.mulf %744, %730 : vector<16x16xf32>
    %746 = arith.addf %711, %745 : vector<16x16xf32>
    %c149 = arith.constant 149 : index
    %747 = memref.load %arg2[%c149] : memref<288xf32, #tpu.memory_space<smem>>
    %748 = vector.broadcast %747 : f32 to vector<16x16xf32>
    %749 = arith.mulf %748, %730 : vector<16x16xf32>
    %750 = arith.addf %715, %749 : vector<16x16xf32>
    %c185 = arith.constant 185 : index
    %751 = memref.load %arg2[%c185] : memref<288xf32, #tpu.memory_space<smem>>
    %752 = vector.broadcast %751 : f32 to vector<16x16xf32>
    %753 = arith.mulf %752, %730 : vector<16x16xf32>
    %754 = arith.addf %719, %753 : vector<16x16xf32>
    %c221 = arith.constant 221 : index
    %755 = memref.load %arg2[%c221] : memref<288xf32, #tpu.memory_space<smem>>
    %756 = vector.broadcast %755 : f32 to vector<16x16xf32>
    %757 = arith.mulf %756, %730 : vector<16x16xf32>
    %758 = arith.addf %723, %757 : vector<16x16xf32>
    %c257 = arith.constant 257 : index
    %759 = memref.load %arg2[%c257] : memref<288xf32, #tpu.memory_space<smem>>
    %760 = vector.broadcast %759 : f32 to vector<16x16xf32>
    %761 = arith.mulf %760, %730 : vector<16x16xf32>
    %762 = arith.addf %727, %761 : vector<16x16xf32>
    %763 = vector.extract_strided_slice %728 {offsets = [1, 0, 0], sizes = [1, 16, 16], strides = [1, 1, 1]} : vector<4x16x16xf32> to vector<1x16x16xf32>
    %764 = vector.shape_cast %763 : vector<1x16x16xf32> to vector<16x16xf32>
    %c14 = arith.constant 14 : index
    %765 = memref.load %arg2[%c14] : memref<288xf32, #tpu.memory_space<smem>>
    %766 = vector.broadcast %765 : f32 to vector<16x16xf32>
    %767 = arith.mulf %766, %764 : vector<16x16xf32>
    %768 = arith.addf %734, %767 : vector<16x16xf32>
    %c50 = arith.constant 50 : index
    %769 = memref.load %arg2[%c50] : memref<288xf32, #tpu.memory_space<smem>>
    %770 = vector.broadcast %769 : f32 to vector<16x16xf32>
    %771 = arith.mulf %770, %764 : vector<16x16xf32>
    %772 = arith.addf %738, %771 : vector<16x16xf32>
    %c86 = arith.constant 86 : index
    %773 = memref.load %arg2[%c86] : memref<288xf32, #tpu.memory_space<smem>>
    %774 = vector.broadcast %773 : f32 to vector<16x16xf32>
    %775 = arith.mulf %774, %764 : vector<16x16xf32>
    %776 = arith.addf %742, %775 : vector<16x16xf32>
    %c122 = arith.constant 122 : index
    %777 = memref.load %arg2[%c122] : memref<288xf32, #tpu.memory_space<smem>>
    %778 = vector.broadcast %777 : f32 to vector<16x16xf32>
    %779 = arith.mulf %778, %764 : vector<16x16xf32>
    %780 = arith.addf %746, %779 : vector<16x16xf32>
    %c158 = arith.constant 158 : index
    %781 = memref.load %arg2[%c158] : memref<288xf32, #tpu.memory_space<smem>>
    %782 = vector.broadcast %781 : f32 to vector<16x16xf32>
    %783 = arith.mulf %782, %764 : vector<16x16xf32>
    %784 = arith.addf %750, %783 : vector<16x16xf32>
    %c194 = arith.constant 194 : index
    %785 = memref.load %arg2[%c194] : memref<288xf32, #tpu.memory_space<smem>>
    %786 = vector.broadcast %785 : f32 to vector<16x16xf32>
    %787 = arith.mulf %786, %764 : vector<16x16xf32>
    %788 = arith.addf %754, %787 : vector<16x16xf32>
    %c230 = arith.constant 230 : index
    %789 = memref.load %arg2[%c230] : memref<288xf32, #tpu.memory_space<smem>>
    %790 = vector.broadcast %789 : f32 to vector<16x16xf32>
    %791 = arith.mulf %790, %764 : vector<16x16xf32>
    %792 = arith.addf %758, %791 : vector<16x16xf32>
    %c266 = arith.constant 266 : index
    %793 = memref.load %arg2[%c266] : memref<288xf32, #tpu.memory_space<smem>>
    %794 = vector.broadcast %793 : f32 to vector<16x16xf32>
    %795 = arith.mulf %794, %764 : vector<16x16xf32>
    %796 = arith.addf %762, %795 : vector<16x16xf32>
    %797 = vector.extract_strided_slice %728 {offsets = [2, 0, 0], sizes = [1, 16, 16], strides = [1, 1, 1]} : vector<4x16x16xf32> to vector<1x16x16xf32>
    %798 = vector.shape_cast %797 : vector<1x16x16xf32> to vector<16x16xf32>
    %c23 = arith.constant 23 : index
    %799 = memref.load %arg2[%c23] : memref<288xf32, #tpu.memory_space<smem>>
    %800 = vector.broadcast %799 : f32 to vector<16x16xf32>
    %801 = arith.mulf %800, %798 : vector<16x16xf32>
    %802 = arith.addf %768, %801 : vector<16x16xf32>
    %c59 = arith.constant 59 : index
    %803 = memref.load %arg2[%c59] : memref<288xf32, #tpu.memory_space<smem>>
    %804 = vector.broadcast %803 : f32 to vector<16x16xf32>
    %805 = arith.mulf %804, %798 : vector<16x16xf32>
    %806 = arith.addf %772, %805 : vector<16x16xf32>
    %c95 = arith.constant 95 : index
    %807 = memref.load %arg2[%c95] : memref<288xf32, #tpu.memory_space<smem>>
    %808 = vector.broadcast %807 : f32 to vector<16x16xf32>
    %809 = arith.mulf %808, %798 : vector<16x16xf32>
    %810 = arith.addf %776, %809 : vector<16x16xf32>
    %c131 = arith.constant 131 : index
    %811 = memref.load %arg2[%c131] : memref<288xf32, #tpu.memory_space<smem>>
    %812 = vector.broadcast %811 : f32 to vector<16x16xf32>
    %813 = arith.mulf %812, %798 : vector<16x16xf32>
    %814 = arith.addf %780, %813 : vector<16x16xf32>
    %c167 = arith.constant 167 : index
    %815 = memref.load %arg2[%c167] : memref<288xf32, #tpu.memory_space<smem>>
    %816 = vector.broadcast %815 : f32 to vector<16x16xf32>
    %817 = arith.mulf %816, %798 : vector<16x16xf32>
    %818 = arith.addf %784, %817 : vector<16x16xf32>
    %c203 = arith.constant 203 : index
    %819 = memref.load %arg2[%c203] : memref<288xf32, #tpu.memory_space<smem>>
    %820 = vector.broadcast %819 : f32 to vector<16x16xf32>
    %821 = arith.mulf %820, %798 : vector<16x16xf32>
    %822 = arith.addf %788, %821 : vector<16x16xf32>
    %c239 = arith.constant 239 : index
    %823 = memref.load %arg2[%c239] : memref<288xf32, #tpu.memory_space<smem>>
    %824 = vector.broadcast %823 : f32 to vector<16x16xf32>
    %825 = arith.mulf %824, %798 : vector<16x16xf32>
    %826 = arith.addf %792, %825 : vector<16x16xf32>
    %c275 = arith.constant 275 : index
    %827 = memref.load %arg2[%c275] : memref<288xf32, #tpu.memory_space<smem>>
    %828 = vector.broadcast %827 : f32 to vector<16x16xf32>
    %829 = arith.mulf %828, %798 : vector<16x16xf32>
    %830 = arith.addf %796, %829 : vector<16x16xf32>
    %831 = vector.extract_strided_slice %728 {offsets = [3, 0, 0], sizes = [1, 16, 16], strides = [1, 1, 1]} : vector<4x16x16xf32> to vector<1x16x16xf32>
    %832 = vector.shape_cast %831 : vector<1x16x16xf32> to vector<16x16xf32>
    %c32 = arith.constant 32 : index
    %833 = memref.load %arg2[%c32] : memref<288xf32, #tpu.memory_space<smem>>
    %834 = vector.broadcast %833 : f32 to vector<16x16xf32>
    %835 = arith.mulf %834, %832 : vector<16x16xf32>
    %836 = arith.addf %802, %835 : vector<16x16xf32>
    %c68 = arith.constant 68 : index
    %837 = memref.load %arg2[%c68] : memref<288xf32, #tpu.memory_space<smem>>
    %838 = vector.broadcast %837 : f32 to vector<16x16xf32>
    %839 = arith.mulf %838, %832 : vector<16x16xf32>
    %840 = arith.addf %806, %839 : vector<16x16xf32>
    %c104 = arith.constant 104 : index
    %841 = memref.load %arg2[%c104] : memref<288xf32, #tpu.memory_space<smem>>
    %842 = vector.broadcast %841 : f32 to vector<16x16xf32>
    %843 = arith.mulf %842, %832 : vector<16x16xf32>
    %844 = arith.addf %810, %843 : vector<16x16xf32>
    %c140 = arith.constant 140 : index
    %845 = memref.load %arg2[%c140] : memref<288xf32, #tpu.memory_space<smem>>
    %846 = vector.broadcast %845 : f32 to vector<16x16xf32>
    %847 = arith.mulf %846, %832 : vector<16x16xf32>
    %848 = arith.addf %814, %847 : vector<16x16xf32>
    %c176 = arith.constant 176 : index
    %849 = memref.load %arg2[%c176] : memref<288xf32, #tpu.memory_space<smem>>
    %850 = vector.broadcast %849 : f32 to vector<16x16xf32>
    %851 = arith.mulf %850, %832 : vector<16x16xf32>
    %852 = arith.addf %818, %851 : vector<16x16xf32>
    %c212 = arith.constant 212 : index
    %853 = memref.load %arg2[%c212] : memref<288xf32, #tpu.memory_space<smem>>
    %854 = vector.broadcast %853 : f32 to vector<16x16xf32>
    %855 = arith.mulf %854, %832 : vector<16x16xf32>
    %856 = arith.addf %822, %855 : vector<16x16xf32>
    %c248 = arith.constant 248 : index
    %857 = memref.load %arg2[%c248] : memref<288xf32, #tpu.memory_space<smem>>
    %858 = vector.broadcast %857 : f32 to vector<16x16xf32>
    %859 = arith.mulf %858, %832 : vector<16x16xf32>
    %860 = arith.addf %826, %859 : vector<16x16xf32>
    %c284 = arith.constant 284 : index
    %861 = memref.load %arg2[%c284] : memref<288xf32, #tpu.memory_space<smem>>
    %862 = vector.broadcast %861 : f32 to vector<16x16xf32>
    %863 = arith.mulf %862, %832 : vector<16x16xf32>
    %864 = arith.addf %830, %863 : vector<16x16xf32>
    %c0_54 = arith.constant 0 : index
    %c2_55 = arith.constant 2 : index
    %c0_56 = arith.constant 0 : index
    %865 = vector.load %arg5[%c0_54, %c2_55, %c0_56] : memref<4x18x18xf32, #tpu.memory_space<vmem>>, vector<4x16x16xf32>
    %866 = vector.extract_strided_slice %865 {offsets = [0, 0, 0], sizes = [1, 16, 16], strides = [1, 1, 1]} : vector<4x16x16xf32> to vector<1x16x16xf32>
    %867 = vector.shape_cast %866 : vector<1x16x16xf32> to vector<16x16xf32>
    %c6_57 = arith.constant 6 : index
    %868 = memref.load %arg2[%c6_57] : memref<288xf32, #tpu.memory_space<smem>>
    %869 = vector.broadcast %868 : f32 to vector<16x16xf32>
    %870 = arith.mulf %869, %867 : vector<16x16xf32>
    %871 = arith.addf %836, %870 : vector<16x16xf32>
    %c42 = arith.constant 42 : index
    %872 = memref.load %arg2[%c42] : memref<288xf32, #tpu.memory_space<smem>>
    %873 = vector.broadcast %872 : f32 to vector<16x16xf32>
    %874 = arith.mulf %873, %867 : vector<16x16xf32>
    %875 = arith.addf %840, %874 : vector<16x16xf32>
    %c78 = arith.constant 78 : index
    %876 = memref.load %arg2[%c78] : memref<288xf32, #tpu.memory_space<smem>>
    %877 = vector.broadcast %876 : f32 to vector<16x16xf32>
    %878 = arith.mulf %877, %867 : vector<16x16xf32>
    %879 = arith.addf %844, %878 : vector<16x16xf32>
    %c114 = arith.constant 114 : index
    %880 = memref.load %arg2[%c114] : memref<288xf32, #tpu.memory_space<smem>>
    %881 = vector.broadcast %880 : f32 to vector<16x16xf32>
    %882 = arith.mulf %881, %867 : vector<16x16xf32>
    %883 = arith.addf %848, %882 : vector<16x16xf32>
    %c150 = arith.constant 150 : index
    %884 = memref.load %arg2[%c150] : memref<288xf32, #tpu.memory_space<smem>>
    %885 = vector.broadcast %884 : f32 to vector<16x16xf32>
    %886 = arith.mulf %885, %867 : vector<16x16xf32>
    %887 = arith.addf %852, %886 : vector<16x16xf32>
    %c186 = arith.constant 186 : index
    %888 = memref.load %arg2[%c186] : memref<288xf32, #tpu.memory_space<smem>>
    %889 = vector.broadcast %888 : f32 to vector<16x16xf32>
    %890 = arith.mulf %889, %867 : vector<16x16xf32>
    %891 = arith.addf %856, %890 : vector<16x16xf32>
    %c222 = arith.constant 222 : index
    %892 = memref.load %arg2[%c222] : memref<288xf32, #tpu.memory_space<smem>>
    %893 = vector.broadcast %892 : f32 to vector<16x16xf32>
    %894 = arith.mulf %893, %867 : vector<16x16xf32>
    %895 = arith.addf %860, %894 : vector<16x16xf32>
    %c258 = arith.constant 258 : index
    %896 = memref.load %arg2[%c258] : memref<288xf32, #tpu.memory_space<smem>>
    %897 = vector.broadcast %896 : f32 to vector<16x16xf32>
    %898 = arith.mulf %897, %867 : vector<16x16xf32>
    %899 = arith.addf %864, %898 : vector<16x16xf32>
    %900 = vector.extract_strided_slice %865 {offsets = [1, 0, 0], sizes = [1, 16, 16], strides = [1, 1, 1]} : vector<4x16x16xf32> to vector<1x16x16xf32>
    %901 = vector.shape_cast %900 : vector<1x16x16xf32> to vector<16x16xf32>
    %c15_58 = arith.constant 15 : index
    %902 = memref.load %arg2[%c15_58] : memref<288xf32, #tpu.memory_space<smem>>
    %903 = vector.broadcast %902 : f32 to vector<16x16xf32>
    %904 = arith.mulf %903, %901 : vector<16x16xf32>
    %905 = arith.addf %871, %904 : vector<16x16xf32>
    %c51 = arith.constant 51 : index
    %906 = memref.load %arg2[%c51] : memref<288xf32, #tpu.memory_space<smem>>
    %907 = vector.broadcast %906 : f32 to vector<16x16xf32>
    %908 = arith.mulf %907, %901 : vector<16x16xf32>
    %909 = arith.addf %875, %908 : vector<16x16xf32>
    %c87 = arith.constant 87 : index
    %910 = memref.load %arg2[%c87] : memref<288xf32, #tpu.memory_space<smem>>
    %911 = vector.broadcast %910 : f32 to vector<16x16xf32>
    %912 = arith.mulf %911, %901 : vector<16x16xf32>
    %913 = arith.addf %879, %912 : vector<16x16xf32>
    %c123 = arith.constant 123 : index
    %914 = memref.load %arg2[%c123] : memref<288xf32, #tpu.memory_space<smem>>
    %915 = vector.broadcast %914 : f32 to vector<16x16xf32>
    %916 = arith.mulf %915, %901 : vector<16x16xf32>
    %917 = arith.addf %883, %916 : vector<16x16xf32>
    %c159 = arith.constant 159 : index
    %918 = memref.load %arg2[%c159] : memref<288xf32, #tpu.memory_space<smem>>
    %919 = vector.broadcast %918 : f32 to vector<16x16xf32>
    %920 = arith.mulf %919, %901 : vector<16x16xf32>
    %921 = arith.addf %887, %920 : vector<16x16xf32>
    %c195 = arith.constant 195 : index
    %922 = memref.load %arg2[%c195] : memref<288xf32, #tpu.memory_space<smem>>
    %923 = vector.broadcast %922 : f32 to vector<16x16xf32>
    %924 = arith.mulf %923, %901 : vector<16x16xf32>
    %925 = arith.addf %891, %924 : vector<16x16xf32>
    %c231 = arith.constant 231 : index
    %926 = memref.load %arg2[%c231] : memref<288xf32, #tpu.memory_space<smem>>
    %927 = vector.broadcast %926 : f32 to vector<16x16xf32>
    %928 = arith.mulf %927, %901 : vector<16x16xf32>
    %929 = arith.addf %895, %928 : vector<16x16xf32>
    %c267 = arith.constant 267 : index
    %930 = memref.load %arg2[%c267] : memref<288xf32, #tpu.memory_space<smem>>
    %931 = vector.broadcast %930 : f32 to vector<16x16xf32>
    %932 = arith.mulf %931, %901 : vector<16x16xf32>
    %933 = arith.addf %899, %932 : vector<16x16xf32>
    %934 = vector.extract_strided_slice %865 {offsets = [2, 0, 0], sizes = [1, 16, 16], strides = [1, 1, 1]} : vector<4x16x16xf32> to vector<1x16x16xf32>
    %935 = vector.shape_cast %934 : vector<1x16x16xf32> to vector<16x16xf32>
    %c24 = arith.constant 24 : index
    %936 = memref.load %arg2[%c24] : memref<288xf32, #tpu.memory_space<smem>>
    %937 = vector.broadcast %936 : f32 to vector<16x16xf32>
    %938 = arith.mulf %937, %935 : vector<16x16xf32>
    %939 = arith.addf %905, %938 : vector<16x16xf32>
    %c60 = arith.constant 60 : index
    %940 = memref.load %arg2[%c60] : memref<288xf32, #tpu.memory_space<smem>>
    %941 = vector.broadcast %940 : f32 to vector<16x16xf32>
    %942 = arith.mulf %941, %935 : vector<16x16xf32>
    %943 = arith.addf %909, %942 : vector<16x16xf32>
    %c96 = arith.constant 96 : index
    %944 = memref.load %arg2[%c96] : memref<288xf32, #tpu.memory_space<smem>>
    %945 = vector.broadcast %944 : f32 to vector<16x16xf32>
    %946 = arith.mulf %945, %935 : vector<16x16xf32>
    %947 = arith.addf %913, %946 : vector<16x16xf32>
    %c132 = arith.constant 132 : index
    %948 = memref.load %arg2[%c132] : memref<288xf32, #tpu.memory_space<smem>>
    %949 = vector.broadcast %948 : f32 to vector<16x16xf32>
    %950 = arith.mulf %949, %935 : vector<16x16xf32>
    %951 = arith.addf %917, %950 : vector<16x16xf32>
    %c168 = arith.constant 168 : index
    %952 = memref.load %arg2[%c168] : memref<288xf32, #tpu.memory_space<smem>>
    %953 = vector.broadcast %952 : f32 to vector<16x16xf32>
    %954 = arith.mulf %953, %935 : vector<16x16xf32>
    %955 = arith.addf %921, %954 : vector<16x16xf32>
    %c204 = arith.constant 204 : index
    %956 = memref.load %arg2[%c204] : memref<288xf32, #tpu.memory_space<smem>>
    %957 = vector.broadcast %956 : f32 to vector<16x16xf32>
    %958 = arith.mulf %957, %935 : vector<16x16xf32>
    %959 = arith.addf %925, %958 : vector<16x16xf32>
    %c240 = arith.constant 240 : index
    %960 = memref.load %arg2[%c240] : memref<288xf32, #tpu.memory_space<smem>>
    %961 = vector.broadcast %960 : f32 to vector<16x16xf32>
    %962 = arith.mulf %961, %935 : vector<16x16xf32>
    %963 = arith.addf %929, %962 : vector<16x16xf32>
    %c276 = arith.constant 276 : index
    %964 = memref.load %arg2[%c276] : memref<288xf32, #tpu.memory_space<smem>>
    %965 = vector.broadcast %964 : f32 to vector<16x16xf32>
    %966 = arith.mulf %965, %935 : vector<16x16xf32>
    %967 = arith.addf %933, %966 : vector<16x16xf32>
    %968 = vector.extract_strided_slice %865 {offsets = [3, 0, 0], sizes = [1, 16, 16], strides = [1, 1, 1]} : vector<4x16x16xf32> to vector<1x16x16xf32>
    %969 = vector.shape_cast %968 : vector<1x16x16xf32> to vector<16x16xf32>
    %c33 = arith.constant 33 : index
    %970 = memref.load %arg2[%c33] : memref<288xf32, #tpu.memory_space<smem>>
    %971 = vector.broadcast %970 : f32 to vector<16x16xf32>
    %972 = arith.mulf %971, %969 : vector<16x16xf32>
    %973 = arith.addf %939, %972 : vector<16x16xf32>
    %c69 = arith.constant 69 : index
    %974 = memref.load %arg2[%c69] : memref<288xf32, #tpu.memory_space<smem>>
    %975 = vector.broadcast %974 : f32 to vector<16x16xf32>
    %976 = arith.mulf %975, %969 : vector<16x16xf32>
    %977 = arith.addf %943, %976 : vector<16x16xf32>
    %c105 = arith.constant 105 : index
    %978 = memref.load %arg2[%c105] : memref<288xf32, #tpu.memory_space<smem>>
    %979 = vector.broadcast %978 : f32 to vector<16x16xf32>
    %980 = arith.mulf %979, %969 : vector<16x16xf32>
    %981 = arith.addf %947, %980 : vector<16x16xf32>
    %c141 = arith.constant 141 : index
    %982 = memref.load %arg2[%c141] : memref<288xf32, #tpu.memory_space<smem>>
    %983 = vector.broadcast %982 : f32 to vector<16x16xf32>
    %984 = arith.mulf %983, %969 : vector<16x16xf32>
    %985 = arith.addf %951, %984 : vector<16x16xf32>
    %c177 = arith.constant 177 : index
    %986 = memref.load %arg2[%c177] : memref<288xf32, #tpu.memory_space<smem>>
    %987 = vector.broadcast %986 : f32 to vector<16x16xf32>
    %988 = arith.mulf %987, %969 : vector<16x16xf32>
    %989 = arith.addf %955, %988 : vector<16x16xf32>
    %c213 = arith.constant 213 : index
    %990 = memref.load %arg2[%c213] : memref<288xf32, #tpu.memory_space<smem>>
    %991 = vector.broadcast %990 : f32 to vector<16x16xf32>
    %992 = arith.mulf %991, %969 : vector<16x16xf32>
    %993 = arith.addf %959, %992 : vector<16x16xf32>
    %c249 = arith.constant 249 : index
    %994 = memref.load %arg2[%c249] : memref<288xf32, #tpu.memory_space<smem>>
    %995 = vector.broadcast %994 : f32 to vector<16x16xf32>
    %996 = arith.mulf %995, %969 : vector<16x16xf32>
    %997 = arith.addf %963, %996 : vector<16x16xf32>
    %c285 = arith.constant 285 : index
    %998 = memref.load %arg2[%c285] : memref<288xf32, #tpu.memory_space<smem>>
    %999 = vector.broadcast %998 : f32 to vector<16x16xf32>
    %1000 = arith.mulf %999, %969 : vector<16x16xf32>
    %1001 = arith.addf %967, %1000 : vector<16x16xf32>
    %c0_59 = arith.constant 0 : index
    %c2_60 = arith.constant 2 : index
    %c1_61 = arith.constant 1 : index
    %1002 = vector.load %arg5[%c0_59, %c2_60, %c1_61] : memref<4x18x18xf32, #tpu.memory_space<vmem>>, vector<4x16x16xf32>
    %1003 = vector.extract_strided_slice %1002 {offsets = [0, 0, 0], sizes = [1, 16, 16], strides = [1, 1, 1]} : vector<4x16x16xf32> to vector<1x16x16xf32>
    %1004 = vector.shape_cast %1003 : vector<1x16x16xf32> to vector<16x16xf32>
    %c7_62 = arith.constant 7 : index
    %1005 = memref.load %arg2[%c7_62] : memref<288xf32, #tpu.memory_space<smem>>
    %1006 = vector.broadcast %1005 : f32 to vector<16x16xf32>
    %1007 = arith.mulf %1006, %1004 : vector<16x16xf32>
    %1008 = arith.addf %973, %1007 : vector<16x16xf32>
    %c43 = arith.constant 43 : index
    %1009 = memref.load %arg2[%c43] : memref<288xf32, #tpu.memory_space<smem>>
    %1010 = vector.broadcast %1009 : f32 to vector<16x16xf32>
    %1011 = arith.mulf %1010, %1004 : vector<16x16xf32>
    %1012 = arith.addf %977, %1011 : vector<16x16xf32>
    %c79 = arith.constant 79 : index
    %1013 = memref.load %arg2[%c79] : memref<288xf32, #tpu.memory_space<smem>>
    %1014 = vector.broadcast %1013 : f32 to vector<16x16xf32>
    %1015 = arith.mulf %1014, %1004 : vector<16x16xf32>
    %1016 = arith.addf %981, %1015 : vector<16x16xf32>
    %c115 = arith.constant 115 : index
    %1017 = memref.load %arg2[%c115] : memref<288xf32, #tpu.memory_space<smem>>
    %1018 = vector.broadcast %1017 : f32 to vector<16x16xf32>
    %1019 = arith.mulf %1018, %1004 : vector<16x16xf32>
    %1020 = arith.addf %985, %1019 : vector<16x16xf32>
    %c151 = arith.constant 151 : index
    %1021 = memref.load %arg2[%c151] : memref<288xf32, #tpu.memory_space<smem>>
    %1022 = vector.broadcast %1021 : f32 to vector<16x16xf32>
    %1023 = arith.mulf %1022, %1004 : vector<16x16xf32>
    %1024 = arith.addf %989, %1023 : vector<16x16xf32>
    %c187 = arith.constant 187 : index
    %1025 = memref.load %arg2[%c187] : memref<288xf32, #tpu.memory_space<smem>>
    %1026 = vector.broadcast %1025 : f32 to vector<16x16xf32>
    %1027 = arith.mulf %1026, %1004 : vector<16x16xf32>
    %1028 = arith.addf %993, %1027 : vector<16x16xf32>
    %c223 = arith.constant 223 : index
    %1029 = memref.load %arg2[%c223] : memref<288xf32, #tpu.memory_space<smem>>
    %1030 = vector.broadcast %1029 : f32 to vector<16x16xf32>
    %1031 = arith.mulf %1030, %1004 : vector<16x16xf32>
    %1032 = arith.addf %997, %1031 : vector<16x16xf32>
    %c259 = arith.constant 259 : index
    %1033 = memref.load %arg2[%c259] : memref<288xf32, #tpu.memory_space<smem>>
    %1034 = vector.broadcast %1033 : f32 to vector<16x16xf32>
    %1035 = arith.mulf %1034, %1004 : vector<16x16xf32>
    %1036 = arith.addf %1001, %1035 : vector<16x16xf32>
    %1037 = vector.extract_strided_slice %1002 {offsets = [1, 0, 0], sizes = [1, 16, 16], strides = [1, 1, 1]} : vector<4x16x16xf32> to vector<1x16x16xf32>
    %1038 = vector.shape_cast %1037 : vector<1x16x16xf32> to vector<16x16xf32>
    %c16 = arith.constant 16 : index
    %1039 = memref.load %arg2[%c16] : memref<288xf32, #tpu.memory_space<smem>>
    %1040 = vector.broadcast %1039 : f32 to vector<16x16xf32>
    %1041 = arith.mulf %1040, %1038 : vector<16x16xf32>
    %1042 = arith.addf %1008, %1041 : vector<16x16xf32>
    %c52 = arith.constant 52 : index
    %1043 = memref.load %arg2[%c52] : memref<288xf32, #tpu.memory_space<smem>>
    %1044 = vector.broadcast %1043 : f32 to vector<16x16xf32>
    %1045 = arith.mulf %1044, %1038 : vector<16x16xf32>
    %1046 = arith.addf %1012, %1045 : vector<16x16xf32>
    %c88 = arith.constant 88 : index
    %1047 = memref.load %arg2[%c88] : memref<288xf32, #tpu.memory_space<smem>>
    %1048 = vector.broadcast %1047 : f32 to vector<16x16xf32>
    %1049 = arith.mulf %1048, %1038 : vector<16x16xf32>
    %1050 = arith.addf %1016, %1049 : vector<16x16xf32>
    %c124 = arith.constant 124 : index
    %1051 = memref.load %arg2[%c124] : memref<288xf32, #tpu.memory_space<smem>>
    %1052 = vector.broadcast %1051 : f32 to vector<16x16xf32>
    %1053 = arith.mulf %1052, %1038 : vector<16x16xf32>
    %1054 = arith.addf %1020, %1053 : vector<16x16xf32>
    %c160 = arith.constant 160 : index
    %1055 = memref.load %arg2[%c160] : memref<288xf32, #tpu.memory_space<smem>>
    %1056 = vector.broadcast %1055 : f32 to vector<16x16xf32>
    %1057 = arith.mulf %1056, %1038 : vector<16x16xf32>
    %1058 = arith.addf %1024, %1057 : vector<16x16xf32>
    %c196 = arith.constant 196 : index
    %1059 = memref.load %arg2[%c196] : memref<288xf32, #tpu.memory_space<smem>>
    %1060 = vector.broadcast %1059 : f32 to vector<16x16xf32>
    %1061 = arith.mulf %1060, %1038 : vector<16x16xf32>
    %1062 = arith.addf %1028, %1061 : vector<16x16xf32>
    %c232 = arith.constant 232 : index
    %1063 = memref.load %arg2[%c232] : memref<288xf32, #tpu.memory_space<smem>>
    %1064 = vector.broadcast %1063 : f32 to vector<16x16xf32>
    %1065 = arith.mulf %1064, %1038 : vector<16x16xf32>
    %1066 = arith.addf %1032, %1065 : vector<16x16xf32>
    %c268 = arith.constant 268 : index
    %1067 = memref.load %arg2[%c268] : memref<288xf32, #tpu.memory_space<smem>>
    %1068 = vector.broadcast %1067 : f32 to vector<16x16xf32>
    %1069 = arith.mulf %1068, %1038 : vector<16x16xf32>
    %1070 = arith.addf %1036, %1069 : vector<16x16xf32>
    %1071 = vector.extract_strided_slice %1002 {offsets = [2, 0, 0], sizes = [1, 16, 16], strides = [1, 1, 1]} : vector<4x16x16xf32> to vector<1x16x16xf32>
    %1072 = vector.shape_cast %1071 : vector<1x16x16xf32> to vector<16x16xf32>
    %c25 = arith.constant 25 : index
    %1073 = memref.load %arg2[%c25] : memref<288xf32, #tpu.memory_space<smem>>
    %1074 = vector.broadcast %1073 : f32 to vector<16x16xf32>
    %1075 = arith.mulf %1074, %1072 : vector<16x16xf32>
    %1076 = arith.addf %1042, %1075 : vector<16x16xf32>
    %c61 = arith.constant 61 : index
    %1077 = memref.load %arg2[%c61] : memref<288xf32, #tpu.memory_space<smem>>
    %1078 = vector.broadcast %1077 : f32 to vector<16x16xf32>
    %1079 = arith.mulf %1078, %1072 : vector<16x16xf32>
    %1080 = arith.addf %1046, %1079 : vector<16x16xf32>
    %c97 = arith.constant 97 : index
    %1081 = memref.load %arg2[%c97] : memref<288xf32, #tpu.memory_space<smem>>
    %1082 = vector.broadcast %1081 : f32 to vector<16x16xf32>
    %1083 = arith.mulf %1082, %1072 : vector<16x16xf32>
    %1084 = arith.addf %1050, %1083 : vector<16x16xf32>
    %c133 = arith.constant 133 : index
    %1085 = memref.load %arg2[%c133] : memref<288xf32, #tpu.memory_space<smem>>
    %1086 = vector.broadcast %1085 : f32 to vector<16x16xf32>
    %1087 = arith.mulf %1086, %1072 : vector<16x16xf32>
    %1088 = arith.addf %1054, %1087 : vector<16x16xf32>
    %c169 = arith.constant 169 : index
    %1089 = memref.load %arg2[%c169] : memref<288xf32, #tpu.memory_space<smem>>
    %1090 = vector.broadcast %1089 : f32 to vector<16x16xf32>
    %1091 = arith.mulf %1090, %1072 : vector<16x16xf32>
    %1092 = arith.addf %1058, %1091 : vector<16x16xf32>
    %c205 = arith.constant 205 : index
    %1093 = memref.load %arg2[%c205] : memref<288xf32, #tpu.memory_space<smem>>
    %1094 = vector.broadcast %1093 : f32 to vector<16x16xf32>
    %1095 = arith.mulf %1094, %1072 : vector<16x16xf32>
    %1096 = arith.addf %1062, %1095 : vector<16x16xf32>
    %c241 = arith.constant 241 : index
    %1097 = memref.load %arg2[%c241] : memref<288xf32, #tpu.memory_space<smem>>
    %1098 = vector.broadcast %1097 : f32 to vector<16x16xf32>
    %1099 = arith.mulf %1098, %1072 : vector<16x16xf32>
    %1100 = arith.addf %1066, %1099 : vector<16x16xf32>
    %c277 = arith.constant 277 : index
    %1101 = memref.load %arg2[%c277] : memref<288xf32, #tpu.memory_space<smem>>
    %1102 = vector.broadcast %1101 : f32 to vector<16x16xf32>
    %1103 = arith.mulf %1102, %1072 : vector<16x16xf32>
    %1104 = arith.addf %1070, %1103 : vector<16x16xf32>
    %1105 = vector.extract_strided_slice %1002 {offsets = [3, 0, 0], sizes = [1, 16, 16], strides = [1, 1, 1]} : vector<4x16x16xf32> to vector<1x16x16xf32>
    %1106 = vector.shape_cast %1105 : vector<1x16x16xf32> to vector<16x16xf32>
    %c34 = arith.constant 34 : index
    %1107 = memref.load %arg2[%c34] : memref<288xf32, #tpu.memory_space<smem>>
    %1108 = vector.broadcast %1107 : f32 to vector<16x16xf32>
    %1109 = arith.mulf %1108, %1106 : vector<16x16xf32>
    %1110 = arith.addf %1076, %1109 : vector<16x16xf32>
    %c70 = arith.constant 70 : index
    %1111 = memref.load %arg2[%c70] : memref<288xf32, #tpu.memory_space<smem>>
    %1112 = vector.broadcast %1111 : f32 to vector<16x16xf32>
    %1113 = arith.mulf %1112, %1106 : vector<16x16xf32>
    %1114 = arith.addf %1080, %1113 : vector<16x16xf32>
    %c106 = arith.constant 106 : index
    %1115 = memref.load %arg2[%c106] : memref<288xf32, #tpu.memory_space<smem>>
    %1116 = vector.broadcast %1115 : f32 to vector<16x16xf32>
    %1117 = arith.mulf %1116, %1106 : vector<16x16xf32>
    %1118 = arith.addf %1084, %1117 : vector<16x16xf32>
    %c142 = arith.constant 142 : index
    %1119 = memref.load %arg2[%c142] : memref<288xf32, #tpu.memory_space<smem>>
    %1120 = vector.broadcast %1119 : f32 to vector<16x16xf32>
    %1121 = arith.mulf %1120, %1106 : vector<16x16xf32>
    %1122 = arith.addf %1088, %1121 : vector<16x16xf32>
    %c178 = arith.constant 178 : index
    %1123 = memref.load %arg2[%c178] : memref<288xf32, #tpu.memory_space<smem>>
    %1124 = vector.broadcast %1123 : f32 to vector<16x16xf32>
    %1125 = arith.mulf %1124, %1106 : vector<16x16xf32>
    %1126 = arith.addf %1092, %1125 : vector<16x16xf32>
    %c214 = arith.constant 214 : index
    %1127 = memref.load %arg2[%c214] : memref<288xf32, #tpu.memory_space<smem>>
    %1128 = vector.broadcast %1127 : f32 to vector<16x16xf32>
    %1129 = arith.mulf %1128, %1106 : vector<16x16xf32>
    %1130 = arith.addf %1096, %1129 : vector<16x16xf32>
    %c250 = arith.constant 250 : index
    %1131 = memref.load %arg2[%c250] : memref<288xf32, #tpu.memory_space<smem>>
    %1132 = vector.broadcast %1131 : f32 to vector<16x16xf32>
    %1133 = arith.mulf %1132, %1106 : vector<16x16xf32>
    %1134 = arith.addf %1100, %1133 : vector<16x16xf32>
    %c286 = arith.constant 286 : index
    %1135 = memref.load %arg2[%c286] : memref<288xf32, #tpu.memory_space<smem>>
    %1136 = vector.broadcast %1135 : f32 to vector<16x16xf32>
    %1137 = arith.mulf %1136, %1106 : vector<16x16xf32>
    %1138 = arith.addf %1104, %1137 : vector<16x16xf32>
    %c0_63 = arith.constant 0 : index
    %c2_64 = arith.constant 2 : index
    %c2_65 = arith.constant 2 : index
    %1139 = vector.load %arg5[%c0_63, %c2_64, %c2_65] : memref<4x18x18xf32, #tpu.memory_space<vmem>>, vector<4x16x16xf32>
    %1140 = vector.extract_strided_slice %1139 {offsets = [0, 0, 0], sizes = [1, 16, 16], strides = [1, 1, 1]} : vector<4x16x16xf32> to vector<1x16x16xf32>
    %1141 = vector.shape_cast %1140 : vector<1x16x16xf32> to vector<16x16xf32>
    %c8 = arith.constant 8 : index
    %1142 = memref.load %arg2[%c8] : memref<288xf32, #tpu.memory_space<smem>>
    %1143 = vector.broadcast %1142 : f32 to vector<16x16xf32>
    %1144 = arith.mulf %1143, %1141 : vector<16x16xf32>
    %1145 = arith.addf %1110, %1144 : vector<16x16xf32>
    %c44 = arith.constant 44 : index
    %1146 = memref.load %arg2[%c44] : memref<288xf32, #tpu.memory_space<smem>>
    %1147 = vector.broadcast %1146 : f32 to vector<16x16xf32>
    %1148 = arith.mulf %1147, %1141 : vector<16x16xf32>
    %1149 = arith.addf %1114, %1148 : vector<16x16xf32>
    %c80 = arith.constant 80 : index
    %1150 = memref.load %arg2[%c80] : memref<288xf32, #tpu.memory_space<smem>>
    %1151 = vector.broadcast %1150 : f32 to vector<16x16xf32>
    %1152 = arith.mulf %1151, %1141 : vector<16x16xf32>
    %1153 = arith.addf %1118, %1152 : vector<16x16xf32>
    %c116 = arith.constant 116 : index
    %1154 = memref.load %arg2[%c116] : memref<288xf32, #tpu.memory_space<smem>>
    %1155 = vector.broadcast %1154 : f32 to vector<16x16xf32>
    %1156 = arith.mulf %1155, %1141 : vector<16x16xf32>
    %1157 = arith.addf %1122, %1156 : vector<16x16xf32>
    %c152 = arith.constant 152 : index
    %1158 = memref.load %arg2[%c152] : memref<288xf32, #tpu.memory_space<smem>>
    %1159 = vector.broadcast %1158 : f32 to vector<16x16xf32>
    %1160 = arith.mulf %1159, %1141 : vector<16x16xf32>
    %1161 = arith.addf %1126, %1160 : vector<16x16xf32>
    %c188 = arith.constant 188 : index
    %1162 = memref.load %arg2[%c188] : memref<288xf32, #tpu.memory_space<smem>>
    %1163 = vector.broadcast %1162 : f32 to vector<16x16xf32>
    %1164 = arith.mulf %1163, %1141 : vector<16x16xf32>
    %1165 = arith.addf %1130, %1164 : vector<16x16xf32>
    %c224 = arith.constant 224 : index
    %1166 = memref.load %arg2[%c224] : memref<288xf32, #tpu.memory_space<smem>>
    %1167 = vector.broadcast %1166 : f32 to vector<16x16xf32>
    %1168 = arith.mulf %1167, %1141 : vector<16x16xf32>
    %1169 = arith.addf %1134, %1168 : vector<16x16xf32>
    %c260 = arith.constant 260 : index
    %1170 = memref.load %arg2[%c260] : memref<288xf32, #tpu.memory_space<smem>>
    %1171 = vector.broadcast %1170 : f32 to vector<16x16xf32>
    %1172 = arith.mulf %1171, %1141 : vector<16x16xf32>
    %1173 = arith.addf %1138, %1172 : vector<16x16xf32>
    %1174 = vector.extract_strided_slice %1139 {offsets = [1, 0, 0], sizes = [1, 16, 16], strides = [1, 1, 1]} : vector<4x16x16xf32> to vector<1x16x16xf32>
    %1175 = vector.shape_cast %1174 : vector<1x16x16xf32> to vector<16x16xf32>
    %c17_66 = arith.constant 17 : index
    %1176 = memref.load %arg2[%c17_66] : memref<288xf32, #tpu.memory_space<smem>>
    %1177 = vector.broadcast %1176 : f32 to vector<16x16xf32>
    %1178 = arith.mulf %1177, %1175 : vector<16x16xf32>
    %1179 = arith.addf %1145, %1178 : vector<16x16xf32>
    %c53 = arith.constant 53 : index
    %1180 = memref.load %arg2[%c53] : memref<288xf32, #tpu.memory_space<smem>>
    %1181 = vector.broadcast %1180 : f32 to vector<16x16xf32>
    %1182 = arith.mulf %1181, %1175 : vector<16x16xf32>
    %1183 = arith.addf %1149, %1182 : vector<16x16xf32>
    %c89 = arith.constant 89 : index
    %1184 = memref.load %arg2[%c89] : memref<288xf32, #tpu.memory_space<smem>>
    %1185 = vector.broadcast %1184 : f32 to vector<16x16xf32>
    %1186 = arith.mulf %1185, %1175 : vector<16x16xf32>
    %1187 = arith.addf %1153, %1186 : vector<16x16xf32>
    %c125 = arith.constant 125 : index
    %1188 = memref.load %arg2[%c125] : memref<288xf32, #tpu.memory_space<smem>>
    %1189 = vector.broadcast %1188 : f32 to vector<16x16xf32>
    %1190 = arith.mulf %1189, %1175 : vector<16x16xf32>
    %1191 = arith.addf %1157, %1190 : vector<16x16xf32>
    %c161 = arith.constant 161 : index
    %1192 = memref.load %arg2[%c161] : memref<288xf32, #tpu.memory_space<smem>>
    %1193 = vector.broadcast %1192 : f32 to vector<16x16xf32>
    %1194 = arith.mulf %1193, %1175 : vector<16x16xf32>
    %1195 = arith.addf %1161, %1194 : vector<16x16xf32>
    %c197 = arith.constant 197 : index
    %1196 = memref.load %arg2[%c197] : memref<288xf32, #tpu.memory_space<smem>>
    %1197 = vector.broadcast %1196 : f32 to vector<16x16xf32>
    %1198 = arith.mulf %1197, %1175 : vector<16x16xf32>
    %1199 = arith.addf %1165, %1198 : vector<16x16xf32>
    %c233 = arith.constant 233 : index
    %1200 = memref.load %arg2[%c233] : memref<288xf32, #tpu.memory_space<smem>>
    %1201 = vector.broadcast %1200 : f32 to vector<16x16xf32>
    %1202 = arith.mulf %1201, %1175 : vector<16x16xf32>
    %1203 = arith.addf %1169, %1202 : vector<16x16xf32>
    %c269 = arith.constant 269 : index
    %1204 = memref.load %arg2[%c269] : memref<288xf32, #tpu.memory_space<smem>>
    %1205 = vector.broadcast %1204 : f32 to vector<16x16xf32>
    %1206 = arith.mulf %1205, %1175 : vector<16x16xf32>
    %1207 = arith.addf %1173, %1206 : vector<16x16xf32>
    %1208 = vector.extract_strided_slice %1139 {offsets = [2, 0, 0], sizes = [1, 16, 16], strides = [1, 1, 1]} : vector<4x16x16xf32> to vector<1x16x16xf32>
    %1209 = vector.shape_cast %1208 : vector<1x16x16xf32> to vector<16x16xf32>
    %c26 = arith.constant 26 : index
    %1210 = memref.load %arg2[%c26] : memref<288xf32, #tpu.memory_space<smem>>
    %1211 = vector.broadcast %1210 : f32 to vector<16x16xf32>
    %1212 = arith.mulf %1211, %1209 : vector<16x16xf32>
    %1213 = arith.addf %1179, %1212 : vector<16x16xf32>
    %c62 = arith.constant 62 : index
    %1214 = memref.load %arg2[%c62] : memref<288xf32, #tpu.memory_space<smem>>
    %1215 = vector.broadcast %1214 : f32 to vector<16x16xf32>
    %1216 = arith.mulf %1215, %1209 : vector<16x16xf32>
    %1217 = arith.addf %1183, %1216 : vector<16x16xf32>
    %c98 = arith.constant 98 : index
    %1218 = memref.load %arg2[%c98] : memref<288xf32, #tpu.memory_space<smem>>
    %1219 = vector.broadcast %1218 : f32 to vector<16x16xf32>
    %1220 = arith.mulf %1219, %1209 : vector<16x16xf32>
    %1221 = arith.addf %1187, %1220 : vector<16x16xf32>
    %c134 = arith.constant 134 : index
    %1222 = memref.load %arg2[%c134] : memref<288xf32, #tpu.memory_space<smem>>
    %1223 = vector.broadcast %1222 : f32 to vector<16x16xf32>
    %1224 = arith.mulf %1223, %1209 : vector<16x16xf32>
    %1225 = arith.addf %1191, %1224 : vector<16x16xf32>
    %c170 = arith.constant 170 : index
    %1226 = memref.load %arg2[%c170] : memref<288xf32, #tpu.memory_space<smem>>
    %1227 = vector.broadcast %1226 : f32 to vector<16x16xf32>
    %1228 = arith.mulf %1227, %1209 : vector<16x16xf32>
    %1229 = arith.addf %1195, %1228 : vector<16x16xf32>
    %c206 = arith.constant 206 : index
    %1230 = memref.load %arg2[%c206] : memref<288xf32, #tpu.memory_space<smem>>
    %1231 = vector.broadcast %1230 : f32 to vector<16x16xf32>
    %1232 = arith.mulf %1231, %1209 : vector<16x16xf32>
    %1233 = arith.addf %1199, %1232 : vector<16x16xf32>
    %c242 = arith.constant 242 : index
    %1234 = memref.load %arg2[%c242] : memref<288xf32, #tpu.memory_space<smem>>
    %1235 = vector.broadcast %1234 : f32 to vector<16x16xf32>
    %1236 = arith.mulf %1235, %1209 : vector<16x16xf32>
    %1237 = arith.addf %1203, %1236 : vector<16x16xf32>
    %c278 = arith.constant 278 : index
    %1238 = memref.load %arg2[%c278] : memref<288xf32, #tpu.memory_space<smem>>
    %1239 = vector.broadcast %1238 : f32 to vector<16x16xf32>
    %1240 = arith.mulf %1239, %1209 : vector<16x16xf32>
    %1241 = arith.addf %1207, %1240 : vector<16x16xf32>
    %1242 = vector.extract_strided_slice %1139 {offsets = [3, 0, 0], sizes = [1, 16, 16], strides = [1, 1, 1]} : vector<4x16x16xf32> to vector<1x16x16xf32>
    %1243 = vector.shape_cast %1242 : vector<1x16x16xf32> to vector<16x16xf32>
    %c35 = arith.constant 35 : index
    %1244 = memref.load %arg2[%c35] : memref<288xf32, #tpu.memory_space<smem>>
    %1245 = vector.broadcast %1244 : f32 to vector<16x16xf32>
    %1246 = arith.mulf %1245, %1243 : vector<16x16xf32>
    %1247 = arith.addf %1213, %1246 : vector<16x16xf32>
    %c71 = arith.constant 71 : index
    %1248 = memref.load %arg2[%c71] : memref<288xf32, #tpu.memory_space<smem>>
    %1249 = vector.broadcast %1248 : f32 to vector<16x16xf32>
    %1250 = arith.mulf %1249, %1243 : vector<16x16xf32>
    %1251 = arith.addf %1217, %1250 : vector<16x16xf32>
    %c107 = arith.constant 107 : index
    %1252 = memref.load %arg2[%c107] : memref<288xf32, #tpu.memory_space<smem>>
    %1253 = vector.broadcast %1252 : f32 to vector<16x16xf32>
    %1254 = arith.mulf %1253, %1243 : vector<16x16xf32>
    %1255 = arith.addf %1221, %1254 : vector<16x16xf32>
    %c143 = arith.constant 143 : index
    %1256 = memref.load %arg2[%c143] : memref<288xf32, #tpu.memory_space<smem>>
    %1257 = vector.broadcast %1256 : f32 to vector<16x16xf32>
    %1258 = arith.mulf %1257, %1243 : vector<16x16xf32>
    %1259 = arith.addf %1225, %1258 : vector<16x16xf32>
    %c179 = arith.constant 179 : index
    %1260 = memref.load %arg2[%c179] : memref<288xf32, #tpu.memory_space<smem>>
    %1261 = vector.broadcast %1260 : f32 to vector<16x16xf32>
    %1262 = arith.mulf %1261, %1243 : vector<16x16xf32>
    %1263 = arith.addf %1229, %1262 : vector<16x16xf32>
    %c215 = arith.constant 215 : index
    %1264 = memref.load %arg2[%c215] : memref<288xf32, #tpu.memory_space<smem>>
    %1265 = vector.broadcast %1264 : f32 to vector<16x16xf32>
    %1266 = arith.mulf %1265, %1243 : vector<16x16xf32>
    %1267 = arith.addf %1233, %1266 : vector<16x16xf32>
    %c251 = arith.constant 251 : index
    %1268 = memref.load %arg2[%c251] : memref<288xf32, #tpu.memory_space<smem>>
    %1269 = vector.broadcast %1268 : f32 to vector<16x16xf32>
    %1270 = arith.mulf %1269, %1243 : vector<16x16xf32>
    %1271 = arith.addf %1237, %1270 : vector<16x16xf32>
    %c287 = arith.constant 287 : index
    %1272 = memref.load %arg2[%c287] : memref<288xf32, #tpu.memory_space<smem>>
    %1273 = vector.broadcast %1272 : f32 to vector<16x16xf32>
    %1274 = arith.mulf %1273, %1243 : vector<16x16xf32>
    %1275 = arith.addf %1241, %1274 : vector<16x16xf32>
    %1276 = vector.shape_cast %1247 : vector<16x16xf32> to vector<1x16x16xf32>
    %1277 = vector.shape_cast %1251 : vector<16x16xf32> to vector<1x16x16xf32>
    %1278 = vector.shape_cast %1255 : vector<16x16xf32> to vector<1x16x16xf32>
    %1279 = vector.shape_cast %1259 : vector<16x16xf32> to vector<1x16x16xf32>
    %1280 = vector.shape_cast %1263 : vector<16x16xf32> to vector<1x16x16xf32>
    %1281 = vector.shape_cast %1267 : vector<16x16xf32> to vector<1x16x16xf32>
    %1282 = vector.shape_cast %1271 : vector<16x16xf32> to vector<1x16x16xf32>
    %1283 = vector.shape_cast %1275 : vector<16x16xf32> to vector<1x16x16xf32>
    %1284 = tpu.concatenate %1276, %1277, %1278, %1279, %1280, %1281, %1282, %1283 in 0 : vector<1x16x16xf32>, vector<1x16x16xf32>, vector<1x16x16xf32>, vector<1x16x16xf32>, vector<1x16x16xf32>, vector<1x16x16xf32>, vector<1x16x16xf32>, vector<1x16x16xf32> -> vector<8x16x16xf32>
    %c0_67 = arith.constant 0 : index
    %c0_68 = arith.constant 0 : index
    %c0_69 = arith.constant 0 : index
    %c0_70 = arith.constant 0 : index
    %1285 = vector.load %arg4[%c0_67, %c0_68, %c0_69, %c0_70] : memref<1x8x16x16xf32, #tpu.memory_space<vmem>>, vector<1x8x16x16xf32>
    %1286 = vector.shape_cast %1285 : vector<1x8x16x16xf32> to vector<8x16x16xf32>
    %1287 = vector.shape_cast %1284 : vector<8x16x16xf32> to vector<1x8x16x16xf32>
    tpu.vector_store %arg4[%c0_67, %c0_68, %c0_69, %c0_70], %1287 {strides = array<i32>} : memref<1x8x16x16xf32, #tpu.memory_space<vmem>>, vector<1x8x16x16xf32>,
    return
  }
  func.func @transform_0(%arg0: i32) -> (i32, i32, i32, i32) {
    %c0_i32 = arith.constant 0 : i32
    %c0_i32_0 = arith.constant 0 : i32
    %c0_i32_1 = arith.constant 0 : i32
    %c0_i32_2 = arith.constant 0 : i32
    return %arg0, %c0_i32, %c0_i32_0, %c0_i32_1 : i32, i32, i32, i32
  }
  func.func @transform_1(%arg0: i32) -> i32 {
    %c0_i32 = arith.constant 0 : i32
    %c0_i32_0 = arith.constant 0 : i32
    return %c0_i32 : i32
  }
  func.func @transform_2(%arg0: i32) -> i32 {
    %c0_i32 = arith.constant 0 : i32
    %c0_i32_0 = arith.constant 0 : i32
    return %c0_i32 : i32
  }
  func.func @transform_3(%arg0: i32) -> (i32, i32, i32, i32) {
    %c0_i32 = arith.constant 0 : i32
    %c0_i32_0 = arith.constant 0 : i32
    %c0_i32_1 = arith.constant 0 : i32
    %c0_i32_2 = arith.constant 0 : i32
    return %arg0, %c0_i32, %c0_i32_0, %c0_i32_1 : i32, i32, i32, i32
  }
}

</mosaic_0001>

<bundles_post_ra>
// kernel: tpu_custom_call.1
= control target key start
LH: loop header
LB: loop body
LE: loop exit
PB: predicated region body
PF: predicated region fallthrough
CT: control target
= control target key end

     0   :  { %s8285_s0 = inlined_call_operand.hbm [shape: f32[2,4,16,16], index: 0, kind: input, shape index: {}]   ;;  %s8286_s1 = inlined_call_operand.hbm [shape: f32[288], index: 1, kind: input, shape index: {}]   ;;  %s8287_s2 = inlined_call_operand.vmem [shape: f32[8], index: 2, kind: input, shape index: {}]   ;;  %s8288_s3 = inlined_call_operand.hbm [shape: f32[2,8,16,16], index: 3, kind: output, shape index: {}]  }
   0x1   :  { %8372 = sst [smem:[#allocation199_spill]] %s8285_s0 }
   0x2   :  { %8373 = sst [smem:[#allocation200_spill]] %s8286_s1 }
   0x3   :  { %8374 = sst [smem:[#allocation201_spill]] %s8287_s2 }
   0x4   :  { %8375 = sst [smem:[#allocation202_spill]] %s8288_s3 }
   0x5   :  { %8 = vsyncpa [#allocation4], 0 }
   0x6   :  { %10 = vsyncpa [#allocation4 + $0x1], 0 }
   0x7   :  { %11 = vsyncpa [#allocation6], 0 }
   0x8   :  { %12 = vsyncpa [#allocation7], 0 }
   0x9   :  { %13 = vsyncpa [#allocation5], 0 }
   0xa   :  { %15 = vsyncpa [#allocation5 + $0x1], 0  ;;  %s4434_s12 = smov 0   ;;  %s4436_s13 = smov 0  }
   0xb   :  { %s4438_s14 = smov 0   ;;  %s4440_s15 = smov 0  }
   0xc LB: > { %8376 = sst [smem:[#allocation15_spill]] %s4388_s12  ;;  %s4455_s16 = sadd.s32 4294967295, %s4400_s15   ;;  %s4400_s15 = sphi %s4440_s15, %s9111_s15   ;;  %s4396_s14 = sphi %s4438_s14, %s9114_s14   ;;  %s4392_s13 = sphi %s4436_s13, %s9113_s13   ;;  %s4388_s12 = sphi %s4434_s12, %s9112_s12  }
   0xd   : > { %8377 = sst [smem:[#allocation16_spill]] %s4392_s13  ;;  %s3861_s17 = sadd.s32 4294967294, %s4400_s15  }
   0xe   : > { %8378 = sst [smem:[#allocation17_spill]] %s4396_s14  ;;  %s4459_s18 = sadd.s32 1, %s4400_s15  }
   0xf   : > { %8379 = sst [smem:[#allocation18_spill]] %s4400_s15  ;;  %s28_s19 = sadd.s32 1, %s4396_s14 }
  0x10   : > { %8380 = sst [smem:[#allocation19_spill]] %s4455_s16  ;;  %s25_s20 = ssub.s32 %s4400_s15, %s4459_s18 }
  0x11   : > { %8381 = sst [smem:[#allocation20_spill]] %s4459_s18  ;;  %p35_p0 = scmp.ne.s32.totalorder %s4396_s14, %s4392_s13 }
  0x12   : > { %p26_p1 = scmp.eq.s32.totalorder %s25_s20, 0  ;;  %p36_p2 = scmp.eq.s32.totalorder %s4400_s15, 0 }
  0x13   : > { %p41_p3 = scmp.ne.s32.totalorder %s4392_s13, %s4388_s12  ;;  %p8289_p4 = scmp.eq.s32.totalorder %s4455_s16, 0 }
  0x14   : > { %s4471_s21 = scalar_select %p26_p1, %s4396_s14, %s28_s19  }
  0x15   : > { %p4473_p5 = por %p36_p2, %p35_p0  ;;  %p4479_p6 = por %p8289_p4, %p41_p3 }
  0x16   : > { %8382 = sst [smem:[#allocation21_spill]] %s4471_s21  ;;  %p107_p7 = scmp.eq.s32.totalorder %s4455_s16, 1 }
  0x17   : > { %s8384_s23 = scalar_select %p4479_p6, 1, 0 }
  0x18   : > { %p113_p8 = scmp.eq.s32.totalorder %s3861_s17, 1  ;;  %p3862_p9 = scmp.ge.s32.totalorder %s4400_s15, 1 }
  0x19   : > { %p120_p10 = scmp.lt.s32.totalorder %s4400_s15, 3  ;;  %p4486_p11 = por %p107_p7, %p35_p0 }
  0x1a   : > { %p4490_p12 = por %p113_p8, %p41_p3  ;;  %p4204_p4 = scmp.lt.s32.totalorder %s4400_s15, 2 }
  0x1b   : > { %s8385_s24 = scalar_select %p4486_p11, 1, 0 }
  0x1c   : > { %s8387_s25 = scalar_select %p4490_p12, 1, 0 }
  0x1d   : > { %8386 = sst [smem:[#allocation22_spill]] %s8385_s24  ;;  %p4494_p13 = pnand %p3862_p9, %p120_p10 }
  0x1e   : > { %8388 = sst [smem:[#allocation23_spill]] %s8387_s25  ;;  %s8390_s2 = sld [smem:[#allocation201_spill]] }
  0x1f   : > { %s8389_s26 = scalar_select %p4494_p13, 1, 0 }
  0x20   : > { %p4187_p2 = pneg %p4494_p13  ;;  %p8391_p0 = scmp.eq.s32.totalorder %s4455_s16, 0 }
  0x21   : > { %p4513_p3 = pnand %p4204_p4, %p4473_p5  ;;  %s153_s5 = sand.u32 1, %s4396_s14  }
  0x22   : > { %p4507_p7 = pnand %p4187_p2, %p8391_p0  ;;  %s8394_s1 = sld [smem:[#allocation200_spill]] }
  0x24   : > { %s142_s29 = sshll.u32 %s8390_s2, 4  ;;  %p4270_p9 = pneg %p4507_p7  ;;  %s143_s29 = int_to_ptr.vmem [resolvable:$true] %s142_s29 }
  0x28   : > { %s4268_s8 = scalar_lea.hbm %s8394_s1, 48  ;;  %s4273_s19 = scalar_lea.hbm %s8394_s1, 64 }
  0x29   : > { %p4269_p8 = scmp.ne.s32.totalorder %s8394_s1, %s4268_s8  ;;  %p4274_p4 = scmp.lt.u32.totalorder %s4273_s19, %s4268_s8 }
  0x2a   : > { %p4275_p5 = scmp.lt.u32.totalorder %s4268_s8, %s8394_s1 }
  0x2b   : > { %p4271_p10 = pnand %p4270_p9, %p4269_p8 }
  0x2c   : > { %p4276_p0 = por %p4275_p5, %p4274_p4 }
  0x2d   : > { %p4272_p2 = pneg %p4271_p10 }
  0x2f   : > { %p4277_p1 = pnand %p4276_p0, %p4272_p2 }
  0x31   : > { %4280 = shalt.err (!%p4277_p1)
}
  0x32   : > { %s4402_s27 = smov [#allocation8]   ;;  %s4281_s7 = scalar_lea.vmem %s143_s29, 16 }
  0x33   : > { %4190 = dma.hbm_to_smem (!%p4507_p7), %s8394_s1, 48, %s4402_s27, [#allocation6]  }
  0x34   : > { %p4282_p8 = scmp.ne.s32.totalorder %s143_s29, %s4281_s7  ;;  %p4289_p11 = scmp.lt.s32.totalorder %s143_s29, %s143_s29 }
  0x35   : > { %p4290_p6 = scmp.lt.s32.totalorder %s4281_s7, %s4281_s7 }
  0x36   : > { %p4284_p10 = pnand %p4282_p8, %p4270_p9 }
  0x37   : > { %p4291_p13 = por %p4290_p6, %p4289_p11 }
  0x38   : > { %p4285_p12 = pneg %p4284_p10 }
  0x3a   : > { %p4292_p4 = pnand %p4291_p13, %p4285_p12 }
  0x3c   : > { %4295 = shalt.err (!%p4292_p4)
}
  0x3d   : > { %s4403_s8 = smov [#allocation9]   ;;  %s3866_s9 = sshll.u32 %s153_s5, 6 }
  0x3e   : > { %4193 = dma.vmem_to_smem (!%p4507_p7), %s143_s29, 16, %s4403_s8, [#allocation7]  }
  0x3f   : > { %s4173_s10 = sshll.u32 %s4400_s15, 10  ;;  %s8395_s0 = sld [smem:[#allocation199_spill]] }
  0x40   : > { %s157_s20 = scalar_lea.vmem [#allocation3], %s3866_s9  ;;  %s4557_s22 = scalar_lea.sflag [#allocation4], %s153_s5 }
  0x41   : > { %s164_s30 = sshll.u32 %s157_s20, 4  ;;  %p4298_p11 = pneg %p4513_p3  ;;  %s4553_s30 = int_to_ptr.vmem [resolvable:$true] %s164_s30 }
  0x45   : > { %s4551_s19 = scalar_lea.hbm %s8395_s0, %s4173_s10  ;;  %s4301_s6 = scalar_lea.hbm %s8395_s0, 2048 }
  0x46   : > { %s4296_s29 = scalar_lea.hbm %s4551_s19, 1024  ;;  %p4302_p1 = scmp.lt.u32.totalorder %s4551_s19, %s8395_s0 }
  0x47   : > { %p4297_p6 = scmp.ne.s32.totalorder %s4551_s19, %s4296_s29  ;;  %p4303_p7 = scmp.lt.u32.totalorder %s4301_s6, %s4296_s29 }
  0x48   : > { %p4305_p2 = scmp.lt.u32.totalorder %s4296_s29, %s4551_s19 }
  0x49   : > { %p4299_p12 = pnand %p4298_p11, %p4297_p6  ;;  %p4304_p9 = por %p4303_p7, %p4302_p1 }
  0x4b   : > { %p4300_p13 = pneg %p4299_p12  ;;  %p4306_p5 = por %p4305_p2, %p4304_p9 }
  0x4d   : > { %p4307_p0 = pnand %p4306_p5, %p4300_p13 }
  0x4f   : > { %4310 = shalt.err (!%p4307_p0)
}
  0x50   : > { %s4311_s5 = scalar_lea.vmem %s4553_s30, 1024  ;;  %s4404_s9 = smov [#allocation3]  }
  0x51   : > { %p4312_p8 = scmp.ne.s32.totalorder %s4553_s30, %s4311_s5  ;;  %s4316_s10 = sshll.u32 %s4404_s9, 4  ;;  %s4317_s10 = int_to_ptr.vmem [resolvable:$false] %s4316_s10 }
  0x52   : > { %s4318_s11 = scalar_lea.vmem %s4317_s10, 2048  ;;  %p4319_p6 = scmp.lt.s32.totalorder %s4553_s30, %s4317_s10 }
  0x53   : > { %p4314_p10 = pnand %p4312_p8, %p4298_p11  ;;  %p4320_p12 = scmp.lt.s32.totalorder %s4318_s11, %s4311_s5 }
  0x55   : > { %p4315_p4 = pneg %p4314_p10  ;;  %p4321_p1 = por %p4320_p12, %p4319_p6 }
  0x57   : > { %p4322_p7 = pnand %p4321_p1, %p4315_p4 }
  0x59   : > { %4325 = shalt.err (!%p4322_p7)
}
  0x5a   : > { %s4405_s17 = smov 128   ;;  %s4406_s20 = smov 8  }
  0x5b   : > { %4197 = dma.hbm_to_vmem [thread:$0]  (!%p4513_p3), %s4551_s19, 1024, %s4553_s30, %s4557_s22, %s4405_s17, %s4405_s17, %s4406_s20  }
  0x5c   : > { %p8396_p11 = scmp.ne.s32.totalorder %s8389_s26, 0 }
  0x5e   : > { %176 = sbr.rel (%p8396_p11) target bundleno = 1411 (0x583), region = 32 }
  0x65   : > { %s4588_s29 = sand.u32 1, %s4392_s13   ;;  %p8398_p13 = scmp.ne.s32.totalorder %s8384_s23, 0 }
  0x66   : > { %8397 = sst [smem:[#allocation24_spill]] %s4588_s29  ;;  %s3870_s27 = sshll.u32 %s4588_s29, 6 }
  0x67   : > { %s179_s28 = scalar_lea.sflag [#allocation4], %s4588_s29  ;;  %s182_s6 = scalar_lea.vmem [#allocation3], %s3870_s27 }
  0x68   : > { %4371 = dma.done.wait (%p8398_p13), %s179_s28, 1024  }
  0x69   : > { %4373 = vsyncadd (%p8398_p13), %s179_s28, 4294966272  ;;  %p8399_p9 = scmp.eq.s32.totalorder %s4455_s16, 0 }
  0x6b   : > { %4375 = dma.done.wait (%p8399_p9), [#allocation6], 48   ;;  %p8400_p3 = pmov %p8399_p9 }
  0x6d   : > { %4377 = vsyncadd (%p8400_p3), [#allocation6], 4294967248  ;;  %p8401_p2 = pmov %p8400_p3 }
  0x6f   : > { %4379 = dma.done.wait (%p8401_p2), [#allocation7], 16   ;;  %p8402_p5 = pmov %p8401_p2 }
  0x71   : > { %4381 = vsyncadd (%p8402_p5), [#allocation7], 4294967280 }
  0x72   : > { %195 = sfence }
  0x73   : > { %v214_v0 = vld [vmem:[%s182_s6] sm:$0xff]  ;;  %v216_v1 = vld [vmem:[%s182_s6 + $0x10] sm:$0xff]  ;;  %s4407_s26 = smov 1   ;;  %v215_v2 = vld [vmem:[%s182_s6 + $0x8] sm:$0xff]  ;;  %vm254_vm0 = vcmask 138248   ;;  %vm263_vm1 = vcmask 132105  }
  0x74   : > { %230 = vrot.lane.b32.xlu0 %v214_v0, %s4407_s26  ;;  %234 = vrot.lane.b32.xlu1 %v216_v1, %s4407_s26  ;;  %v217_v3 = vld [vmem:[%s182_s6 + $0x18] sm:$0xff]  ;;  %v218_v4 = vld [vmem:[%s182_s6 + $0x20] sm:$0xff]  ;;  %vm268_vm2 = vcmask 137230   ;;  %s8293_s23 = smov 126   ;;  %vm333_vm3 = vcmask 7168   ;;  %vm336_vm4 = vcmask 1024  }
  0x75   : > { %v219_v5 = vld [vmem:[%s182_s6 + $0x28] sm:$0xff]  ;;  %v221_v6 = vld [vmem:[%s182_s6 + $0x38] sm:$0xff]  ;;  %v220_v7 = vld [vmem:[%s182_s6 + $0x30] sm:$0xff]  ;;  %s4409_s4 = smov 2   ;;  %s4656_s19 = sld [smem:[#allocation8 + $0x1]]  ;;  %vm407_vm5 = vcmask 146568  }
  0x76   : > { %s4658_s30 = sld [smem:[#allocation8 + $0x25]]  ;;  %s4660_s22 = sld [smem:[#allocation8 + $0x49]]  ;;  %vm410_vm6 = vcmask 140424   ;;  %vm3733_vm7 = vcmask 130048  }
  0x77   : > { %s4662_s7 = sld [smem:[#allocation8 + $0x6d]]  ;;  %s4664_s8 = sld [smem:[#allocation8 + $0x91]] }
  0x78   : > { %232 = vrot.lane.b32.xlu0 %v215_v2, %s4407_s26  ;;  %236 = vrot.lane.b32.xlu1 %v217_v3, %s4407_s26  ;;  %s4666_s5 = sld [smem:[#allocation8 + $0xb5]]  ;;  %s4668_s9 = sld [smem:[#allocation8 + $0xd9]] }
  0x79   : > { %s4670_s10 = sld [smem:[#allocation8 + $0xfd]]  ;;  %s4672_s11 = sld [smem:[#allocation9]] }
  0x7a   : > { %s4674_s17 = sld [smem:[#allocation8]]  ;;  %s4676_s20 = sld [smem:[#allocation9 + $0x1]] }
  0x7b   : > { %s4678_s27 = sld [smem:[#allocation8 + $0x24]]  ;;  %s4680_s28 = sld [smem:[#allocation8 + $0x9]]  ;;  %v646_v55 = vstv %s4656_s19 }
  0x7c   : > { %238 = vrot.lane.b32.xlu0 %v218_v4, %s4407_s26  ;;  %240 = vrot.lane.b32.xlu1 %v219_v5, %s4407_s26  ;;  %s4682_s6 = sld [smem:[#allocation8 + $0x48]]  ;;  %s4691_s0 = sld [smem:[#allocation8 + $0x36]]  ;;  %v660_v60 = vstv %s4658_s30  ;;  %v674_v61 = vstv %s4660_s22 }
  0x7d   : > { %8403 = sst [smem:[#allocation25_spill]] %s4664_s8  ;;  %s4693_s1 = sld [smem:[#allocation8 + $0x51]]  ;;  %v688_v62 = vstv %s4662_s7  ;;  %v702_v63 = vstv %s4664_s8 }
  0x7e   : > { %8404 = sst [smem:[#allocation26_spill]] %s4666_s5  ;;  %s4695_s2 = sld [smem:[#allocation8 + $0x6c]]  ;;  %v716_v0 = vstv %s4666_s5  ;;  %v730_v1 = vstv %s4668_s9 }
  0x7f   : > { %8405 = sst [smem:[#allocation27_spill]] %s4668_s9  ;;  %s4697_s21 = sld [smem:[#allocation9 + $0x3]]  ;;  %v744_v2 = vstv %s4670_s10  ;;  %v422_v3 = vstv %s4672_s11 }
  0x80   : > { %244 = vrot.lane.b32.xlu1 %v221_v6, %s4407_s26  ;;  %242 = vrot.lane.b32.xlu0 %v220_v7, %s4407_s26  ;;  %8406 = sst [smem:[#allocation28_spill]] %s4670_s10  ;;  %s4699_s14 = sld [smem:[#allocation8 + $0x90]]  ;;  %v454_v4 = vstv %s4674_s17 }
  0x81   : > { %8407 = sst [smem:[#allocation29_spill]] %s4672_s11  ;;  %s4685_s26 = sld [smem:[#allocation8 + $0x2d]] }
  0x82   : > { %8408 = sst [smem:[#allocation30_spill]] %s4676_s20  ;;  %s4703_s13 = sld [smem:[#allocation8 + $0x1b]] }
  0x83   : > { %8409 = sst [smem:[#allocation31_spill]] %s4682_s6  ;;  %s4705_s18 = sld [smem:[#allocation9 + $0x4]] }
  0x84   : > { %8412 = sst [smem:[#allocation34_spill]] %s4691_s0  ;;  %s4708_s15 = sld [smem:[#allocation8 + $0x3f]] }
  0x85   : > { %8413 = sst [smem:[#allocation35_spill]] %s4693_s1  ;;  %s4710_s25 = sld [smem:[#allocation8 + $0x5a]] }
  0x86   : > { %8414 = sst [smem:[#allocation36_spill]] %s4695_s2  ;;  %s4714_s3 = sld [smem:[#allocation8 + $0xb4]] }
  0x87   : > { %8415 = sst [smem:[#allocation37_spill]] %s4697_s21  ;;  %s4712_s12 = sld [smem:[#allocation8 + $0x75]] }
  0x88   : > { %s4718_s24 = sld [smem:[#allocation8 + $0xa]]  ;;  %s4720_s16 = sld [smem:[#allocation8 + $0x2e]] }
  0x89   : > { %8416 = sst [smem:[#allocation38_spill]] %s4705_s18  ;;  %s4727_s19 = sld [smem:[#allocation8 + $0x52]] }
  0x8a   : > { %s4729_s29 = sld [smem:[#allocation8 + $0x76]]  ;;  %s4745_s8 = sld [smem:[#allocation9 + $0x5]] }
  0x8b   : > { %s4743_s30 = sld [smem:[#allocation8 + $0x7e]]  ;;  %s4755_s10 = sld [smem:[#allocation8 + $0x99]] }
  0x8c   : > { %8418 = sst [smem:[#allocation40_spill]] %s4714_s3  ;;  %s8313_s3 = smov 127  }
  0x8d   : > { %8417 = sst [smem:[#allocation39_spill]] %s4712_s12  ;;  %s4771_s9 = sld [smem:[#allocation9 + $0x6]] }
  0x8e   : > { %8419 = sst [smem:[#allocation41_spill]] %s4718_s24  ;;  %s4737_s24 = sld [smem:[#allocation8 + $0xbe]] }
  0x8f   : > { %8420 = sst [smem:[#allocation42_spill]] %s4720_s16  ;;  %s4735_s16 = sld [smem:[#allocation8 + $0x9a]] }
  0x90   : > { %8421 = sst [smem:[#allocation43_spill]] %s4729_s29  ;;  %s8427_s5 = smov 127  }
  0x91   : > { %8424 = sst [smem:[#allocation46_spill]] %s4745_s8  ;;  %s4777_s11 = sld [smem:[#allocation8 + $0xa2]] }
  0x92   : > { %s3934_s22 = sld [smem:[#allocation8 + $0xeb]]  ;;  %s3935_s17 = sld [smem:[#allocation8 + $0x10f]] }
  0x93   : > { %8426 = sst [smem:[#allocation48_spill]] %s4771_s9  ;;  %s3936_s7 = sld [smem:[#allocation8 + $0x1c]] }
  0x94   : > { %8423 = sst [smem:[#allocation45_spill]] %s4737_s24  ;;  %s4884_s24 = sld [smem:[#allocation8 + $0xea]] }
  0x95   : > { %8422 = sst [smem:[#allocation44_spill]] %s4735_s16 }
  0xe6   : > { %v231_v8 = vpop.permute.xlu0 %230  ;;  %v235_v9 = vpop.permute.xlu1 %234 }
  0xe7   : > { %255 = vst.msk [vmem:[#allocation2 + $0x1] sm:$0xff] %vm254_vm0, %v231_v8  ;;  %257 = vst.msk [vmem:[#allocation2 + $0x19] sm:$0xff] %vm254_vm0, %v235_v9 }
  0xe8   : > { %264 = vst.msk [vmem:[#allocation2 - $0x1] sm:$0x2] %vm263_vm1, %v231_v8  ;;  %265 = vst.msk [vmem:[#allocation2 + $0x17] sm:$0x2] %vm263_vm1, %v235_v9  ;;  %v502_v8 = vstv %s4680_s28  ;;  %v425_v9 = vstv %s4676_s20  ;;  %s4763_s20 = sld [smem:[#allocation8 + $0xd8]] }
  0xe9   : > { %s3937_s28 = sld [smem:[#allocation8 + $0x40]] }
  0xea   : > { %v233_v10 = vpop.permute.xlu0 %232  ;;  %v237_v11 = vpop.permute.xlu1 %236 }
  0xeb   : > { %256 = vst.msk [vmem:[#allocation2 + $0x9] sm:$0xff] %vm254_vm0, %v233_v10  ;;  %258 = vst.msk [vmem:[#allocation2 + $0x21] sm:$0xff] %vm254_vm0, %v237_v11 }
  0xec   : > { %269 = vst.msk [vmem:[#allocation2 + $0xb] sm:$0x40] %vm268_vm2, %v233_v10  ;;  %270 = vst.msk [vmem:[#allocation2 + $0x23] sm:$0x40] %vm268_vm2, %v237_v11  ;;  %v460_v10 = vstv %s4678_s27  ;;  %v466_v11 = vstv %s4682_s6  ;;  %s4769_s6 = sld [smem:[#allocation8 + $0x87]]  ;;  %s4934_s27 = sld [smem:[#allocation8 + $0x105]] }
  0xee   : > { %v239_v13 = vpop.permute.xlu0 %238  ;;  %v241_v14 = vpop.permute.xlu1 %240  ;;  %8425 = sst [smem:[#allocation47_spill]] %s4763_s20 }
  0xef   : > { %v273_v12 = vld [vmem:[#allocation2] sm:$0xff]  ;;  %259 = vst.msk [vmem:[#allocation2 + $0x31] sm:$0xff] %vm254_vm0, %v239_v13  ;;  %260 = vst.msk [vmem:[#allocation2 + $0x39] sm:$0xff] %vm254_vm0, %v241_v14  ;;  %v276_v20 = vld [vmem:[#allocation2 + $0x18] sm:$0xff] }
  0xf0   : > { %297 = vrot.lane.b32.xlu0 %v273_v12, %s8293_s23  ;;  %266 = vst.msk [vmem:[#allocation2 + $0x2f] sm:$0x2] %vm263_vm1, %v239_v13 }
  0xf1   : > { %271 = vst.msk [vmem:[#allocation2 + $0x3b] sm:$0x40] %vm268_vm2, %v241_v14  ;;  %v508_v14 = vstv %s4685_s26  ;;  %s3941_s26 = sld [smem:[#allocation8 + $0xd0]] }
  0xf2   : > { %v274_v16 = vld [vmem:[#allocation2 + $0x8] sm:$0xff]  ;;  %v245_v17 = vpop.permute.xlu1 %244  ;;  %v243_v18 = vpop.permute.xlu0 %242  ;;  %v277_v19 = vld [vmem:[#allocation2 + $0x20] sm:$0xff] }
  0xf3   : > { %v275_v15 = vld [vmem:[#allocation2 + $0x10] sm:$0x3]  ;;  %299 = vrot.lane.b32.xlu1 %v274_v16, %s8293_s23  ;;  %262 = vst.msk [vmem:[#allocation2 + $0x51] sm:$0xff] %vm254_vm0, %v245_v17  ;;  %261 = vst.msk [vmem:[#allocation2 + $0x49] sm:$0xff] %vm254_vm0, %v243_v18  ;;  %v278_v21 = vld [vmem:[#allocation2 + $0x28] sm:$0x3] }
  0xf4   : > { %301 = vrot.lane.b32.xlu0 %v275_v15, %s8293_s23  ;;  %272 = vst.msk [vmem:[#allocation2 + $0x53] sm:$0x40] %vm268_vm2, %v245_v17  ;;  %v556_v17 = vstv %s4691_s0  ;;  %s4779_s0 = sld [smem:[#allocation8 + $0xbd]] }
  0xf5   : > { %267 = vst.msk [vmem:[#allocation2 + $0x47] sm:$0x2] %vm263_vm1, %v243_v18  ;;  %v514_v18 = vstv %s4693_s1  ;;  %s8430_s1 = sld [smem:[#allocation42_spill]] }
  0xf6   : > { %v280_v23 = vld [vmem:[#allocation2 + $0x38] sm:$0xff] }
  0xf7   : > { %303 = vrot.lane.b32.xlu1 %v276_v20, %s8293_s23  ;;  %v279_v22 = vld [vmem:[#allocation2 + $0x30] sm:$0xff]  ;;  %v431_v20 = vstv %s4697_s21  ;;  %s4787_s21 = sld [smem:[#allocation8 + $0xfc]] }
  0xf8   : > { %305 = vrot.lane.b32.xlu0 %v277_v19, %s8293_s23  ;;  %v281_v24 = vld [vmem:[#allocation2 + $0x40] sm:$0x3]  ;;  %v472_v19 = vstv %s4695_s2  ;;  %s4785_s2 = sld [smem:[#allocation9 + $0x7]] }
  0xfa   : > { %v283_v25 = vld [vmem:[#allocation2 + $0x50] sm:$0xff] }
  0xfb   : > { %307 = vrot.lane.b32.xlu1 %v278_v21, %s8293_s23  ;;  %v284_v27 = vld [vmem:[#allocation2 + $0x58] sm:$0x3]  ;;  %v478_v21 = vstv %s4699_s14  ;;  %s3948_s14 = sld [smem:[#allocation8 + $0x92]] }
  0xfc   : > { %309 = vrot.lane.b32.xlu0 %v279_v22, %s8293_s23  ;;  %v282_v26 = vld [vmem:[#allocation2 + $0x48] sm:$0xff] }
  0xff   : > { %311 = vrot.lane.b32.xlu1 %v280_v23, %s8293_s23 }
 0x100   : > { %313 = vrot.lane.b32.xlu0 %v281_v24, %s8293_s23  ;;  %v598_v24 = vstv %s4703_s13  ;;  %s3943_s13 = sld [smem:[#allocation8 + $0x118]] }
 0x103   : > { %315 = vrot.lane.b32.xlu1 %v282_v26, %s8293_s23  ;;  %v562_v26 = vstv %s4710_s25  ;;  %s3945_s25 = sld [smem:[#allocation8 + $0x26]] }
 0x104   : > { %317 = vrot.lane.b32.xlu0 %v283_v25, %s8293_s23  ;;  %v604_v25 = vstv %s4708_s15  ;;  %s4969_s15 = sld [smem:[#allocation8 + $0xcf]] }
 0x107   : > { %319 = vrot.lane.b32.xlu1 %v284_v27, %s8293_s23  ;;  %s4689_s23 = sld [smem:[#allocation8 + $0x12]]  ;;  %v434_v27 = vstv %s4705_s18  ;;  %s4801_s18 = sld [smem:[#allocation8 + $0xc6]] }
 0x10d   : > { %8411 = sst [smem:[#allocation33_spill]] %s4689_s23  ;;  %v550_v16 = vstv %s4689_s23 }
 0x10e   : > { %s8429_s23 = sld [smem:[#allocation41_spill]] }
 0x162   : > { %v298_v28 = vpop.permute.xlu0 %297 }
 0x163   : > { %334 = vst.msk [vmem:[#allocation2] sm:$0xff] %vm333_vm3, %v298_v28 }
 0x165   : > { %v300_v29 = vpop.permute.xlu1 %299 }
 0x166   : > { %v302_v30 = vpop.permute.xlu0 %301  ;;  %335 = vst.msk [vmem:[#allocation2 + $0x8] sm:$0xff] %vm333_vm3, %v300_v29 }
 0x167   : > { %337 = vst.msk [vmem:[#allocation2 + $0x10] sm:$0x3] %vm336_vm4, %v302_v30  ;;  %v520_v30 = vstv %s4712_s12  ;;  %s4807_s12 = sld [smem:[#allocation8 + $0xe1]] }
 0x169   : > { %v304_v31 = vpop.permute.xlu1 %303 }
 0x16a   : > { %v306_v32 = vpop.permute.xlu0 %305  ;;  %v347_v33 = vld [vmem:[#allocation2] sm:$0xff]  ;;  %338 = vst.msk [vmem:[#allocation2 + $0x18] sm:$0xff] %vm333_vm3, %v304_v31 }
 0x16b   : > { %339 = vst.msk [vmem:[#allocation2 + $0x20] sm:$0xff] %vm333_vm3, %v306_v32  ;;  %371 = vrot.lane.b32.xlu0 %v347_v33, %s4409_s4  ;;  %v758_v32 = vstv %s8429_s23  ;;  %v772_v33 = vstv %s8430_s1  ;;  %s5078_s23 = sld [smem:[#allocation8 + $0x117]]  ;;  %s5127_s1 = sld [smem:[#allocation8 + $0xe2]] }
 0x16d   : > { %v308_v34 = vpop.permute.xlu1 %307  ;;  %v348_v36 = vld [vmem:[#allocation2 + $0x8] sm:$0xff] }
 0x16e   : > { %v310_v35 = vpop.permute.xlu0 %309  ;;  %v349_v37 = vld [vmem:[#allocation2 + $0x10] sm:$0x3]  ;;  %340 = vst.msk [vmem:[#allocation2 + $0x28] sm:$0x3] %vm336_vm4, %v308_v34  ;;  %373 = vrot.lane.b32.xlu1 %v348_v36, %s4409_s4  ;;  %v786_v34 = vstv %s4727_s19  ;;  %v814_v36 = vstv %s4735_s16  ;;  %s3932_s19 = sld [smem:[#allocation8 + $0xa3]]  ;;  %s3942_s16 = sld [smem:[#allocation8 + $0xf4]] }
 0x16f   : > { %341 = vst.msk [vmem:[#allocation2 + $0x30] sm:$0xff] %vm333_vm3, %v310_v35  ;;  %375 = vrot.lane.b32.xlu0 %v349_v37, %s4409_s4  ;;  %v800_v35 = vstv %s4729_s29  ;;  %s4843_s29 = sld [smem:[#allocation8 + $0xab]] }
 0x171   : > { %v312_v38 = vpop.permute.xlu1 %311  ;;  %v350_v40 = vld [vmem:[#allocation2 + $0x18] sm:$0xff] }
 0x172   : > { %v314_v39 = vpop.permute.xlu0 %313  ;;  %v351_v41 = vld [vmem:[#allocation2 + $0x20] sm:$0xff]  ;;  %342 = vst.msk [vmem:[#allocation2 + $0x38] sm:$0xff] %vm333_vm3, %v312_v38  ;;  %377 = vrot.lane.b32.xlu1 %v350_v40, %s4409_s4 }
 0x173   : > { %343 = vst.msk [vmem:[#allocation2 + $0x40] sm:$0x3] %vm336_vm4, %v314_v39  ;;  %379 = vrot.lane.b32.xlu0 %v351_v41, %s4409_s4 }
 0x175   : > { %v316_v42 = vpop.permute.xlu1 %315  ;;  %v352_v44 = vld [vmem:[#allocation2 + $0x28] sm:$0x3] }
 0x176   : > { %v318_v43 = vpop.permute.xlu0 %317  ;;  %v353_v45 = vld [vmem:[#allocation2 + $0x30] sm:$0xff]  ;;  %344 = vst.msk [vmem:[#allocation2 + $0x48] sm:$0xff] %vm333_vm3, %v316_v42  ;;  %381 = vrot.lane.b32.xlu1 %v352_v44, %s4409_s4  ;;  %v568_v42 = vstv %s4743_s30  ;;  %v437_v44 = vstv %s4745_s8  ;;  %s5005_s8 = sld [smem:[#allocation8 + $0x10e]]  ;;  %s3933_s30 = sld [smem:[#allocation8 + $0xc7]] }
 0x177   : > { %345 = vst.msk [vmem:[#allocation2 + $0x50] sm:$0xff] %vm333_vm3, %v318_v43  ;;  %383 = vrot.lane.b32.xlu0 %v353_v45, %s4409_s4  ;;  %v526_v43 = vstv %s4755_s10  ;;  %s3950_s10 = sld [smem:[#allocation8 + $0xda]] }
 0x179   : > { %v354_v46 = vld [vmem:[#allocation2 + $0x38] sm:$0xff]  ;;  %v320_v48 = vpop.permute.xlu1 %319 }
 0x17a   : > { %v355_v47 = vld [vmem:[#allocation2 + $0x40] sm:$0x3]  ;;  %385 = vrot.lane.b32.xlu1 %v354_v46, %s4409_s4  ;;  %346 = vst.msk [vmem:[#allocation2 + $0x58] sm:$0x3] %vm336_vm4, %v320_v48 }
 0x17b   : > { %387 = vrot.lane.b32.xlu0 %v355_v47, %s4409_s4 }
 0x17d   : > { %v356_v49 = vld [vmem:[#allocation2 + $0x48] sm:$0xff] }
 0x17e   : > { %v357_v50 = vld [vmem:[#allocation2 + $0x50] sm:$0xff]  ;;  %389 = vrot.lane.b32.xlu1 %v356_v49, %s4409_s4 }
 0x17f   : > { %391 = vrot.lane.b32.xlu0 %v357_v50, %s4409_s4 }
 0x181   : > { %v358_v51 = vld [vmem:[#allocation2 + $0x58] sm:$0x3] }
 0x182   : > { %393 = vrot.lane.b32.xlu1 %v358_v51, %s4409_s4  ;;  %s4687_s4 = sld [smem:[#allocation9 + $0x2]]  ;;  %v616_v51 = vstv %s4769_s6  ;;  %s3930_s6 = sld [smem:[#allocation8 + $0x5b]] }
 0x188   : > { %8410 = sst [smem:[#allocation32_spill]] %s4687_s4  ;;  %v428_v15 = vstv %s4687_s4 }
 0x189   : > { %s8428_s4 = sld [smem:[#allocation40_spill]] }
 0x18a   : > { %8431 = sst [smem:[#allocation40_spill]] %s4785_s2  ;;  %s3947_s2 = sld [smem:[#allocation8 + $0x6e]] }
 0x18f   : > { %v484_v31 = vstv %s8428_s4  ;;  %s3931_s4 = sld [smem:[#allocation8 + $0x7f]] }
 0x1dd   : > { %v372_v52 = vpop.permute.xlu0 %371 }
 0x1de   : > { %408 = vst.msk [vmem:[#allocation2] sm:$0xff] %vm407_vm5, %v372_v52  ;;  %v440_v52 = vstv %s4771_s9  ;;  %s3939_s9 = sld [smem:[#allocation8 + $0x88]] }
 0x1e0   : > { %v374_v53 = vpop.permute.xlu1 %373 }
 0x1e1   : > { %v376_v54 = vpop.permute.xlu0 %375  ;;  %409 = vst.msk [vmem:[#allocation2 + $0x8] sm:$0xff] %vm407_vm5, %v374_v53  ;;  %v490_v53 = vstv %s4763_s20  ;;  %s5175_s20 = sld [smem:[#allocation8 + $0x13]] }
 0x1e2   : > { %411 = vst.msk [vmem:[#allocation2 + $0x10] sm:$0x3] %vm410_vm6, %v376_v54 }
 0x1e4   : > { %v378_v57 = vpop.permute.xlu1 %377 }
 0x1e5   : > { %v4716_v56 = vld [vmem:[#allocation2] sm:$0xff]  ;;  %v380_v58 = vpop.permute.xlu0 %379  ;;  %412 = vst.msk [vmem:[#allocation2 + $0x18] sm:$0xff] %vm407_vm5, %v378_v57  ;;  %v532_v57 = vstv %s4779_s0  ;;  %s3952_s0 = sld [smem:[#allocation8 + $0xb]] }
 0x1e6   : > { %413 = vst.msk [vmem:[#allocation2 + $0x20] sm:$0xff] %vm407_vm5, %v380_v58  ;;  %v647_v59 = vmul.f32 %v646_v55, %v4716_v56  ;;  %v661_v13 = vmul.f32 %v660_v60, %v4716_v56  ;;  %v675_v29 = vmul.f32 %v674_v61, %v4716_v56  ;;  %v689_v47 = vmul.f32 %v688_v62, %v4716_v56 }
 0x1e7   : > { %v455_v48 = vmul.f32 %v454_v4, %v4716_v56  ;;  %v461_v50 = vmul.f32 %v460_v10, %v4716_v56 }
 0x1e8   : > { %651 = vrot.lane.b32.xlu0 %v647_v59, %s8313_s3  ;;  %v4747_v5 = vld [vmem:[#allocation2 + $0x8] sm:$0xff]  ;;  %v382_v6 = vpop.permute.xlu1 %381  ;;  %s4753_s3 = sld [smem:[#allocation8 + $0x63]] }
 0x1e9   : > { %v384_v7 = vpop.permute.xlu0 %383  ;;  %414 = vst.msk [vmem:[#allocation2 + $0x28] sm:$0x3] %vm410_vm6, %v382_v6  ;;  %v648_v12 = vmul.f32 %v646_v55, %v4747_v5  ;;  %v662_v28 = vmul.f32 %v660_v60, %v4747_v5  ;;  %v676_v46 = vmul.f32 %v674_v61, %v4747_v5  ;;  %v456_v49 = vmul.f32 %v454_v4, %v4747_v5 }
 0x1ea   : > { %415 = vst.msk [vmem:[#allocation2 + $0x30] sm:$0xff] %vm407_vm5, %v384_v7  ;;  %v574_v55 = vstv %s4777_s11  ;;  %v496_v6 = vstv %s4787_s21  ;;  %s3929_s21 = sld [smem:[#allocation8 + $0x37]]  ;;  %s3951_s11 = sld [smem:[#allocation8 + $0xfe]] }
 0x1eb   : > { %653 = vrot.lane.b32.xlu1 %v648_v12, %s8427_s5  ;;  %v690_v12 = vmul.f32 %v688_v62, %v4747_v5  ;;  %v463_v62 = vadd.f32 %v461_v50, %v425_v9 }
 0x1ec   : > { %665 = vrot.lane.b32.xlu0 %v661_v13, %s8427_s5  ;;  %v386_v22 = vpop.permute.xlu1 %385  ;;  %v4809_v38 = vld [vmem:[#allocation2 + $0x18] sm:$0xff]  ;;  %v703_v13 = vmul.f32 %v702_v63, %v4716_v56 }
 0x1ed   : > { %v388_v23 = vpop.permute.xlu0 %387  ;;  %416 = vst.msk [vmem:[#allocation2 + $0x38] sm:$0xff] %vm407_vm5, %v386_v22  ;;  %v4815_v45 = vld [vmem:[#allocation2 + $0x20] sm:$0xff]  ;;  %v503_v54 = vmul.f32 %v502_v8, %v4809_v38  ;;  %v509_v61 = vmul.f32 %v508_v14, %v4809_v38  ;;  %v458_v22 = vadd.f32 %v456_v49, %v422_v3 }
 0x1ee   : > { %417 = vst.msk [vmem:[#allocation2 + $0x40] sm:$0x3] %vm410_vm6, %v388_v23  ;;  %v610_v41 = vstv %s4753_s3  ;;  %v504_v60 = vmul.f32 %v502_v8, %v4815_v45  ;;  %v457_v8 = vadd.f32 %v455_v48, %v422_v3  ;;  %v717_v23 = vmul.f32 %v716_v0, %v4716_v56  ;;  %s5042_s3 = sld [smem:[#allocation8 + $0xf3]] }
 0x1ef   : > { %667 = vrot.lane.b32.xlu1 %v662_v28, %s8427_s5  ;;  %v731_v28 = vmul.f32 %v730_v1, %v4716_v56  ;;  %v745_v48 = vmul.f32 %v744_v2, %v4716_v56  ;;  %v511_v50 = vadd.f32 %v509_v61, %v463_v62  ;;  %v510_v61 = vmul.f32 %v508_v14, %v4815_v45 }
 0x1f0   : > { %679 = vrot.lane.b32.xlu0 %v675_v29, %s8427_s5  ;;  %v390_v39 = vpop.permute.xlu1 %389  ;;  %v580_v29 = vstv %s4801_s18  ;;  %v505_v3 = vadd.f32 %v503_v54, %v457_v8  ;;  %v462_v54 = vmul.f32 %v460_v10, %v4747_v5  ;;  %v718_v10 = vmul.f32 %v716_v0, %v4747_v5  ;;  %s8452_s18 = sld [smem:[#allocation40_spill]] }
 0x1f1   : > { %v392_v40 = vpop.permute.xlu0 %391  ;;  %418 = vst.msk [vmem:[#allocation2 + $0x48] sm:$0xff] %vm407_vm5, %v390_v39  ;;  %v4846_v58 = vld [vmem:[#allocation2 + $0x30] sm:$0xff]  ;;  %v4923_v8 = vmul.f32 %v484_v31, %v4716_v56  ;;  %v732_v0 = vmul.f32 %v730_v1, %v4747_v5  ;;  %v622_v62 = vstv %s4843_s29  ;;  %s5161_s29 = sld [smem:[#allocation8 + $0x106]] }
 0x1f2   : > { %419 = vst.msk [vmem:[#allocation2 + $0x50] sm:$0xff] %vm407_vm5, %v392_v40  ;;  %v551_v39 = vmul.f32 %v550_v16, %v4846_v58  ;;  %v506_v40 = vadd.f32 %v504_v60, %v458_v22  ;;  %v704_v60 = vmul.f32 %v702_v63, %v4747_v5  ;;  %v479_v63 = vmul.f32 %v478_v21, %v4716_v56 }
 0x1f3   : > { %681 = vrot.lane.b32.xlu1 %v676_v46, %s8427_s5  ;;  %v538_v46 = vstv %s4807_s12  ;;  %s8454_s12 = sld [smem:[#allocation45_spill]] }
 0x1f4   : > { %693 = vrot.lane.b32.xlu0 %v689_v47, %s8427_s5  ;;  %v394_v59 = vpop.permute.xlu1 %393  ;;  %v4856_v7 = vld [vmem:[#allocation2 + $0x38] sm:$0xff]  ;;  %v553_v22 = vadd.f32 %v551_v39, %v505_v3 }
 0x1f5   : > { %420 = vst.msk [vmem:[#allocation2 + $0x58] sm:$0x3] %vm410_vm6, %v394_v59  ;;  %v552_v49 = vmul.f32 %v550_v16, %v4856_v7  ;;  %v473_v16 = vmul.f32 %v472_v19, %v4716_v56  ;;  %v558_v1 = vmul.f32 %v556_v17, %v4856_v7 }
 0x1f7   : > { %695 = vrot.lane.b32.xlu1 %v690_v12, %s8427_s5  ;;  %v557_v12 = vmul.f32 %v556_v17, %v4846_v58  ;;  %v554_v37 = vadd.f32 %v552_v49, %v506_v40  ;;  %v468_v40 = vmul.f32 %v466_v11, %v4747_v5 }
 0x1f8   : > { %707 = vrot.lane.b32.xlu0 %v703_v13, %s8427_s5  ;;  %v4886_v47 = vld [vmem:[#allocation2 + $0x48] sm:$0xff]  ;;  %v467_v13 = vmul.f32 %v466_v11, %v4716_v56  ;;  %v515_v11 = vmul.f32 %v514_v18, %v4809_v38 }
 0x1f9   : > { %v4897_v59 = vld [vmem:[#allocation2 + $0x50] sm:$0xff]  ;;  %v599_v14 = vmul.f32 %v598_v24, %v4886_v47  ;;  %v559_v39 = vadd.f32 %v557_v12, %v511_v50  ;;  %v605_v4 = vmul.f32 %v604_v25, %v4886_v47 }
 0x1fa   : > { %v606_v17 = vmul.f32 %v604_v25, %v4897_v59  ;;  %v586_v25 = vstv %s4884_s24  ;;  %s3938_s24 = sld [smem:[#allocation8 + $0x64]] }
 0x1fb   : > { %709 = vrot.lane.b32.xlu1 %v704_v60, %s8427_s5  ;;  %v600_v60 = vmul.f32 %v598_v24, %v4897_v59  ;;  %v4944_v3 = vadd.f32 %v599_v14, %v553_v22  ;;  %v469_v24 = vadd.f32 %v467_v13, %v428_v15  ;;  %v4961_v50 = vadd.f32 %v605_v4, %v559_v39 }
 0x1fc   : > { %721 = vrot.lane.b32.xlu0 %v717_v23, %s8427_s5  ;;  %v464_v23 = vadd.f32 %v462_v54, %v425_v9  ;;  %v746_v54 = vmul.f32 %v744_v2, %v4747_v5  ;;  %v611_v4 = vmul.f32 %v610_v41, %v4886_v47  ;;  %v516_v2 = vmul.f32 %v514_v18, %v4815_v45 }
 0x1fd   : > { %v4952_v49 = vadd.f32 %v600_v60, %v554_v37  ;;  %v563_v37 = vmul.f32 %v562_v26, %v4846_v58  ;;  %v517_v13 = vadd.f32 %v515_v11, %v469_v24  ;;  %v759_v22 = vmul.f32 %v758_v32, %v4809_v38 }
 0x1fe   : > { %v512_v9 = vadd.f32 %v510_v61, %v464_v23  ;;  %v564_v61 = vmul.f32 %v562_v26, %v4856_v7  ;;  %v612_v60 = vmul.f32 %v610_v41, %v4897_v59  ;;  %v544_v23 = vstv %s4934_s27  ;;  %s3940_s27 = sld [smem:[#allocation8 + $0xac]] }
 0x1ff   : > { %723 = vrot.lane.b32.xlu1 %v718_v10, %s8427_s5  ;;  %v470_v10 = vadd.f32 %v468_v40, %v428_v15  ;;  %v569_v15 = vmul.f32 %v568_v42, %v4846_v58  ;;  %v565_v18 = vadd.f32 %v563_v37, %v517_v13  ;;  %v570_v41 = vmul.f32 %v568_v42, %v4856_v7 }
 0x200   : > { %735 = vrot.lane.b32.xlu0 %v731_v28, %s8427_s5  ;;  %v560_v12 = vadd.f32 %v558_v1, %v512_v9  ;;  %v475_v28 = vadd.f32 %v473_v16, %v431_v20  ;;  %v521_v16 = vmul.f32 %v520_v30, %v4809_v38  ;;  %v773_v1 = vmul.f32 %v772_v33, %v4809_v38 }
 0x201   : > { %v518_v26 = vadd.f32 %v516_v2, %v470_v10  ;;  %v5016_v40 = vadd.f32 %v611_v4, %v565_v18  ;;  %v481_v37 = vadd.f32 %v479_v63, %v434_v27  ;;  %v787_v13 = vmul.f32 %v786_v34, %v4809_v38 }
 0x202   : > { %v4991_v14 = vadd.f32 %v606_v17, %v560_v12  ;;  %v523_v39 = vadd.f32 %v521_v16, %v475_v28  ;;  %v522_v17 = vmul.f32 %v520_v30, %v4815_v45  ;;  %v618_v30 = vmul.f32 %v616_v51, %v4897_v59 }
 0x203   : > { %737 = vrot.lane.b32.xlu1 %v732_v0, %s8427_s5  ;;  %v474_v0 = vmul.f32 %v472_v19, %v4747_v5  ;;  %v566_v9 = vadd.f32 %v564_v61, %v518_v26  ;;  %v527_v19 = vmul.f32 %v526_v43, %v4809_v38  ;;  %v628_v12 = vstv %s4969_s15  ;;  %s3944_s15 = sld [smem:[#allocation8 + $0x2]] }
 0x204   : > { %749 = vrot.lane.b32.xlu0 %v745_v48, %s8427_s5  ;;  %v617_v48 = vmul.f32 %v616_v51, %v4886_v47  ;;  %v571_v24 = vadd.f32 %v569_v15, %v523_v39  ;;  %v623_v28 = vmul.f32 %v622_v62, %v4886_v47  ;;  %v760_v51 = vmul.f32 %v758_v32, %v4815_v45 }
 0x205   : > { %v476_v11 = vadd.f32 %v474_v0, %v431_v20  ;;  %v5033_v42 = vadd.f32 %v612_v60, %v566_v9  ;;  %v575_v20 = vmul.f32 %v574_v55, %v4846_v58  ;;  %v529_v4 = vadd.f32 %v527_v19, %v481_v37 }
 0x206   : > { %v5044_v63 = vadd.f32 %v617_v48, %v571_v24  ;;  %v480_v10 = vmul.f32 %v478_v21, %v4747_v5  ;;  %v528_v61 = vmul.f32 %v526_v43, %v4815_v45  ;;  %v487_v16 = vadd.f32 %v4923_v8, %v437_v44 }
 0x207   : > { %751 = vrot.lane.b32.xlu1 %v746_v54, %s8427_s5  ;;  %v524_v54 = vadd.f32 %v522_v17, %v476_v11  ;;  %v533_v32 = vmul.f32 %v532_v57, %v4809_v38  ;;  %v576_v43 = vmul.f32 %v574_v55, %v4856_v7  ;;  %v581_v15 = vmul.f32 %v580_v29, %v4846_v58 }
 0x208   : > { %763 = vrot.lane.b32.xlu0 %v759_v22, %s8427_s5  ;;  %v577_v22 = vadd.f32 %v575_v20, %v529_v4  ;;  %v482_v21 = vadd.f32 %v480_v10, %v434_v27  ;;  %v592_v8 = vstv %s5005_s8  ;;  %v629_v27 = vmul.f32 %v628_v12, %v4886_v47  ;;  %s3946_s8 = sld [smem:[#allocation8 + $0x4a]] }
 0x209   : > { %v572_v2 = vadd.f32 %v570_v41, %v524_v54  ;;  %v535_v60 = vadd.f32 %v533_v32, %v487_v16  ;;  %v774_v55 = vmul.f32 %v772_v33, %v4815_v45  ;;  %v624_v39 = vmul.f32 %v622_v62, %v4897_v59 }
 0x20a   : > { %v5082_v26 = vadd.f32 %v623_v28, %v577_v22  ;;  %v486_v48 = vmul.f32 %v484_v31, %v4747_v5  ;;  %v582_v9 = vmul.f32 %v580_v29, %v4856_v7  ;;  %v534_v41 = vmul.f32 %v532_v57, %v4815_v45 }
 0x20b   : > { %765 = vrot.lane.b32.xlu1 %v760_v51, %s8427_s5  ;;  %v5080_v18 = vadd.f32 %v618_v30, %v572_v2  ;;  %v583_v0 = vadd.f32 %v581_v15, %v535_v60  ;;  %v491_v33 = vmul.f32 %v490_v53, %v4716_v56  ;;  %v539_v31 = vmul.f32 %v538_v46, %v4809_v38 }
 0x20c   : > { %777 = vrot.lane.b32.xlu0 %v773_v1, %s8427_s5  ;;  %v530_v1 = vadd.f32 %v528_v61, %v482_v21  ;;  %v488_v17 = vadd.f32 %v486_v48, %v437_v44  ;;  %v634_v24 = vstv %s5042_s3  ;;  %v801_v57 = vmul.f32 %v800_v35, %v4809_v38  ;;  %s8459_s3 = smov 126  }
 0x20d   : > { %v5114_v29 = vadd.f32 %v629_v27, %v583_v0  ;;  %v493_v11 = vadd.f32 %v491_v33, %v440_v52  ;;  %v587_v37 = vmul.f32 %v586_v25, %v4846_v58  ;;  %v788_v44 = vmul.f32 %v786_v34, %v4815_v45 }
 0x20e   : > { %v578_v62 = vadd.f32 %v576_v43, %v530_v1  ;;  %v536_v30 = vadd.f32 %v534_v41, %v488_v17  ;;  %v630_v20 = vmul.f32 %v628_v12, %v4897_v59  ;;  %v635_v4 = vmul.f32 %v634_v24, %v4886_v47 }
 0x20f   : > { %779 = vrot.lane.b32.xlu1 %v774_v55, %s8427_s5  ;;  %v541_v54 = vadd.f32 %v539_v31, %v493_v11  ;;  %v492_v28 = vmul.f32 %v490_v53, %v4747_v5  ;;  %v540_v34 = vmul.f32 %v538_v46, %v4815_v45  ;;  %v815_v12 = vmul.f32 %v814_v36, %v4809_v38 }
 0x210   : > { %791 = vrot.lane.b32.xlu0 %v787_v13, %s8427_s5  ;;  %v5124_v19 = vadd.f32 %v624_v39, %v578_v62  ;;  %v584_v51 = vadd.f32 %v582_v9, %v536_v30  ;;  %v497_v13 = vmul.f32 %v496_v6, %v4716_v56  ;;  %v640_v10 = vstv %s5078_s23  ;;  %s3949_s23 = sld [smem:[#allocation8 + $0xb6]] }
 0x211   : > { %v589_v61 = vadd.f32 %v587_v37, %v541_v54  ;;  %v494_v2 = vadd.f32 %v492_v28, %v440_v52  ;;  %v588_v53 = vmul.f32 %v586_v25, %v4856_v7  ;;  %v545_v46 = vmul.f32 %v544_v23, %v4809_v38 }
 0x212   : > { %v802_v22 = vmul.f32 %v800_v35, %v4815_v45  ;;  %v5156_v16 = vadd.f32 %v630_v20, %v584_v51  ;;  %v8453_v32 = vstv %s8452_s18  ;;  %v593_v43 = vmul.f32 %v592_v8, %v4846_v58  ;;  %s3954_s18 = sld [smem:[#allocation8 + $0x53]] }
 0x213   : > { %793 = vrot.lane.b32.xlu1 %v788_v44, %s8427_s5  ;;  %v499_v21 = vadd.f32 %v497_v13, %v8453_v32  ;;  %v5163_v52 = vadd.f32 %v635_v4, %v589_v61  ;;  %v542_v25 = vadd.f32 %v540_v34, %v494_v2  ;;  %v636_v15 = vmul.f32 %v634_v24, %v4897_v59 }
 0x214   : > { %805 = vrot.lane.b32.xlu0 %v801_v57, %s8427_s5  ;;  %v498_v35 = vmul.f32 %v496_v6, %v4747_v5  ;;  %v641_v27 = vmul.f32 %v640_v10, %v4886_v47  ;;  %v546_v55 = vmul.f32 %v544_v23, %v4815_v45  ;;  %v8455_v39 = vmov %v8453_v32 }
 0x215   : > { %v547_v60 = vadd.f32 %v545_v46, %v499_v21  ;;  %v590_v1 = vadd.f32 %v588_v53, %v542_v25  ;;  %v594_v0 = vmul.f32 %v592_v8, %v4856_v7  ;;  %v8456_v6 = vstv %s8454_s12  ;;  %s3955_s12 = sld [smem:[#allocation8 + $0x77]] }
 0x216   : > { %v500_v48 = vadd.f32 %v498_v35, %v8455_v39  ;;  %v829_v9 = vmul.f32 %v8456_v6, %v4809_v38  ;;  %v816_v41 = vmul.f32 %v814_v36, %v4815_v45  ;;  %v842_v62 = vstv %s5127_s1  ;;  %s3953_s1 = sld [smem:[#allocation8 + $0x2f]] }
 0x217   : > { %807 = vrot.lane.b32.xlu1 %v802_v22, %s8427_s5  ;;  %v595_v33 = vadd.f32 %v593_v43, %v547_v60  ;;  %v5187_v17 = vadd.f32 %v636_v15, %v590_v1  ;;  %v642_v31 = vmul.f32 %v640_v10, %v4897_v59  ;;  %v843_v57 = vmul.f32 %v842_v62, %v4809_v38 }
 0x218   : > { %819 = vrot.lane.b32.xlu0 %v815_v12, %s8427_s5  ;;  %v548_v23 = vadd.f32 %v546_v55, %v500_v48  ;;  %v8457_v36 = vmov %v8456_v6  ;;  %v856_v37 = vstv %s5161_s29  ;;  %v870_v30 = vstv %s5175_s20  ;;  %s3956_s29 = sld [smem:[#allocation8 + $0x9b]]  ;;  %s3957_s20 = sld [smem:[#allocation8 + $0xbf]] }
 0x219   : > { %v5192_v24 = vadd.f32 %v641_v27, %v595_v33  ;;  %v830_v11 = vmul.f32 %v8457_v36, %v4815_v45  ;;  %v857_v20 = vmul.f32 %v856_v37, %v4809_v38  ;;  %v844_v54 = vmul.f32 %v842_v62, %v4815_v45 }
 0x21a   : > { %v596_v8 = vadd.f32 %v594_v0, %v548_v23  ;;  %v871_v4 = vmul.f32 %v870_v30, %v4846_v58  ;;  %v884_v28 = vstv %s3929_s21  ;;  %v858_v34 = vmul.f32 %v856_v37, %v4815_v45  ;;  %s3958_s21 = sld [smem:[#allocation8 + $0xe3]] }
 0x21b   : > { %821 = vrot.lane.b32.xlu1 %v816_v41, %s8427_s5  ;;  %v872_v12 = vmul.f32 %v870_v30, %v4856_v7  ;;  %v885_v51 = vmul.f32 %v884_v28, %v4846_v58  ;;  %v898_v13 = vstv %s3930_s6  ;;  %v886_v10 = vmul.f32 %v884_v28, %v4856_v7  ;;  %s3959_s6 = sld [smem:[#allocation8 + $0x107]] }
 0x21c   : > { %833 = vrot.lane.b32.xlu0 %v829_v9, %s8427_s5  ;;  %v5199_v44 = vadd.f32 %v642_v31, %v596_v8  ;;  %v899_v61 = vmul.f32 %v898_v13, %v4846_v58  ;;  %v912_v2 = vstv %s3931_s4  ;;  %v900_v53 = vmul.f32 %v898_v13, %v4856_v7  ;;  %s3960_s4 = sld [smem:[#allocation8 + $0x14]] }
 0x21d   : > { %v913_v46 = vmul.f32 %v912_v2, %v4846_v58  ;;  %v926_v22 = vstv %s3932_s19  ;;  %v914_v32 = vmul.f32 %v912_v2, %v4856_v7  ;;  %v940_v43 = vstv %s3933_s30  ;;  %s3961_s19 = sld [smem:[#allocation8 + $0x38]]  ;;  %s3962_s30 = sld [smem:[#allocation8 + $0x5c]] }
 0x21e   : > { %8458 = vst [vmem:[#allocation49_spill] sm:$0xff] %v5199_v44  ;;  %v927_v21 = vmul.f32 %v926_v22, %v4846_v58  ;;  %v928_v25 = vmul.f32 %v926_v22, %v4856_v7  ;;  %v941_v15 = vmul.f32 %v940_v43, %v4846_v58  ;;  %v954_v35 = vstv %s3934_s22  ;;  %s3963_s22 = sld [smem:[#allocation8 + $0x80]] }
 0x21f   : > { %835 = vrot.lane.b32.xlu1 %v830_v11, %s8427_s5  ;;  %v942_v60 = vmul.f32 %v940_v43, %v4856_v7  ;;  %v955_v27 = vmul.f32 %v954_v35, %v4846_v58  ;;  %v968_v55 = vstv %s3935_s17  ;;  %v982_v1 = vstv %s3936_s7  ;;  %s3964_s17 = sld [smem:[#allocation8 + $0xa4]]  ;;  %s3965_s7 = sld [smem:[#allocation8 + $0xc8]] }
 0x220   : > { %847 = vrot.lane.b32.xlu0 %v843_v57, %s8427_s5  ;;  %v956_v39 = vmul.f32 %v954_v35, %v4856_v7  ;;  %v969_v48 = vmul.f32 %v968_v55, %v4846_v58  ;;  %v983_v0 = vmul.f32 %v982_v1, %v4886_v47  ;;  %v996_v6 = vstv %s3937_s28  ;;  %s3966_s28 = sld [smem:[#allocation8 + $0xec]] }
 0x221   : > { %v970_v9 = vmul.f32 %v968_v55, %v4856_v7  ;;  %v997_v41 = vmul.f32 %v996_v6, %v4886_v47  ;;  %v984_v33 = vmul.f32 %v982_v1, %v4897_v59  ;;  %v1010_v62 = vstv %s3938_s24  ;;  %s3967_s24 = sld [smem:[#allocation8 + $0x110]] }
 0x222   : > { %v1011_v23 = vmul.f32 %v1010_v62, %v4886_v47  ;;  %v998_v31 = vmul.f32 %v996_v6, %v4897_v59  ;;  %v1024_v8 = vstv %s3939_s9  ;;  %v1012_v36 = vmul.f32 %v1010_v62, %v4897_v59  ;;  %s3968_s9 = sld [smem:[#allocation8 + $0x1d]] }
 0x223   : > { %849 = vrot.lane.b32.xlu1 %v844_v54, %s8427_s5  ;;  %v1025_v57 = vmul.f32 %v1024_v8, %v4886_v47  ;;  %v1038_v11 = vstv %s3940_s27  ;;  %v1026_v30 = vmul.f32 %v1024_v8, %v4897_v59  ;;  %v1108_v35 = vstv %s3945_s25  ;;  %s3969_s27 = sld [smem:[#allocation8 + $0x41]]  ;;  %s5506_s25 = sld [smem:[#allocation8 + $0xf5]] }
 0x224   : > { %861 = vrot.lane.b32.xlu0 %v857_v20, %s8427_s5  ;;  %v1039_v37 = vmul.f32 %v1038_v11, %v4886_v47  ;;  %v1052_v20 = vstv %s3941_s26  ;;  %v1040_v28 = vmul.f32 %v1038_v11, %v4897_v59  ;;  %v1109_v55 = vmul.f32 %v1108_v35, %v4716_v56  ;;  %s3970_s26 = sld [smem:[#allocation8 + $0x65]] }
 0x225   : > { %v1150_v8 = vstv %s3948_s14  ;;  %s5536_s14 = sld [smem:[#allocation8 + $0x28]] }
 0x226   : > { %v1151_v11 = vmul.f32 %v1150_v8, %v4716_v56 }
 0x227   : > { %863 = vrot.lane.b32.xlu1 %v858_v34, %s8427_s5  ;;  %v1066_v34 = vstv %s3942_s16  ;;  %s3971_s16 = sld [smem:[#allocation8 + $0x89]] }
 0x228   : > { %875 = vrot.lane.b32.xlu0 %v871_v4, %s8427_s5  ;;  %v1053_v4 = vmul.f32 %v1052_v20, %v4886_v47  ;;  %v1067_v13 = vmul.f32 %v1066_v34, %v4886_v47  ;;  %v1068_v22 = vmul.f32 %v1066_v34, %v4897_v59  ;;  %v1152_v34 = vmul.f32 %v1150_v8, %v4747_v5 }
 0x22b   : > { %877 = vrot.lane.b32.xlu1 %v872_v12, %s8427_s5 }
 0x22c   : > { %889 = vrot.lane.b32.xlu0 %v885_v51, %s8427_s5 }
 0x22f   : > { %891 = vrot.lane.b32.xlu1 %v886_v10, %s8427_s5  ;;  %v1054_v10 = vmul.f32 %v1052_v20, %v4897_v59 }
 0x230   : > { %903 = vrot.lane.b32.xlu0 %v899_v61, %s8427_s5  ;;  %v1080_v61 = vstv %s3943_s13  ;;  %s3972_s13 = sld [smem:[#allocation8 + $0xad]] }
 0x233   : > { %905 = vrot.lane.b32.xlu1 %v900_v53, %s8427_s5 }
 0x234   : > { %917 = vrot.lane.b32.xlu0 %v913_v46, %s8427_s5  ;;  %v1081_v46 = vmul.f32 %v1080_v61, %v4886_v47 }
 0x237   : > { %919 = vrot.lane.b32.xlu1 %v914_v32, %s8427_s5  ;;  %v1094_v32 = vstv %s3944_s15  ;;  %s5496_s15 = sld [smem:[#allocation8 + $0xd1]] }
 0x238   : > { %931 = vrot.lane.b32.xlu0 %v927_v21, %s8427_s5  ;;  %v1096_v1 = vmul.f32 %v1094_v32, %v4747_v5 }
 0x23b   : > { %933 = vrot.lane.b32.xlu1 %v928_v25, %s8427_s5  ;;  %v1095_v25 = vmul.f32 %v1094_v32, %v4716_v56  ;;  %v1192_v32 = vstv %s3951_s11  ;;  %s5567_s11 = sld [smem:[#allocation8 + $0x94]] }
 0x23c   : > { %945 = vrot.lane.b32.xlu0 %v941_v15, %s8427_s5  ;;  %v1082_v15 = vmul.f32 %v1080_v61, %v4897_v59 }
 0x23f   : > { %947 = vrot.lane.b32.xlu1 %v942_v60, %s8427_s5 }
 0x240   : > { %959 = vrot.lane.b32.xlu0 %v955_v27, %s8427_s5 }
 0x243   : > { %961 = vrot.lane.b32.xlu1 %v956_v39, %s8427_s5  ;;  %v1122_v39 = vstv %s3946_s8  ;;  %s5517_s8 = sld [smem:[#allocation8 + $0x119]] }
 0x244   : > { %973 = vrot.lane.b32.xlu0 %v969_v48, %s8427_s5  ;;  %v1123_v6 = vmul.f32 %v1122_v39, %v4716_v56 }
 0x247   : > { %975 = vrot.lane.b32.xlu1 %v970_v9, %s8427_s5  ;;  %v1110_v9 = vmul.f32 %v1108_v35, %v4747_v5  ;;  %v1193_v35 = vmul.f32 %v1192_v32, %v4716_v56 }
 0x248   : > { %987 = vrot.lane.b32.xlu0 %v983_v0, %s8427_s5 }
 0x24b   : > { %989 = vrot.lane.b32.xlu1 %v984_v33, %s8427_s5 }
 0x24c   : > { %1001 = vrot.lane.b32.xlu0 %v997_v41, %s8427_s5  ;;  %v1136_v41 = vstv %s3947_s2  ;;  %s5527_s2 = sld [smem:[#allocation8 + $0x4]] }
 0x24f   : > { %1003 = vrot.lane.b32.xlu1 %v998_v31, %s8427_s5  ;;  %v1124_v31 = vmul.f32 %v1122_v39, %v4747_v5 }
 0x250   : > { %1015 = vrot.lane.b32.xlu0 %v1011_v23, %s8427_s5  ;;  %v1137_v23 = vmul.f32 %v1136_v41, %v4716_v56 }
 0x253   : > { %1017 = vrot.lane.b32.xlu1 %v1012_v36, %s8427_s5 }
 0x254   : > { %1029 = vrot.lane.b32.xlu0 %v1025_v57, %s8427_s5 }
 0x257   : > { %1031 = vrot.lane.b32.xlu1 %v1026_v30, %s8427_s5  ;;  %v1164_v30 = vstv %s3949_s23  ;;  %s4010_s23 = sld [smem:[#allocation8 + $0x4c]] }
 0x258   : > { %1043 = vrot.lane.b32.xlu0 %v1039_v37, %s8427_s5  ;;  %v1138_v37 = vmul.f32 %v1136_v41, %v4747_v5  ;;  %v1194_v41 = vmul.f32 %v1192_v32, %v4747_v5 }
 0x25a   : > { %v5260_v54 = vpop.permute.xlu0 %651 }
 0x25b   : > { %1045 = vrot.lane.b32.xlu1 %v1040_v28, %s8427_s5  ;;  %v1165_v28 = vmul.f32 %v1164_v30, %v4716_v56 }
 0x25c   : > { %1057 = vrot.lane.b32.xlu0 %v1053_v4, %s8427_s5 }
 0x25d   : > { %v5266_v12 = vpop.permute.xlu1 %653 }
 0x25e   : > { %v5268_v51 = vpop.permute.xlu0 %665 }
 0x25f   : > { %1059 = vrot.lane.b32.xlu1 %v1054_v10, %s8427_s5 }
 0x260   : > { %1071 = vrot.lane.b32.xlu0 %v1067_v13, %s8427_s5  ;;  %v1178_v13 = vstv %s3950_s10  ;;  %s5557_s10 = sld [smem:[#allocation8 + $0x70]] }
 0x261   : > { %v5274_v2 = vpop.permute.xlu1 %667 }
 0x262   : > { %v5276_v53 = vpop.permute.xlu0 %679 }
 0x263   : > { %1073 = vrot.lane.b32.xlu1 %v1068_v22, %s8427_s5  ;;  %v1166_v22 = vmul.f32 %v1164_v30, %v4747_v5 }
 0x264   : > { %1085 = vrot.lane.b32.xlu0 %v1081_v46, %s8427_s5  ;;  %v1179_v46 = vmul.f32 %v1178_v13, %v4716_v56 }
 0x265   : > { %v5282_v21 = vpop.permute.xlu1 %681 }
 0x266   : > { %v5284_v43 = vpop.permute.xlu0 %693 }
 0x267   : > { %1087 = vrot.lane.b32.xlu1 %v1082_v15, %s8427_s5 }
 0x268   : > { %1099 = vrot.lane.b32.xlu0 %v1095_v25, %s8459_s3 }
 0x269   : > { %v5290_v60 = vpop.permute.xlu1 %695 }
 0x26a   : > { %v5292_v27 = vpop.permute.xlu0 %707 }
 0x26b   : > { %1101 = vrot.lane.b32.xlu1 %v1096_v1, %s8459_s3  ;;  %v1206_v1 = vstv %s3952_s0  ;;  %s5578_s0 = sld [smem:[#allocation8 + $0xb8]] }
 0x26c   : > { %1113 = vrot.lane.b32.xlu0 %v1109_v55, %s8459_s3  ;;  %v1180_v55 = vmul.f32 %v1178_v13, %v4747_v5  ;;  %v1248_v13 = vstv %s3955_s12  ;;  %s5595_s12 = sld [smem:[#allocation8 + $0x3]] }
 0x26d   : > { %v5298_v48 = vpop.permute.xlu1 %709  ;;  %v1249_v32 = vmul.f32 %v1248_v13, %v4809_v38 }
 0x26e   : > { %v5300_v0 = vpop.permute.xlu0 %721 }
 0x26f   : > { %1115 = vrot.lane.b32.xlu1 %v1110_v9, %s8459_s3  ;;  %v1207_v9 = vmul.f32 %v1206_v1, %v4809_v38 }
 0x270   : > { %1127 = vrot.lane.b32.xlu0 %v1123_v6, %s8459_s3 }
 0x271   : > { %v5306_v33 = vpop.permute.xlu1 %723 }
 0x272   : > { %v5308_v62 = vpop.permute.xlu0 %735  ;;  %8522 = sst [smem:[#allocation41_spill]] %s5595_s12 }
 0x273   : > { %1129 = vrot.lane.b32.xlu1 %v1124_v31, %s8459_s3  ;;  %s5697_s12 = sld [smem:[#allocation8 + $0x112]] }
 0x274   : > { %1141 = vrot.lane.b32.xlu0 %v1137_v23, %s8459_s3  ;;  %v1220_v23 = vstv %s3953_s1  ;;  %s5589_s1 = sld [smem:[#allocation8 + $0xdc]] }
 0x275   : > { %v5314_v57 = vpop.permute.xlu1 %737  ;;  %v1221_v8 = vmul.f32 %v1220_v23, %v4809_v38 }
 0x276   : > { %v5316_v36 = vpop.permute.xlu0 %749 }
 0x277   : > { %1143 = vrot.lane.b32.xlu1 %v1138_v37, %s8459_s3  ;;  %v1234_v37 = vstv %s3954_s18  ;;  %s5593_s18 = sld [smem:[#allocation8 + $0x100]] }
 0x278   : > { %1155 = vrot.lane.b32.xlu0 %v1151_v11, %s8459_s3  ;;  %v1208_v11 = vmul.f32 %v1206_v1, %v4815_v45 }
 0x279   : > { %v5322_v20 = vpop.permute.xlu1 %751 }
 0x27a   : > { %8460 = vst [vmem:[#allocation50_spill] sm:$0xff] %v5322_v20  ;;  %v5324_v4 = vpop.permute.xlu0 %763 }
 0x27b   : > { %8461 = vst [vmem:[#allocation51_spill] sm:$0xff] %v5324_v4  ;;  %1157 = vrot.lane.b32.xlu1 %v1152_v34, %s8459_s3  ;;  %v1222_v34 = vmul.f32 %v1220_v23, %v4815_v45  ;;  %v1250_v23 = vmul.f32 %v1248_v13, %v4815_v45 }
 0x27c   : > { %1169 = vrot.lane.b32.xlu0 %v1165_v28, %s8459_s3  ;;  %v1235_v28 = vmul.f32 %v1234_v37, %v4809_v38 }
 0x27d   : > { %v5330_v10 = vpop.permute.xlu1 %765 }
 0x27e   : > { %8462 = vst [vmem:[#allocation52_spill] sm:$0xff] %v5330_v10  ;;  %v5332_v61 = vpop.permute.xlu0 %777 }
 0x27f   : > { %8463 = vst [vmem:[#allocation53_spill] sm:$0xff] %v5332_v61  ;;  %1171 = vrot.lane.b32.xlu1 %v1166_v22, %s8459_s3 }
 0x280   : > { %1183 = vrot.lane.b32.xlu0 %v1179_v46, %s8459_s3 }
 0x281   : > { %v5338_v25 = vpop.permute.xlu1 %779 }
 0x282   : > { %8464 = vst [vmem:[#allocation54_spill] sm:$0xff] %v5338_v25  ;;  %v5340_v15 = vpop.permute.xlu0 %791 }
 0x283   : > { %8465 = vst [vmem:[#allocation55_spill] sm:$0xff] %v5340_v15  ;;  %1185 = vrot.lane.b32.xlu1 %v1180_v55, %s8459_s3  ;;  %v1262_v55 = vstv %s3956_s29  ;;  %s5603_s29 = sld [smem:[#allocation8 + $0x27]] }
 0x284   : > { %1197 = vrot.lane.b32.xlu0 %v1193_v35, %s8459_s3  ;;  %v1236_v35 = vmul.f32 %v1234_v37, %v4815_v45 }
 0x285   : > { %v5346_v39 = vpop.permute.xlu1 %793 }
 0x286   : > { %8466 = vst [vmem:[#allocation56_spill] sm:$0xff] %v5346_v39  ;;  %v5348_v6 = vpop.permute.xlu0 %805 }
 0x287   : > { %8467 = vst [vmem:[#allocation57_spill] sm:$0xff] %v5348_v6  ;;  %1199 = vrot.lane.b32.xlu1 %v1194_v41, %s8459_s3  ;;  %v1263_v41 = vmul.f32 %v1262_v55, %v4809_v38 }
 0x288   : > { %1211 = vrot.lane.b32.xlu0 %v1207_v9, %s8459_s3 }
 0x289   : > { %v5354_v56 = vpop.permute.xlu1 %807 }
 0x28a   : > { %8468 = vst [vmem:[#allocation58_spill] sm:$0xff] %v5354_v56  ;;  %v5356_v31 = vpop.permute.xlu0 %819 }
 0x28b   : > { %8469 = vst [vmem:[#allocation59_spill] sm:$0xff] %v5356_v31  ;;  %1213 = vrot.lane.b32.xlu1 %v1208_v11, %s8459_s3 }
 0x28c   : > { %1225 = vrot.lane.b32.xlu0 %v1221_v8, %s8459_s3  ;;  %v1276_v8 = vstv %s3957_s20  ;;  %s5605_s20 = sld [smem:[#allocation8 + $0x4b]] }
 0x28d   : > { %v5362_v5 = vpop.permute.xlu1 %821 }
 0x28e   : > { %8470 = vst [vmem:[#allocation60_spill] sm:$0xff] %v5362_v5  ;;  %v5364_v30 = vpop.permute.xlu0 %833 }
 0x28f   : > { %8471 = vst [vmem:[#allocation61_spill] sm:$0xff] %v5364_v30  ;;  %1227 = vrot.lane.b32.xlu1 %v1222_v34, %s8459_s3  ;;  %v1264_v34 = vmul.f32 %v1262_v55, %v4815_v45 }
 0x290   : > { %1239 = vrot.lane.b32.xlu0 %v1235_v28, %s8459_s3  ;;  %v1277_v28 = vmul.f32 %v1276_v8, %v4809_v38 }
 0x291   : > { %v5370_v46 = vpop.permute.xlu1 %835 }
 0x292   : > { %8472 = vst [vmem:[#allocation62_spill] sm:$0xff] %v5370_v46  ;;  %v5372_v22 = vpop.permute.xlu0 %847 }
 0x293   : > { %8473 = vst [vmem:[#allocation63_spill] sm:$0xff] %v5372_v22  ;;  %1241 = vrot.lane.b32.xlu1 %v1236_v35, %s8459_s3 }
 0x294   : > { %1253 = vrot.lane.b32.xlu0 %v1249_v32, %s8459_s3  ;;  %v1290_v32 = vstv %s3958_s21  ;;  %s5608_s21 = sld [smem:[#allocation8 + $0x6f]] }
 0x295   : > { %v5378_v1 = vpop.permute.xlu1 %849 }
 0x296   : > { %8474 = vst [vmem:[#allocation64_spill] sm:$0xff] %v5378_v1  ;;  %v5380_v9 = vpop.permute.xlu0 %861  ;;  %v5747_v1 = vld [vmem:[#allocation2 + $0x31] sm:$0xff] }
 0x297   : > { %8475 = vst [vmem:[#allocation65_spill] sm:$0xff] %v5380_v9  ;;  %1255 = vrot.lane.b32.xlu1 %v1250_v23, %s8459_s3  ;;  %v1278_v23 = vmul.f32 %v1276_v8, %v4815_v45  ;;  %v5749_v9 = vld [vmem:[#allocation2 + $0x39] sm:$0xff] }
 0x298   : > { %1267 = vrot.lane.b32.xlu0 %v1263_v41, %s8459_s3  ;;  %v1291_v41 = vmul.f32 %v1290_v32, %v4809_v38 }
 0x299   : > { %v5386_v11 = vpop.permute.xlu1 %863 }
 0x29a   : > { %8476 = vst [vmem:[#allocation66_spill] sm:$0xff] %v5386_v11  ;;  %v5388_v37 = vpop.permute.xlu0 %875  ;;  %v1304_v11 = vstv %s3959_s6  ;;  %s5610_s6 = sld [smem:[#allocation8 + $0x93]] }
 0x29b   : > { %8477 = vst [vmem:[#allocation67_spill] sm:$0xff] %v5388_v37  ;;  %1269 = vrot.lane.b32.xlu1 %v1264_v34, %s8459_s3  ;;  %v1292_v34 = vmul.f32 %v1290_v32, %v4815_v45 }
 0x29c   : > { %1281 = vrot.lane.b32.xlu0 %v1277_v28, %s8459_s3  ;;  %v1305_v28 = vmul.f32 %v1304_v11, %v4809_v38 }
 0x29d   : > { %v5394_v13 = vpop.permute.xlu1 %877 }
 0x29e   : > { %8478 = vst [vmem:[#allocation68_spill] sm:$0xff] %v5394_v13  ;;  %v5396_v35 = vpop.permute.xlu0 %889  ;;  %v1318_v13 = vstv %s3960_s4  ;;  %s5614_s4 = sld [smem:[#allocation8 + $0xb7]] }
 0x29f   : > { %8479 = vst [vmem:[#allocation69_spill] sm:$0xff] %v5396_v35  ;;  %1283 = vrot.lane.b32.xlu1 %v1278_v23, %s8459_s3  ;;  %v1319_v23 = vmul.f32 %v1318_v13, %v4846_v58 }
 0x2a0   : > { %1295 = vrot.lane.b32.xlu0 %v1291_v41, %s8459_s3  ;;  %v1306_v41 = vmul.f32 %v1304_v11, %v4815_v45 }
 0x2a1   : > { %v5402_v55 = vpop.permute.xlu1 %891 }
 0x2a2   : > { %8480 = vst [vmem:[#allocation70_spill] sm:$0xff] %v5402_v55  ;;  %v5404_v37 = vpop.permute.xlu0 %903  ;;  %v1332_v55 = vstv %s3961_s19  ;;  %s5616_s19 = sld [smem:[#allocation8 + $0xdb]] }
 0x2a3   : > { %8481 = vst [vmem:[#allocation71_spill] sm:$0xff] %v5404_v37  ;;  %1297 = vrot.lane.b32.xlu1 %v1292_v34, %s8459_s3  ;;  %v1333_v34 = vmul.f32 %v1332_v55, %v4846_v58 }
 0x2a4   : > { %1309 = vrot.lane.b32.xlu0 %v1305_v28, %s8459_s3  ;;  %v1320_v28 = vmul.f32 %v1318_v13, %v4856_v7 }
 0x2a5   : > { %v5410_v8 = vpop.permute.xlu1 %905 }
 0x2a6   : > { %8482 = vst [vmem:[#allocation72_spill] sm:$0xff] %v5410_v8  ;;  %v5412_v35 = vpop.permute.xlu0 %917  ;;  %v1346_v8 = vstv %s3962_s30  ;;  %s5618_s30 = sld [smem:[#allocation8 + $0xd]] }
 0x2a7   : > { %8483 = vst [vmem:[#allocation73_spill] sm:$0xff] %v5412_v35  ;;  %1311 = vrot.lane.b32.xlu1 %v1306_v41, %s8459_s3  ;;  %v1334_v41 = vmul.f32 %v1332_v55, %v4856_v7  ;;  %v5713_v35 = vld [vmem:[#allocation2 + $0x21] sm:$0xff] }
 0x2a8   : > { %1323 = vrot.lane.b32.xlu0 %v1319_v23, %s8459_s3  ;;  %v1347_v23 = vmul.f32 %v1346_v8, %v4846_v58  ;;  %8533 = vst [vmem:[#allocation122_spill] sm:$0xff] %v5713_v35 }
 0x2a9   : > { %v5418_v38 = vpop.permute.xlu1 %919 }
 0x2aa   : > { %8484 = vst [vmem:[#allocation74_spill] sm:$0xff] %v5418_v38  ;;  %v5420_v32 = vpop.permute.xlu0 %931  ;;  %v1360_v38 = vstv %s3963_s22  ;;  %s5620_s22 = sld [smem:[#allocation8 + $0xff]] }
 0x2ab   : > { %8485 = vst [vmem:[#allocation75_spill] sm:$0xff] %v5420_v32  ;;  %1325 = vrot.lane.b32.xlu1 %v1320_v28, %s8459_s3  ;;  %v1348_v28 = vmul.f32 %v1346_v8, %v4856_v7 }
 0x2ac   : > { %1337 = vrot.lane.b32.xlu0 %v1333_v34, %s8459_s3  ;;  %v1361_v34 = vmul.f32 %v1360_v38, %v4846_v58 }
 0x2ad   : > { %v5426_v45 = vpop.permute.xlu1 %933 }
 0x2ae   : > { %8486 = vst [vmem:[#allocation76_spill] sm:$0xff] %v5426_v45  ;;  %v5428_v11 = vpop.permute.xlu0 %945  ;;  %v1374_v45 = vstv %s3964_s17  ;;  %s5628_s17 = sld [smem:[#allocation8 + $0x31]] }
 0x2af   : > { %8487 = vst [vmem:[#allocation77_spill] sm:$0xff] %v5428_v11  ;;  %1339 = vrot.lane.b32.xlu1 %v1334_v41, %s8459_s3  ;;  %v1362_v41 = vmul.f32 %v1360_v38, %v4856_v7 }
 0x2b0   : > { %1351 = vrot.lane.b32.xlu0 %v1347_v23, %s8459_s3  ;;  %v1375_v23 = vmul.f32 %v1374_v45, %v4846_v58 }
 0x2b1   : > { %v5434_v13 = vpop.permute.xlu1 %947 }
 0x2b2   : > { %8488 = vst [vmem:[#allocation78_spill] sm:$0xff] %v5434_v13  ;;  %v5436_v32 = vpop.permute.xlu0 %959  ;;  %v1388_v13 = vstv %s3965_s7  ;;  %s5630_s7 = sld [smem:[#allocation8 + $0x55]] }
 0x2b3   : > { %8489 = vst [vmem:[#allocation79_spill] sm:$0xff] %v5436_v32  ;;  %1353 = vrot.lane.b32.xlu1 %v1348_v28, %s8459_s3  ;;  %v1376_v28 = vmul.f32 %v1374_v45, %v4856_v7 }
 0x2b4   : > { %1365 = vrot.lane.b32.xlu0 %v1361_v34, %s8459_s3  ;;  %v1389_v34 = vmul.f32 %v1388_v13, %v4846_v58 }
 0x2b5   : > { %v5442_v55 = vpop.permute.xlu1 %961 }
 0x2b6   : > { %8490 = vst [vmem:[#allocation80_spill] sm:$0xff] %v5442_v55  ;;  %v5444_v11 = vpop.permute.xlu0 %973  ;;  %v1402_v55 = vstv %s3966_s28  ;;  %s5633_s28 = sld [smem:[#allocation8 + $0x79]] }
 0x2b7   : > { %8491 = vst [vmem:[#allocation81_spill] sm:$0xff] %v5444_v11  ;;  %1367 = vrot.lane.b32.xlu1 %v1362_v41, %s8459_s3  ;;  %v1390_v41 = vmul.f32 %v1388_v13, %v4856_v7 }
 0x2b8   : > { %1379 = vrot.lane.b32.xlu0 %v1375_v23, %s8459_s3  ;;  %v1403_v23 = vmul.f32 %v1402_v55, %v4846_v58 }
 0x2b9   : > { %v5450_v8 = vpop.permute.xlu1 %975 }
 0x2ba   : > { %8492 = vst [vmem:[#allocation82_spill] sm:$0xff] %v5450_v8  ;;  %v5452_v32 = vpop.permute.xlu0 %987  ;;  %v1416_v8 = vstv %s3967_s24  ;;  %s5635_s24 = sld [smem:[#allocation8 + $0x9d]] }
 0x2bb   : > { %8493 = vst [vmem:[#allocation83_spill] sm:$0xff] %v5452_v32  ;;  %1381 = vrot.lane.b32.xlu1 %v1376_v28, %s8459_s3  ;;  %v1404_v28 = vmul.f32 %v1402_v55, %v4856_v7 }
 0x2bc   : > { %1393 = vrot.lane.b32.xlu0 %v1389_v34, %s8459_s3  ;;  %v1417_v34 = vmul.f32 %v1416_v8, %v4846_v58 }
 0x2bd   : > { %v5458_v38 = vpop.permute.xlu1 %989 }
 0x2be   : > { %8494 = vst [vmem:[#allocation84_spill] sm:$0xff] %v5458_v38  ;;  %v5460_v11 = vpop.permute.xlu0 %1001  ;;  %v1430_v38 = vstv %s3968_s9  ;;  %s5639_s9 = sld [smem:[#allocation8 + $0xc1]] }
 0x2bf   : > { %8495 = vst [vmem:[#allocation85_spill] sm:$0xff] %v5460_v11  ;;  %1395 = vrot.lane.b32.xlu1 %v1390_v41, %s8459_s3  ;;  %v1418_v41 = vmul.f32 %v1416_v8, %v4856_v7 }
 0x2c0   : > { %1407 = vrot.lane.b32.xlu0 %v1403_v23, %s8459_s3  ;;  %v1431_v23 = vmul.f32 %v1430_v38, %v4886_v47 }
 0x2c1   : > { %v5466_v45 = vpop.permute.xlu1 %1003 }
 0x2c2   : > { %8496 = vst [vmem:[#allocation86_spill] sm:$0xff] %v5466_v45  ;;  %v5468_v32 = vpop.permute.xlu0 %1015  ;;  %v1444_v45 = vstv %s3969_s27  ;;  %s5641_s27 = sld [smem:[#allocation8 + $0xe5]] }
 0x2c3   : > { %8497 = vst [vmem:[#allocation87_spill] sm:$0xff] %v5468_v32  ;;  %1409 = vrot.lane.b32.xlu1 %v1404_v28, %s8459_s3  ;;  %v1432_v28 = vmul.f32 %v1430_v38, %v4897_v59 }
 0x2c4   : > { %1421 = vrot.lane.b32.xlu0 %v1417_v34, %s8459_s3  ;;  %v1445_v34 = vmul.f32 %v1444_v45, %v4886_v47  ;;  %v1924_v37 = vstv %s5639_s9  ;;  %s5879_s9 = sld [smem:[#allocation8 + $0xaf]] }
 0x2c5   : > { %v5474_v13 = vpop.permute.xlu1 %1017  ;;  %v5768_v61 = vmul.f32 %v1924_v37, %v5713_v35 }
 0x2c6   : > { %8498 = vst [vmem:[#allocation88_spill] sm:$0xff] %v5474_v13  ;;  %v5476_v11 = vpop.permute.xlu0 %1029  ;;  %v1458_v13 = vstv %s3970_s26  ;;  %s5643_s26 = sld [smem:[#allocation8 + $0x109]] }
 0x2c7   : > { %8499 = vst [vmem:[#allocation89_spill] sm:$0xff] %v5476_v11  ;;  %1423 = vrot.lane.b32.xlu1 %v1418_v41, %s8459_s3  ;;  %v1446_v41 = vmul.f32 %v1444_v45, %v4897_v59  ;;  %v1528_v11 = vstv %s5517_s8  ;;  %s5660_s8 = sld [smem:[#allocation8 + $0x9c]] }
 0x2c8   : > { %1435 = vrot.lane.b32.xlu0 %v1431_v23, %s8459_s3  ;;  %v1459_v23 = vmul.f32 %v1458_v13, %v4886_v47 }
 0x2c9   : > { %v5482_v58 = vpop.permute.xlu1 %1031 }
 0x2ca   : > { %8500 = vst [vmem:[#allocation90_spill] sm:$0xff] %v5482_v58  ;;  %v5484_v55 = vpop.permute.xlu0 %1043  ;;  %v1472_v58 = vstv %s3971_s16  ;;  %s5645_s16 = sld [smem:[#allocation8 + $0xc]] }
 0x2cb   : > { %8501 = vst [vmem:[#allocation91_spill] sm:$0xff] %v5484_v55  ;;  %1437 = vrot.lane.b32.xlu1 %v1432_v28, %s8459_s3  ;;  %v1514_v55 = vstv %s5506_s25  ;;  %s5658_s25 = sld [smem:[#allocation8 + $0x78]] }
 0x2cc   : > { %1449 = vrot.lane.b32.xlu0 %v1445_v34, %s8459_s3  ;;  %v1460_v34 = vmul.f32 %v1458_v13, %v4897_v59 }
 0x2cd   : > { %v5490_v7 = vpop.permute.xlu1 %1045 }
 0x2ce   : > { %8502 = vst [vmem:[#allocation92_spill] sm:$0xff] %v5490_v7  ;;  %v5492_v8 = vpop.permute.xlu0 %1057  ;;  %v1486_v7 = vstv %s3972_s13  ;;  %s5653_s13 = sld [smem:[#allocation8 + $0x30]] }
 0x2cf   : > { %8503 = vst [vmem:[#allocation93_spill] sm:$0xff] %v5492_v8  ;;  %1451 = vrot.lane.b32.xlu1 %v1446_v41, %s8459_s3  ;;  %v1473_v8 = vmul.f32 %v1472_v58, %v4886_v47 }
 0x2d0   : > { %1463 = vrot.lane.b32.xlu0 %v1459_v23, %s8459_s3  ;;  %v1474_v23 = vmul.f32 %v1472_v58, %v4897_v59 }
 0x2d1   : > { %v5500_v38 = vpop.permute.xlu1 %1059 }
 0x2d2   : > { %8504 = vst [vmem:[#allocation94_spill] sm:$0xff] %v5500_v38  ;;  %v5502_v28 = vpop.permute.xlu0 %1071  ;;  %v1500_v38 = vstv %s5496_s15  ;;  %s5655_s15 = sld [smem:[#allocation8 + $0x54]] }
 0x2d3   : > { %8505 = vst [vmem:[#allocation95_spill] sm:$0xff] %v5502_v28  ;;  %1465 = vrot.lane.b32.xlu1 %v1460_v34, %s8459_s3  ;;  %v1487_v28 = vmul.f32 %v1486_v7, %v4886_v47 }
 0x2d4   : > { %1477 = vrot.lane.b32.xlu0 %v1473_v8, %s8459_s3  ;;  %v1488_v8 = vmul.f32 %v1486_v7, %v4897_v59 }
 0x2d5   : > { %v5510_v45 = vpop.permute.xlu1 %1073 }
 0x2d6   : > { %8506 = vst [vmem:[#allocation96_spill] sm:$0xff] %v5510_v45  ;;  %v5512_v41 = vpop.permute.xlu0 %1085  ;;  %v4250_v45 = vld [vmem:[#allocation2 + $0x48] sm:$0xff] }
 0x2d7   : > { %8507 = vst [vmem:[#allocation97_spill] sm:$0xff] %v5512_v41  ;;  %1479 = vrot.lane.b32.xlu1 %v1474_v23, %s8459_s3  ;;  %v1501_v41 = vmul.f32 %v4250_v45, %v1500_v38 }
 0x2d8   : > { %1491 = vrot.lane.b32.xlu0 %v1487_v28, %s8459_s3  ;;  %v4251_v28 = vld [vmem:[#allocation2 + $0x50] sm:$0xff] }
 0x2d9   : > { %v5521_v13 = vpop.permute.xlu1 %1087  ;;  %v1502_v23 = vmul.f32 %v4251_v28, %v1500_v38  ;;  %v1530_v32 = vmul.f32 %v4251_v28, %v1528_v11 }
 0x2da   : > { %8508 = vst [vmem:[#allocation98_spill] sm:$0xff] %v5521_v13  ;;  %v5523_v34 = vpop.permute.xlu0 %1099  ;;  %v1515_v13 = vmul.f32 %v4250_v45, %v1514_v55 }
 0x2db   : > { %8509 = vst [vmem:[#allocation99_spill] sm:$0xff] %v5523_v34  ;;  %1493 = vrot.lane.b32.xlu1 %v1488_v8, %s8459_s3  ;;  %v1529_v8 = vmul.f32 %v4250_v45, %v1528_v11 }
 0x2dc   : > { %1505 = vrot.lane.b32.xlu0 %v1501_v41, %s8459_s3  ;;  %v1516_v41 = vmul.f32 %v4251_v28, %v1514_v55  ;;  %v1770_v28 = vstv %s4010_s23  ;;  %s5668_s23 = sld [smem:[#allocation8 + $0x16]] }
 0x2dd   : > { %v5531_v47 = vpop.permute.xlu1 %1101 }
 0x2de   : > { %8510 = vst [vmem:[#allocation100_spill] sm:$0xff] %v5531_v47  ;;  %v5533_v58 = vpop.permute.xlu0 %1113  ;;  %v5544_v47 = vld [vmem:[#allocation2 + $0x1] sm:$0xff] }
 0x2df   : > { %8511 = vst [vmem:[#allocation101_spill] sm:$0xff] %v5533_v58  ;;  %1507 = vrot.lane.b32.xlu1 %v1502_v23, %s8459_s3  ;;  %v1742_v58 = vstv %s5527_s2  ;;  %s5664_s2 = sld [smem:[#allocation8 + $0xc0]] }
 0x2e0   : > { %1519 = vrot.lane.b32.xlu0 %v1515_v13, %s8459_s3  ;;  %v1743_v13 = vmul.f32 %v1742_v58, %v5544_v47 }
 0x2e1   : > { %v5540_v59 = vpop.permute.xlu1 %1115 }
 0x2e2   : > { %8512 = vst [vmem:[#allocation102_spill] sm:$0xff] %v5540_v59  ;;  %v5542_v7 = vpop.permute.xlu0 %1127  ;;  %v5554_v59 = vld [vmem:[#allocation2 + $0x9] sm:$0xff]  ;;  %v1966_v5 = vstv %s5668_s23  ;;  %s6448_s23 = sld [smem:[#allocation8 + $0x11a]] }
 0x2e3   : > { %8513 = vst [vmem:[#allocation103_spill] sm:$0xff] %v5542_v7  ;;  %1521 = vrot.lane.b32.xlu1 %v1516_v41, %s8459_s3  ;;  %v1756_v7 = vstv %s5536_s14  ;;  %v1744_v41 = vmul.f32 %v1742_v58, %v5554_v59  ;;  %s5666_s14 = sld [smem:[#allocation8 + $0xe4]] }
 0x2e4   : > { %1533 = vrot.lane.b32.xlu0 %v1529_v8, %s8459_s3  ;;  %v1757_v11 = vmul.f32 %v1756_v7, %v5544_v47 }
 0x2e5   : > { %v5549_v38 = vpop.permute.xlu1 %1129 }
 0x2e6   : > { %8514 = vst [vmem:[#allocation104_spill] sm:$0xff] %v5549_v38  ;;  %v5551_v23 = vpop.permute.xlu0 %1141  ;;  %v1952_v38 = vstv %s5643_s26  ;;  %s5909_s26 = sld [smem:[#allocation8 + $0xd3]] }
 0x2e7   : > { %8515 = vst [vmem:[#allocation105_spill] sm:$0xff] %v5551_v23  ;;  %1535 = vrot.lane.b32.xlu1 %v1530_v32, %s8459_s3  ;;  %v5683_v23 = vld [vmem:[#allocation2 + $0x19] sm:$0xff]  ;;  %s5695_s3 = sld [smem:[#allocation8 + $0xee]] }
 0x2e8   : > { %1747 = vrot.lane.b32.xlu0 %v1743_v13, %s8427_s5  ;;  %v1758_v13 = vmul.f32 %v1756_v7, %v5554_v59 }
 0x2e9   : > { %v5561_v55 = vpop.permute.xlu1 %1143 }
 0x2ea   : > { %8516 = vst [vmem:[#allocation106_spill] sm:$0xff] %v5561_v55  ;;  %v5563_v45 = vpop.permute.xlu0 %1155  ;;  %v1784_v55 = vstv %s5557_s10  ;;  %s5670_s10 = sld [smem:[#allocation8 + $0x3a]] }
 0x2eb   : > { %8517 = vst [vmem:[#allocation107_spill] sm:$0xff] %v5563_v45  ;;  %1749 = vrot.lane.b32.xlu1 %v1744_v41, %s8427_s5  ;;  %v1771_v45 = vmul.f32 %v1770_v28, %v5544_v47 }
 0x2ec   : > { %1761 = vrot.lane.b32.xlu0 %v1757_v11, %s8427_s5  ;;  %v1772_v11 = vmul.f32 %v1770_v28, %v5554_v59 }
 0x2ed   : > { %v5571_v8 = vpop.permute.xlu1 %1157  ;;  %v2050_v22 = vstv %s5695_s3  ;;  %s8538_s3 = sld [smem:[#allocation41_spill]] }
 0x2ee   : > { %8518 = vst [vmem:[#allocation108_spill] sm:$0xff] %v5571_v8  ;;  %v5573_v32 = vpop.permute.xlu0 %1169  ;;  %v1798_v8 = vstv %s5567_s11  ;;  %s5678_s11 = sld [smem:[#allocation8 + $0x5e]] }
 0x2ef   : > { %8519 = vst [vmem:[#allocation109_spill] sm:$0xff] %v5573_v32  ;;  %1763 = vrot.lane.b32.xlu1 %v1758_v13, %s8427_s5  ;;  %v1785_v32 = vmul.f32 %v1784_v55, %v5544_v47  ;;  %v1786_v13 = vmul.f32 %v1784_v55, %v5554_v59  ;;  %v1799_v28 = vmul.f32 %v1798_v8, %v5544_v47 }
 0x2f0   : > { %1775 = vrot.lane.b32.xlu0 %v1771_v45, %s8427_s5 }
 0x2f1   : > { %v5582_v58 = vpop.permute.xlu1 %1171 }
 0x2f2   : > { %8520 = vst [vmem:[#allocation110_spill] sm:$0xff] %v5582_v58  ;;  %v5584_v41 = vpop.permute.xlu0 %1183 }
 0x2f3   : > { %8521 = vst [vmem:[#allocation111_spill] sm:$0xff] %v5584_v41  ;;  %1777 = vrot.lane.b32.xlu1 %v1772_v11, %s8427_s5  ;;  %v1812_v11 = vstv %s5578_s0  ;;  %s5680_s0 = sld [smem:[#allocation8 + $0x82]] }
 0x2f4   : > { %1789 = vrot.lane.b32.xlu0 %v1785_v32, %s8427_s5  ;;  %v1994_v31 = vstv %s5678_s11  ;;  %s6502_s11 = sld [smem:[#allocation8 + $0x5]] }
 0x2f5   : > { %v5597_v7 = vpop.permute.xlu1 %1185 }
 0x2f6   : > { %8523 = vst [vmem:[#allocation112_spill] sm:$0xff] %v5597_v7  ;;  %v5599_v45 = vpop.permute.xlu0 %1197  ;;  %v1813_v7 = vmul.f32 %v1812_v11, %v5544_v47 }
 0x2f7   : > { %8524 = vst [vmem:[#allocation113_spill] sm:$0xff] %v5599_v45  ;;  %1791 = vrot.lane.b32.xlu1 %v1786_v13, %s8427_s5  ;;  %v1800_v45 = vmul.f32 %v1798_v8, %v5554_v59  ;;  %v1826_v13 = vstv %s5589_s1  ;;  %s5686_s1 = sld [smem:[#allocation8 + $0xa6]] }
 0x2f8   : > { %1803 = vrot.lane.b32.xlu0 %v1799_v28, %s8427_s5  ;;  %v1827_v41 = vmul.f32 %v1826_v13, %v5544_v47  ;;  %v1828_v58 = vmul.f32 %v1826_v13, %v5554_v59  ;;  %v1882_v13 = vstv %s5630_s7  ;;  %s5791_s7 = sld [smem:[#allocation8 + $0x67]] }
 0x2f9   : > { %v5622_v55 = vpop.permute.xlu1 %1199 }
 0x2fa   : > { %8525 = vst [vmem:[#allocation114_spill] sm:$0xff] %v5622_v55  ;;  %v5624_v32 = vpop.permute.xlu0 %1211  ;;  %v1814_v55 = vmul.f32 %v1812_v11, %v5554_v59 }
 0x2fb   : > { %8526 = vst [vmem:[#allocation115_spill] sm:$0xff] %v5624_v32  ;;  %1805 = vrot.lane.b32.xlu1 %v1800_v45, %s8427_s5 }
 0x2fc   : > { %1817 = vrot.lane.b32.xlu0 %v1813_v7, %s8427_s5  ;;  %v1840_v7 = vstv %s5593_s18  ;;  %s5688_s18 = sld [smem:[#allocation8 + $0xca]] }
 0x2fd   : > { %v5647_v8 = vpop.permute.xlu1 %1213  ;;  %v2022_v56 = vstv %s5686_s1  ;;  %s6549_s1 = sld [smem:[#allocation8 + $0x4d]] }
 0x2fe   : > { %8527 = vst [vmem:[#allocation116_spill] sm:$0xff] %v5647_v8  ;;  %v5649_v28 = vpop.permute.xlu0 %1225  ;;  %v1868_v8 = vstv %s5628_s17  ;;  %s5745_s17 = sld [smem:[#allocation8 + $0x43]] }
 0x2ff   : > { %8528 = vst [vmem:[#allocation117_spill] sm:$0xff] %v5649_v28  ;;  %1819 = vrot.lane.b32.xlu1 %v1814_v55, %s8427_s5  ;;  %v1896_v55 = vstv %s5633_s28  ;;  %v1910_v28 = vstv %s5635_s24  ;;  %s5823_s28 = sld [smem:[#allocation8 + $0x8b]]  ;;  %s5859_s24 = sld [smem:[#allocation8 + $0x108]] }
 0x300   : > { %1831 = vrot.lane.b32.xlu0 %v1827_v41, %s8427_s5  ;;  %v1841_v41 = vmul.f32 %v1840_v7, %v5544_v47  ;;  %v1897_v39 = vmul.f32 %v1896_v55, %v5683_v23  ;;  %v1898_v46 = vmul.f32 %v1896_v55, %v5713_v35  ;;  %v1911_v15 = vmul.f32 %v1910_v28, %v5683_v23 }
 0x301   : > { %v5672_v45 = vpop.permute.xlu1 %1227  ;;  %v5762_v25 = vmul.f32 %v1910_v28, %v5713_v35  ;;  %v5782_v28 = vmul.f32 %v1952_v38, %v5713_v35  ;;  %v5788_v55 = vmul.f32 %v1966_v5, %v5749_v9 }
 0x302   : > { %8529 = vst [vmem:[#allocation118_spill] sm:$0xff] %v5672_v45  ;;  %v5674_v11 = vpop.permute.xlu0 %1239  ;;  %v1854_v45 = vstv %s5618_s30  ;;  %s5723_s30 = sld [smem:[#allocation8 + $0x1f]]  ;;  %v2036_v6 = vstv %s5688_s18  ;;  %s4043_s18 = sld [smem:[#allocation8 + $0x71]] }
 0x303   : > { %8530 = vst [vmem:[#allocation119_spill] sm:$0xff] %v5674_v11  ;;  %1833 = vrot.lane.b32.xlu1 %v1828_v58, %s8427_s5  ;;  %v1855_v34 = vmul.f32 %v1854_v45, %v5683_v23  ;;  %v1938_v11 = vstv %s5641_s27  ;;  %s5881_s27 = sld [smem:[#allocation8 + $0x15]] }
 0x304   : > { %1845 = vrot.lane.b32.xlu0 %v1841_v41, %s8427_s5  ;;  %v1842_v41 = vmul.f32 %v1840_v7, %v5554_v59  ;;  %v1980_v7 = vstv %s5670_s10  ;;  %s6476_s10 = sld [smem:[#allocation8 + $0x11b]] }
 0x305   : > { %v5705_v32 = vpop.permute.xlu1 %1241  ;;  %v5794_v10 = vmul.f32 %v1980_v7, %v5747_v1 }
 0x306   : > { %8531 = vst [vmem:[#allocation120_spill] sm:$0xff] %v5705_v32  ;;  %v5707_v58 = vpop.permute.xlu0 %1253 }
 0x307   : > { %8532 = vst [vmem:[#allocation121_spill] sm:$0xff] %v5707_v58  ;;  %1847 = vrot.lane.b32.xlu1 %v1842_v41, %s8427_s5  ;;  %v1856_v41 = vmul.f32 %v1854_v45, %v5713_v35  ;;  %v2008_v58 = vstv %s5680_s0  ;;  %v1870_v45 = vmul.f32 %v1868_v8, %v5713_v35  ;;  %s6530_s0 = sld [smem:[#allocation8 + $0x29]] }
 0x308   : > { %1859 = vrot.lane.b32.xlu0 %v1855_v34, %s8427_s5  ;;  %v1869_v34 = vmul.f32 %v1868_v8, %v5683_v23  ;;  %v5765_v8 = vmul.f32 %v1924_v37, %v5683_v23  ;;  %v5785_v37 = vmul.f32 %v1966_v5, %v5747_v1  ;;  %v5810_v20 = vmul.f32 %v2008_v58, %v5747_v1 }
 0x309   : > { %v5729_v30 = vpop.permute.xlu1 %1255 }
 0x30a   : > { %8534 = vst [vmem:[#allocation123_spill] sm:$0xff] %v5729_v30  ;;  %v5731_v32 = vpop.permute.xlu0 %1267  ;;  %v1884_v30 = vmul.f32 %v1882_v13, %v5713_v35 }
 0x30b   : > { %8535 = vst [vmem:[#allocation124_spill] sm:$0xff] %v5731_v32  ;;  %1861 = vrot.lane.b32.xlu1 %v1856_v41, %s8427_s5  ;;  %v1883_v32 = vmul.f32 %v1882_v13, %v5683_v23  ;;  %v5771_v13 = vmul.f32 %v1938_v11, %v5683_v23 }
 0x30c   : > { %1873 = vrot.lane.b32.xlu0 %v1869_v34, %s8427_s5 }
 0x30d   : > { %v5755_v41 = vpop.permute.xlu1 %1269 }
 0x30e   : > { %8536 = vst [vmem:[#allocation125_spill] sm:$0xff] %v5755_v41  ;;  %v5757_v34 = vpop.permute.xlu0 %1281  ;;  %v5774_v41 = vmul.f32 %v1938_v11, %v5713_v35  ;;  %v2078_v11 = vstv %s5723_s30  ;;  %s8790_s30 = smov 126  }
 0x30f   : > { %8537 = vst [vmem:[#allocation126_spill] sm:$0xff] %v5757_v34  ;;  %v5777_v34 = vmul.f32 %v1952_v38, %v5683_v23  ;;  %1875 = vrot.lane.b32.xlu1 %v1870_v45, %s8427_s5  ;;  %v5797_v45 = vmul.f32 %v1980_v7, %v5749_v9  ;;  %v5800_v38 = vmul.f32 %v1994_v31, %v5747_v1 }
 0x310   : > { %1887 = vrot.lane.b32.xlu0 %v1883_v32, %s8427_s5  ;;  %v5803_v32 = vmul.f32 %v1994_v31, %v5749_v9  ;;  %v5813_v7 = vmul.f32 %v2008_v58, %v5749_v9  ;;  %v8547_v31 = vstv %s5645_s16  ;;  %v5834_v58 = vmul.f32 %v2036_v6, %v5747_v1  ;;  %s5949_s16 = sld [smem:[#allocation8 + $0x42]] }
 0x311   : > { %8539 = vst [vmem:[#allocation127_spill] sm:$0xff] %v5797_v45  ;;  %8540 = vst [vmem:[#allocation128_spill] sm:$0xff] %v5800_v38  ;;  %v5805_v5 = vpop.permute.xlu1 %1283  ;;  %v5816_v45 = vmul.f32 %v2022_v56, %v5747_v1  ;;  %v8545_v38 = vstv %s8538_s3  ;;  %s4045_s3 = sld [smem:[#allocation8 + $0xb9]] }
 0x312   : > { %8541 = vst [vmem:[#allocation129_spill] sm:$0xff] %v5805_v5  ;;  %v5807_v4 = vpop.permute.xlu0 %1295  ;;  %8543 = vst [vmem:[#allocation131_spill] sm:$0xff] %v5813_v7  ;;  %v5821_v44 = vmul.f32 %v8545_v38, %v5544_v47  ;;  %v5831_v5 = vmul.f32 %v2022_v56, %v5749_v9 }
 0x313   : > { %8542 = vst [vmem:[#allocation130_spill] sm:$0xff] %v5807_v4  ;;  %8544 = vst [vmem:[#allocation132_spill] sm:$0xff] %v5816_v45  ;;  %v5828_v4 = vmul.f32 %v8547_v31, %v5683_v23  ;;  %v8551_v45 = vmov %v8545_v38  ;;  %1889 = vrot.lane.b32.xlu1 %v1884_v30, %s8427_s5  ;;  %v8553_v38 = vmov %v8547_v31  ;;  %v8555_v31 = vstv %s5603_s29  ;;  %v5861_v30 = vld [vmem:[#allocation2 + $0x49] sm:$0xff]  ;;  %s5907_s29 = sld [smem:[#allocation8 + $0x1e]] }
 0x314   : > { %8546 = vst [vmem:[#allocation133_spill] sm:$0xff] %v5821_v44  ;;  %8549 = vst [vmem:[#allocation135_spill] sm:$0xff] %v5831_v5  ;;  %v5839_v7 = vmul.f32 %v8551_v45, %v5554_v59  ;;  %1901 = vrot.lane.b32.xlu0 %v1897_v39, %s8427_s5  ;;  %v5846_v44 = vmul.f32 %v8553_v38, %v5713_v35  ;;  %v5851_v56 = vmul.f32 %v8555_v31, %v5544_v47 }
 0x315   : > { %8548 = vst [vmem:[#allocation134_spill] sm:$0xff] %v5828_v4  ;;  %8550 = vst [vmem:[#allocation136_spill] sm:$0xff] %v5834_v58  ;;  %v8557_v4 = vstv %s5653_s13  ;;  %v2092_v45 = vstv %s5745_s17  ;;  %v5864_v39 = vmul.f32 %v2036_v6, %v5749_v9  ;;  %v5867_v38 = vmul.f32 %v2050_v22, %v5747_v1  ;;  %v5883_v6 = vld [vmem:[#allocation2 + $0x51] sm:$0xff]  ;;  %s6009_s13 = sld [smem:[#allocation8 + $0x8a]]  ;;  %s4044_s17 = sld [smem:[#allocation8 + $0x95]] }
 0x316   : > { %8552 = vst [vmem:[#allocation137_spill] sm:$0xff] %v5839_v7  ;;  %8554 = vst [vmem:[#allocation138_spill] sm:$0xff] %v5846_v44  ;;  %v5856_v58 = vmul.f32 %v8557_v4, %v5683_v23  ;;  %v5872_v44 = vmul.f32 %v8555_v31, %v5554_v59  ;;  %v5887_v7 = vpop.permute.xlu0 %1309  ;;  %v8567_v31 = vstv %s5605_s20  ;;  %s5947_s20 = sld [smem:[#allocation8 + $0x39]] }
 0x317   : > { %8556 = vst [vmem:[#allocation139_spill] sm:$0xff] %v5851_v56  ;;  %8559 = vst [vmem:[#allocation141_spill] sm:$0xff] %v5861_v30  ;;  %v5885_v56 = vpop.permute.xlu1 %1297  ;;  %1903 = vrot.lane.b32.xlu1 %v1898_v46, %s8427_s5 }
 0x318   : > { %8558 = vst [vmem:[#allocation140_spill] sm:$0xff] %v5856_v58  ;;  %8560 = vst [vmem:[#allocation142_spill] sm:$0xff] %v5864_v39  ;;  %v5877_v58 = vmul.f32 %v8557_v4, %v5713_v35  ;;  %v8569_v4 = vstv %s5655_s15  ;;  %v8572_v39 = vstv %s5697_s12  ;;  %1915 = vrot.lane.b32.xlu0 %v1911_v15, %s8427_s5  ;;  %v8584_v15 = vstv %s5658_s25  ;;  %s6031_s15 = sld [smem:[#allocation8 + $0xa5]] }
 0x319   : > { %8561 = vst [vmem:[#allocation143_spill] sm:$0xff] %v5867_v38  ;;  %8562 = vst [vmem:[#allocation144_spill] sm:$0xff] %v5872_v44  ;;  %v5892_v44 = vmul.f32 %v8567_v31, %v5544_v47  ;;  %v5900_v38 = vmul.f32 %v2050_v22, %v5749_v9  ;;  %v5905_v5 = vmul.f32 %v8572_v39, %v5747_v1  ;;  %v8576_v22 = vstv %s5608_s21  ;;  %s5989_s21 = sld [smem:[#allocation8 + $0x66]] }
 0x31a   : > { %8563 = vst [vmem:[#allocation145_spill] sm:$0xff] %v5877_v58  ;;  %8564 = vst [vmem:[#allocation146_spill] sm:$0xff] %v5883_v6  ;;  %v5897_v58 = vmul.f32 %v8569_v4, %v5683_v23  ;;  %v8578_v39 = vstv %s5658_s25  ;;  %v5954_v46 = vmul.f32 %v8584_v15, %v5713_v35  ;;  %v5974_v15 = vmul.f32 %v2092_v45, %v5861_v30  ;;  %s6033_s25 = sld [smem:[#allocation8 + $0xae]] }
 0x31b   : > { %8565 = vst [vmem:[#allocation147_spill] sm:$0xff] %v5885_v56  ;;  %8566 = vst [vmem:[#allocation148_spill] sm:$0xff] %v5887_v7  ;;  %v5914_v7 = vmul.f32 %v8567_v31, %v5554_v59  ;;  %v5919_v56 = vmul.f32 %v8569_v4, %v5713_v35  ;;  %v8580_v31 = vstv %s5697_s12  ;;  %v5939_v4 = vmul.f32 %v2078_v11, %v5861_v30  ;;  %s5987_s12 = sld [smem:[#allocation8 + $0x5d]] }
 0x31c   : > { %8568 = vst [vmem:[#allocation149_spill] sm:$0xff] %v5892_v44  ;;  %8570 = vst [vmem:[#allocation150_spill] sm:$0xff] %v5897_v58  ;;  %v5924_v58 = vmul.f32 %v8576_v22, %v5544_v47  ;;  %v5929_v44 = vmul.f32 %v8578_v39, %v5683_v23  ;;  %v2106_v39 = vstv %s5791_s7  ;;  %1917 = vrot.lane.b32.xlu1 %v5762_v25, %s8427_s5  ;;  %1929 = vrot.lane.b32.xlu0 %v5765_v8, %s8427_s5  ;;  %s4046_s7 = sld [smem:[#allocation8 + $0xdd]] }
 0x31d   : > { %8571 = vst [vmem:[#allocation151_spill] sm:$0xff] %v5900_v38  ;;  %8573 = vst [vmem:[#allocation152_spill] sm:$0xff] %v5905_v5  ;;  %v8606_v8 = vstv %s5666_s14  ;;  %v8616_v5 = vstv %s5859_s24 }
 0x31e   : > { %8574 = vst [vmem:[#allocation153_spill] sm:$0xff] %v5914_v7  ;;  %8575 = vst [vmem:[#allocation154_spill] sm:$0xff] %v5919_v56  ;;  %v5936_v7 = vmul.f32 %v8580_v31, %v5749_v9  ;;  %v5944_v56 = vmul.f32 %v8576_v22, %v5554_v59  ;;  %v8586_v31 = vstv %s5610_s6  ;;  %v5967_v22 = vmul.f32 %v2078_v11, %v5883_v6  ;;  %s6007_s6 = sld [smem:[#allocation8 + $0x81]] }
 0x31f   : > { %8577 = vst [vmem:[#allocation155_spill] sm:$0xff] %v5924_v58  ;;  %8579 = vst [vmem:[#allocation156_spill] sm:$0xff] %v5929_v44  ;;  %v5959_v44 = vmul.f32 %v8586_v31, %v5544_v47  ;;  %v8588_v58 = vstv %s5660_s8  ;;  %v2120_v11 = vstv %s5823_s28  ;;  %s6061_s8 = sld [smem:[#allocation8 + $0xd2]]  ;;  %v6076_v38 = vmul.f32 %v8616_v5, %v5683_v23  ;;  %s4047_s28 = sld [smem:[#allocation8 + $0x101]] }
 0x320   : > { %8581 = vst [vmem:[#allocation157_spill] sm:$0xff] %v5936_v7  ;;  %8582 = vst [vmem:[#allocation158_spill] sm:$0xff] %v5939_v4  ;;  %v5964_v4 = vmul.f32 %v8588_v58, %v5683_v23  ;;  %v5971_v7 = vpop.permute.xlu0 %1323  ;;  %1931 = vrot.lane.b32.xlu1 %v5768_v61, %s8427_s5  ;;  %1943 = vrot.lane.b32.xlu0 %v5771_v13, %s8427_s5  ;;  %v1700_v5 = vstv %s5949_s16  ;;  %v8623_v13 = vstv %s5909_s26  ;;  %s4054_s16 = sld [smem:[#allocation8 + $0xe6]] }
 0x321   : > { %8583 = vst [vmem:[#allocation159_spill] sm:$0xff] %v5944_v56  ;;  %8585 = vst [vmem:[#allocation160_spill] sm:$0xff] %v5954_v46  ;;  %v5969_v56 = vpop.permute.xlu1 %1311  ;;  %v8593_v46 = vmov %v8586_v31 }
 0x322   : > { %8587 = vst [vmem:[#allocation161_spill] sm:$0xff] %v5959_v44  ;;  %8589 = vst [vmem:[#allocation162_spill] sm:$0xff] %v5964_v4  ;;  %v5979_v31 = vmul.f32 %v8593_v46, %v5554_v59  ;;  %v5984_v4 = vmul.f32 %v8588_v58, %v5713_v35  ;;  %v6002_v46 = vmul.f32 %v2092_v45, %v5883_v6 }
 0x323   : > { %8590 = vst [vmem:[#allocation163_spill] sm:$0xff] %v5967_v22  ;;  %8591 = vst [vmem:[#allocation164_spill] sm:$0xff] %v5969_v56  ;;  %v8596_v56 = vstv %s5614_s4  ;;  %v6005_v58 = vmul.f32 %v2106_v39, %v5861_v30  ;;  %s6047_s4 = sld [smem:[#allocation8 + $0xc9]] }
 0x324   : > { %8592 = vst [vmem:[#allocation165_spill] sm:$0xff] %v5974_v15  ;;  %8594 = vst [vmem:[#allocation166_spill] sm:$0xff] %v5979_v31  ;;  %v5994_v44 = vmul.f32 %v8596_v56, %v5544_v47  ;;  %v8598_v15 = vstv %s5664_s2  ;;  %v6018_v45 = vmul.f32 %v8596_v56, %v5554_v59  ;;  %v6038_v56 = vmul.f32 %v8606_v8, %v5683_v23  ;;  %s6422_s2 = sld [smem:[#allocation8 + $0xf6]] }
 0x325   : > { %8595 = vst [vmem:[#allocation167_spill] sm:$0xff] %v5984_v4  ;;  %v5999_v22 = vmul.f32 %v8598_v15, %v5683_v23  ;;  %8600 = vst [vmem:[#allocation170_spill] sm:$0xff] %v6002_v46  ;;  %v8604_v4 = vstv %s5616_s19  ;;  %v6049_v25 = vpop.permute.xlu1 %1325  ;;  %v1652_v23 = vstv %s5947_s20  ;;  %1945 = vrot.lane.b32.xlu1 %v5774_v41, %s8427_s5  ;;  %1957 = vrot.lane.b32.xlu0 %v5777_v34, %s8427_s5  ;;  %s4053_s20 = sld [smem:[#allocation8 + $0xc2]] }
 0x326   : > { %8597 = vst [vmem:[#allocation168_spill] sm:$0xff] %v5994_v44  ;;  %8601 = vst [vmem:[#allocation171_spill] sm:$0xff] %v6005_v58  ;;  %v6028_v44 = vmul.f32 %v8604_v4, %v5544_v47  ;;  %v2134_v4 = vstv %s5879_s9  ;;  %v8614_v58 = vstv %s5620_s22  ;;  %s6405_s22 = sld [smem:[#allocation8 + $0xf7]]  ;;  %s6600_s9 = sld [smem:[#allocation8 + $0x32]] }
 0x327   : > { %8599 = vst [vmem:[#allocation169_spill] sm:$0xff] %v5999_v22  ;;  %8602 = vst [vmem:[#allocation172_spill] sm:$0xff] %v6018_v45  ;;  %v6023_v22 = vmul.f32 %v8598_v15, %v5713_v35  ;;  %v6041_v45 = vmul.f32 %v2106_v39, %v5883_v6  ;;  %v6044_v15 = vmul.f32 %v2120_v11, %v5861_v30  ;;  %v1694_v39 = vstv %s5907_s29  ;;  %s4051_s29 = sld [smem:[#allocation8 + $0x7a]] }
 0x328   : > { %8605 = vst [vmem:[#allocation174_spill] sm:$0xff] %v6028_v44  ;;  %8607 = vst [vmem:[#allocation175_spill] sm:$0xff] %v6038_v56  ;;  %v8610_v44 = vstv %s5616_s19  ;;  %v1646_v56 = vstv %s5881_s27  ;;  %v6071_v46 = vmul.f32 %v8614_v58, %v5544_v47  ;;  %v8620_v47 = vmov %v8614_v58  ;;  %s6396_s19 = sld [smem:[#allocation8 + $0xed]]  ;;  %s6609_s27 = sld [smem:[#allocation8 + $0x56]] }
 0x329   : > { %8603 = vst [vmem:[#allocation173_spill] sm:$0xff] %v6023_v22  ;;  %8608 = vst [vmem:[#allocation176_spill] sm:$0xff] %v6041_v45  ;;  %v6051_v22 = vpop.permute.xlu0 %1337  ;;  %v6056_v8 = vmul.f32 %v8610_v44, %v5554_v59  ;;  %v6079_v44 = vmul.f32 %v2120_v11, %v5883_v6  ;;  %v6091_v58 = vmul.f32 %v8620_v47, %v5554_v59  ;;  %v6109_v59 = vpop.permute.xlu1 %1339  ;;  %1959 = vrot.lane.b32.xlu1 %v5782_v28, %s8427_s5 }
 0x32a   : > { %8609 = vst [vmem:[#allocation177_spill] sm:$0xff] %v6044_v15  ;;  %v8612_v15 = vstv %s5666_s14  ;;  %8615 = vst [vmem:[#allocation180_spill] sm:$0xff] %v6071_v46  ;;  %v6096_v11 = vmul.f32 %v1646_v56, %v5747_v1  ;;  %v6099_v45 = vmul.f32 %v1694_v39, %v5861_v30  ;;  %v6102_v61 = vmul.f32 %v2134_v4, %v5883_v6  ;;  %s6437_s14 = sld [smem:[#allocation8 + $0x111]] }
 0x32b   : > { %8611 = vst [vmem:[#allocation178_spill] sm:$0xff] %v6056_v8  ;;  %v6066_v31 = vmul.f32 %v8612_v15, %v5713_v35  ;;  %8617 = vst [vmem:[#allocation181_spill] sm:$0xff] %v6076_v38  ;;  %v6086_v15 = vmul.f32 %v2134_v4, %v5861_v30  ;;  %v6107_v35 = vmul.f32 %v8623_v13, %v5861_v30  ;;  %v1706_v4 = vstv %s5989_s21  ;;  %s6649_s21 = sld [smem:[#allocation8 + $0x17]] }
 0x32c   : > { %8618 = vst [vmem:[#allocation182_spill] sm:$0xff] %v6079_v44  ;;  %8621 = vst [vmem:[#allocation184_spill] sm:$0xff] %v6091_v58  ;;  %v6114_v58 = vmul.f32 %v1646_v56, %v5749_v9  ;;  %v6117_v38 = vmul.f32 %v1694_v39, %v5883_v6  ;;  %v6125_v13 = vmul.f32 %v1700_v5, %v5861_v30  ;;  %v1712_v46 = vstv %s6009_s13  ;;  %s6666_s13 = sld [smem:[#allocation8 + $0x5f]] }
 0x32d   : > { %8613 = vst [vmem:[#allocation179_spill] sm:$0xff] %v6066_v31  ;;  %8619 = vst [vmem:[#allocation183_spill] sm:$0xff] %v6086_v15  ;;  %v6111_v47 = vpop.permute.xlu0 %1351  ;;  %v1658_v31 = vstv %s5987_s12  ;;  %v6134_v56 = vmul.f32 %v1652_v23, %v5749_v9  ;;  %v6137_v39 = vmul.f32 %v1700_v5, %v5883_v6  ;;  %v1670_v8 = vstv %s6031_s15  ;;  %v6151_v34 = vpop.permute.xlu1 %1353  ;;  %1971 = vrot.lane.b32.xlu0 %v5785_v37, %s8427_s5  ;;  %s4055_s12 = sld [smem:[#allocation8 + $0x10a]]  ;;  %s4059_s15 = sld [smem:[#allocation8 + $0x83]] }
 0x32e   : > { %8622 = vst [vmem:[#allocation185_spill] sm:$0xff] %v6102_v61  ;;  %8624 = vst [vmem:[#allocation186_spill] sm:$0xff] %v6107_v35  ;;  %v6122_v61 = vmul.f32 %v1652_v23, %v5747_v1  ;;  %v1664_v35 = vstv %s6007_s6  ;;  %v1718_v15 = vstv %s6033_s25  ;;  %v6142_v44 = vmul.f32 %v1658_v31, %v5747_v1  ;;  %1973 = vrot.lane.b32.xlu1 %v5788_v55, %s8427_s5  ;;  %s6657_s6 = sld [smem:[#allocation8 + $0x3b]]  ;;  %s4060_s25 = sld [smem:[#allocation8 + $0xa7]] }
 0x32f   : > { %8625 = vst [vmem:[#allocation187_spill] sm:$0xff] %v6117_v38  ;;  %8626 = vst [vmem:[#allocation188_spill] sm:$0xff] %v6125_v13  ;;  %v6145_v13 = vmul.f32 %v1706_v4, %v5861_v30  ;;  %v6148_v38 = vmul.f32 %v1658_v31, %v5749_v9  ;;  %v6156_v5 = vmul.f32 %v1706_v4, %v5883_v6  ;;  %v8635_v37 = vstv %s6061_s8 }
 0x330   : > { %8627 = vst [vmem:[#allocation189_spill] sm:$0xff] %v6137_v39  ;;  %8628 = vst [vmem:[#allocation190_spill] sm:$0xff] %v6142_v44  ;;  %v6159_v39 = vmul.f32 %v1664_v35, %v5747_v1  ;;  %v6162_v44 = vmul.f32 %v1664_v35, %v5749_v9  ;;  %v6166_v31 = vmul.f32 %v1712_v46, %v5861_v30 }
 0x331   : > { %8629 = vst [vmem:[#allocation191_spill] sm:$0xff] %v6145_v13  ;;  %8630 = vst [vmem:[#allocation192_spill] sm:$0xff] %v6148_v38  ;;  %v6153_v23 = vpop.permute.xlu0 %1365  ;;  %v6169_v41 = vmul.f32 %v1712_v46, %v5883_v6  ;;  %v6172_v38 = vmul.f32 %v1670_v8, %v5747_v1  ;;  %v6175_v4 = vmul.f32 %v1718_v15, %v5861_v30  ;;  %v8634_v46 = vstv %s6047_s4 }
 0x332   : > { %v6182_v35 = vmul.f32 %v1670_v8, %v5749_v9  ;;  %v6185_v13 = vmul.f32 %v1718_v15, %v5883_v6  ;;  %v671_v28 = vadd.f32 %v5268_v51, %v4961_v50  ;;  %v6201_v8 = vmul.f32 %v8635_v37, %v5861_v30  ;;  %1985 = vrot.lane.b32.xlu0 %v5794_v10, %s8427_s5  ;;  %v8646_v10 = vld [vmem:[#allocation58_spill] sm:$0xff]  ;;  %v8647_v37 = vld [vmem:[#allocation59_spill] sm:$0xff]  ;;  %v8693_v30 = vld [vmem:[#allocation97_spill] sm:$0xff] }
 0x333   : > { %8631 = vst [vmem:[#allocation193_spill] sm:$0xff] %v6169_v41  ;;  %8632 = vst [vmem:[#allocation194_spill] sm:$0xff] %v6172_v38  ;;  %v6190_v41 = vmul.f32 %v8634_v46, %v5747_v1  ;;  %v657_v38 = vadd.f32 %v5260_v54, %v4944_v3  ;;  %v672_v15 = vadd.f32 %v5274_v2, %v4991_v14  ;;  %v8639_v2 = vld [vmem:[#allocation51_spill] sm:$0xff] }
 0x334   : > { %8633 = vst [vmem:[#allocation195_spill] sm:$0xff] %v6175_v4  ;;  %v658_v4 = vadd.f32 %v5266_v12, %v4952_v49  ;;  %8636 = vst [vmem:[#allocation196_spill] sm:$0xff] %v6201_v8  ;;  %v685_v46 = vadd.f32 %v5276_v53, %v5016_v40  ;;  %v686_v6 = vadd.f32 %v5282_v21, %v5033_v42  ;;  %v6211_v49 = vpop.permute.xlu1 %1367  ;;  %v8640_v53 = vld [vmem:[#allocation52_spill] sm:$0xff]  ;;  %v8708_v8 = vld [vmem:[#allocation134_spill] sm:$0xff] }
 0x335   : > { %v699_v3 = vadd.f32 %v5284_v43, %v5044_v63  ;;  %v6213_v54 = vpop.permute.xlu0 %1379  ;;  %v700_v50 = vadd.f32 %v5290_v60, %v5080_v18  ;;  %v713_v12 = vadd.f32 %v5292_v27, %v5082_v26  ;;  %v714_v14 = vadd.f32 %v5298_v48, %v5124_v19  ;;  %v8637_v26 = vld [vmem:[#allocation49_spill] sm:$0xff]  ;;  %v8642_v60 = vld [vmem:[#allocation54_spill] sm:$0xff]  ;;  %v8643_v27 = vld [vmem:[#allocation55_spill] sm:$0xff] }
 0x336   : > { %v727_v40 = vadd.f32 %v5300_v0, %v5114_v29  ;;  %v728_v42 = vadd.f32 %v5306_v33, %v5156_v16  ;;  %v741_v63 = vadd.f32 %v5308_v62, %v5163_v52  ;;  %v742_v51 = vadd.f32 %v5314_v57, %v5187_v17  ;;  %v8638_v29 = vld [vmem:[#allocation50_spill] sm:$0xff]  ;;  %v8641_v52 = vld [vmem:[#allocation53_spill] sm:$0xff]  ;;  %v8644_v0 = vld [vmem:[#allocation56_spill] sm:$0xff] }
 0x337   : > { %v755_v18 = vadd.f32 %v5316_v36, %v5192_v24  ;;  %v756_v19 = vadd.f32 %v8638_v29, %v8637_v26  ;;  %v769_v16 = vadd.f32 %v8639_v2, %v657_v38  ;;  %v770_v21 = vadd.f32 %v8640_v53, %v658_v4  ;;  %v8645_v24 = vld [vmem:[#allocation57_spill] sm:$0xff]  ;;  %v8648_v26 = vld [vmem:[#allocation60_spill] sm:$0xff]  ;;  %v8650_v2 = vld [vmem:[#allocation62_spill] sm:$0xff] }
 0x338   : > { %v783_v43 = vadd.f32 %v8641_v52, %v671_v28  ;;  %v784_v17 = vadd.f32 %v8642_v60, %v672_v15  ;;  %v797_v48 = vadd.f32 %v8643_v27, %v685_v46  ;;  %v798_v33 = vadd.f32 %v8644_v0, %v686_v6  ;;  %v6243_v62 = vpop.permute.xlu1 %1381  ;;  %v8649_v29 = vld [vmem:[#allocation61_spill] sm:$0xff]  ;;  %v8651_v53 = vld [vmem:[#allocation63_spill] sm:$0xff]  ;;  %v8653_v52 = vld [vmem:[#allocation128_spill] sm:$0xff] }
 0x339   : > { %v6245_v57 = vpop.permute.xlu0 %1393  ;;  %v811_v36 = vadd.f32 %v8645_v24, %v699_v3  ;;  %v812_v55 = vadd.f32 %v8646_v10, %v700_v50  ;;  %v825_v38 = vadd.f32 %v8647_v37, %v713_v12  ;;  %v826_v4 = vadd.f32 %v8648_v26, %v714_v14  ;;  %v8652_v6 = vld [vmem:[#allocation127_spill] sm:$0xff]  ;;  %1999 = vrot.lane.b32.xlu0 %v8653_v52, %s8427_s5  ;;  %v8654_v60 = vld [vmem:[#allocation64_spill] sm:$0xff]  ;;  %v8655_v27 = vld [vmem:[#allocation65_spill] sm:$0xff] }
 0x33a   : > { %v839_v28 = vadd.f32 %v8649_v29, %v727_v40  ;;  %v840_v15 = vadd.f32 %v8650_v2, %v728_v42  ;;  %v853_v46 = vadd.f32 %v8651_v53, %v741_v63  ;;  %1987 = vrot.lane.b32.xlu1 %v8652_v6, %s8427_s5  ;;  %v854_v3 = vadd.f32 %v8654_v60, %v742_v51  ;;  %v8656_v0 = vld [vmem:[#allocation66_spill] sm:$0xff]  ;;  %v8657_v24 = vld [vmem:[#allocation67_spill] sm:$0xff]  ;;  %v8658_v10 = vld [vmem:[#allocation68_spill] sm:$0xff] }
 0x33b   : > { %v867_v50 = vadd.f32 %v8655_v27, %v755_v18  ;;  %v868_v12 = vadd.f32 %v8656_v0, %v756_v19  ;;  %v881_v14 = vadd.f32 %v8657_v24, %v769_v16  ;;  %v882_v40 = vadd.f32 %v8658_v10, %v770_v21  ;;  %v8659_v37 = vld [vmem:[#allocation69_spill] sm:$0xff]  ;;  %v8660_v26 = vld [vmem:[#allocation70_spill] sm:$0xff]  ;;  %v8661_v29 = vld [vmem:[#allocation71_spill] sm:$0xff] }
 0x33c   : > { %v895_v42 = vadd.f32 %v8659_v37, %v783_v43  ;;  %v896_v63 = vadd.f32 %v8660_v26, %v784_v17  ;;  %v909_v2 = vadd.f32 %v8661_v29, %v797_v48  ;;  %v6266_v53 = vpop.permute.xlu1 %1395  ;;  %v8662_v52 = vld [vmem:[#allocation72_spill] sm:$0xff]  ;;  %v8663_v60 = vld [vmem:[#allocation73_spill] sm:$0xff]  ;;  %v8664_v27 = vld [vmem:[#allocation74_spill] sm:$0xff] }
 0x33d   : > { %v6268_v6 = vpop.permute.xlu0 %1407  ;;  %v910_v51 = vadd.f32 %v8662_v52, %v798_v33  ;;  %v923_v18 = vadd.f32 %v8663_v60, %v811_v36  ;;  %v924_v19 = vadd.f32 %v8664_v27, %v812_v55  ;;  %v8665_v0 = vld [vmem:[#allocation83_spill] sm:$0xff]  ;;  %v8667_v10 = vld [vmem:[#allocation76_spill] sm:$0xff]  ;;  %v8668_v37 = vld [vmem:[#allocation77_spill] sm:$0xff]  ;;  %2013 = vrot.lane.b32.xlu0 %v5810_v20, %s8427_s5 }
 0x33e   : > { %v993_v16 = vadd.f32 %v8665_v0, %v881_v14  ;;  %v8666_v24 = vld [vmem:[#allocation75_spill] sm:$0xff]  ;;  %v938_v43 = vadd.f32 %v8667_v10, %v826_v4  ;;  %v951_v17 = vadd.f32 %v8668_v37, %v839_v28  ;;  %2001 = vrot.lane.b32.xlu1 %v5803_v32, %s8427_s5  ;;  %v8669_v48 = vld [vmem:[#allocation78_spill] sm:$0xff]  ;;  %v8671_v29 = vld [vmem:[#allocation80_spill] sm:$0xff] }
 0x33f   : > { %v937_v21 = vadd.f32 %v8666_v24, %v825_v38  ;;  %v952_v33 = vadd.f32 %v8669_v48, %v840_v15  ;;  %v8670_v26 = vld [vmem:[#allocation79_spill] sm:$0xff]  ;;  %v966_v55 = vadd.f32 %v8671_v29, %v854_v3  ;;  %v8673_v60 = vld [vmem:[#allocation81_spill] sm:$0xff]  ;;  %v8674_v27 = vld [vmem:[#allocation82_spill] sm:$0xff] }
 0x340   : > { %v965_v36 = vadd.f32 %v8670_v26, %v853_v46  ;;  %v8672_v52 = vld [vmem:[#allocation99_spill] sm:$0xff]  ;;  %v979_v38 = vadd.f32 %v8673_v60, %v867_v50  ;;  %v980_v4 = vadd.f32 %v8674_v27, %v868_v12  ;;  %v8675_v0 = vld [vmem:[#allocation84_spill] sm:$0xff]  ;;  %v8676_v24 = vld [vmem:[#allocation85_spill] sm:$0xff]  ;;  %v6289_v32 = vpop.permute.xlu1 %1409 }
 0x341   : > { %v1105_v14 = vadd.f32 %v8672_v52, %v993_v16  ;;  %v994_v28 = vadd.f32 %v8675_v0, %v882_v40  ;;  %v1007_v10 = vadd.f32 %v8676_v24, %v895_v42  ;;  %v6291_v37 = vpop.permute.xlu0 %1421  ;;  %v8677_v20 = vld [vmem:[#allocation86_spill] sm:$0xff]  ;;  %v8678_v48 = vld [vmem:[#allocation87_spill] sm:$0xff]  ;;  %v8679_v26 = vld [vmem:[#allocation88_spill] sm:$0xff] }
 0x342   : > { %v1008_v15 = vadd.f32 %v8677_v20, %v896_v63  ;;  %v1021_v46 = vadd.f32 %v8678_v48, %v909_v2  ;;  %v1022_v3 = vadd.f32 %v8679_v26, %v910_v51  ;;  %v8680_v29 = vld [vmem:[#allocation115_spill] sm:$0xff]  ;;  %v8681_v52 = vld [vmem:[#allocation89_spill] sm:$0xff]  ;;  %v8682_v60 = vld [vmem:[#allocation90_spill] sm:$0xff] }
 0x343   : > { %v1217_v16 = vadd.f32 %v8680_v29, %v1105_v14  ;;  %v1035_v50 = vadd.f32 %v8681_v52, %v923_v18  ;;  %v1036_v12 = vadd.f32 %v8682_v60, %v924_v19  ;;  %v8683_v27 = vld [vmem:[#allocation91_spill] sm:$0xff]  ;;  %v8685_v0 = vld [vmem:[#allocation132_spill] sm:$0xff]  ;;  %v8688_v48 = vld [vmem:[#allocation101_spill] sm:$0xff] }
 0x344   : > { %v1049_v40 = vadd.f32 %v8683_v27, %v937_v21  ;;  %v8684_v42 = vld [vmem:[#allocation131_spill] sm:$0xff]  ;;  %2027 = vrot.lane.b32.xlu0 %v8685_v0, %s8427_s5  ;;  %v8686_v24 = vld [vmem:[#allocation92_spill] sm:$0xff]  ;;  %v1119_v51 = vadd.f32 %v8688_v48, %v1007_v10  ;;  %v8689_v26 = vld [vmem:[#allocation93_spill] sm:$0xff] }
 0x345   : > { %2015 = vrot.lane.b32.xlu1 %v8684_v42, %s8427_s5  ;;  %v1050_v63 = vadd.f32 %v8686_v24, %v938_v43  ;;  %v8687_v20 = vld [vmem:[#allocation100_spill] sm:$0xff]  ;;  %v1329_v14 = vadd.f32 %v5971_v7, %v1217_v16  ;;  %v1063_v18 = vadd.f32 %v8689_v26, %v951_v17  ;;  %v8690_v29 = vld [vmem:[#allocation94_spill] sm:$0xff]  ;;  %v8691_v52 = vld [vmem:[#allocation95_spill] sm:$0xff]  ;;  %v6314_v42 = vpop.permute.xlu1 %1423  ;;  %v1436_v0 = vpop.permute.xlu0 %1435  ;;  %v6317_v43 = vadd.f32 %v8693_v30, %v979_v38 }
 0x346   : > { %v1106_v2 = vadd.f32 %v8687_v20, %v994_v28  ;;  %v1064_v19 = vadd.f32 %v8690_v29, %v952_v33  ;;  %v1077_v21 = vadd.f32 %v8691_v52, %v965_v36  ;;  %v8692_v60 = vld [vmem:[#allocation96_spill] sm:$0xff]  ;;  %v8695_v10 = vld [vmem:[#allocation117_spill] sm:$0xff]  ;;  %v8696_v16 = vld [vmem:[#allocation98_spill] sm:$0xff] }
 0x347   : > { %v6312_v27 = vadd.f32 %v8692_v60, %v966_v55  ;;  %v8694_v28 = vld [vmem:[#allocation116_spill] sm:$0xff]  ;;  %v1231_v20 = vadd.f32 %v8695_v10, %v1119_v51  ;;  %v1441_v7 = vadd.f32 %v1436_v0, %v1329_v14  ;;  %v6322_v17 = vadd.f32 %v8696_v16, %v980_v4  ;;  %v8697_v33 = vld [vmem:[#allocation102_spill] sm:$0xff]  ;;  %v8698_v36 = vld [vmem:[#allocation103_spill] sm:$0xff] }
 0x348   : > { %v1218_v24 = vadd.f32 %v8694_v28, %v1106_v2  ;;  %v1120_v48 = vadd.f32 %v8697_v33, %v1008_v15  ;;  %v1133_v26 = vadd.f32 %v8698_v36, %v1021_v46  ;;  %v8699_v55 = vld [vmem:[#allocation135_spill] sm:$0xff]  ;;  %v8700_v29 = vld [vmem:[#allocation136_spill] sm:$0xff]  ;;  %v8702_v14 = vld [vmem:[#allocation133_spill] sm:$0xff] }
 0x349   : > { %2029 = vrot.lane.b32.xlu1 %v8699_v55, %s8427_s5  ;;  %2041 = vrot.lane.b32.xlu0 %v8700_v29, %s8427_s5  ;;  %v8701_v30 = vld [vmem:[#allocation104_spill] sm:$0xff]  ;;  %v1343_v51 = vadd.f32 %v6051_v22, %v1231_v20  ;;  %v1553_v52 = vadd.f32 %v8702_v14, %v1441_v7  ;;  %v8703_v4 = vld [vmem:[#allocation105_spill] sm:$0xff]  ;;  %v8704_v0 = vld [vmem:[#allocation106_spill] sm:$0xff]  ;;  %v1438_v33 = vpop.permute.xlu1 %1437  ;;  %v1450_v36 = vpop.permute.xlu0 %1449 }
 0x34a   : > { %v1134_v38 = vadd.f32 %v8701_v30, %v1022_v3  ;;  %v1330_v2 = vadd.f32 %v6049_v25, %v1218_v24  ;;  %v1147_v60 = vadd.f32 %v8703_v4, %v1035_v50  ;;  %v1148_v15 = vadd.f32 %v8704_v0, %v1036_v12  ;;  %v8705_v28 = vld [vmem:[#allocation107_spill] sm:$0xff]  ;;  %v8706_v10 = vld [vmem:[#allocation118_spill] sm:$0xff]  ;;  %v8709_v24 = vld [vmem:[#allocation108_spill] sm:$0xff] }
 0x34b   : > { %v1161_v46 = vadd.f32 %v8705_v28, %v1049_v40  ;;  %v1232_v16 = vadd.f32 %v8706_v10, %v1120_v48  ;;  %v8707_v55 = vld [vmem:[#allocation119_spill] sm:$0xff]  ;;  %v1601_v3 = vadd.f32 %v8708_v8, %v1553_v52  ;;  %v1455_v25 = vadd.f32 %v1450_v36, %v1343_v51  ;;  %v8710_v20 = vld [vmem:[#allocation109_spill] sm:$0xff]  ;;  %v8711_v12 = vld [vmem:[#allocation142_spill] sm:$0xff] }
 0x34c   : > { %v1245_v29 = vadd.f32 %v8707_v55, %v1133_v26  ;;  %v1442_v30 = vadd.f32 %v1438_v33, %v1330_v2  ;;  %v1162_v22 = vadd.f32 %v8709_v24, %v1050_v63  ;;  %v1175_v7 = vadd.f32 %v8710_v20, %v1063_v18  ;;  %v8712_v40 = vld [vmem:[#allocation143_spill] sm:$0xff]  ;;  %v8713_v14 = vld [vmem:[#allocation137_spill] sm:$0xff]  ;;  %v8715_v51 = vld [vmem:[#allocation110_spill] sm:$0xff] }
 0x34d   : > { %v1344_v50 = vadd.f32 %v6109_v59, %v1232_v16  ;;  %2043 = vrot.lane.b32.xlu1 %v8711_v12, %s8427_s5  ;;  %2055 = vrot.lane.b32.xlu0 %v8712_v40, %s8427_s5  ;;  %v8714_v4 = vld [vmem:[#allocation139_spill] sm:$0xff]  ;;  %v1649_v2 = vadd.f32 %v6096_v11, %v1601_v3  ;;  %v1176_v63 = vadd.f32 %v8715_v51, %v1064_v19  ;;  %v8716_v52 = vld [vmem:[#allocation120_spill] sm:$0xff]  ;;  %v8717_v0 = vld [vmem:[#allocation121_spill] sm:$0xff]  ;;  %v1452_v16 = vpop.permute.xlu1 %1451  ;;  %v1464_v33 = vpop.permute.xlu0 %1463 }
 0x34e   : > { %v1357_v48 = vadd.f32 %v6111_v47, %v1245_v29  ;;  %v1554_v26 = vadd.f32 %v8713_v14, %v1442_v30  ;;  %v1559_v8 = vadd.f32 %v8714_v4, %v1455_v25  ;;  %v1246_v18 = vadd.f32 %v8716_v52, %v1134_v38  ;;  %v8718_v28 = vld [vmem:[#allocation123_spill] sm:$0xff]  ;;  %v8719_v36 = vld [vmem:[#allocation138_spill] sm:$0xff]  ;;  %v8720_v24 = vld [vmem:[#allocation140_spill] sm:$0xff] }
 0x34f   : > { %v1259_v59 = vadd.f32 %v8717_v0, %v1147_v60  ;;  %v1260_v10 = vadd.f32 %v8718_v28, %v1148_v15  ;;  %v1456_v29 = vadd.f32 %v1452_v16, %v1344_v50  ;;  %v8721_v19 = vld [vmem:[#allocation151_spill] sm:$0xff]  ;;  %v8722_v38 = vld [vmem:[#allocation152_spill] sm:$0xff]  ;;  %v6364_v60 = vadd.f32 %v6099_v45, %v1649_v2  ;;  %v8724_v20 = vld [vmem:[#allocation149_spill] sm:$0xff] }
 0x350   : > { %v1602_v55 = vadd.f32 %v8719_v36, %v1554_v26  ;;  %v1607_v47 = vadd.f32 %v8720_v24, %v1559_v8  ;;  %v1469_v30 = vadd.f32 %v1464_v33, %v1357_v48  ;;  %v1358_v25 = vadd.f32 %v6151_v34, %v1246_v18  ;;  %v8723_v15 = vld [vmem:[#allocation144_spill] sm:$0xff]  ;;  %v8725_v34 = vld [vmem:[#allocation111_spill] sm:$0xff]  ;;  %v8727_v26 = vld [vmem:[#allocation125_spill] sm:$0xff] }
 0x351   : > { %v1371_v11 = vadd.f32 %v6153_v23, %v1259_v59  ;;  %2057 = vrot.lane.b32.xlu1 %v8721_v19, %s8427_s5  ;;  %2069 = vrot.lane.b32.xlu0 %v8722_v38, %s8427_s5  ;;  %v1560_v3 = vadd.f32 %v8723_v15, %v1456_v29  ;;  %v1189_v48 = vadd.f32 %v8725_v34, %v1077_v21  ;;  %v8726_v23 = vld [vmem:[#allocation124_spill] sm:$0xff]  ;;  %v1466_v51 = vpop.permute.xlu1 %1465  ;;  %v1478_v52 = vpop.permute.xlu0 %1477  ;;  %v8728_v45 = vld [vmem:[#allocation145_spill] sm:$0xff]  ;;  %v8729_v18 = vld [vmem:[#allocation150_spill] sm:$0xff] }
 0x352   : > { %v1565_v12 = vadd.f32 %v8724_v20, %v1469_v30  ;;  %v1650_v50 = vadd.f32 %v6114_v58, %v1602_v55  ;;  %v1655_v40 = vadd.f32 %v6122_v61, %v1607_v47  ;;  %v1273_v14 = vadd.f32 %v8726_v23, %v1161_v46  ;;  %v8730_v61 = vld [vmem:[#allocation157_spill] sm:$0xff]  ;;  %v8731_v21 = vld [vmem:[#allocation158_spill] sm:$0xff]  ;;  %v8732_v46 = vld [vmem:[#allocation187_spill] sm:$0xff] }
 0x353   : > { %v1274_v4 = vadd.f32 %v8727_v26, %v1162_v22  ;;  %v1372_v8 = vadd.f32 %v6211_v49, %v1260_v10  ;;  %v1608_v2 = vadd.f32 %v8728_v45, %v1560_v3  ;;  %v1470_v59 = vadd.f32 %v1466_v51, %v1358_v25  ;;  %v8733_v49 = vld [vmem:[#allocation188_spill] sm:$0xff]  ;;  %v8734_v16 = vld [vmem:[#allocation153_spill] sm:$0xff]  ;;  %v8735_v36 = vld [vmem:[#allocation155_spill] sm:$0xff] }
 0x354   : > { %v1613_v0 = vadd.f32 %v8729_v18, %v1565_v12  ;;  %v1483_v28 = vadd.f32 %v1478_v52, %v1371_v11  ;;  %v1385_v58 = vadd.f32 %v6213_v54, %v1273_v14  ;;  %v6382_v22 = vadd.f32 %v8732_v46, %v1650_v50  ;;  %v8736_v47 = vld [vmem:[#allocation190_spill] sm:$0xff]  ;;  %v8737_v29 = vld [vmem:[#allocation112_spill] sm:$0xff]  ;;  %v8739_v19 = vld [vmem:[#allocation129_spill] sm:$0xff] }
 0x355   : > { %2071 = vrot.lane.b32.xlu1 %v8730_v61, %s8427_s5  ;;  %2083 = vrot.lane.b32.xlu0 %v8731_v21, %s8427_s5  ;;  %v6385_v10 = vadd.f32 %v8733_v49, %v1655_v40  ;;  %v1566_v33 = vadd.f32 %v8734_v16, %v1470_v59  ;;  %v1656_v24 = vadd.f32 %v6134_v56, %v1608_v2  ;;  %v8738_v25 = vld [vmem:[#allocation126_spill] sm:$0xff]  ;;  %v1480_v3 = vpop.permute.xlu1 %1479  ;;  %v1492_v20 = vpop.permute.xlu0 %1491  ;;  %v8741_v40 = vld [vmem:[#allocation156_spill] sm:$0xff]  ;;  %v8745_v26 = vld [vmem:[#allocation191_spill] sm:$0xff] }
 0x356   : > { %v1571_v55 = vadd.f32 %v8735_v36, %v1483_v28  ;;  %v1661_v54 = vadd.f32 %v8736_v47, %v1613_v0  ;;  %v1190_v30 = vadd.f32 %v8737_v29, %v6312_v27  ;;  %v1287_v11 = vadd.f32 %v8738_v25, %v1175_v7  ;;  %v8740_v12 = vld [vmem:[#allocation154_spill] sm:$0xff]  ;;  %v8742_v27 = vld [vmem:[#allocation163_spill] sm:$0xff]  ;;  %v8743_v7 = vld [vmem:[#allocation165_spill] sm:$0xff] }
 0x357   : > { %v1288_v38 = vadd.f32 %v8739_v19, %v1176_v63  ;;  %v1386_v15 = vadd.f32 %v6243_v62, %v1274_v4  ;;  %v1614_v50 = vadd.f32 %v8740_v12, %v1566_v33  ;;  %v1484_v56 = vadd.f32 %v1480_v3, %v1372_v8  ;;  %v8744_v62 = vld [vmem:[#allocation189_spill] sm:$0xff]  ;;  %v8746_v51 = vld [vmem:[#allocation159_spill] sm:$0xff]  ;;  %v8748_v2 = vld [vmem:[#allocation192_spill] sm:$0xff] }
 0x358   : > { %v1619_v34 = vadd.f32 %v8741_v40, %v1571_v55  ;;  %v1497_v23 = vadd.f32 %v1492_v20, %v1385_v58  ;;  %v1399_v14 = vadd.f32 %v6245_v57, %v1287_v11  ;;  %v6408_v63 = vadd.f32 %v8744_v62, %v1656_v24  ;;  %v8747_v8 = vld [vmem:[#allocation161_spill] sm:$0xff]  ;;  %v8750_v28 = vld [vmem:[#allocation130_spill] sm:$0xff]  ;;  %v8751_v61 = vld [vmem:[#allocation147_spill] sm:$0xff] }
 0x359   : > { %2085 = vrot.lane.b32.xlu1 %v8742_v27, %s8427_s5  ;;  %2097 = vrot.lane.b32.xlu0 %v8743_v7, %s8427_s5  ;;  %v6411_v4 = vadd.f32 %v8745_v26, %v1661_v54  ;;  %v1572_v52 = vadd.f32 %v8746_v51, %v1484_v56  ;;  %v1662_v57 = vadd.f32 %v8748_v2, %v1614_v50  ;;  %v8749_v0 = vld [vmem:[#allocation113_spill] sm:$0xff]  ;;  %v1494_v49 = vpop.permute.xlu1 %1493  ;;  %v1506_v16 = vpop.permute.xlu0 %1505  ;;  %v8752_v33 = vld [vmem:[#allocation160_spill] sm:$0xff]  ;;  %v8753_v55 = vld [vmem:[#allocation162_spill] sm:$0xff]  ;;  %v2162_v26 = vstv %s6405_s22  ;;  %s6706_s22 = sld [smem:[#allocation8 + $0x20]] }
 0x35a   : > { %v1577_v45 = vadd.f32 %v8747_v8, %v1497_v23  ;;  %v1667_v18 = vadd.f32 %v6159_v39, %v1619_v34  ;;  %v1203_v59 = vadd.f32 %v8749_v0, %v6317_v43  ;;  %v1301_v58 = vadd.f32 %v8750_v28, %v1189_v48  ;;  %v8754_v43 = vld [vmem:[#allocation170_spill] sm:$0xff]  ;;  %v8755_v48 = vld [vmem:[#allocation171_spill] sm:$0xff]  ;;  %v8757_v11 = vld [vmem:[#allocation168_spill] sm:$0xff] }
 0x35b   : > { %v1302_v21 = vadd.f32 %v8751_v61, %v1190_v30  ;;  %v1400_v46 = vadd.f32 %v6266_v53, %v1288_v38  ;;  %v1620_v36 = vadd.f32 %v8752_v33, %v1572_v52  ;;  %v1498_v47 = vadd.f32 %v1494_v49, %v1386_v15  ;;  %v8756_v30 = vld [vmem:[#allocation166_spill] sm:$0xff]  ;;  %v8760_v12 = vld [vmem:[#allocation148_spill] sm:$0xff]  ;;  %v8761_v56 = vld [vmem:[#allocation167_spill] sm:$0xff] }
 0x35c   : > { %v1625_v24 = vadd.f32 %v8753_v55, %v1577_v45  ;;  %v1511_v54 = vadd.f32 %v1506_v16, %v1399_v14  ;;  %v1413_v39 = vadd.f32 %v6268_v6, %v1301_v58  ;;  %v6432_v53 = vadd.f32 %v6156_v5, %v1662_v57  ;;  %v8758_v38 = vld [vmem:[#allocation194_spill] sm:$0xff]  ;;  %v8762_v14 = vld [vmem:[#allocation169_spill] sm:$0xff]  ;;  %v8766_v8 = vld [vmem:[#allocation195_spill] sm:$0xff] }
 0x35d   : > { %2099 = vrot.lane.b32.xlu1 %v8754_v43, %s8427_s5  ;;  %2111 = vrot.lane.b32.xlu0 %v8755_v48, %s8427_s5  ;;  %v6435_v29 = vadd.f32 %v6166_v31, %v1667_v18  ;;  %v1578_v25 = vadd.f32 %v8756_v30, %v1498_v47  ;;  %v1668_v6 = vadd.f32 %v6162_v44, %v1620_v36  ;;  %v8759_v3 = vld [vmem:[#allocation114_spill] sm:$0xff]  ;;  %v1508_v31 = vpop.permute.xlu1 %1507  ;;  %v1520_v40 = vpop.permute.xlu0 %1519  ;;  %v1682_v34 = vstv %s6396_s19  ;;  %v8765_v51 = vld [vmem:[#allocation193_spill] sm:$0xff]  ;;  %v8767_v2 = vld [vmem:[#allocation172_spill] sm:$0xff]  ;;  %s4063_s19 = sld [smem:[#allocation8 + $0x113]] }
 0x35e   : > { %v1583_v19 = vadd.f32 %v8757_v11, %v1511_v54  ;;  %v1673_v15 = vadd.f32 %v8758_v38, %v1625_v24  ;;  %v1204_v20 = vadd.f32 %v8759_v3, %v6322_v17  ;;  %v1315_v5 = vadd.f32 %v8760_v12, %v1203_v59  ;;  %v8763_v17 = vld [vmem:[#allocation176_spill] sm:$0xff]  ;;  %v8768_v18 = vld [vmem:[#allocation174_spill] sm:$0xff]  ;;  %v8771_v36 = vld [vmem:[#allocation173_spill] sm:$0xff] }
 0x35f   : > { %v1414_v50 = vadd.f32 %v6289_v32, %v1302_v21  ;;  %v1626_v23 = vadd.f32 %v8761_v56, %v1578_v25  ;;  %v1512_v44 = vadd.f32 %v1508_v31, %v1400_v46  ;;  %v1525_v7 = vadd.f32 %v1520_v40, %v1413_v39  ;;  %v8764_v32 = vld [vmem:[#allocation177_spill] sm:$0xff]  ;;  %v8769_v28 = vld [vmem:[#allocation164_spill] sm:$0xff]  ;;  %v8772_v24 = vld [vmem:[#allocation175_spill] sm:$0xff] }
 0x360   : > { %v1631_v27 = vadd.f32 %v8762_v14, %v1583_v19  ;;  %v1427_v62 = vadd.f32 %v6291_v37, %v1315_v5  ;;  %v6459_v52 = vadd.f32 %v8765_v51, %v1668_v6  ;;  %v6462_v45 = vadd.f32 %v8766_v8, %v1673_v15  ;;  %v8773_v39 = vld [vmem:[#allocation182_spill] sm:$0xff]  ;;  %v8774_v43 = vld [vmem:[#allocation183_spill] sm:$0xff]  ;;  %v8775_v30 = vld [vmem:[#allocation196_spill] sm:$0xff] }
 0x361   : > { %2113 = vrot.lane.b32.xlu1 %v8763_v17, %s8427_s5  ;;  %2125 = vrot.lane.b32.xlu0 %v8764_v32, %s8427_s5  ;;  %v1584_v57 = vadd.f32 %v8767_v2, %v1512_v44  ;;  %v1589_v0 = vadd.f32 %v8768_v18, %v1525_v7  ;;  %v1674_v59 = vadd.f32 %v6182_v35, %v1626_v23  ;;  %v1522_v61 = vpop.permute.xlu1 %1521  ;;  %v1534_v21 = vpop.permute.xlu0 %1533  ;;  %v8770_v46 = vstv %s6047_s4  ;;  %v8776_v19 = vld [vmem:[#allocation178_spill] sm:$0xff]  ;;  %v8777_v38 = vld [vmem:[#allocation180_spill] sm:$0xff]  ;;  %v8780_v40 = vld [vmem:[#allocation141_spill] sm:$0xff]  ;;  %s4061_s4 = sld [smem:[#allocation8 + $0xcb]] }
 0x362   : > { %v1679_v37 = vadd.f32 %v6190_v41, %v1631_v27  ;;  %v1316_v58 = vadd.f32 %v8769_v28, %v1204_v20  ;;  %v1678_v49 = vmul.f32 %v8770_v46, %v5749_v9  ;;  %v1683_v16 = vmul.f32 %v1682_v34, %v5747_v1  ;;  %v8778_v5 = vld [vmem:[#allocation146_spill] sm:$0xff]  ;;  %v8781_v14 = vld [vmem:[#allocation179_spill] sm:$0xff]  ;;  %v8782_v44 = vld [vmem:[#allocation181_spill] sm:$0xff] }
 0x363   : > { %v1730_v33 = vstv %s6422_s2  ;;  %v1632_v55 = vadd.f32 %v8771_v36, %v1584_v57  ;;  %v1637_v47 = vadd.f32 %v8772_v24, %v1589_v0  ;;  %v1526_v54 = vadd.f32 %v1522_v61, %v1414_v50  ;;  %v8783_v32 = vld [vmem:[#allocation122_spill] sm:$0xff]  ;;  %v8785_v2 = vld [vmem:[#allocation185_spill] sm:$0xff]  ;;  %v8787_v0 = vld [vmem:[#allocation184_spill] sm:$0xff]  ;;  %s6714_s2 = sld [smem:[#allocation8 + $0x44]] }
 0x364   : > { %v1539_v35 = vadd.f32 %v1534_v21, %v1427_v62  ;;  %v1428_v41 = vadd.f32 %v6314_v42, %v1316_v58  ;;  %v6484_v48 = vadd.f32 %v6185_v13, %v1674_v59  ;;  %v6487_v25 = vadd.f32 %v8775_v30, %v1679_v37 }
 0x365   : > { %2127 = vrot.lane.b32.xlu1 %v8773_v39, %s8427_s5  ;;  %2139 = vrot.lane.b32.xlu0 %v8774_v43, %s8427_s5  ;;  %v1688_v11 = vstv %s6437_s14  ;;  %v1590_v6 = vadd.f32 %v8776_v19, %v1526_v54  ;;  %v1680_v3 = vadd.f32 %v1678_v49, %v1632_v55  ;;  %v1685_v42 = vadd.f32 %v1683_v16, %v1637_v47  ;;  %v1536_v20 = vpop.permute.xlu1 %1535  ;;  %v6492_v12 = vpop.permute.xlu0 %1747  ;;  %s6723_s14 = sld [smem:[#allocation8 + $0x68]] }
 0x366   : > { %v1595_v15 = vadd.f32 %v8777_v38, %v1539_v35  ;;  %v8779_v50 = vstv %s6061_s8  ;;  %v1731_v13 = vmul.f32 %v1730_v33, %v8780_v40  ;;  %v1684_v56 = vmul.f32 %v1682_v34, %v5749_v9  ;;  %v8786_v34 = vld [vmem:[#allocation186_spill] sm:$0xff]  ;;  %s4062_s8 = sld [smem:[#allocation8 + $0xef]] }
 0x367   : > { %v1726_v31 = vmul.f32 %v8779_v50, %v8778_v5  ;;  %v1736_v23 = vstv %s6448_s23  ;;  %v1638_v27 = vadd.f32 %v8781_v14, %v1590_v6  ;;  %v1540_v62 = vadd.f32 %v1536_v20, %v1428_v41  ;;  %v4253_v50 = vld [vmem:[#allocation2 + $0x9] sm:$0xff]  ;;  %s4067_s23 = sld [smem:[#allocation8 + $0x8c]] }
 0x368   : > { %v1643_v7 = vadd.f32 %v8782_v44, %v1595_v15  ;;  %v1689_v17 = vmul.f32 %v1688_v11, %v5747_v1  ;;  %v8784_v51 = vstv %s5859_s24  ;;  %v6514_v18 = vadd.f32 %v1731_v13, %v1685_v42  ;;  %v4252_v15 = vld [vmem:[#allocation2 + $0x1] sm:$0xff]  ;;  %s6592_s24 = sld [smem:[#allocation8 + $0xe]] }
 0x369   : > { %v1642_v8 = vmul.f32 %v8784_v51, %v8783_v32  ;;  %2141 = vrot.lane.b32.xlu1 %v8785_v2, %s8427_s5  ;;  %2153 = vrot.lane.b32.xlu0 %v8786_v34, %s8427_s5  ;;  %v6512_v57 = vadd.f32 %v1726_v31, %v1680_v3  ;;  %v1596_v59 = vadd.f32 %v8787_v0, %v1540_v62  ;;  %v6518_v58 = vpop.permute.xlu1 %1749  ;;  %v6520_v61 = vpop.permute.xlu0 %1761  ;;  %v8788_v21 = vstv %s5909_s26  ;;  %s4052_s26 = sld [smem:[#allocation8 + $0x9e]] }
 0x36a   : > { %v1732_v37 = vmul.f32 %v1730_v33, %v8778_v5  ;;  %v1686_v28 = vadd.f32 %v1684_v56, %v1638_v27  ;;  %v1691_v1 = vadd.f32 %v1689_v17, %v1643_v7  ;;  %v2150_v46 = vmul.f32 %v8788_v21, %v8778_v5 }
 0x36b   : > { %v2163_v49 = vmul.f32 %v2162_v26, %v8780_v40  ;;  %v1737_v16 = vmul.f32 %v1736_v23, %v8780_v40  ;;  %v1644_v36 = vadd.f32 %v1642_v8, %v1596_v59  ;;  %v2176_v55 = vstv %s6476_s10  ;;  %s4068_s10 = sld [smem:[#allocation8 + $0xb0]] }
 0x36c   : > { %v6532_v33 = vadd.f32 %v1732_v37, %v1686_v28  ;;  %v1690_v24 = vmul.f32 %v1688_v11, %v5749_v9  ;;  %v1738_v54 = vmul.f32 %v1736_v23, %v8778_v5  ;;  %v2164_v43 = vmul.f32 %v2162_v26, %v8778_v5 }
 0x36d   : > { %2155 = vrot.lane.b32.xlu1 %v2150_v46, %s8427_s5  ;;  %2167 = vrot.lane.b32.xlu0 %v2163_v49, %s8427_s5  ;;  %v6537_v47 = vadd.f32 %v1737_v16, %v1691_v1  ;;  %v6540_v41 = vpop.permute.xlu1 %1763  ;;  %v6542_v39 = vpop.permute.xlu0 %1775  ;;  %v2177_v30 = vmul.f32 %v2176_v55, %v8780_v40  ;;  %v2190_v9 = vstv %s6502_s11  ;;  %v2178_v38 = vmul.f32 %v2176_v55, %v8778_v5  ;;  %s4069_s11 = sld [smem:[#allocation8 + $0xd4]] }
 0x36e   : > { %v1692_v35 = vadd.f32 %v1690_v24, %v1644_v36  ;;  %v2191_v26 = vmul.f32 %v4252_v15, %v2190_v9  ;;  %v2204_v3 = vstv %s6530_s0  ;;  %v2192_v31 = vmul.f32 %v4253_v50, %v2190_v9  ;;  %s4070_s0 = sld [smem:[#allocation8 + $0xf8]] }
 0x36f   : > { %v2205_v40 = vmul.f32 %v4252_v15, %v2204_v3  ;;  %v2218_v13 = vstv %s6549_s1  ;;  %v2206_v23 = vmul.f32 %v4253_v50, %v2204_v3  ;;  %v2232_v27 = vstv %s4043_s18  ;;  %v4254_v3 = vld [vmem:[#allocation2 + $0x19] sm:$0xff]  ;;  %s4071_s1 = sld [smem:[#allocation8 + $0x11c]]  ;;  %s6763_s18 = sld [smem:[#allocation8 + $0x7]] }
 0x370   : > { %v6551_v11 = vadd.f32 %v1738_v54, %v1692_v35  ;;  %v2219_v14 = vmul.f32 %v4252_v15, %v2218_v13  ;;  %v2220_v62 = vmul.f32 %v4253_v50, %v2218_v13  ;;  %v2233_v17 = vmul.f32 %v4252_v15, %v2232_v27 }
 0x371   : > { %2169 = vrot.lane.b32.xlu1 %v2164_v43, %s8427_s5  ;;  %2181 = vrot.lane.b32.xlu0 %v2177_v30, %s8427_s5  ;;  %v6555_v19 = vpop.permute.xlu1 %1777  ;;  %v6557_v6 = vpop.permute.xlu0 %1789  ;;  %v2246_v32 = vstv %s4044_s17  ;;  %v2234_v2 = vmul.f32 %v4253_v50, %v2232_v27  ;;  %v2260_v0 = vstv %s4045_s3  ;;  %s6771_s17 = sld [smem:[#allocation8 + $0x2b]]  ;;  %s4106_s3 = sld [smem:[#allocation8 + $0x4f]] }
 0x372   : > { %8789 = vst [vmem:[#allocation49_spill] sm:$0xff] %v6551_v11  ;;  %v2247_v34 = vmul.f32 %v4252_v15, %v2246_v32  ;;  %v2248_v28 = vmul.f32 %v4253_v50, %v2246_v32  ;;  %v2261_v1 = vmul.f32 %v4252_v15, %v2260_v0  ;;  %v2274_v21 = vstv %s4046_s7  ;;  %s4107_s7 = sld [smem:[#allocation8 + $0x73]] }
 0x373   : > { %v2262_v16 = vmul.f32 %v4253_v50, %v2260_v0  ;;  %v2275_v36 = vmul.f32 %v4252_v15, %v2274_v21  ;;  %v2288_v55 = vstv %s4047_s28  ;;  %v2276_v35 = vmul.f32 %v4253_v50, %v2274_v21  ;;  %s4108_s28 = sld [smem:[#allocation8 + $0x97]] }
 0x374   : > { %v2289_v43 = vmul.f32 %v4252_v15, %v2288_v55  ;;  %v2302_v30 = vstv %s6592_s24  ;;  %s6808_s24 = sld [smem:[#allocation8 + $0xbb]] }
 0x375   : > { %2183 = vrot.lane.b32.xlu1 %v2178_v38, %s8427_s5  ;;  %2195 = vrot.lane.b32.xlu0 %v2191_v26, %s8790_s30  ;;  %v6563_v42 = vpop.permute.xlu1 %1791  ;;  %v6565_v20 = vpop.permute.xlu0 %1803  ;;  %v2290_v26 = vmul.f32 %v4253_v50, %v2288_v55 }
 0x379   : > { %2197 = vrot.lane.b32.xlu1 %v2192_v31, %s8790_s30  ;;  %2209 = vrot.lane.b32.xlu0 %v2205_v40, %s8790_s30  ;;  %v6570_v5 = vpop.permute.xlu1 %1805  ;;  %v6572_v56 = vpop.permute.xlu0 %1817  ;;  %v2303_v31 = vmul.f32 %v4254_v3, %v2302_v30  ;;  %v2316_v40 = vstv %s6600_s9  ;;  %s6818_s9 = sld [smem:[#allocation8 + $0xdf]] }
 0x37a   : > { %v2317_v27 = vmul.f32 %v4254_v3, %v2316_v40 }
 0x37d   : > { %2211 = vrot.lane.b32.xlu1 %v2206_v23, %s8790_s30  ;;  %2223 = vrot.lane.b32.xlu0 %v2219_v14, %s8790_s30  ;;  %v6576_v44 = vpop.permute.xlu1 %1819  ;;  %v6578_v7 = vpop.permute.xlu0 %1831  ;;  %v4255_v23 = vld [vmem:[#allocation2 + $0x21] sm:$0xff] }
 0x37e   : > { %v2304_v14 = vmul.f32 %v4255_v23, %v2302_v30  ;;  %v2318_v32 = vmul.f32 %v4255_v23, %v2316_v40  ;;  %v2372_v30 = vstv %s4053_s20  ;;  %s6846_s20 = sld [smem:[#allocation8 + $0x58]] }
 0x381   : > { %2225 = vrot.lane.b32.xlu1 %v2220_v62, %s8790_s30  ;;  %2237 = vrot.lane.b32.xlu0 %v2233_v17, %s8790_s30  ;;  %v6582_v51 = vpop.permute.xlu1 %1833  ;;  %v6584_v8 = vpop.permute.xlu0 %1845  ;;  %v2330_v62 = vstv %s6609_s27  ;;  %s6829_s27 = sld [smem:[#allocation8 + $0x103]] }
 0x382   : > { %8791 = vst [vmem:[#allocation50_spill] sm:$0xff] %v6584_v8 }
 0x385   : > { %2239 = vrot.lane.b32.xlu1 %v2234_v2, %s8790_s30  ;;  %2251 = vrot.lane.b32.xlu0 %v2247_v34, %s8790_s30  ;;  %v6588_v59 = vpop.permute.xlu1 %1847  ;;  %v6590_v37 = vpop.permute.xlu0 %1859  ;;  %v2331_v2 = vmul.f32 %v4254_v3, %v2330_v62  ;;  %v2344_v34 = vstv %s4051_s29  ;;  %s6839_s29 = sld [smem:[#allocation8 + $0x10]] }
 0x386   : > { %8792 = vst [vmem:[#allocation51_spill] sm:$0xff] %v6588_v59  ;;  %8793 = vst [vmem:[#allocation52_spill] sm:$0xff] %v6590_v37  ;;  %v2345_v21 = vmul.f32 %v4254_v3, %v2344_v34 }
 0x389   : > { %2253 = vrot.lane.b32.xlu1 %v2248_v28, %s8790_s30  ;;  %2265 = vrot.lane.b32.xlu0 %v2261_v1, %s8790_s30  ;;  %v6596_v46 = vpop.permute.xlu1 %1861  ;;  %v6598_v49 = vpop.permute.xlu0 %1873  ;;  %v2332_v1 = vmul.f32 %v4255_v23, %v2330_v62 }
 0x38a   : > { %8794 = vst [vmem:[#allocation53_spill] sm:$0xff] %v6596_v46  ;;  %8795 = vst [vmem:[#allocation54_spill] sm:$0xff] %v6598_v49 }
 0x38d   : > { %2267 = vrot.lane.b32.xlu1 %v2262_v16, %s8790_s30  ;;  %2279 = vrot.lane.b32.xlu0 %v2275_v36, %s8790_s30  ;;  %v6604_v24 = vpop.permute.xlu1 %1875  ;;  %v6606_v54 = vpop.permute.xlu0 %1887  ;;  %v2358_v16 = vstv %s4052_s26  ;;  %s6842_s26 = sld [smem:[#allocation8 + $0x34]] }
 0x38e   : > { %8796 = vst [vmem:[#allocation55_spill] sm:$0xff] %v6604_v24  ;;  %8797 = vst [vmem:[#allocation56_spill] sm:$0xff] %v6606_v54  ;;  %v2360_v40 = vmul.f32 %v4255_v23, %v2358_v16 }
 0x391   : > { %2281 = vrot.lane.b32.xlu1 %v2276_v35, %s8790_s30  ;;  %2293 = vrot.lane.b32.xlu0 %v2289_v43, %s8790_s30  ;;  %v6613_v9 = vpop.permute.xlu1 %1889  ;;  %v6615_v38 = vpop.permute.xlu0 %1901  ;;  %v2346_v35 = vmul.f32 %v4255_v23, %v2344_v34  ;;  %v2359_v43 = vmul.f32 %v4254_v3, %v2358_v16 }
 0x392   : > { %8798 = vst [vmem:[#allocation57_spill] sm:$0xff] %v6613_v9  ;;  %8799 = vst [vmem:[#allocation58_spill] sm:$0xff] %v6615_v38 }
 0x395   : > { %2295 = vrot.lane.b32.xlu1 %v2290_v26, %s8790_s30  ;;  %2307 = vrot.lane.b32.xlu0 %v2303_v31, %s8790_s30  ;;  %v6620_v15 = vpop.permute.xlu1 %1903  ;;  %v6622_v13 = vpop.permute.xlu0 %1915 }
 0x396   : > { %8800 = vst [vmem:[#allocation59_spill] sm:$0xff] %v6620_v15  ;;  %8801 = vst [vmem:[#allocation60_spill] sm:$0xff] %v6622_v13 }
 0x399   : > { %2309 = vrot.lane.b32.xlu1 %v2304_v14, %s8790_s30  ;;  %2321 = vrot.lane.b32.xlu0 %v2317_v27, %s8790_s30  ;;  %v6627_v50 = vpop.permute.xlu1 %1917  ;;  %v6629_v17 = vpop.permute.xlu0 %1929  ;;  %v2373_v14 = vmul.f32 %v4254_v3, %v2372_v30  ;;  %v2386_v27 = vstv %s4054_s16  ;;  %s6848_s16 = sld [smem:[#allocation8 + $0x7c]] }
 0x39a   : > { %8802 = vst [vmem:[#allocation61_spill] sm:$0xff] %v6627_v50  ;;  %8803 = vst [vmem:[#allocation62_spill] sm:$0xff] %v6629_v17  ;;  %v2387_v34 = vmul.f32 %v4254_v3, %v2386_v27  ;;  %v6938_v17 = vld [vmem:[#allocation2 + $0x3a] sm:$0xff] }
 0x39d   : > { %2323 = vrot.lane.b32.xlu1 %v2318_v32, %s8790_s30  ;;  %2335 = vrot.lane.b32.xlu0 %v2331_v2, %s8790_s30  ;;  %v6633_v0 = vpop.permute.xlu1 %1931  ;;  %v6635_v28 = vpop.permute.xlu0 %1943  ;;  %v2374_v2 = vmul.f32 %v4255_v23, %v2372_v30 }
 0x39e   : > { %8804 = vst [vmem:[#allocation63_spill] sm:$0xff] %v6633_v0  ;;  %8805 = vst [vmem:[#allocation127_spill] sm:$0xff] %v6635_v28 }
 0x3a1   : > { %2337 = vrot.lane.b32.xlu1 %v2332_v1, %s8790_s30  ;;  %2349 = vrot.lane.b32.xlu0 %v2345_v21, %s8790_s30  ;;  %v6639_v36 = vpop.permute.xlu1 %1945  ;;  %v6641_v55 = vpop.permute.xlu0 %1957  ;;  %v2400_v1 = vstv %s4055_s12  ;;  %s6850_s12 = sld [smem:[#allocation8 + $0xa0]] }
 0x3a2   : > { %8806 = vst [vmem:[#allocation128_spill] sm:$0xff] %v6639_v36  ;;  %8807 = vst [vmem:[#allocation64_spill] sm:$0xff] %v6641_v55 }
 0x3a5   : > { %2351 = vrot.lane.b32.xlu1 %v2346_v35, %s8790_s30  ;;  %2363 = vrot.lane.b32.xlu0 %v2359_v43, %s8790_s30  ;;  %v6645_v26 = vpop.permute.xlu1 %1959  ;;  %v6647_v31 = vpop.permute.xlu0 %1971  ;;  %v2388_v35 = vmul.f32 %v4255_v23, %v2386_v27  ;;  %v2401_v43 = vmul.f32 %v4254_v3, %v2400_v1 }
 0x3a6   : > { %8808 = vst [vmem:[#allocation65_spill] sm:$0xff] %v6645_v26  ;;  %8809 = vst [vmem:[#allocation66_spill] sm:$0xff] %v6647_v31 }
 0x3a9   : > { %2365 = vrot.lane.b32.xlu1 %v2360_v40, %s8790_s30  ;;  %2377 = vrot.lane.b32.xlu0 %v2373_v14, %s8790_s30  ;;  %v6653_v62 = vpop.permute.xlu1 %1973  ;;  %v6655_v32 = vpop.permute.xlu0 %1985  ;;  %v2414_v40 = vstv %s6649_s21  ;;  %s6858_s21 = sld [smem:[#allocation8 + $0xc4]] }
 0x3aa   : > { %8810 = vst [vmem:[#allocation67_spill] sm:$0xff] %v6653_v62  ;;  %8811 = vst [vmem:[#allocation68_spill] sm:$0xff] %v6655_v32  ;;  %v2442_v62 = vstv %s6666_s13  ;;  %s6863_s13 = sld [smem:[#allocation8 + $0x10c]] }
 0x3ad   : > { %2379 = vrot.lane.b32.xlu1 %v2374_v2, %s8790_s30  ;;  %2391 = vrot.lane.b32.xlu0 %v2387_v34, %s8790_s30  ;;  %v6661_v21 = vpop.permute.xlu1 %1987  ;;  %v6663_v16 = vpop.permute.xlu0 %1999  ;;  %v2402_v2 = vmul.f32 %v4255_v23, %v2400_v1  ;;  %v4256_v34 = vld [vmem:[#allocation2 + $0x31] sm:$0xff] }
 0x3ae   : > { %8812 = vst [vmem:[#allocation69_spill] sm:$0xff] %v6661_v21  ;;  %8813 = vst [vmem:[#allocation70_spill] sm:$0xff] %v6663_v16  ;;  %v2415_v32 = vmul.f32 %v4256_v34, %v2414_v40  ;;  %v2428_v21 = vstv %s6657_s6  ;;  %s6861_s6 = sld [smem:[#allocation8 + $0xe8]] }
 0x3af   : > { %v3020_v26 = vstv %s6858_s21  ;;  %s7102_s21 = sld [smem:[#allocation8 + $0x102]] }
 0x3b1   : > { %2393 = vrot.lane.b32.xlu1 %v2388_v35, %s8790_s30  ;;  %2405 = vrot.lane.b32.xlu0 %v2401_v43, %s8790_s30  ;;  %v6670_v30 = vpop.permute.xlu1 %2001  ;;  %v6672_v14 = vpop.permute.xlu0 %2013  ;;  %v4257_v35 = vld [vmem:[#allocation2 + $0x39] sm:$0xff]  ;;  %v2429_v43 = vmul.f32 %v4256_v34, %v2428_v21 }
 0x3b2   : > { %8814 = vst [vmem:[#allocation71_spill] sm:$0xff] %v6670_v30  ;;  %8815 = vst [vmem:[#allocation72_spill] sm:$0xff] %v6672_v14  ;;  %v2416_v16 = vmul.f32 %v4257_v35, %v2414_v40  ;;  %v2443_v14 = vmul.f32 %v4256_v34, %v2442_v62  ;;  %v2470_v30 = vstv %s4060_s25  ;;  %s6869_s25 = sld [smem:[#allocation8 + $0x3d]] }
 0x3b4   : > { %v3034_v28 = vstv %s6861_s6  ;;  %s7104_s6 = sld [smem:[#allocation8 + $0x10b]] }
 0x3b5   : > { %2407 = vrot.lane.b32.xlu1 %v2402_v2, %s8790_s30  ;;  %2419 = vrot.lane.b32.xlu0 %v2415_v32, %s8790_s30  ;;  %v2430_v2 = vmul.f32 %v4257_v35, %v2428_v21  ;;  %v2456_v32 = vstv %s4059_s15  ;;  %s6867_s15 = sld [smem:[#allocation8 + $0x19]] }
 0x3b6   : > { %v6679_v27 = vpop.permute.xlu0 %2027 }
 0x3b7   : > { %v6677_v3 = vpop.permute.xlu1 %2015  ;;  %8817 = vst [vmem:[#allocation74_spill] sm:$0xff] %v6679_v27 }
 0x3b8   : > { %8816 = vst [vmem:[#allocation73_spill] sm:$0xff] %v6677_v3  ;;  %v2444_v3 = vmul.f32 %v4257_v35, %v2442_v62  ;;  %v3076_v50 = vstv %s6869_s25  ;;  %s7134_s25 = sld [smem:[#allocation8 + $0x21]] }
 0x3b9   : > { %2421 = vrot.lane.b32.xlu1 %v2416_v16, %s8790_s30  ;;  %2433 = vrot.lane.b32.xlu0 %v2429_v43, %s8790_s30  ;;  %v2457_v16 = vmul.f32 %v4256_v34, %v2456_v32  ;;  %v6989_v49 = vmul.f32 %v3076_v50, %v6938_v17 }
 0x3bb   : > { %v6684_v23 = vpop.permute.xlu1 %2029  ;;  %v6686_v1 = vpop.permute.xlu0 %2041  ;;  %v3062_v0 = vstv %s6867_s15  ;;  %8868 = vst [vmem:[#allocation110_spill] sm:$0xff] %v6989_v49  ;;  %s7132_s15 = sld [smem:[#allocation8 + $0x18]] }
 0x3bc   : > { %8818 = vst [vmem:[#allocation83_spill] sm:$0xff] %v6684_v23  ;;  %8819 = vst [vmem:[#allocation75_spill] sm:$0xff] %v6686_v1  ;;  %v2458_v1 = vmul.f32 %v4257_v35, %v2456_v32  ;;  %v2484_v23 = vstv %s4061_s4  ;;  %s6880_s4 = sld [smem:[#allocation8 + $0x61]] }
 0x3bd   : > { %2435 = vrot.lane.b32.xlu1 %v2430_v2, %s8790_s30  ;;  %2447 = vrot.lane.b32.xlu0 %v2443_v14, %s8790_s30  ;;  %v2471_v2 = vmul.f32 %v4256_v34, %v2470_v30 }
 0x3bf   : > { %v6690_v40 = vpop.permute.xlu1 %2043  ;;  %v6692_v27 = vpop.permute.xlu0 %2055 }
 0x3c0   : > { %8820 = vst [vmem:[#allocation76_spill] sm:$0xff] %v6690_v40  ;;  %8821 = vst [vmem:[#allocation77_spill] sm:$0xff] %v6692_v27  ;;  %v2472_v27 = vmul.f32 %v4257_v35, %v2470_v30  ;;  %v2498_v40 = vstv %s4062_s8  ;;  %s6885_s8 = sld [smem:[#allocation8 + $0x85]] }
 0x3c1   : > { %2449 = vrot.lane.b32.xlu1 %v2444_v3, %s8790_s30  ;;  %2461 = vrot.lane.b32.xlu0 %v2457_v16, %s8790_s30  ;;  %v2485_v3 = vmul.f32 %v4256_v34, %v2484_v23 }
 0x3c3   : > { %v6696_v21 = vpop.permute.xlu1 %2057  ;;  %v6698_v43 = vpop.permute.xlu0 %2069 }
 0x3c4   : > { %8822 = vst [vmem:[#allocation78_spill] sm:$0xff] %v6696_v21  ;;  %8823 = vst [vmem:[#allocation79_spill] sm:$0xff] %v6698_v43  ;;  %v2512_v43 = vstv %s4063_s19  ;;  %v2526_v21 = vstv %s6706_s22  ;;  %s6887_s19 = sld [smem:[#allocation8 + $0xa9]]  ;;  %s6892_s22 = sld [smem:[#allocation8 + $0x6]] }
 0x3c5   : > { %2463 = vrot.lane.b32.xlu1 %v2458_v1, %s8790_s30  ;;  %2475 = vrot.lane.b32.xlu0 %v2471_v2, %s8790_s30  ;;  %v2486_v1 = vmul.f32 %v4257_v35, %v2484_v23  ;;  %v2499_v2 = vmul.f32 %v4256_v34, %v2498_v40 }
 0x3c7   : > { %v6702_v62 = vpop.permute.xlu1 %2071  ;;  %v6704_v14 = vpop.permute.xlu0 %2083 }
 0x3c8   : > { %8824 = vst [vmem:[#allocation80_spill] sm:$0xff] %v6702_v62  ;;  %8825 = vst [vmem:[#allocation99_spill] sm:$0xff] %v6704_v14  ;;  %v2554_v14 = vstv %s6723_s14  ;;  %s6900_s14 = sld [smem:[#allocation8 + $0xcd]] }
 0x3c9   : > { %2477 = vrot.lane.b32.xlu1 %v2472_v27, %s8790_s30  ;;  %2489 = vrot.lane.b32.xlu0 %v2485_v3, %s8790_s30  ;;  %v2500_v27 = vmul.f32 %v4257_v35, %v2498_v40  ;;  %v2513_v3 = vmul.f32 %v4256_v34, %v2512_v43 }
 0x3ca   : > { %v3118_v24 = vstv %s6887_s19  ;;  %v2646_v46 = vstv %s6892_s22  ;;  %s7162_s19 = sld [smem:[#allocation8 + $0x45]]  ;;  %s7188_s22 = sld [smem:[#allocation8 + $0x60]] }
 0x3cb   : > { %v6710_v32 = vpop.permute.xlu1 %2085  ;;  %v6712_v16 = vpop.permute.xlu0 %2097 }
 0x3cc   : > { %8826 = vst [vmem:[#allocation81_spill] sm:$0xff] %v6710_v32  ;;  %8827 = vst [vmem:[#allocation82_spill] sm:$0xff] %v6712_v16 }
 0x3cd   : > { %2491 = vrot.lane.b32.xlu1 %v2486_v1, %s8790_s30  ;;  %2503 = vrot.lane.b32.xlu0 %v2499_v2, %s8790_s30  ;;  %v2514_v1 = vmul.f32 %v4257_v35, %v2512_v43  ;;  %v4258_v2 = vld [vmem:[#allocation2 + $0x49] sm:$0xff] }
 0x3ce   : > { %v2527_v32 = vmul.f32 %v4258_v2, %v2526_v21 }
 0x3cf   : > { %v6718_v30 = vpop.permute.xlu1 %2099  ;;  %v6720_v62 = vpop.permute.xlu0 %2111 }
 0x3d0   : > { %8828 = vst [vmem:[#allocation84_spill] sm:$0xff] %v6718_v30  ;;  %8829 = vst [vmem:[#allocation85_spill] sm:$0xff] %v6720_v62  ;;  %v2540_v30 = vstv %s6714_s2  ;;  %s6898_s2 = sld [smem:[#allocation8 + $0xf]] }
 0x3d1   : > { %2505 = vrot.lane.b32.xlu1 %v2500_v27, %s8790_s30  ;;  %2517 = vrot.lane.b32.xlu0 %v2513_v3, %s8790_s30  ;;  %v4259_v27 = vld [vmem:[#allocation2 + $0x51] sm:$0xff]  ;;  %v2541_v3 = vmul.f32 %v4258_v2, %v2540_v30 }
 0x3d2   : > { %v2528_v62 = vmul.f32 %v4259_v27, %v2526_v21 }
 0x3d3   : > { %v6727_v23 = vpop.permute.xlu1 %2113  ;;  %v6729_v16 = vpop.permute.xlu0 %2125 }
 0x3d4   : > { %8830 = vst [vmem:[#allocation86_spill] sm:$0xff] %v6727_v23  ;;  %8831 = vst [vmem:[#allocation87_spill] sm:$0xff] %v6729_v16  ;;  %v2555_v16 = vmul.f32 %v4258_v2, %v2554_v14  ;;  %v2582_v23 = vstv %s4068_s10  ;;  %s6918_s10 = sld [smem:[#allocation8 + $0x33]] }
 0x3d5   : > { %2519 = vrot.lane.b32.xlu1 %v2514_v1, %s8790_s30  ;;  %2531 = vrot.lane.b32.xlu0 %v2527_v32, %s8790_s30  ;;  %v2542_v1 = vmul.f32 %v4259_v27, %v2540_v30  ;;  %v2568_v32 = vstv %s4067_s23  ;;  %s6910_s23 = sld [smem:[#allocation8 + $0x2a]] }
 0x3d7   : > { %v6734_v34 = vpop.permute.xlu1 %2127  ;;  %v6736_v40 = vpop.permute.xlu0 %2139 }
 0x3d8   : > { %8832 = vst [vmem:[#allocation88_spill] sm:$0xff] %v6734_v34  ;;  %8833 = vst [vmem:[#allocation115_spill] sm:$0xff] %v6736_v40  ;;  %v2556_v34 = vmul.f32 %v4259_v27, %v2554_v14 }
 0x3d9   : > { %2533 = vrot.lane.b32.xlu1 %v2528_v62, %s8790_s30  ;;  %2545 = vrot.lane.b32.xlu0 %v2541_v3, %s8790_s30  ;;  %v2569_v62 = vmul.f32 %v4258_v2, %v2568_v32 }
 0x3db   : > { %v6741_v35 = vpop.permute.xlu1 %2141  ;;  %v6743_v43 = vpop.permute.xlu0 %2153 }
 0x3dc   : > { %8834 = vst [vmem:[#allocation89_spill] sm:$0xff] %v6741_v35  ;;  %8835 = vst [vmem:[#allocation90_spill] sm:$0xff] %v6743_v43  ;;  %v2570_v43 = vmul.f32 %v4259_v27, %v2568_v32  ;;  %v2596_v35 = vstv %s4069_s11  ;;  %s6920_s11 = sld [smem:[#allocation8 + $0xf1]] }
 0x3dd   : > { %2547 = vrot.lane.b32.xlu1 %v2542_v1, %s8790_s30  ;;  %2559 = vrot.lane.b32.xlu0 %v2555_v16, %s8790_s30  ;;  %v2583_v1 = vmul.f32 %v4258_v2, %v2582_v23 }
 0x3df   : > { %v6747_v21 = vpop.permute.xlu1 %2155  ;;  %v6749_v40 = vpop.permute.xlu0 %2167 }
 0x3e0   : > { %8836 = vst [vmem:[#allocation91_spill] sm:$0xff] %v6747_v21  ;;  %8837 = vst [vmem:[#allocation131_spill] sm:$0xff] %v6749_v40  ;;  %v2584_v40 = vmul.f32 %v4259_v27, %v2582_v23  ;;  %v2610_v21 = vstv %s4070_s0  ;;  %s6936_s0 = sld [smem:[#allocation8 + $0x4e]] }
 0x3e1   : > { %2561 = vrot.lane.b32.xlu1 %v2556_v34, %s8790_s30  ;;  %2573 = vrot.lane.b32.xlu0 %v2569_v62, %s8790_s30  ;;  %v2597_v34 = vmul.f32 %v4258_v2, %v2596_v35 }
 0x3e3   : > { %v6753_v30 = vpop.permute.xlu1 %2169  ;;  %v6755_v3 = vpop.permute.xlu0 %2181 }
 0x3e4   : > { %8838 = vst [vmem:[#allocation132_spill] sm:$0xff] %v6753_v30  ;;  %8839 = vst [vmem:[#allocation92_spill] sm:$0xff] %v6755_v3  ;;  %v2624_v3 = vstv %s4071_s1  ;;  %v6779_v30 = vld [vmem:[#allocation2 + $0x2] sm:$0xff]  ;;  %s6950_s1 = sld [smem:[#allocation8 + $0x57]] }
 0x3e5   : > { %2575 = vrot.lane.b32.xlu1 %v2570_v43, %s8790_s30  ;;  %2587 = vrot.lane.b32.xlu0 %v2583_v1, %s8790_s30  ;;  %v2598_v43 = vmul.f32 %v4259_v27, %v2596_v35  ;;  %v2611_v1 = vmul.f32 %v4258_v2, %v2610_v21  ;;  %v7023_v11 = vmul.f32 %v2646_v46, %v6779_v30 }
 0x3e7   : > { %v6759_v14 = vpop.permute.xlu1 %2183  ;;  %v6761_v16 = vpop.permute.xlu0 %2195  ;;  %8876 = vst [vmem:[#allocation144_spill] sm:$0xff] %v7023_v11 }
 0x3e8   : > { %8840 = vst [vmem:[#allocation100_spill] sm:$0xff] %v6759_v14  ;;  %8841 = vst [vmem:[#allocation101_spill] sm:$0xff] %v6761_v16 }
 0x3e9   : > { %2589 = vrot.lane.b32.xlu1 %v2584_v40, %s8790_s30  ;;  %2601 = vrot.lane.b32.xlu0 %v2597_v34, %s8790_s30  ;;  %v2612_v40 = vmul.f32 %v4259_v27, %v2610_v21  ;;  %v2625_v34 = vmul.f32 %v4258_v2, %v2624_v3 }
 0x3eb   : > { %v6767_v32 = vpop.permute.xlu1 %2197  ;;  %v6769_v62 = vpop.permute.xlu0 %2209 }
 0x3ec   : > { %8842 = vst [vmem:[#allocation93_spill] sm:$0xff] %v6767_v32  ;;  %8843 = vst [vmem:[#allocation94_spill] sm:$0xff] %v6769_v62  ;;  %v2838_v32 = vstv %s6763_s18  ;;  %v2626_v62 = vmul.f32 %v4259_v27, %v2624_v3  ;;  %s6952_s18 = sld [smem:[#allocation8 + $0x115]] }
 0x3ed   : > { %2603 = vrot.lane.b32.xlu1 %v2598_v43, %s8790_s30  ;;  %2615 = vrot.lane.b32.xlu0 %v2611_v1, %s8790_s30  ;;  %v2839_v1 = vmul.f32 %v2838_v32, %v6779_v30 }
 0x3ef   : > { %v6775_v23 = vpop.permute.xlu1 %2211  ;;  %v6777_v14 = vpop.permute.xlu0 %2223 }
 0x3f0   : > { %8844 = vst [vmem:[#allocation95_spill] sm:$0xff] %v6775_v23  ;;  %8845 = vst [vmem:[#allocation96_spill] sm:$0xff] %v6777_v14  ;;  %v6789_v23 = vld [vmem:[#allocation2 + $0xa] sm:$0xff]  ;;  %v2852_v14 = vstv %s6771_s17  ;;  %s6976_s17 = sld [smem:[#allocation8 + $0x72]] }
 0x3f1   : > { %2617 = vrot.lane.b32.xlu1 %v2612_v40, %s8790_s30  ;;  %2629 = vrot.lane.b32.xlu0 %v2625_v34, %s8790_s30  ;;  %v2840_v40 = vmul.f32 %v2838_v32, %v6789_v23  ;;  %v2853_v34 = vmul.f32 %v2852_v14, %v6779_v30  ;;  %v7043_v11 = vmul.f32 %v2646_v46, %v6789_v23 }
 0x3f3   : > { %v6784_v35 = vpop.permute.xlu1 %2225  ;;  %v6786_v43 = vpop.permute.xlu0 %2237  ;;  %8880 = vst [vmem:[#allocation125_spill] sm:$0xff] %v7043_v11 }
 0x3f4   : > { %8846 = vst [vmem:[#allocation97_spill] sm:$0xff] %v6784_v35  ;;  %8847 = vst [vmem:[#allocation116_spill] sm:$0xff] %v6786_v43  ;;  %v2866_v43 = vstv %s4106_s3  ;;  %s6978_s3 = sld [smem:[#allocation8 + $0x7b]] }
 0x3f5   : > { %2631 = vrot.lane.b32.xlu1 %v2626_v62, %s8790_s30  ;;  %2843 = vrot.lane.b32.xlu0 %v2839_v1, %s8427_s5  ;;  %v2854_v62 = vmul.f32 %v2852_v14, %v6789_v23  ;;  %v2867_v1 = vmul.f32 %v2866_v43, %v6779_v30 }
 0x3f7   : > { %v6794_v2 = vpop.permute.xlu1 %2239  ;;  %v6796_v21 = vpop.permute.xlu0 %2251 }
 0x3f8   : > { %8848 = vst [vmem:[#allocation117_spill] sm:$0xff] %v6794_v2  ;;  %8849 = vst [vmem:[#allocation98_spill] sm:$0xff] %v6796_v21  ;;  %v2880_v2 = vstv %s4107_s7  ;;  %s6992_s7 = sld [smem:[#allocation8 + $0x22]] }
 0x3f9   : > { %2845 = vrot.lane.b32.xlu1 %v2840_v40, %s8427_s5  ;;  %2857 = vrot.lane.b32.xlu0 %v2853_v34, %s8427_s5  ;;  %v2868_v34 = vmul.f32 %v2866_v43, %v6789_v23 }
 0x3fb   : > { %v6802_v27 = vpop.permute.xlu1 %2253  ;;  %v6804_v3 = vpop.permute.xlu0 %2265 }
 0x3fc   : > { %8850 = vst [vmem:[#allocation102_spill] sm:$0xff] %v6802_v27  ;;  %8851 = vst [vmem:[#allocation103_spill] sm:$0xff] %v6804_v3  ;;  %v2881_v3 = vmul.f32 %v2880_v2, %v6779_v30  ;;  %v2894_v27 = vstv %s4108_s28  ;;  %s7002_s28 = sld [smem:[#allocation8 + $0x96]] }
 0x3fd   : > { %2859 = vrot.lane.b32.xlu1 %v2854_v62, %s8427_s5  ;;  %2871 = vrot.lane.b32.xlu0 %v2867_v1, %s8427_s5  ;;  %v2882_v1 = vmul.f32 %v2880_v2, %v6789_v23  ;;  %v2922_v2 = vstv %s6818_s9  ;;  %s7020_s9 = sld [smem:[#allocation8 + $0x46]] }
 0x3fe   : > { %v2924_v21 = vmul.f32 %v2922_v2, %v6789_v23 }
 0x3ff   : > { %v6812_v32 = vpop.permute.xlu1 %2267  ;;  %v6814_v40 = vpop.permute.xlu0 %2279 }
 0x400   : > { %8852 = vst [vmem:[#allocation135_spill] sm:$0xff] %v6812_v32  ;;  %8853 = vst [vmem:[#allocation136_spill] sm:$0xff] %v6814_v40  ;;  %v2895_v40 = vmul.f32 %v2894_v27, %v6779_v30  ;;  %v2908_v32 = vstv %s6808_s24  ;;  %s7004_s24 = sld [smem:[#allocation8 + $0x9f]] }
 0x401   : > { %2873 = vrot.lane.b32.xlu1 %v2868_v34, %s8427_s5  ;;  %2885 = vrot.lane.b32.xlu0 %v2881_v3, %s8427_s5  ;;  %v2896_v3 = vmul.f32 %v2894_v27, %v6789_v23 }
 0x403   : > { %v6822_v14 = vpop.permute.xlu1 %2281  ;;  %v6824_v62 = vpop.permute.xlu0 %2293 }
 0x404   : > { %8854 = vst [vmem:[#allocation104_spill] sm:$0xff] %v6822_v14  ;;  %8855 = vst [vmem:[#allocation133_spill] sm:$0xff] %v6824_v62  ;;  %v2909_v62 = vmul.f32 %v2908_v32, %v6779_v30 }
 0x405   : > { %2887 = vrot.lane.b32.xlu1 %v2882_v1, %s8427_s5  ;;  %2899 = vrot.lane.b32.xlu0 %v2895_v40, %s8427_s5  ;;  %v2910_v1 = vmul.f32 %v2908_v32, %v6789_v23  ;;  %v6871_v32 = vld [vmem:[#allocation2 + $0x1a] sm:$0xff] }
 0x406   : > { %v6959_v38 = vmul.f32 %v3034_v28, %v6871_v32 }
 0x407   : > { %v6833_v43 = vpop.permute.xlu1 %2295  ;;  %v6835_v34 = vpop.permute.xlu0 %2307 }
 0x408   : > { %8856 = vst [vmem:[#allocation105_spill] sm:$0xff] %v6833_v43  ;;  %8857 = vst [vmem:[#allocation106_spill] sm:$0xff] %v6835_v34  ;;  %v2923_v43 = vmul.f32 %v2922_v2, %v6779_v30  ;;  %v3006_v34 = vstv %s6850_s12  ;;  %s7084_s12 = sld [smem:[#allocation8 + $0x8e]] }
 0x409   : > { %2901 = vrot.lane.b32.xlu1 %v2896_v3, %s8427_s5  ;;  %2913 = vrot.lane.b32.xlu0 %v2909_v62, %s8427_s5  ;;  %v2936_v3 = vstv %s6829_s27  ;;  %s7030_s27 = sld [smem:[#allocation8 + $0xba]] }
 0x40a   : > { %v2937_v35 = vmul.f32 %v2936_v3, %v6779_v30  ;;  %v2938_v2 = vmul.f32 %v2936_v3, %v6789_v23 }
 0x40b   : > { %v6852_v40 = vpop.permute.xlu1 %2309  ;;  %v6854_v27 = vpop.permute.xlu0 %2321 }
 0x40c   : > { %8858 = vst [vmem:[#allocation107_spill] sm:$0xff] %v6852_v40  ;;  %8859 = vst [vmem:[#allocation118_spill] sm:$0xff] %v6854_v27  ;;  %v2964_v27 = vstv %s6842_s26  ;;  %v2992_v40 = vstv %s6848_s16  ;;  %s7046_s26 = sld [smem:[#allocation8 + $0x6a]]  ;;  %s7074_s16 = sld [smem:[#allocation8 + $0xe7]] }
 0x40d   : > { %2915 = vrot.lane.b32.xlu1 %v2910_v1, %s8427_s5  ;;  %2927 = vrot.lane.b32.xlu0 %v2923_v43, %s8427_s5  ;;  %v2950_v1 = vstv %s6839_s29  ;;  %v6882_v43 = vld [vmem:[#allocation2 + $0x22] sm:$0xff]  ;;  %v2965_v31 = vmul.f32 %v2964_v27, %v6871_v32  ;;  %s7032_s29 = sld [smem:[#allocation8 + $0xc3]] }
 0x40e   : > { %8862 = vst [vmem:[#allocation108_spill] sm:$0xff] %v6882_v43  ;;  %v2966_v3 = vmul.f32 %v2964_v27, %v6882_v43  ;;  %v6927_v27 = vmul.f32 %v2992_v40, %v6871_v32 }
 0x40f   : > { %v6873_v62 = vpop.permute.xlu1 %2323  ;;  %v6875_v14 = vpop.permute.xlu0 %2335 }
 0x410   : > { %8860 = vst [vmem:[#allocation119_spill] sm:$0xff] %v6873_v62  ;;  %8861 = vst [vmem:[#allocation134_spill] sm:$0xff] %v6875_v14  ;;  %v2978_v14 = vstv %s6846_s20  ;;  %v2951_v62 = vmul.f32 %v2950_v1, %v6871_v32  ;;  %s7072_s20 = sld [smem:[#allocation8 + $0xde]] }
 0x411   : > { %2929 = vrot.lane.b32.xlu1 %v2924_v21, %s8427_s5  ;;  %2941 = vrot.lane.b32.xlu0 %v2937_v35, %s8427_s5  ;;  %v2952_v35 = vmul.f32 %v2950_v1, %v6882_v43  ;;  %v2979_v55 = vmul.f32 %v2978_v14, %v6871_v32  ;;  %v6914_v36 = vmul.f32 %v2978_v14, %v6882_v43  ;;  %v6922_v1 = vld [vmem:[#allocation2 + $0x32] sm:$0xff] }
 0x412   : > { %8865 = vst [vmem:[#allocation143_spill] sm:$0xff] %v6922_v1  ;;  %v6933_v14 = vmul.f32 %v3006_v34, %v6871_v32 }
 0x413   : > { %v6902_v16 = vpop.permute.xlu1 %2337  ;;  %v6904_v21 = vpop.permute.xlu0 %2349 }
 0x414   : > { %8863 = vst [vmem:[#allocation109_spill] sm:$0xff] %v6902_v16  ;;  %8864 = vst [vmem:[#allocation142_spill] sm:$0xff] %v6904_v21  ;;  %v3048_v16 = vstv %s6863_s13  ;;  %v6930_v21 = vmul.f32 %v2992_v40, %v6882_v43  ;;  %v6947_v40 = vmul.f32 %v3020_v26, %v6882_v43  ;;  %s7114_s13 = sld [smem:[#allocation8 + $0xb2]] }
 0x415   : > { %2943 = vrot.lane.b32.xlu1 %v2938_v2, %s8427_s5  ;;  %2955 = vrot.lane.b32.xlu0 %v2951_v62, %s8427_s5  ;;  %v6941_v2 = vmul.f32 %v3006_v34, %v6882_v43  ;;  %v6944_v62 = vmul.f32 %v3020_v26, %v6871_v32  ;;  %v6962_v34 = vmul.f32 %v3034_v28, %v6882_v43  ;;  %v3090_v26 = vstv %s6880_s4  ;;  %s7144_s4 = sld [smem:[#allocation8 + $0xd6]] }
 0x416   : > { %v6965_v9 = vmul.f32 %v3048_v16, %v6871_v32  ;;  %v6969_v54 = vmul.f32 %v3048_v16, %v6882_v43  ;;  %v6983_v28 = vmul.f32 %v3062_v0, %v6938_v17  ;;  %v6986_v16 = vmul.f32 %v3076_v50, %v6922_v1 }
 0x417   : > { %v6954_v13 = vpop.permute.xlu1 %2351  ;;  %v6956_v15 = vpop.permute.xlu0 %2363  ;;  %v6995_v37 = vmul.f32 %v3090_v26, %v6922_v1 }
 0x418   : > { %8866 = vst [vmem:[#allocation137_spill] sm:$0xff] %v6954_v13  ;;  %8867 = vst [vmem:[#allocation139_spill] sm:$0xff] %v6956_v15  ;;  %v6972_v13 = vmul.f32 %v3062_v0, %v6922_v1  ;;  %v3104_v15 = vstv %s6885_s8  ;;  %v2694_v0 = vstv %s6898_s2  ;;  %s7160_s8 = sld [smem:[#allocation8 + $0x3c]]  ;;  %s7190_s2 = sld [smem:[#allocation8 + $0x69]] }
 0x419   : > { %2957 = vrot.lane.b32.xlu1 %v2952_v35, %s8427_s5  ;;  %2969 = vrot.lane.b32.xlu0 %v2965_v31, %s8427_s5  ;;  %8869 = vst [vmem:[#allocation120_spill] sm:$0xff] %v6995_v37  ;;  %v6998_v31 = vmul.f32 %v3090_v26, %v6938_v17  ;;  %v3132_v35 = vstv %s6900_s14  ;;  %v7011_v49 = vmul.f32 %v3104_v15, %v6922_v1  ;;  %s7202_s14 = sld [smem:[#allocation8 + $0x84]] }
 0x41a   : > { %v7014_v37 = vmul.f32 %v3104_v15, %v6938_v17  ;;  %v7017_v26 = vmul.f32 %v3118_v24, %v6922_v1  ;;  %v7037_v15 = vmul.f32 %v2694_v0, %v6871_v32  ;;  %v7064_v11 = vmul.f32 %v3132_v35, %v6938_v17 }
 0x41b   : > { %8870 = vst [vmem:[#allocation121_spill] sm:$0xff] %v6998_v31  ;;  %v7006_v59 = vpop.permute.xlu1 %2365  ;;  %v7008_v50 = vpop.permute.xlu0 %2377  ;;  %8873 = vst [vmem:[#allocation140_spill] sm:$0xff] %v7011_v49  ;;  %v2652_v31 = vstv %s6910_s23  ;;  %v3146_v49 = vstv %s6920_s11  ;;  %s7204_s23 = sld [smem:[#allocation8 + $0x8d]]  ;;  %s7220_s11 = sld [smem:[#allocation8 + $0xb1]] }
 0x41c   : > { %8871 = vst [vmem:[#allocation123_spill] sm:$0xff] %v7006_v59  ;;  %8872 = vst [vmem:[#allocation138_spill] sm:$0xff] %v7008_v50  ;;  %v7026_v50 = vmul.f32 %v3118_v24, %v6938_v17  ;;  %v2700_v59 = vstv %s6918_s10  ;;  %v2658_v24 = vstv %s6936_s0  ;;  %s7218_s10 = sld [smem:[#allocation8 + $0xa8]]  ;;  %s7232_s0 = sld [smem:[#allocation8 + $0xcc]] }
 0x41d   : > { %8874 = vst [vmem:[#allocation151_spill] sm:$0xff] %v7014_v37  ;;  %8875 = vst [vmem:[#allocation152_spill] sm:$0xff] %v7017_v26  ;;  %2971 = vrot.lane.b32.xlu1 %v2966_v3, %s8427_s5  ;;  %2983 = vrot.lane.b32.xlu0 %v2979_v55, %s8427_s5  ;;  %v7040_v26 = vmul.f32 %v3132_v35, %v6922_v1  ;;  %v7052_v3 = vmul.f32 %v2652_v31, %v6779_v30  ;;  %v2706_v55 = vstv %s6950_s1  ;;  %s7246_s1 = sld [smem:[#allocation8 + $0xd5]] }
 0x41e   : > { %8877 = vst [vmem:[#allocation149_spill] sm:$0xff] %v7026_v50  ;;  %8878 = vst [vmem:[#allocation111_spill] sm:$0xff] %v7037_v15  ;;  %v7049_v50 = vmul.f32 %v2694_v0, %v6882_v43  ;;  %v3160_v37 = vstv %s6952_s18  ;;  %v7061_v46 = vmul.f32 %v2700_v59, %v6871_v32  ;;  %v7070_v0 = vmul.f32 %v2652_v31, %v6789_v23  ;;  %s7573_s18 = sld [smem:[#allocation8 + $0xf0]] }
 0x41f   : > { %8879 = vst [vmem:[#allocation124_spill] sm:$0xff] %v7040_v26  ;;  %8882 = vst [vmem:[#allocation150_spill] sm:$0xff] %v7052_v3  ;;  %v7056_v15 = vpop.permute.xlu1 %2379  ;;  %v7058_v8 = vpop.permute.xlu0 %2391  ;;  %v7067_v26 = vmul.f32 %v3146_v49, %v6922_v1  ;;  %v2664_v35 = vstv %s6976_s17  ;;  %v7096_v31 = vmul.f32 %v3146_v49, %v6938_v17  ;;  %v2718_v49 = vstv %s7004_s24  ;;  %s7582_s17 = sld [smem:[#allocation8 + $0xfa]]  ;;  %s7653_s24 = sld [smem:[#allocation8 + $0x11e]] }
 0x420   : > { %8881 = vst [vmem:[#allocation145_spill] sm:$0xff] %v7049_v50  ;;  %8883 = vst [vmem:[#allocation157_spill] sm:$0xff] %v7056_v15  ;;  %v7077_v15 = vmul.f32 %v2700_v59, %v6882_v43  ;;  %v7086_v50 = vld [vmem:[#allocation2 + $0x4a] sm:$0xff]  ;;  %v7093_v59 = vmul.f32 %v2706_v55, %v6871_v32  ;;  %v7123_v3 = vmul.f32 %v2664_v35, %v6779_v30 }
 0x421   : > { %8884 = vst [vmem:[#allocation158_spill] sm:$0xff] %v7058_v8  ;;  %8885 = vst [vmem:[#allocation187_spill] sm:$0xff] %v7061_v46  ;;  %v7080_v8 = vmul.f32 %v2658_v24, %v6779_v30  ;;  %v2712_v46 = vstv %s6978_s3  ;;  %2985 = vrot.lane.b32.xlu1 %v6914_v36, %s8427_s5  ;;  %2997 = vrot.lane.b32.xlu0 %v6927_v27, %s8427_s5  ;;  %v7107_v36 = vmul.f32 %v2658_v24, %v6789_v23  ;;  %s7599_s3 = sld [smem:[#allocation8 + $0xf9]] }
 0x422   : > { %8886 = vst [vmem:[#allocation188_spill] sm:$0xff] %v7070_v0  ;;  %8887 = vst [vmem:[#allocation153_spill] sm:$0xff] %v7077_v15  ;;  %v7099_v15 = vmul.f32 %v3160_v37, %v6922_v1  ;;  %v7110_v27 = vmul.f32 %v2706_v55, %v6882_v43  ;;  %v7116_v0 = vld [vmem:[#allocation2 + $0x52] sm:$0xff]  ;;  %v7126_v24 = vmul.f32 %v2712_v46, %v6871_v32 }
 0x423   : > { %8888 = vst [vmem:[#allocation155_spill] sm:$0xff] %v7080_v8  ;;  %8889 = vst [vmem:[#allocation190_spill] sm:$0xff] %v7086_v50  ;;  %v3174_v8 = vstv %s6992_s7  ;;  %v7129_v55 = vmul.f32 %v3160_v37, %v6938_v17  ;;  %v7151_v37 = vmul.f32 %v2712_v46, %v6882_v43  ;;  %s7614_s7 = sld [smem:[#allocation8 + $0x114]] }
 0x424   : > { %8890 = vst [vmem:[#allocation112_spill] sm:$0xff] %v7093_v59  ;;  %8891 = vst [vmem:[#allocation126_spill] sm:$0xff] %v7096_v31  ;;  %v2670_v59 = vstv %s7002_s28  ;;  %v7120_v31 = vpop.permute.xlu0 %2405  ;;  %s7625_s28 = sld [smem:[#allocation8 + $0x11d]] }
 0x425   : > { %8892 = vst [vmem:[#allocation129_spill] sm:$0xff] %v7099_v15  ;;  %8893 = vst [vmem:[#allocation154_spill] sm:$0xff] %v7107_v36  ;;  %v7118_v15 = vpop.permute.xlu1 %2393  ;;  %v7137_v36 = vmul.f32 %v3174_v8, %v7086_v50  ;;  %2999 = vrot.lane.b32.xlu1 %v6930_v21, %s8427_s5  ;;  %3011 = vrot.lane.b32.xlu0 %v6933_v14, %s8427_s5  ;;  %v7165_v21 = vmul.f32 %v3174_v8, %v7116_v0 }
 0x426   : > { %8894 = vst [vmem:[#allocation156_spill] sm:$0xff] %v7110_v27  ;;  %8895 = vst [vmem:[#allocation163_spill] sm:$0xff] %v7116_v0  ;;  %v3188_v27 = vstv %s7020_s9  ;;  %v7171_v46 = vmul.f32 %v2670_v59, %v6789_v23  ;;  %s7679_s9 = sld [smem:[#allocation8 + $0x8]] }
 0x427   : > { %8896 = vst [vmem:[#allocation165_spill] sm:$0xff] %v7118_v15  ;;  %8897 = vst [vmem:[#allocation189_spill] sm:$0xff] %v7120_v31  ;;  %v7140_v31 = vmul.f32 %v2664_v35, %v6789_v23  ;;  %v2676_v15 = vstv %s7030_s27  ;;  %v7157_v35 = vmul.f32 %v2718_v49, %v6871_v32  ;;  %v7168_v14 = vmul.f32 %v3188_v27, %v7086_v50  ;;  %s7707_s27 = sld [smem:[#allocation8 + $0x2c]] }
 0x428   : > { %8898 = vst [vmem:[#allocation191_spill] sm:$0xff] %v7123_v3  ;;  %8899 = vst [vmem:[#allocation159_spill] sm:$0xff] %v7126_v24  ;;  %v2724_v3 = vstv %s7032_s29  ;;  %v7154_v24 = vmul.f32 %v2670_v59, %v6779_v30  ;;  %v7193_v59 = vmul.f32 %v3188_v27, %v7116_v0  ;;  %s7726_s29 = sld [smem:[#allocation8 + $0x50]] }
 0x429   : > { %8900 = vst [vmem:[#allocation161_spill] sm:$0xff] %v7137_v36  ;;  %8901 = vst [vmem:[#allocation192_spill] sm:$0xff] %v7140_v31  ;;  %v3202_v31 = vstv %s7046_s26  ;;  %v7181_v36 = vmul.f32 %v2676_v15, %v6779_v30  ;;  %v7184_v8 = vmul.f32 %v2724_v3, %v6871_v32  ;;  %3013 = vrot.lane.b32.xlu1 %v6941_v2, %s8427_s5  ;;  %3025 = vrot.lane.b32.xlu0 %v6944_v62, %s8427_s5  ;;  %s4139_s26 = sld [smem:[#allocation8 + $0x74]] }
 0x42a   : > { %8902 = vst [vmem:[#allocation113_spill] sm:$0xff] %v7151_v37  ;;  %8903 = vst [vmem:[#allocation130_spill] sm:$0xff] %v7154_v24  ;;  %v7174_v37 = vmul.f32 %v2718_v49, %v6882_v43  ;;  %v7176_v24 = vpop.permute.xlu1 %2407  ;;  %v7196_v49 = vmul.f32 %v3202_v31, %v7086_v50  ;;  %v7211_v27 = vmul.f32 %v2724_v3, %v6882_v43 }
 0x42b   : > { %8904 = vst [vmem:[#allocation147_spill] sm:$0xff] %v7157_v35  ;;  %8905 = vst [vmem:[#allocation160_spill] sm:$0xff] %v7165_v21  ;;  %v7178_v35 = vpop.permute.xlu0 %2419  ;;  %v2682_v21 = vstv %s7072_s20  ;;  %s4140_s20 = sld [smem:[#allocation8 + $0x98]] }
 0x42c   : > { %8906 = vst [vmem:[#allocation162_spill] sm:$0xff] %v7168_v14  ;;  %8907 = vst [vmem:[#allocation170_spill] sm:$0xff] %v7171_v46  ;;  %v2730_v14 = vstv %s7074_s16  ;;  %v7223_v2 = vmul.f32 %v2682_v21, %v6779_v30  ;;  %v7229_v3 = vmul.f32 %v2682_v21, %v6789_v23  ;;  %s4142_s16 = sld [smem:[#allocation8 + $0xe0]] }
 0x42d   : > { %8908 = vst [vmem:[#allocation171_spill] sm:$0xff] %v7174_v37  ;;  %8909 = vst [vmem:[#allocation166_spill] sm:$0xff] %v7176_v24  ;;  %v7199_v24 = vmul.f32 %v2676_v15, %v6789_v23  ;;  %v3216_v37 = vstv %s7084_s12  ;;  %v2688_v15 = vstv %s7102_s21  ;;  %v7226_v62 = vmul.f32 %v2730_v14, %v6871_v32  ;;  %3027 = vrot.lane.b32.xlu1 %v6947_v40, %s8427_s5  ;;  %s4143_s12 = sld [smem:[#allocation8 + $0x104]]  ;;  %s7769_s21 = sld [smem:[#allocation8 + $0x11]] }
 0x42e   : > { %8910 = vst [vmem:[#allocation168_spill] sm:$0xff] %v7181_v36  ;;  %8911 = vst [vmem:[#allocation194_spill] sm:$0xff] %v7184_v8  ;;  %v7214_v8 = vmul.f32 %v3202_v31, %v7116_v0  ;;  %v7234_v31 = vpop.permute.xlu1 %2421  ;;  %v2742_v36 = vstv %s7132_s15  ;;  %v7249_v21 = vmul.f32 %v2688_v15, %v6779_v30  ;;  %3039 = vrot.lane.b32.xlu0 %v6959_v38, %s8427_s5  ;;  %s7798_s15 = sld [smem:[#allocation8 + $0x7d]] }
 0x42f   : > { %8912 = vst [vmem:[#allocation114_spill] sm:$0xff] %v7193_v59  ;;  %8913 = vst [vmem:[#allocation148_spill] sm:$0xff] %v7196_v49  ;;  %v7257_v49 = vmul.f32 %v3216_v37, %v7116_v0  ;;  %v7282_v38 = vmul.f32 %v2742_v36, %v6938_v17 }
 0x430   : > { %8914 = vst [vmem:[#allocation167_spill] sm:$0xff] %v7199_v24  ;;  %8915 = vst [vmem:[#allocation169_spill] sm:$0xff] %v7211_v27  ;;  %v3230_v27 = vstv %s7114_s13  ;;  %v7236_v24 = vpop.permute.xlu0 %2433  ;;  %s7786_s13 = sld [smem:[#allocation8 + $0x59]] }
 0x431   : > { %8916 = vst [vmem:[#allocation176_spill] sm:$0xff] %v7214_v8  ;;  %8917 = vst [vmem:[#allocation177_spill] sm:$0xff] %v7223_v2  ;;  %v7239_v8 = vmul.f32 %v3216_v37, %v7086_v50  ;;  %v7242_v2 = vmul.f32 %v2730_v14, %v6882_v43  ;;  %v7265_v30 = vmul.f32 %v3230_v27, %v7086_v50  ;;  %v2796_v37 = vstv %s7162_s19  ;;  %s7843_s19 = sld [smem:[#allocation8 + $0x10d]] }
 0x432   : > { %8918 = vst [vmem:[#allocation193_spill] sm:$0xff] %v7226_v62  ;;  %8919 = vst [vmem:[#allocation195_spill] sm:$0xff] %v7229_v3  ;;  %v2790_v62 = vstv %s7134_s25  ;;  %v8923_v3 = vstv %s7104_s6  ;;  %v7268_v14 = vmul.f32 %v2688_v15, %v6789_v23  ;;  %v7279_v40 = vmul.f32 %v3230_v27, %v7116_v0  ;;  %v7284_v43 = vpop.permute.xlu1 %2435  ;;  %3041 = vrot.lane.b32.xlu1 %v6962_v34, %s8427_s5  ;;  %s7811_s25 = sld [smem:[#allocation8 + $0xa1]] }
 0x433   : > { %8920 = vst [vmem:[#allocation172_spill] sm:$0xff] %v7239_v8  ;;  %8921 = vst [vmem:[#allocation174_spill] sm:$0xff] %v7242_v2  ;;  %v7254_v46 = vmul.f32 %v8923_v3, %v6871_v32  ;;  %v2748_v32 = vstv %s7160_s8  ;;  %v7273_v3 = vmul.f32 %v2742_v36, %v6922_v1  ;;  %v7276_v8 = vmul.f32 %v2790_v62, %v7086_v50  ;;  %s7832_s8 = sld [smem:[#allocation8 + $0xe9]] }
 0x434   : > { %8922 = vst [vmem:[#allocation164_spill] sm:$0xff] %v7249_v21  ;;  %8925 = vst [vmem:[#allocation175_spill] sm:$0xff] %v7257_v49  ;;  %v7286_v23 = vpop.permute.xlu0 %2447  ;;  %v8929_v15 = vstv %s7144_s4  ;;  %v2754_v2 = vstv %s7188_s22  ;;  %v2802_v27 = vstv %s7190_s2  ;;  %v7302_v36 = vmul.f32 %v2796_v37, %v7086_v50  ;;  %3053 = vrot.lane.b32.xlu0 %v6965_v9, %s8427_s5  ;;  %s7858_s22 = sld [smem:[#allocation8 + $0x1a]]  ;;  %s7875_s2 = sld [smem:[#allocation8 + $0x3e]] }
 0x435   : > { %8924 = vst [vmem:[#allocation173_spill] sm:$0xff] %v7254_v46  ;;  %8926 = vst [vmem:[#allocation182_spill] sm:$0xff] %v7265_v30  ;;  %v7294_v46 = vmul.f32 %v2790_v62, %v7116_v0  ;;  %v2760_v21 = vstv %s7202_s14  ;;  %v2808_v30 = vstv %s7204_s23  ;;  %v7311_v62 = vmul.f32 %v2748_v32, %v6938_v17  ;;  %s7892_s14 = sld [smem:[#allocation8 + $0x62]]  ;;  %s7911_s23 = sld [smem:[#allocation8 + $0x86]] }
 0x436   : > { %8927 = vst [vmem:[#allocation183_spill] sm:$0xff] %v7268_v14  ;;  %8928 = vst [vmem:[#allocation196_spill] sm:$0xff] %v7279_v40  ;;  %v7291_v14 = vmul.f32 %v8929_v15, %v7086_v50  ;;  %v7299_v40 = vmul.f32 %v2748_v32, %v6922_v1  ;;  %v7314_v15 = vmul.f32 %v2796_v37, %v7116_v0  ;;  %v2814_v49 = vstv %s7220_s11  ;;  %v7328_v9 = vpop.permute.xlu1 %2449  ;;  %s7955_s11 = sld [smem:[#allocation8 + $0xce]] }
 0x437   : > { %8931 = vst [vmem:[#allocation180_spill] sm:$0xff] %v7294_v46  ;;  %8932 = vst [vmem:[#allocation146_spill] sm:$0xff] %v7302_v36  ;;  %v7319_v59 = vmul.f32 %v2754_v2, %v6922_v1  ;;  %v7322_v36 = vmul.f32 %v2802_v27, %v7086_v50  ;;  %v7325_v46 = vmul.f32 %v2754_v2, %v6938_v17  ;;  %3055 = vrot.lane.b32.xlu1 %v6969_v54, %s8427_s5 }
 0x438   : > { %8930 = vst [vmem:[#allocation178_spill] sm:$0xff] %v7291_v14  ;;  %8933 = vst [vmem:[#allocation141_spill] sm:$0xff] %v7314_v15  ;;  %v2766_v14 = vstv %s7218_s10  ;;  %v7330_v32 = vpop.permute.xlu0 %2461  ;;  %v7333_v37 = vmul.f32 %v2802_v27, %v7116_v0  ;;  %v7336_v15 = vmul.f32 %v2760_v21, %v6922_v1  ;;  %v7343_v2 = vmul.f32 %v2760_v21, %v6938_v17  ;;  %s7938_s10 = sld [smem:[#allocation8 + $0xaa]] }
 0x439   : > { %8934 = vst [vmem:[#allocation179_spill] sm:$0xff] %v7319_v59  ;;  %8935 = vst [vmem:[#allocation181_spill] sm:$0xff] %v7322_v36  ;;  %v7339_v59 = vmul.f32 %v2808_v30, %v7086_v50  ;;  %v7346_v34 = vmul.f32 %v2808_v30, %v7116_v0  ;;  %v7352_v27 = vmul.f32 %v2814_v49, %v7086_v50  ;;  %3067 = vrot.lane.b32.xlu0 %v6972_v13, %s8427_s5 }
 0x43a   : > { %8936 = vst [vmem:[#allocation122_spill] sm:$0xff] %v7325_v46  ;;  %v7349_v46 = vmul.f32 %v2766_v14, %v6922_v1  ;;  %v7359_v36 = vmul.f32 %v2766_v14, %v6938_v17  ;;  %v7362_v21 = vmul.f32 %v2814_v49, %v7116_v0  ;;  %v8941_v30 = vstv %s7232_s0 }
 0x43b   : > { %8937 = vst [vmem:[#allocation185_spill] sm:$0xff] %v7346_v34  ;;  %8939 = vst [vmem:[#allocation184_spill] sm:$0xff] %v7352_v27  ;;  %v7367_v34 = vmul.f32 %v8941_v30, %v6922_v1  ;;  %v1754_v27 = vadd.f32 %v6518_v58, %v6382_v22  ;;  %v1767_v54 = vadd.f32 %v6520_v61, %v6385_v10  ;;  %v8942_v13 = vstv %s7246_s1  ;;  %v7388_v22 = vpop.permute.xlu1 %2463  ;;  %v9004_v1 = vld [vmem:[#allocation92_spill] sm:$0xff] }
 0x43c   : > { %8938 = vst [vmem:[#allocation186_spill] sm:$0xff] %v7349_v46  ;;  %8940 = vst [vmem:[#allocation197_spill] sm:$0xff] %v7362_v21  ;;  %v1753_v46 = vadd.f32 %v6492_v12, %v6364_v60  ;;  %v7378_v14 = vmul.f32 %v8942_v13, %v7086_v50  ;;  %v1768_v49 = vadd.f32 %v6540_v41, %v6408_v63  ;;  %v7390_v12 = vpop.permute.xlu0 %2475  ;;  %3069 = vrot.lane.b32.xlu1 %v6983_v28, %s8427_s5  ;;  %v8954_v13 = vld [vmem:[#allocation59_spill] sm:$0xff] }
 0x43d   : > { %v1781_v30 = vadd.f32 %v6542_v39, %v6411_v4  ;;  %v1782_v0 = vadd.f32 %v6555_v19, %v6432_v53  ;;  %v1795_v60 = vadd.f32 %v6557_v6, %v6435_v29  ;;  %v1796_v10 = vadd.f32 %v6563_v42, %v6459_v52  ;;  %3081 = vrot.lane.b32.xlu0 %v6986_v16, %s8427_s5  ;;  %v8944_v52 = vld [vmem:[#allocation50_spill] sm:$0xff]  ;;  %v8947_v39 = vld [vmem:[#allocation52_spill] sm:$0xff]  ;;  %v8948_v19 = vld [vmem:[#allocation53_spill] sm:$0xff] }
 0x43e   : > { %8943 = vst [vmem:[#allocation198_spill] sm:$0xff] %v7378_v14  ;;  %v1809_v58 = vadd.f32 %v6565_v20, %v6462_v45  ;;  %v1810_v63 = vadd.f32 %v6570_v5, %v6484_v48  ;;  %v1823_v4 = vadd.f32 %v6572_v56, %v6487_v25  ;;  %v1824_v53 = vadd.f32 %v6576_v44, %v6512_v57  ;;  %v8945_v48 = vld [vmem:[#allocation49_spill] sm:$0xff]  ;;  %v8946_v25 = vld [vmem:[#allocation51_spill] sm:$0xff]  ;;  %v8951_v5 = vld [vmem:[#allocation56_spill] sm:$0xff] }
 0x43f   : > { %v1837_v29 = vadd.f32 %v6578_v7, %v6514_v18  ;;  %v1838_v61 = vadd.f32 %v6582_v51, %v6532_v33  ;;  %v1851_v45 = vadd.f32 %v8944_v52, %v6537_v47  ;;  %v1852_v41 = vadd.f32 %v8946_v25, %v8945_v48  ;;  %v8949_v18 = vld [vmem:[#allocation54_spill] sm:$0xff]  ;;  %v8950_v20 = vld [vmem:[#allocation55_spill] sm:$0xff]  ;;  %v8952_v44 = vld [vmem:[#allocation57_spill] sm:$0xff]  ;;  %v7420_v51 = vpop.permute.xlu1 %2477 }
 0x440   : > { %v1865_v57 = vadd.f32 %v8947_v39, %v1753_v46  ;;  %v1866_v6 = vadd.f32 %v8948_v19, %v1754_v27  ;;  %v1879_v42 = vadd.f32 %v8949_v18, %v1767_v54  ;;  %v1880_v33 = vadd.f32 %v8950_v20, %v1768_v49  ;;  %v7422_v28 = vpop.permute.xlu0 %2489  ;;  %v8953_v47 = vld [vmem:[#allocation58_spill] sm:$0xff]  ;;  %v8955_v48 = vld [vmem:[#allocation60_spill] sm:$0xff]  ;;  %v8956_v25 = vld [vmem:[#allocation61_spill] sm:$0xff] }
 0x441   : > { %v1893_v56 = vadd.f32 %v8951_v5, %v1781_v30  ;;  %v1894_v7 = vadd.f32 %v8952_v44, %v1782_v0  ;;  %v1907_v16 = vadd.f32 %v8953_v47, %v1795_v60  ;;  %v1908_v52 = vadd.f32 %v8954_v13, %v1796_v10  ;;  %v8957_v39 = vld [vmem:[#allocation62_spill] sm:$0xff]  ;;  %v8958_v19 = vld [vmem:[#allocation63_spill] sm:$0xff]  ;;  %v8961_v20 = vld [vmem:[#allocation120_spill] sm:$0xff] }
 0x442   : > { %v1921_v46 = vadd.f32 %v8955_v48, %v1809_v58  ;;  %v1922_v27 = vadd.f32 %v8956_v25, %v1810_v63  ;;  %v1935_v54 = vadd.f32 %v8957_v39, %v1823_v4  ;;  %v1936_v49 = vadd.f32 %v8958_v19, %v1824_v53  ;;  %v8959_v18 = vld [vmem:[#allocation127_spill] sm:$0xff]  ;;  %v8960_v0 = vld [vmem:[#allocation110_spill] sm:$0xff]  ;;  %3095 = vrot.lane.b32.xlu0 %v8961_v20, %s8427_s5  ;;  %v8962_v5 = vld [vmem:[#allocation128_spill] sm:$0xff] }
 0x443   : > { %v1949_v30 = vadd.f32 %v8959_v18, %v1837_v29  ;;  %3083 = vrot.lane.b32.xlu1 %v8960_v0, %s8427_s5  ;;  %v1950_v60 = vadd.f32 %v8962_v5, %v1838_v61  ;;  %v8963_v44 = vld [vmem:[#allocation64_spill] sm:$0xff]  ;;  %v8964_v47 = vld [vmem:[#allocation65_spill] sm:$0xff]  ;;  %v8965_v13 = vld [vmem:[#allocation66_spill] sm:$0xff]  ;;  %v7443_v0 = vpop.permute.xlu1 %2491 }
 0x444   : > { %v1963_v10 = vadd.f32 %v8963_v44, %v1851_v45  ;;  %v1964_v58 = vadd.f32 %v8964_v47, %v1852_v41  ;;  %v1977_v63 = vadd.f32 %v8965_v13, %v1865_v57  ;;  %v8966_v48 = vld [vmem:[#allocation67_spill] sm:$0xff]  ;;  %v8967_v25 = vld [vmem:[#allocation68_spill] sm:$0xff]  ;;  %v8968_v39 = vld [vmem:[#allocation69_spill] sm:$0xff]  ;;  %v7445_v50 = vpop.permute.xlu0 %2503 }
 0x445   : > { %v1978_v4 = vadd.f32 %v8966_v48, %v1866_v6  ;;  %v1991_v53 = vadd.f32 %v8967_v25, %v1879_v42  ;;  %v1992_v29 = vadd.f32 %v8968_v39, %v1880_v33  ;;  %v8969_v19 = vld [vmem:[#allocation70_spill] sm:$0xff]  ;;  %v8970_v20 = vld [vmem:[#allocation71_spill] sm:$0xff]  ;;  %v8971_v5 = vld [vmem:[#allocation72_spill] sm:$0xff] }
 0x446   : > { %v2005_v18 = vadd.f32 %v8969_v19, %v1893_v56  ;;  %v2006_v61 = vadd.f32 %v8970_v20, %v1894_v7  ;;  %v2019_v45 = vadd.f32 %v8971_v5, %v1907_v16  ;;  %v8972_v44 = vld [vmem:[#allocation73_spill] sm:$0xff]  ;;  %v8973_v47 = vld [vmem:[#allocation99_spill] sm:$0xff]  ;;  %v8974_v13 = vld [vmem:[#allocation74_spill] sm:$0xff] }
 0x447   : > { %v2020_v41 = vadd.f32 %v8972_v44, %v1908_v52  ;;  %v2089_v57 = vadd.f32 %v8973_v47, %v1977_v63  ;;  %v2033_v6 = vadd.f32 %v8974_v13, %v1921_v46  ;;  %v8975_v48 = vld [vmem:[#allocation83_spill] sm:$0xff]  ;;  %v8977_v56 = vld [vmem:[#allocation121_spill] sm:$0xff]  ;;  %v8978_v39 = vld [vmem:[#allocation140_spill] sm:$0xff] }
 0x448   : > { %v2034_v42 = vadd.f32 %v8975_v48, %v1922_v27  ;;  %v8976_v25 = vld [vmem:[#allocation75_spill] sm:$0xff]  ;;  %3097 = vrot.lane.b32.xlu1 %v8977_v56, %s8427_s5  ;;  %3109 = vrot.lane.b32.xlu0 %v8978_v39, %s8427_s5  ;;  %v8979_v19 = vld [vmem:[#allocation76_spill] sm:$0xff]  ;;  %v8980_v20 = vld [vmem:[#allocation77_spill] sm:$0xff]  ;;  %v7466_v56 = vpop.permute.xlu1 %2505  ;;  %v7468_v21 = vpop.permute.xlu0 %2517 }
 0x449   : > { %v2047_v33 = vadd.f32 %v8976_v25, %v1935_v54  ;;  %v2048_v7 = vadd.f32 %v8979_v19, %v1936_v49  ;;  %v2061_v16 = vadd.f32 %v8980_v20, %v1949_v30  ;;  %v8981_v5 = vld [vmem:[#allocation78_spill] sm:$0xff]  ;;  %v8982_v44 = vld [vmem:[#allocation101_spill] sm:$0xff]  ;;  %v8983_v47 = vld [vmem:[#allocation79_spill] sm:$0xff] }
 0x44a   : > { %v2062_v52 = vadd.f32 %v8981_v5, %v1950_v60  ;;  %v2201_v63 = vadd.f32 %v8982_v44, %v2089_v57  ;;  %v2075_v46 = vadd.f32 %v8983_v47, %v1963_v10  ;;  %v8984_v13 = vld [vmem:[#allocation80_spill] sm:$0xff]  ;;  %v8985_v48 = vld [vmem:[#allocation81_spill] sm:$0xff]  ;;  %v8986_v25 = vld [vmem:[#allocation82_spill] sm:$0xff] }
 0x44b   : > { %v2076_v27 = vadd.f32 %v8984_v13, %v1964_v58  ;;  %v2090_v54 = vadd.f32 %v8985_v48, %v1978_v4  ;;  %v2103_v14 = vadd.f32 %v8986_v25, %v1991_v53  ;;  %v8987_v39 = vld [vmem:[#allocation84_spill] sm:$0xff]  ;;  %v8988_v19 = vld [vmem:[#allocation85_spill] sm:$0xff]  ;;  %v8989_v20 = vld [vmem:[#allocation86_spill] sm:$0xff] }
 0x44c   : > { %v2104_v49 = vadd.f32 %v8987_v39, %v1992_v29  ;;  %v2117_v30 = vadd.f32 %v8988_v19, %v2005_v18  ;;  %v2118_v60 = vadd.f32 %v8989_v20, %v2006_v61  ;;  %v8990_v5 = vld [vmem:[#allocation106_spill] sm:$0xff]  ;;  %v8991_v44 = vld [vmem:[#allocation87_spill] sm:$0xff]  ;;  %v8992_v47 = vld [vmem:[#allocation88_spill] sm:$0xff] }
 0x44d   : > { %v2313_v57 = vadd.f32 %v8990_v5, %v2201_v63  ;;  %v2131_v10 = vadd.f32 %v8991_v44, %v2019_v45  ;;  %v2132_v58 = vadd.f32 %v8992_v47, %v2020_v41  ;;  %v8993_v13 = vld [vmem:[#allocation115_spill] sm:$0xff]  ;;  %v8995_v48 = vld [vmem:[#allocation152_spill] sm:$0xff]  ;;  %v8996_v25 = vld [vmem:[#allocation89_spill] sm:$0xff] }
 0x44e   : > { %v2145_v4 = vadd.f32 %v8993_v13, %v2033_v6  ;;  %v8994_v53 = vld [vmem:[#allocation151_spill] sm:$0xff]  ;;  %3123 = vrot.lane.b32.xlu0 %v8995_v48, %s8427_s5  ;;  %v2146_v29 = vadd.f32 %v8996_v25, %v2034_v42  ;;  %v8997_v39 = vld [vmem:[#allocation93_spill] sm:$0xff]  ;;  %v8998_v19 = vld [vmem:[#allocation94_spill] sm:$0xff]  ;;  %v2532_v48 = vpop.permute.xlu0 %2531  ;;  %v7494_v42 = vadd.f32 %v9004_v1, %v2075_v46 }
 0x44f   : > { %3111 = vrot.lane.b32.xlu1 %v8994_v53, %s8427_s5  ;;  %v2202_v18 = vadd.f32 %v8997_v39, %v2090_v54  ;;  %v2215_v61 = vadd.f32 %v8998_v19, %v2103_v14  ;;  %v2425_v63 = vadd.f32 %v7178_v35, %v2313_v57  ;;  %v8999_v20 = vld [vmem:[#allocation90_spill] sm:$0xff]  ;;  %v9000_v5 = vld [vmem:[#allocation91_spill] sm:$0xff]  ;;  %v9002_v47 = vld [vmem:[#allocation132_spill] sm:$0xff]  ;;  %v7491_v53 = vpop.permute.xlu1 %2519 }
 0x450   : > { %v2159_v45 = vadd.f32 %v8999_v20, %v2047_v33  ;;  %v2160_v41 = vadd.f32 %v9000_v5, %v2048_v7  ;;  %v9001_v44 = vld [vmem:[#allocation131_spill] sm:$0xff]  ;;  %v7489_v13 = vadd.f32 %v9002_v47, %v2062_v52  ;;  %9003 = vst [vmem:[#allocation50_spill] sm:$0xff] %v7491_v53  ;;  %v9006_v14 = vld [vmem:[#allocation118_spill] sm:$0xff]  ;;  %v9007_v57 = vld [vmem:[#allocation100_spill] sm:$0xff] }
 0x451   : > { %v2173_v6 = vadd.f32 %v9001_v44, %v2061_v16  ;;  %v9005_v54 = vld [vmem:[#allocation107_spill] sm:$0xff]  ;;  %v2327_v39 = vadd.f32 %v9006_v14, %v2215_v61  ;;  %v2537_v35 = vadd.f32 %v2532_v48, %v2425_v63  ;;  %v7499_v33 = vadd.f32 %v9007_v57, %v2076_v27  ;;  %v9009_v16 = vld [vmem:[#allocation96_spill] sm:$0xff]  ;;  %v9010_v52 = vld [vmem:[#allocation149_spill] sm:$0xff] }
 0x452   : > { %v2314_v25 = vadd.f32 %v9005_v54, %v2202_v18  ;;  %v9008_v7 = vld [vmem:[#allocation95_spill] sm:$0xff]  ;;  %v2229_v20 = vadd.f32 %v9009_v16, %v2117_v30  ;;  %v9011_v5 = vld [vmem:[#allocation124_spill] sm:$0xff]  ;;  %v9012_v1 = vld [vmem:[#allocation97_spill] sm:$0xff]  ;;  %v2546_v16 = vpop.permute.xlu0 %2545 }
 0x453   : > { %v2216_v19 = vadd.f32 %v9008_v7, %v2104_v49  ;;  %3125 = vrot.lane.b32.xlu1 %v9010_v52, %s8427_s5  ;;  %3137 = vrot.lane.b32.xlu0 %v9011_v5, %s8427_s5  ;;  %v2230_v46 = vadd.f32 %v9012_v1, %v2118_v60  ;;  %v2439_v61 = vadd.f32 %v7236_v24, %v2327_v39  ;;  %v9013_v63 = vld [vmem:[#allocation144_spill] sm:$0xff]  ;;  %v9015_v48 = vld [vmem:[#allocation117_spill] sm:$0xff]  ;;  %v9016_v54 = vld [vmem:[#allocation98_spill] sm:$0xff]  ;;  %v2534_v7 = vpop.permute.xlu1 %2533 }
 0x454   : > { %v2426_v18 = vadd.f32 %v7234_v31, %v2314_v25  ;;  %v2649_v44 = vadd.f32 %v9013_v63, %v2537_v35  ;;  %v9014_v27 = vld [vmem:[#allocation116_spill] sm:$0xff]  ;;  %v2244_v49 = vadd.f32 %v9015_v48, %v2132_v58  ;;  %v2257_v30 = vadd.f32 %v9016_v54, %v2145_v4  ;;  %v9017_v14 = vld [vmem:[#allocation119_spill] sm:$0xff]  ;;  %v9018_v52 = vld [vmem:[#allocation134_spill] sm:$0xff] }
 0x455   : > { %v2243_v47 = vadd.f32 %v9014_v27, %v2131_v10  ;;  %v2328_v57 = vadd.f32 %v9017_v14, %v2216_v19  ;;  %v2341_v5 = vadd.f32 %v9018_v52, %v2229_v20  ;;  %v9019_v53 = vld [vmem:[#allocation111_spill] sm:$0xff]  ;;  %v2551_v31 = vadd.f32 %v2546_v16, %v2439_v61  ;;  %v9020_v25 = vld [vmem:[#allocation102_spill] sm:$0xff]  ;;  %v9022_v4 = vld [vmem:[#allocation125_spill] sm:$0xff] }
 0x456   : > { %v2697_v60 = vadd.f32 %v9019_v53, %v2649_v44  ;;  %v2538_v1 = vadd.f32 %v2534_v7, %v2426_v18  ;;  %v2258_v24 = vadd.f32 %v9020_v25, %v2146_v29  ;;  %v9021_v39 = vld [vmem:[#allocation103_spill] sm:$0xff]  ;;  %v9023_v20 = vld [vmem:[#allocation150_spill] sm:$0xff]  ;;  %v9025_v63 = vld [vmem:[#allocation109_spill] sm:$0xff]  ;;  %v2560_v54 = vpop.permute.xlu0 %2559 }
 0x457   : > { %v2271_v35 = vadd.f32 %v9021_v39, %v2159_v45  ;;  %v2440_v10 = vadd.f32 %v7284_v43, %v2328_v57  ;;  %3139 = vrot.lane.b32.xlu1 %v7064_v11, %s8427_s5  ;;  %3151 = vrot.lane.b32.xlu0 %v7067_v26, %s8427_s5  ;;  %v2453_v58 = vadd.f32 %v7286_v23, %v2341_v5  ;;  %v9024_v61 = vld [vmem:[#allocation135_spill] sm:$0xff]  ;;  %v9026_v44 = vld [vmem:[#allocation142_spill] sm:$0xff]  ;;  %v9027_v27 = vld [vmem:[#allocation137_spill] sm:$0xff]  ;;  %v2548_v11 = vpop.permute.xlu1 %2547 }
 0x458   : > { %v2650_v19 = vadd.f32 %v9022_v4, %v2538_v1  ;;  %v2655_v53 = vadd.f32 %v9023_v20, %v2551_v31  ;;  %v2745_v18 = vadd.f32 %v7273_v3, %v2697_v60  ;;  %v2272_v29 = vadd.f32 %v9024_v61, %v2160_v41  ;;  %v9028_v14 = vld [vmem:[#allocation145_spill] sm:$0xff]  ;;  %v9029_v57 = vld [vmem:[#allocation187_spill] sm:$0xff]  ;;  %v9030_v41 = vld [vmem:[#allocation126_spill] sm:$0xff] }
 0x459   : > { %v2342_v45 = vadd.f32 %v9025_v63, %v2230_v46  ;;  %v2355_v43 = vadd.f32 %v9026_v44, %v2243_v47  ;;  %v2356_v48 = vadd.f32 %v9027_v27, %v2244_v49  ;;  %v2552_v7 = vadd.f32 %v2548_v11, %v2440_v10  ;;  %v9031_v46 = vld [vmem:[#allocation129_spill] sm:$0xff]  ;;  %v9032_v49 = vld [vmem:[#allocation188_spill] sm:$0xff]  ;;  %v9033_v60 = vld [vmem:[#allocation155_spill] sm:$0xff] }
 0x45a   : > { %v2698_v26 = vadd.f32 %v9028_v14, %v2650_v19  ;;  %v2703_v23 = vadd.f32 %v9029_v57, %v2655_v53  ;;  %v2565_v16 = vadd.f32 %v2560_v54, %v2453_v58  ;;  %v7541_v47 = vadd.f32 %v7276_v8, %v2745_v18  ;;  %v9036_v58 = vld [vmem:[#allocation123_spill] sm:$0xff]  ;;  %v2574_v53 = vpop.permute.xlu0 %2573  ;;  %v9037_v8 = vld [vmem:[#allocation153_spill] sm:$0xff]  ;;  %v9038_v61 = vld [vmem:[#allocation112_spill] sm:$0xff] }
 0x45b   : > { %v2454_v52 = vadd.f32 %v7328_v9, %v2342_v45  ;;  %v2467_v3 = vadd.f32 %v7330_v32, %v2355_v43  ;;  %3153 = vrot.lane.b32.xlu1 %v9030_v41, %s8427_s5  ;;  %3165 = vrot.lane.b32.xlu0 %v9031_v46, %s8427_s5  ;;  %v2656_v5 = vadd.f32 %v9032_v49, %v2552_v7  ;;  %v9034_v9 = vld [vmem:[#allocation136_spill] sm:$0xff]  ;;  %v9035_v32 = vld [vmem:[#allocation139_spill] sm:$0xff]  ;;  %v2562_v20 = vpop.permute.xlu1 %2561  ;;  %v9042_v43 = vld [vmem:[#allocation154_spill] sm:$0xff] }
 0x45c   : > { %v2661_v1 = vadd.f32 %v9033_v60, %v2565_v16  ;;  %v2746_v31 = vadd.f32 %v7282_v38, %v2698_v26  ;;  %v2751_v25 = vadd.f32 %v7299_v40, %v2703_v23  ;;  %v2285_v39 = vadd.f32 %v9034_v9, %v2173_v6  ;;  %v9039_v40 = vld [vmem:[#allocation161_spill] sm:$0xff]  ;;  %v9040_v6 = vld [vmem:[#allocation180_spill] sm:$0xff]  ;;  %v9044_v14 = vld [vmem:[#allocation179_spill] sm:$0xff] }
 0x45d   : > { %v2369_v10 = vadd.f32 %v9035_v32, %v2257_v30  ;;  %v2370_v4 = vadd.f32 %v9036_v58, %v2258_v24  ;;  %v2468_v19 = vadd.f32 %v7388_v22, %v2356_v48  ;;  %v2704_v18 = vadd.f32 %v9037_v8, %v2656_v5  ;;  %v9041_v22 = vld [vmem:[#allocation146_spill] sm:$0xff]  ;;  %v9043_v48 = vld [vmem:[#allocation191_spill] sm:$0xff]  ;;  %v9045_v26 = vld [vmem:[#allocation104_spill] sm:$0xff] }
 0x45e   : > { %v2709_v63 = vadd.f32 %v9038_v61, %v2661_v1  ;;  %v2566_v45 = vadd.f32 %v2562_v20, %v2454_v52  ;;  %v2579_v44 = vadd.f32 %v2574_v53, %v2467_v3  ;;  %v7559_v30 = vadd.f32 %v9040_v6, %v2746_v31  ;;  %v9046_v57 = vld [vmem:[#allocation138_spill] sm:$0xff]  ;;  %v9047_v7 = vld [vmem:[#allocation157_spill] sm:$0xff]  ;;  %v2588_v41 = vpop.permute.xlu0 %2587  ;;  %v9048_v46 = vld [vmem:[#allocation156_spill] sm:$0xff] }
 0x45f   : > { %v2481_v38 = vadd.f32 %v7390_v12, %v2369_v10  ;;  %3167 = vrot.lane.b32.xlu1 %v7129_v55, %s8427_s5  ;;  %3179 = vrot.lane.b32.xlu0 %v9039_v40, %s8427_s5  ;;  %v7562_v24 = vadd.f32 %v9041_v22, %v2751_v25  ;;  %v2752_v54 = vadd.f32 %v7311_v62, %v2704_v18  ;;  %v2576_v3 = vpop.permute.xlu1 %2575  ;;  %v9049_v5 = vld [vmem:[#allocation159_spill] sm:$0xff]  ;;  %v9053_v25 = vld [vmem:[#allocation181_spill] sm:$0xff]  ;;  %v9054_v32 = vld [vmem:[#allocation192_spill] sm:$0xff] }
 0x460   : > { %v2662_v27 = vadd.f32 %v9042_v43, %v2566_v45  ;;  %v2667_v11 = vadd.f32 %v9043_v48, %v2579_v44  ;;  %v2757_v12 = vadd.f32 %v9044_v14, %v2709_v63  ;;  %v2286_v55 = vadd.f32 %v9045_v26, %v7489_v13  ;;  %v9050_v13 = vld [vmem:[#allocation160_spill] sm:$0xff]  ;;  %v9055_v58 = vld [vmem:[#allocation130_spill] sm:$0xff]  ;;  %v9057_v53 = vld [vmem:[#allocation133_spill] sm:$0xff] }
 0x461   : > { %v2383_v23 = vadd.f32 %v9046_v57, %v2271_v35  ;;  %v2384_v16 = vadd.f32 %v9047_v7, %v2272_v29  ;;  %v2482_v52 = vadd.f32 %v7420_v51, %v2370_v4  ;;  %v2580_v62 = vadd.f32 %v2576_v3, %v2468_v19  ;;  %v9051_v35 = vld [vmem:[#allocation162_spill] sm:$0xff]  ;;  %v9052_v51 = vld [vmem:[#allocation141_spill] sm:$0xff]  ;;  %v9061_v43 = vld [vmem:[#allocation147_spill] sm:$0xff] }
 0x462   : > { %v2710_v49 = vadd.f32 %v9048_v46, %v2662_v27  ;;  %v2715_v60 = vadd.f32 %v9049_v5, %v2667_v11  ;;  %v2593_v1 = vadd.f32 %v2588_v41, %v2481_v38  ;;  %v7585_v29 = vadd.f32 %v9052_v51, %v2752_v54  ;;  %v9056_v19 = vld [vmem:[#allocation122_spill] sm:$0xff]  ;;  %v9059_v63 = vld [vmem:[#allocation165_spill] sm:$0xff]  ;;  %v2602_v40 = vpop.permute.xlu0 %2601  ;;  %v9065_v26 = vld [vmem:[#allocation168_spill] sm:$0xff] }
 0x463   : > { %v2495_v31 = vadd.f32 %v7422_v28, %v2383_v23  ;;  %3181 = vrot.lane.b32.xlu1 %v9050_v13, %s8427_s5  ;;  %3193 = vrot.lane.b32.xlu0 %v9051_v35, %s8427_s5  ;;  %v7588_v9 = vadd.f32 %v9053_v25, %v2757_v12  ;;  %v2668_v10 = vadd.f32 %v9054_v32, %v2580_v62  ;;  %v9058_v18 = vld [vmem:[#allocation158_spill] sm:$0xff]  ;;  %v2590_v38 = vpop.permute.xlu1 %2589  ;;  %v9060_v6 = vld [vmem:[#allocation113_spill] sm:$0xff]  ;;  %v2778_v46 = vstv %s7573_s18  ;;  %v9074_v25 = vld [vmem:[#allocation184_spill] sm:$0xff]  ;;  %s7996_s18 = sld [smem:[#allocation8 + $0x23]] }
 0x464   : > { %v2673_v4 = vadd.f32 %v9055_v58, %v2593_v1  ;;  %v2758_v28 = vadd.f32 %v9056_v19, %v2710_v49  ;;  %v2763_v20 = vadd.f32 %v7336_v15, %v2715_v60  ;;  %v2299_v8 = vadd.f32 %v9057_v53, %v7494_v42  ;;  %v9062_v42 = vld [vmem:[#allocation114_spill] sm:$0xff]  ;;  %v9067_v7 = vld [vmem:[#allocation105_spill] sm:$0xff]  ;;  %v9069_v49 = vld [vmem:[#allocation171_spill] sm:$0xff] }
 0x465   : > { %v2397_v61 = vadd.f32 %v9058_v18, %v2285_v39  ;;  %v2398_v45 = vadd.f32 %v9059_v63, %v2286_v55  ;;  %v2496_v44 = vadd.f32 %v7443_v0, %v2384_v16  ;;  %v2716_v22 = vadd.f32 %v9060_v6, %v2668_v10  ;;  %v9063_v39 = vld [vmem:[#allocation148_spill] sm:$0xff]  ;;  %v9064_v14 = vld [vmem:[#allocation170_spill] sm:$0xff]  ;;  %v9073_v35 = vld [vmem:[#allocation185_spill] sm:$0xff] }
 0x466   : > { %v2721_v27 = vadd.f32 %v9061_v43, %v2673_v4  ;;  %v2594_v48 = vadd.f32 %v2590_v38, %v2482_v52  ;;  %v2607_v11 = vadd.f32 %v2602_v40, %v2495_v31  ;;  %v7609_v0 = vadd.f32 %v7333_v37, %v2758_v28  ;;  %v9066_v57 = vld [vmem:[#allocation186_spill] sm:$0xff]  ;;  %v9068_v52 = vld [vmem:[#allocation189_spill] sm:$0xff]  ;;  %v2616_v41 = vpop.permute.xlu0 %2615  ;;  %v9075_v10 = vld [vmem:[#allocation167_spill] sm:$0xff] }
 0x467   : > { %v2509_v15 = vadd.f32 %v7445_v50, %v2397_v61  ;;  %3195 = vrot.lane.b32.xlu1 %v9062_v42, %s8427_s5  ;;  %3207 = vrot.lane.b32.xlu0 %v9063_v39, %s8427_s5  ;;  %v7612_v54 = vadd.f32 %v7339_v59, %v2763_v20  ;;  %v2764_v50 = vadd.f32 %v7343_v2, %v2716_v22  ;;  %v2604_v59 = vpop.permute.xlu1 %2603  ;;  %v9070_v60 = vld [vmem:[#allocation194_spill] sm:$0xff]  ;;  %v3258_v13 = vstv %s7582_s17  ;;  %v9076_v4 = vld [vmem:[#allocation177_spill] sm:$0xff]  ;;  %s8009_s17 = sld [smem:[#allocation8 + $0x47]] }
 0x468   : > { %v2674_v12 = vadd.f32 %v9064_v14, %v2594_v48  ;;  %v2679_v55 = vadd.f32 %v9065_v26, %v2607_v11  ;;  %v2769_v23 = vadd.f32 %v9066_v57, %v2721_v27  ;;  %v2300_v16 = vadd.f32 %v9067_v7, %v7499_v33  ;;  %v9071_v33 = vld [vmem:[#allocation176_spill] sm:$0xff]  ;;  %v9077_v20 = vld [vmem:[#allocation166_spill] sm:$0xff]  ;;  %v9080_v40 = vld [vmem:[#allocation169_spill] sm:$0xff] }
 0x469   : > { %v2411_v37 = vadd.f32 %v9068_v52, %v2299_v8  ;;  %v2510_v3 = vadd.f32 %v7466_v56, %v2398_v45  ;;  %v2608_v2 = vadd.f32 %v2604_v59, %v2496_v44  ;;  %v2621_v1 = vadd.f32 %v2616_v41, %v2509_v15  ;;  %v9072_v56 = vld [vmem:[#allocation172_spill] sm:$0xff]  ;;  %v9079_v45 = vld [vmem:[#allocation143_spill] sm:$0xff]  ;;  %v9081_v22 = vld [vmem:[#allocation193_spill] sm:$0xff] }
 0x46a   : > { %v2722_v5 = vadd.f32 %v9069_v49, %v2674_v12  ;;  %v2727_v62 = vadd.f32 %v9070_v60, %v2679_v55  ;;  %v7636_v51 = vadd.f32 %v9073_v35, %v2764_v50  ;;  %v7639_v32 = vadd.f32 %v9074_v25, %v2769_v23  ;;  %v2630_v18 = vpop.permute.xlu0 %2629  ;;  %v9083_v11 = vld [vmem:[#allocation175_spill] sm:$0xff]  ;;  %v9084_v15 = vld [vmem:[#allocation182_spill] sm:$0xff]  ;;  %v9085_v42 = vld [vmem:[#allocation197_spill] sm:$0xff] }
 0x46b   : > { %v2523_v31 = vadd.f32 %v7468_v21, %v2411_v37  ;;  %3209 = vrot.lane.b32.xlu1 %v9071_v33, %s8427_s5  ;;  %3221 = vrot.lane.b32.xlu0 %v9072_v56, %s8427_s5  ;;  %v2680_v58 = vadd.f32 %v9075_v10, %v2608_v2  ;;  %v2685_v19 = vadd.f32 %v9076_v4, %v2621_v1  ;;  %v2618_v8 = vpop.permute.xlu1 %2617  ;;  %v9078_v61 = vstv %s7232_s0  ;;  %v9086_v14 = vld [vmem:[#allocation198_spill] sm:$0xff]  ;;  %v9087_v55 = vld [vmem:[#allocation195_spill] sm:$0xff]  ;;  %v9088_v57 = vld [vmem:[#allocation164_spill] sm:$0xff]  ;;  %s7970_s0 = sld [smem:[#allocation8 + $0xf2]] }
 0x46c   : > { %v2770_v28 = vadd.f32 %v7359_v36, %v2722_v5  ;;  %v2775_v21 = vadd.f32 %v7367_v34, %v2727_v62  ;;  %v2412_v53 = vadd.f32 %v9077_v20, %v2300_v16  ;;  %v2774_v63 = vmul.f32 %v9078_v61, %v6938_v17  ;;  %v9082_v34 = vld [vmem:[#allocation50_spill] sm:$0xff]  ;;  %v9094_v25 = vld [vmem:[#allocation108_spill] sm:$0xff] }
 0x46d   : > { %v2779_v44 = vmul.f32 %v2778_v46, %v9079_v45  ;;  %v2826_v38 = vstv %s7599_s3  ;;  %v2728_v6 = vadd.f32 %v9080_v40, %v2680_v58  ;;  %v2733_v43 = vadd.f32 %v9081_v22, %v2685_v19  ;;  %v9091_v49 = vld [vmem:[#allocation190_spill] sm:$0xff]  ;;  %v9096_v4 = vld [vmem:[#allocation196_spill] sm:$0xff]  ;;  %s8022_s3 = sld [smem:[#allocation8 + $0x6b]] }
 0x46e   : > { %v2622_v27 = vadd.f32 %v2618_v8, %v2510_v3  ;;  %v2635_v36 = vadd.f32 %v2630_v18, %v2523_v31  ;;  %v2524_v48 = vadd.f32 %v9082_v34, %v2412_v53  ;;  %v7661_v39 = vadd.f32 %v9085_v42, %v2770_v28  ;;  %v7669_v37 = vpop.permute.xlu0 %2843  ;;  %v9089_v3 = vld [vmem:[#allocation163_spill] sm:$0xff]  ;;  %v9092_v2 = vld [vmem:[#allocation174_spill] sm:$0xff]  ;;  %v9093_v31 = vld [vmem:[#allocation173_spill] sm:$0xff] }
 0x46f   : > { %3223 = vrot.lane.b32.xlu1 %v9083_v11, %s8427_s5  ;;  %3235 = vrot.lane.b32.xlu0 %v9084_v15, %s8427_s5  ;;  %v7664_v12 = vadd.f32 %v9086_v14, %v2775_v21  ;;  %v2784_v26 = vstv %s7614_s7  ;;  %v2776_v7 = vadd.f32 %v2774_v63, %v2728_v6  ;;  %v2781_v16 = vadd.f32 %v2779_v44, %v2733_v43  ;;  %v2632_v52 = vpop.permute.xlu1 %2631  ;;  %v9098_v21 = vld [vmem:[#allocation183_spill] sm:$0xff]  ;;  %s8037_s7 = sld [smem:[#allocation8 + $0x8f]] }
 0x470   : > { %v2686_v50 = vadd.f32 %v9087_v55, %v2622_v27  ;;  %v2691_v23 = vadd.f32 %v9088_v57, %v2635_v36  ;;  %v9090_v59 = vstv %s7246_s1  ;;  %v2827_v5 = vmul.f32 %v2826_v38, %v9091_v49  ;;  %s7983_s1 = sld [smem:[#allocation8 + $0x116]] }
 0x471   : > { %v2822_v41 = vmul.f32 %v9090_v59, %v9089_v3  ;;  %v2780_v60 = vmul.f32 %v2778_v46, %v6938_v17  ;;  %v2832_v62 = vstv %s7625_s28  ;;  %v2636_v56 = vadd.f32 %v2632_v52, %v2524_v48  ;;  %v9097_v46 = vld [vmem:[#allocation178_spill] sm:$0xff]  ;;  %s8052_s28 = sld [smem:[#allocation8 + $0xb3]] }
 0x472   : > { %v2734_v1 = vadd.f32 %v9092_v2, %v2686_v50  ;;  %v2739_v33 = vadd.f32 %v9093_v31, %v2691_v23  ;;  %v2785_v35 = vmul.f32 %v2784_v26, %v9079_v45  ;;  %v9095_v10 = vstv %s7104_s6  ;;  %v7697_v63 = vpop.permute.xlu0 %2857  ;;  %v4260_v23 = vld [vmem:[#allocation2 + $0x2] sm:$0xff]  ;;  %v4261_v59 = vld [vmem:[#allocation2 + $0xa] sm:$0xff]  ;;  %s7777_s6 = sld [smem:[#allocation8 + $0x35]] }
 0x473   : > { %v2738_v58 = vmul.f32 %v9095_v10, %v9094_v25  ;;  %3237 = vrot.lane.b32.xlu1 %v9096_v4, %s8427_s5  ;;  %3249 = vrot.lane.b32.xlu0 %v9097_v46, %s8427_s5  ;;  %v7689_v19 = vadd.f32 %v2822_v41, %v2776_v7  ;;  %v7691_v28 = vadd.f32 %v2827_v5, %v2781_v16  ;;  %v7695_v61 = vpop.permute.xlu1 %2845  ;;  %v9099_v45 = vstv %s7144_s4  ;;  %s7822_s4 = sld [smem:[#allocation8 + $0xc5]] }
 0x474   : > { %v2692_v20 = vadd.f32 %v9098_v21, %v2636_v56  ;;  %v2828_v53 = vmul.f32 %v2826_v38, %v9089_v3  ;;  %v2782_v8 = vadd.f32 %v2780_v60, %v2734_v1  ;;  %v2787_v18 = vadd.f32 %v2785_v35, %v2739_v33 }
 0x475   : > { %v3246_v44 = vmul.f32 %v9099_v45, %v9089_v3  ;;  %v3259_v40 = vmul.f32 %v3258_v13, %v9091_v49  ;;  %v2833_v6 = vmul.f32 %v2832_v62, %v9091_v49  ;;  %v3272_v43 = vstv %s7653_s24  ;;  %s8065_s24 = sld [smem:[#allocation8 + $0xd7]] }
 0x476   : > { %v2740_v22 = vadd.f32 %v2738_v58, %v2692_v20  ;;  %v7709_v38 = vadd.f32 %v2828_v53, %v2782_v8  ;;  %v2786_v27 = vmul.f32 %v2784_v26, %v6938_v17  ;;  %v2834_v34 = vmul.f32 %v2832_v62, %v9089_v3  ;;  %v7719_v15 = vpop.permute.xlu0 %2871 }
 0x477   : > { %3251 = vrot.lane.b32.xlu1 %v3246_v44, %s8427_s5  ;;  %3263 = vrot.lane.b32.xlu0 %v3259_v40, %s8427_s5  ;;  %v7714_v36 = vadd.f32 %v2833_v6, %v2787_v18  ;;  %v7717_v11 = vpop.permute.xlu1 %2859  ;;  %v3260_v42 = vmul.f32 %v3258_v13, %v9089_v3  ;;  %v3273_v14 = vmul.f32 %v3272_v43, %v9091_v49  ;;  %v3286_v17 = vstv %s7679_s9  ;;  %s8074_s9 = sld [smem:[#allocation8 + $0xfb]] }
 0x478   : > { %v2788_v48 = vadd.f32 %v2786_v27, %v2740_v22  ;;  %v3274_v57 = vmul.f32 %v3272_v43, %v9089_v3  ;;  %v3287_v13 = vmul.f32 %v4260_v23, %v3286_v17  ;;  %v3300_v7 = vstv %s7707_s27  ;;  %s8083_s27 = sld [smem:[#allocation8 + $0x11f]] }
 0x479   : > { %v3288_v41 = vmul.f32 %v4261_v59, %v3286_v17  ;;  %v3301_v49 = vmul.f32 %v4260_v23, %v3300_v7  ;;  %v3314_v5 = vstv %s7726_s29  ;;  %v3302_v62 = vmul.f32 %v4261_v59, %v3300_v7  ;;  %v7794_v7 = vld [vmem:[#allocation2 + $0x1a] sm:$0xff] }
 0x47a   : > { %v7728_v26 = vadd.f32 %v2834_v34, %v2788_v48  ;;  %v7734_v50 = vpop.permute.xlu0 %2885  ;;  %v3315_v2 = vmul.f32 %v4260_v23, %v3314_v5  ;;  %v3328_v1 = vstv %s4139_s26  ;;  %v3316_v56 = vmul.f32 %v4261_v59, %v3314_v5 }
 0x47b   : > { %3265 = vrot.lane.b32.xlu1 %v3260_v42, %s8427_s5  ;;  %3277 = vrot.lane.b32.xlu0 %v3273_v14, %s8427_s5  ;;  %v7732_v55 = vpop.permute.xlu1 %2873  ;;  %v3329_v35 = vmul.f32 %v4260_v23, %v3328_v1  ;;  %v3342_v25 = vstv %s4140_s20  ;;  %v3330_v4 = vmul.f32 %v4261_v59, %v3328_v1  ;;  %v3370_v45 = vstv %s4142_s16  ;;  %s9101_s20 = sld [smem:[#allocation19_spill]] }
 0x47c   : > { %v3343_v46 = vmul.f32 %v4260_v23, %v3342_v25  ;;  %v3344_v8 = vmul.f32 %v4261_v59, %v3342_v25  ;;  %v3371_v22 = vmul.f32 %v4260_v23, %v3370_v45  ;;  %v3384_v43 = vstv %s4143_s12 }
 0x47d   : > { %v3372_v48 = vmul.f32 %v4261_v59, %v3370_v45  ;;  %v3385_v42 = vmul.f32 %v4260_v23, %v3384_v43  ;;  %v3398_v14 = vstv %s7769_s21  ;;  %v3426_v1 = vstv %s7786_s13  ;;  %s9103_s13 = sld [smem:[#allocation202_spill]] }
 0x47e   : > { %v7742_v52 = vpop.permute.xlu0 %2899 }
 0x47f   : > { %3279 = vrot.lane.b32.xlu1 %v3274_v57, %s8427_s5  ;;  %3291 = vrot.lane.b32.xlu0 %v3287_v13, %s8790_s30  ;;  %v7740_v16 = vpop.permute.xlu1 %2887  ;;  %s4141_s5 = sld [smem:[#allocation8 + $0xbc]]  ;;  %v3386_v13 = vmul.f32 %v4261_v59, %v3384_v43 }
 0x481   : > { %s4174_s16 = sshll.u32 %s9101_s20, 11 }
 0x482   : > { %v7749_v60 = vpop.permute.xlu0 %2913 }
 0x483   : > { %3293 = vrot.lane.b32.xlu1 %v3288_v41, %s8790_s30  ;;  %3305 = vrot.lane.b32.xlu0 %v3301_v49, %s8790_s30  ;;  %v7747_v3 = vpop.permute.xlu1 %2901  ;;  %v3399_v41 = vmul.f32 %v7794_v7, %v3398_v14  ;;  %v3412_v49 = vstv %s7777_s6 }
 0x485   : > { %v3356_v21 = vstv %s4141_s5  ;;  %s9102_s5 = sld [smem:[#allocation22_spill]] }
 0x486   : > { %v7755_v33 = vpop.permute.xlu0 %2927  ;;  %v3357_v18 = vmul.f32 %v4260_v23, %v3356_v21  ;;  %v3358_v6 = vmul.f32 %v4261_v59, %v3356_v21 }
 0x487   : > { %3307 = vrot.lane.b32.xlu1 %v3302_v62, %s8790_s30  ;;  %3319 = vrot.lane.b32.xlu0 %v3315_v2, %s8790_s30  ;;  %v7753_v31 = vpop.permute.xlu1 %2915  ;;  %v7806_v62 = vld [vmem:[#allocation2 + $0x22] sm:$0xff]  ;;  %v3413_v2 = vmul.f32 %v7794_v7, %v3412_v49 }
 0x488   : > { %v3400_v59 = vmul.f32 %v7806_v62, %v3398_v14  ;;  %v3414_v25 = vmul.f32 %v7806_v62, %v3412_v49  ;;  %v3468_v49 = vstv %s7822_s4 }
 0x48a   : > { %v7761_v58 = vpop.permute.xlu0 %2941 }
 0x48b   : > { %3321 = vrot.lane.b32.xlu1 %v3316_v56, %s8790_s30  ;;  %3333 = vrot.lane.b32.xlu0 %v3329_v35, %s8790_s30  ;;  %v7759_v10 = vpop.permute.xlu1 %2929  ;;  %p9105_p8 = scmp.ne.s32.totalorder %s9102_s5, 0 }
 0x48e   : > { %v7767_v53 = vpop.permute.xlu0 %2955 }
 0x48f   : > { %3335 = vrot.lane.b32.xlu1 %v3330_v4, %s8790_s30  ;;  %3347 = vrot.lane.b32.xlu0 %v3343_v46, %s8790_s30  ;;  %v7765_v20 = vpop.permute.xlu1 %2943  ;;  %v3427_v4 = vmul.f32 %v7794_v7, %v3426_v1  ;;  %v3440_v46 = vstv %s7798_s15  ;;  %s8237_s15 = scalar_lea.hbm %s9103_s13, %s4174_s16 }
 0x490   : > { %v3441_v45 = vmul.f32 %v7794_v7, %v3440_v46 }
 0x492   : > { %v7775_v40 = vpop.permute.xlu0 %2969 }
 0x493   : > { %3349 = vrot.lane.b32.xlu1 %v3344_v8, %s8790_s30  ;;  %3361 = vrot.lane.b32.xlu0 %v3357_v18, %s8790_s30  ;;  %v7773_v44 = vpop.permute.xlu1 %2957  ;;  %v3428_v18 = vmul.f32 %v7806_v62, %v3426_v1 }
 0x496   : > { %v7783_v34 = vpop.permute.xlu0 %2983 }
 0x497   : > { %3363 = vrot.lane.b32.xlu1 %v3358_v6, %s8790_s30  ;;  %3375 = vrot.lane.b32.xlu0 %v3371_v22, %s8790_s30  ;;  %v7781_v27 = vpop.permute.xlu1 %2971  ;;  %v3454_v6 = vstv %s7811_s25  ;;  %v2947_v22 = vadd.f32 %v7761_v58, %v7714_v36  ;;  %v2948_v36 = vadd.f32 %v7765_v20, %v7728_v26  ;;  %s9104_s25 = smov %s9103_s13 }
 0x498   : > { %v3455_v14 = vmul.f32 %v7794_v7, %v3454_v6  ;;  %v3456_v1 = vmul.f32 %v7806_v62, %v3454_v6  ;;  %v3470_v6 = vmul.f32 %v7806_v62, %v3468_v49 }
 0x49a   : > { %v7792_v57 = vpop.permute.xlu0 %2997 }
 0x49b   : > { %3377 = vrot.lane.b32.xlu1 %v3372_v48, %s8790_s30  ;;  %3389 = vrot.lane.b32.xlu0 %v3385_v42, %s8790_s30  ;;  %v7790_v17 = vpop.permute.xlu1 %2985  ;;  %v3442_v42 = vmul.f32 %v7806_v62, %v3440_v46 }
 0x49e   : > { %v7804_v5 = vpop.permute.xlu0 %3011 }
 0x49f   : > { %3391 = vrot.lane.b32.xlu1 %v3386_v13, %s8790_s30  ;;  %3403 = vrot.lane.b32.xlu0 %v3399_v41, %s8790_s30  ;;  %v7802_v23 = vpop.permute.xlu1 %2999  ;;  %v2849_v13 = vadd.f32 %v7669_v37, %v7541_v47  ;;  %v3482_v47 = vstv %s7832_s8  ;;  %v2850_v37 = vadd.f32 %v7695_v61, %v7559_v30  ;;  %v2864_v61 = vadd.f32 %v7717_v11, %v7585_v29 }
 0x4a0   : > { %v3483_v30 = vmul.f32 %v7794_v7, %v3482_v47  ;;  %v2878_v11 = vadd.f32 %v7732_v55, %v7609_v0  ;;  %v7907_v0 = vld [vmem:[#allocation2 + $0x32] sm:$0xff]  ;;  %v3524_v55 = vstv %s7875_s2 }
 0x4a1   : > { %v2961_v58 = vadd.f32 %v7767_v53, %v2849_v13  ;;  %v2962_v20 = vadd.f32 %v7773_v44, %v2850_v37  ;;  %v3484_v13 = vmul.f32 %v7806_v62, %v3482_v47  ;;  %v7925_v37 = vld [vmem:[#allocation2 + $0x3a] sm:$0xff] }
 0x4a2   : > { %v7817_v35 = vpop.permute.xlu0 %3025 }
 0x4a3   : > { %3405 = vrot.lane.b32.xlu1 %v3400_v59, %s8790_s30  ;;  %3417 = vrot.lane.b32.xlu0 %v3413_v2, %s8790_s30  ;;  %v7815_v56 = vpop.permute.xlu1 %3013 }
 0x4a6   : > { %v7828_v8 = vpop.permute.xlu0 %3039 }
 0x4a7   : > { %3419 = vrot.lane.b32.xlu1 %v3414_v25, %s8790_s30  ;;  %3431 = vrot.lane.b32.xlu0 %v3427_v4, %s8790_s30  ;;  %v7826_v21 = vpop.permute.xlu1 %3027  ;;  %v3469_v25 = vmul.f32 %v7794_v7, %v3468_v49  ;;  %v2863_v4 = vadd.f32 %v7697_v63, %v7562_v24  ;;  %v3496_v24 = vstv %s7843_s19  ;;  %v2877_v63 = vadd.f32 %v7719_v15, %v7588_v9  ;;  %s4411_s19 = smov [#allocation10]  }
 0x4a8   : > { %v3497_v29 = vmul.f32 %v7794_v7, %v3496_v24  ;;  %v3510_v9 = vstv %s7858_s22  ;;  %v2891_v15 = vadd.f32 %v7734_v50, %v7612_v54  ;;  %v2892_v50 = vadd.f32 %v7740_v16, %v7636_v51  ;;  %s4330_s22 = sshll.u32 %s4411_s19, 4  ;;  %s4331_s22 = int_to_ptr.vmem [resolvable:$false] %s4330_s22 }
 0x4a9   : > { %v2975_v53 = vadd.f32 %v7775_v40, %v2863_v4  ;;  %v2976_v40 = vadd.f32 %v7781_v27, %v2864_v61  ;;  %v3511_v54 = vmul.f32 %v7907_v0, %v3510_v9  ;;  %v3512_v51 = vmul.f32 %v7925_v37, %v3510_v9  ;;  %s4332_s2 = scalar_lea.vmem %s4331_s22, 4096 }
 0x4aa   : > { %v3054_v48 = vpop.permute.xlu0 %3053  ;;  %v3003_v7 = vadd.f32 %v7792_v57, %v2891_v15  ;;  %v3538_v16 = vstv %s7892_s14  ;;  %v2919_v4 = vadd.f32 %v7749_v60, %v7664_v12  ;;  %v2920_v60 = vadd.f32 %v7753_v31, %v7689_v19 }
 0x4ab   : > { %3433 = vrot.lane.b32.xlu1 %v3428_v18, %s8790_s30  ;;  %3445 = vrot.lane.b32.xlu0 %v3441_v45, %s8790_s30  ;;  %v7839_v43 = vpop.permute.xlu1 %3041  ;;  %v7847_v41 = vadd.f32 %v3054_v48, %v2947_v22  ;;  %v2989_v48 = vadd.f32 %v7783_v34, %v2877_v63  ;;  %v2990_v34 = vadd.f32 %v7790_v17, %v2878_v11 }
 0x4ac   : > { %v2905_v17 = vadd.f32 %v7742_v52, %v7639_v32  ;;  %v3525_v32 = vmul.f32 %v7907_v0, %v3524_v55  ;;  %v2906_v52 = vadd.f32 %v7747_v3, %v7661_v39  ;;  %v3526_v39 = vmul.f32 %v7925_v37, %v3524_v55 }
 0x4ad   : > { %v3539_v12 = vmul.f32 %v7907_v0, %v3538_v16  ;;  %v3552_v3 = vstv %s7911_s23  ;;  %v3540_v31 = vmul.f32 %v7925_v37, %v3538_v16  ;;  %v3608_v55 = vstv %s7983_s1  ;;  %v8027_v16 = vld [vmem:[#allocation2 + $0x4a] sm:$0xff] }
 0x4ae   : > { %v3068_v2 = vpop.permute.xlu0 %3067 }
 0x4af   : > { %3447 = vrot.lane.b32.xlu1 %v3442_v42, %s8790_s30  ;;  %3459 = vrot.lane.b32.xlu0 %v3455_v14, %s8790_s30  ;;  %v3056_v59 = vpop.permute.xlu1 %3055  ;;  %v7866_v26 = vadd.f32 %v3068_v2, %v2961_v58 }
 0x4b0   : > { %v7864_v46 = vadd.f32 %v3056_v59, %v2948_v36  ;;  %v3498_v59 = vmul.f32 %v7806_v62, %v3496_v24  ;;  %v3004_v62 = vadd.f32 %v7802_v23, %v2892_v50 }
 0x4b2   : > { %v3082_v45 = vpop.permute.xlu0 %3081 }
 0x4b3   : > { %3461 = vrot.lane.b32.xlu1 %v3456_v1, %s8790_s30  ;;  %3473 = vrot.lane.b32.xlu0 %v3469_v25, %s8790_s30  ;;  %v3070_v18 = vpop.permute.xlu1 %3069  ;;  %v7883_v44 = vadd.f32 %v3082_v45, %v2975_v53  ;;  %v3017_v1 = vadd.f32 %v7804_v5, %v2905_v17  ;;  %v3018_v5 = vadd.f32 %v7815_v56, %v2906_v52  ;;  %v3636_v52 = vstv %s8009_s17 }
 0x4b4   : > { %v7881_v22 = vadd.f32 %v3070_v18, %v2962_v20  ;;  %v3031_v53 = vadd.f32 %v7817_v35, %v2919_v4  ;;  %v3032_v56 = vadd.f32 %v7826_v21, %v2920_v60 }
 0x4b6   : > { %v3096_v14 = vpop.permute.xlu0 %3095 }
 0x4b7   : > { %3475 = vrot.lane.b32.xlu1 %v3470_v6, %s8790_s30  ;;  %3487 = vrot.lane.b32.xlu0 %v3483_v30, %s8790_s30  ;;  %v3084_v42 = vpop.permute.xlu1 %3083  ;;  %v7900_v27 = vadd.f32 %v3096_v14, %v2989_v48  ;;  %v2933_v6 = vadd.f32 %v7755_v33, %v7691_v28  ;;  %v3553_v28 = vmul.f32 %v7907_v0, %v3552_v3  ;;  %v3566_v48 = vstv %s7938_s10 }
 0x4b8   : > { %v7898_v49 = vadd.f32 %v3084_v42, %v2976_v40  ;;  %v2934_v33 = vadd.f32 %v7759_v10, %v7709_v38  ;;  %v3554_v14 = vmul.f32 %v7925_v37, %v3552_v3  ;;  %v3567_v38 = vmul.f32 %v7907_v0, %v3566_v48 }
 0x4b9   : > { %v3045_v35 = vadd.f32 %v7828_v8, %v2933_v6  ;;  %v3568_v11 = vmul.f32 %v7925_v37, %v3566_v48  ;;  %v3664_v6 = vstv %s8037_s7 }
 0x4ba   : > { %v3110_v58 = vpop.permute.xlu0 %3109  ;;  %v3046_v21 = vadd.f32 %v7839_v43, %v2934_v33 }
 0x4bb   : > { %3489 = vrot.lane.b32.xlu1 %v3484_v13, %s8790_s30  ;;  %3501 = vrot.lane.b32.xlu0 %v3497_v29, %s8790_s30  ;;  %v3098_v36 = vpop.permute.xlu1 %3097  ;;  %v7919_v57 = vadd.f32 %v3110_v58, %v3003_v7  ;;  %v3580_v29 = vstv %s7955_s11  ;;  %v3594_v7 = vstv %s7970_s0 }
 0x4bc   : > { %v7917_v2 = vadd.f32 %v3098_v36, %v2990_v34  ;;  %v3581_v15 = vmul.f32 %v7907_v0, %v3580_v29 }
 0x4bf   : > { %3503 = vrot.lane.b32.xlu1 %v3498_v59, %s8790_s30  ;;  %3515 = vrot.lane.b32.xlu0 %v3511_v54, %s8790_s30  ;;  %v3582_v59 = vmul.f32 %v7925_v37, %v3580_v29  ;;  %v3595_v54 = vmul.f32 %v7907_v0, %v3594_v7 }
 0x4c0   : > { %v3124_v47 = vpop.permute.xlu0 %3123 }
 0x4c1   : > { %v3112_v25 = vpop.permute.xlu1 %3111  ;;  %v7936_v23 = vadd.f32 %v3124_v47, %v3017_v1  ;;  %v3609_v1 = vmul.f32 %v7907_v0, %v3608_v55 }
 0x4c2   : > { %v7934_v20 = vadd.f32 %v3112_v25, %v3004_v62  ;;  %v3596_v62 = vmul.f32 %v7925_v37, %v3594_v7  ;;  %v3622_v25 = vstv %s7996_s18 }
 0x4c3   : > { %3517 = vrot.lane.b32.xlu1 %v3512_v51, %s8790_s30  ;;  %3529 = vrot.lane.b32.xlu0 %v3525_v32, %s8790_s30  ;;  %v3610_v32 = vmul.f32 %v7925_v37, %v3608_v55 }
 0x4c5   : > { %v3126_v18 = vpop.permute.xlu1 %3125  ;;  %v3138_v45 = vpop.permute.xlu0 %3137 }
 0x4c6   : > { %v7951_v30 = vadd.f32 %v3126_v18, %v3018_v5  ;;  %v7953_v24 = vadd.f32 %v3138_v45, %v3031_v53  ;;  %v8041_v5 = vld [vmem:[#allocation2 + $0x52] sm:$0xff]  ;;  %v3650_v45 = vstv %s8022_s3 }
 0x4c7   : > { %3531 = vrot.lane.b32.xlu1 %v3526_v39, %s8790_s30  ;;  %3543 = vrot.lane.b32.xlu0 %v3539_v12, %s8790_s30  ;;  %v3624_v53 = vmul.f32 %v8041_v5, %v3622_v25  ;;  %v3638_v3 = vmul.f32 %v8041_v5, %v3636_v52  ;;  %v3651_v60 = vmul.f32 %v8027_v16, %v3650_v45 }
 0x4c8   : > { %v3666_v48 = vmul.f32 %v8041_v5, %v3664_v6 }
 0x4c9   : > { %v3140_v61 = vpop.permute.xlu1 %3139  ;;  %v3152_v19 = vpop.permute.xlu0 %3151 }
 0x4ca   : > { %v7965_v63 = vadd.f32 %v3140_v61, %v3032_v56  ;;  %v7967_v40 = vadd.f32 %v3152_v19, %v3045_v35  ;;  %v3652_v61 = vmul.f32 %v8041_v5, %v3650_v45  ;;  %v3665_v19 = vmul.f32 %v8027_v16, %v3664_v6 }
 0x4cb   : > { %3545 = vrot.lane.b32.xlu1 %v3540_v31, %s8790_s30  ;;  %3557 = vrot.lane.b32.xlu0 %v3553_v28, %s8790_s30 }
 0x4cd   : > { %v3154_v8 = vpop.permute.xlu1 %3153  ;;  %v3166_v42 = vpop.permute.xlu0 %3165 }
 0x4ce   : > { %v7977_v10 = vadd.f32 %v3154_v8, %v3046_v21  ;;  %v7980_v13 = vadd.f32 %v3166_v42, %v7847_v41  ;;  %v3692_v42 = vstv %s8065_s24 }
 0x4cf   : > { %3559 = vrot.lane.b32.xlu1 %v3554_v14, %s8790_s30  ;;  %3571 = vrot.lane.b32.xlu0 %v3567_v38, %s8790_s30  ;;  %v3693_v29 = vmul.f32 %v8027_v16, %v3692_v42 }
 0x4d1   : > { %v3168_v43 = vpop.permute.xlu1 %3167  ;;  %v3180_v9 = vpop.permute.xlu0 %3179 }
 0x4d2   : > { %v7990_v34 = vadd.f32 %v3168_v43, %v7864_v46  ;;  %v7993_v41 = vadd.f32 %v3180_v9, %v7866_v26 }
 0x4d3   : > { %3573 = vrot.lane.b32.xlu1 %v3568_v11, %s8790_s30  ;;  %3585 = vrot.lane.b32.xlu0 %v3581_v15, %s8790_s30  ;;  %v3694_v15 = vmul.f32 %v8041_v5, %v3692_v42 }
 0x4d5   : > { %v3182_v36 = vpop.permute.xlu1 %3181  ;;  %v3194_v58 = vpop.permute.xlu0 %3193 }
 0x4d6   : > { %v8003_v46 = vadd.f32 %v3182_v36, %v7881_v22  ;;  %v8006_v26 = vadd.f32 %v3194_v58, %v7883_v44 }
 0x4d7   : > { %3587 = vrot.lane.b32.xlu1 %v3582_v59, %s8790_s30  ;;  %3599 = vrot.lane.b32.xlu0 %v3595_v54, %s8790_s30 }
 0x4d9   : > { %v3196_v50 = vpop.permute.xlu1 %3195  ;;  %v3208_v17 = vpop.permute.xlu0 %3207 }
 0x4da   : > { %v8016_v22 = vadd.f32 %v3196_v50, %v7898_v49  ;;  %v8019_v44 = vadd.f32 %v3208_v17, %v7900_v27  ;;  %v3623_v49 = vmul.f32 %v8027_v16, %v3622_v25 }
 0x4db   : > { %3601 = vrot.lane.b32.xlu1 %v3596_v62, %s8790_s30  ;;  %3613 = vrot.lane.b32.xlu0 %v3609_v1, %s8790_s30 }
 0x4dd   : > { %v3210_v47 = vpop.permute.xlu1 %3209  ;;  %v3222_v51 = vpop.permute.xlu0 %3221 }
 0x4de   : > { %v8031_v0 = vadd.f32 %v3210_v47, %v7917_v2  ;;  %v8034_v27 = vadd.f32 %v3222_v51, %v7919_v57  ;;  %v3637_v2 = vmul.f32 %v8027_v16, %v3636_v52 }
 0x4df   : > { %3615 = vrot.lane.b32.xlu1 %v3610_v32, %s8790_s30  ;;  %3627 = vrot.lane.b32.xlu0 %v3623_v49, %s8790_s30 }
 0x4e1   : > { %v3224_v4 = vpop.permute.xlu1 %3223  ;;  %v3236_v37 = vpop.permute.xlu0 %3235 }
 0x4e2   : > { %v8046_v18 = vadd.f32 %v3224_v4, %v7934_v20  ;;  %v8049_v57 = vadd.f32 %v3236_v37, %v7936_v23 }
 0x4e3   : > { %3629 = vrot.lane.b32.xlu1 %v3624_v53, %s8790_s30  ;;  %3641 = vrot.lane.b32.xlu0 %v3637_v2, %s8790_s30 }
 0x4e5   : > { %v3238_v39 = vpop.permute.xlu1 %3237  ;;  %v3250_v12 = vpop.permute.xlu0 %3249 }
 0x4e6   : > { %v8059_v20 = vadd.f32 %v3238_v39, %v7951_v30  ;;  %v8062_v23 = vadd.f32 %v3250_v12, %v7953_v24  ;;  %v3678_v24 = vstv %s8052_s28 }
 0x4e7   : > { %3643 = vrot.lane.b32.xlu1 %v3638_v3, %s8790_s30  ;;  %3655 = vrot.lane.b32.xlu0 %v3651_v60, %s8790_s30  ;;  %v3679_v21 = vmul.f32 %v8027_v16, %v3678_v24  ;;  %v3680_v38 = vmul.f32 %v8041_v5, %v3678_v24 }
 0x4e9   : > { %v3252_v56 = vpop.permute.xlu1 %3251  ;;  %v3264_v35 = vpop.permute.xlu0 %3263 }
 0x4ea   : > { %v3256_v30 = vadd.f32 %v3252_v56, %v7965_v63  ;;  %v3269_v31 = vadd.f32 %v3264_v35, %v7967_v40 }
 0x4eb   : > { %3657 = vrot.lane.b32.xlu1 %v3652_v61, %s8790_s30  ;;  %3669 = vrot.lane.b32.xlu0 %v3665_v19, %s8790_s30 }
 0x4ed   : > { %v3266_v28 = vpop.permute.xlu1 %3265  ;;  %v3278_v33 = vpop.permute.xlu0 %3277 }
 0x4ee   : > { %v3270_v8 = vadd.f32 %v3266_v28, %v7977_v10  ;;  %v3283_v63 = vadd.f32 %v3278_v33, %v7980_v13  ;;  %v3706_v13 = vstv %s8074_s9 }
 0x4ef   : > { %3671 = vrot.lane.b32.xlu1 %v3666_v48, %s8790_s30  ;;  %3683 = vrot.lane.b32.xlu0 %v3679_v21, %s8790_s30  ;;  %v3707_v7 = vmul.f32 %v8027_v16, %v3706_v13  ;;  %v3708_v54 = vmul.f32 %v8041_v5, %v3706_v13 }
 0x4f1   : > { %v3280_v40 = vpop.permute.xlu1 %3279  ;;  %v3292_v14 = vpop.permute.xlu0 %3291 }
 0x4f2   : > { %v3284_v43 = vadd.f32 %v3280_v40, %v7990_v34  ;;  %v8091_v10 = vadd.f32 %v3292_v14, %v7993_v41  ;;  %v3720_v34 = vstv %s8083_s27 }
 0x4f3   : > { %3685 = vrot.lane.b32.xlu1 %v3680_v38, %s8790_s30  ;;  %3697 = vrot.lane.b32.xlu0 %v3693_v29, %s8790_s30  ;;  %v3721_v55 = vmul.f32 %v8027_v16, %v3720_v34  ;;  %v3722_v62 = vmul.f32 %v8041_v5, %v3720_v34 }
 0x4f5   : > { %v3294_v9 = vpop.permute.xlu1 %3293  ;;  %v3306_v11 = vpop.permute.xlu0 %3305 }
 0x4f6   : > { %v8099_v36 = vadd.f32 %v3294_v9, %v8003_v46  ;;  %v8102_v58 = vadd.f32 %v3306_v11, %v8006_v26 }
 0x4f7   : > { %3699 = vrot.lane.b32.xlu1 %v3694_v15, %s8790_s30  ;;  %3711 = vrot.lane.b32.xlu0 %v3707_v7, %s8790_s30 }
 0x4f9   : > { %v3308_v41 = vpop.permute.xlu1 %3307  ;;  %v3320_v59 = vpop.permute.xlu0 %3319 }
 0x4fa   : > { %v8110_v50 = vadd.f32 %v3308_v41, %v8016_v22  ;;  %v8113_v46 = vadd.f32 %v3320_v59, %v8019_v44 }
 0x4fb   : > { %3713 = vrot.lane.b32.xlu1 %v3708_v54, %s8790_s30  ;;  %3725 = vrot.lane.b32.xlu0 %v3721_v55, %s8790_s30 }
 0x4fd   : > { %v3322_v26 = vpop.permute.xlu1 %3321  ;;  %v3334_v17 = vpop.permute.xlu0 %3333 }
 0x4fe   : > { %v8119_v1 = vadd.f32 %v3322_v26, %v8031_v0  ;;  %v8122_v25 = vadd.f32 %v3334_v17, %v8034_v27 }
 0x4ff   : > { %3727 = vrot.lane.b32.xlu1 %v3722_v62, %s8790_s30  ;;  %s9100_s30 = sld [smem:[#allocation24_spill]] }
 0x501   : > { %v3336_v22 = vpop.permute.xlu1 %3335  ;;  %v3348_v47 = vpop.permute.xlu0 %3347 }
 0x502   : > { %v8126_v44 = vadd.f32 %v3336_v22, %v8046_v18  ;;  %v8129_v51 = vadd.f32 %v3348_v47, %v8049_v57 }
 0x505   : > { %v3350_v32 = vpop.permute.xlu1 %3349  ;;  %v3362_v16 = vpop.permute.xlu0 %3361  ;;  %s3873_s29 = sshll.u32 %s9100_s30, 7  ;;  %s3751_s4 = scalar_lea.sflag [#allocation5], %s9100_s30 }
 0x506   : > { %v8132_v49 = vadd.f32 %v3350_v32, %v8059_v20  ;;  %v8135_v0 = vadd.f32 %v3362_v16, %v8062_v23  ;;  %s8175_s26 = scalar_lea.vmem [#allocation10], %s3873_s29 }
 0x507   : > { %s3764_s12 = sshll.u32 %s8175_s26, 4  ;;  %s8239_s12 = int_to_ptr.vmem [resolvable:$true] %s3764_s12 }
 0x508   : > { %s4326_s8 = scalar_lea.vmem %s8239_s12, 2048  ;;  %p4333_p6 = scmp.lt.s32.totalorder %s8239_s12, %s4331_s22 }
 0x509   : > { %v3364_v27 = vpop.permute.xlu1 %3363  ;;  %v3376_v52 = vpop.permute.xlu0 %3375  ;;  %p4327_p0 = scmp.ne.s32.totalorder %s8239_s12, %s4326_s8  ;;  %p4334_p12 = scmp.lt.s32.totalorder %s4332_s2, %s4326_s8 }
 0x50a   : > { %v8137_v4 = vadd.f32 %v3364_v27, %v3256_v30  ;;  %v8139_v37 = vadd.f32 %v3376_v52, %v3269_v31 }
 0x50b   : > { %p4328_p10 = pnand %p4327_p0, %p9105_p8  ;;  %p4335_p1 = por %p4334_p12, %p4333_p6 }
 0x50d   : > { %v3378_v5 = vpop.permute.xlu1 %3377  ;;  %v3390_v53 = vpop.permute.xlu0 %3389  ;;  %p4329_p4 = pneg %p4328_p10 }
 0x50e   : > { %v8141_v2 = vadd.f32 %v3378_v5, %v3270_v8  ;;  %v8143_v18 = vadd.f32 %v3390_v53, %v3283_v63 }
 0x50f   : > { %p4336_p7 = pnand %p4335_p1, %p4329_p4 }
 0x511   : > { %v3392_v57 = vpop.permute.xlu1 %3391  ;;  %v3404_v45 = vpop.permute.xlu0 %3403 }
 0x512   : > { %v8145_v39 = vadd.f32 %v3392_v57, %v3284_v43  ;;  %v3409_v34 = vadd.f32 %v3404_v45, %v8091_v10 }
 0x515   : > { %v3406_v12 = vpop.permute.xlu1 %3405  ;;  %v3418_v3 = vpop.permute.xlu0 %3417 }
 0x516   : > { %v3410_v55 = vadd.f32 %v3406_v12, %v8099_v36  ;;  %v3423_v26 = vadd.f32 %v3418_v3, %v8102_v58 }
 0x519   : > { %v3420_v60 = vpop.permute.xlu1 %3419  ;;  %v3432_v20 = vpop.permute.xlu0 %3431 }
 0x51a   : > { %v3424_v32 = vadd.f32 %v3420_v60, %v8110_v50  ;;  %v3437_v16 = vadd.f32 %v3432_v20, %v8113_v46 }
 0x51d   : > { %v3434_v23 = vpop.permute.xlu1 %3433  ;;  %v3446_v6 = vpop.permute.xlu0 %3445 }
 0x51e   : > { %v3438_v57 = vadd.f32 %v3434_v23, %v8119_v1  ;;  %v3451_v45 = vadd.f32 %v3446_v6, %v8122_v25 }
 0x521   : > { %v3448_v56 = vpop.permute.xlu1 %3447  ;;  %v3460_v35 = vpop.permute.xlu0 %3459 }
 0x525   : > { %v8147_v61 = vpop.permute.xlu1 %3461  ;;  %v8149_v19 = vpop.permute.xlu0 %3473 }
 0x529   : > { %v8151_v30 = vpop.permute.xlu1 %3475  ;;  %v8153_v31 = vpop.permute.xlu0 %3487 }
 0x52d   : > { %v8155_v24 = vpop.permute.xlu1 %3489  ;;  %v8157_v28 = vpop.permute.xlu0 %3501 }
 0x531   : > { %v8159_v33 = vpop.permute.xlu1 %3503  ;;  %v3516_v48 = vpop.permute.xlu0 %3515 }
 0x532   : > { %v3521_v41 = vadd.f32 %v3516_v48, %v3409_v34  ;;  %v3452_v48 = vadd.f32 %v3448_v56, %v8126_v44  ;;  %v3479_v44 = vadd.f32 %v8149_v19, %v8135_v0 }
 0x535   : > { %v3518_v21 = vpop.permute.xlu1 %3517  ;;  %v3530_v8 = vpop.permute.xlu0 %3529 }
 0x536   : > { %v3522_v62 = vadd.f32 %v3518_v21, %v3410_v55  ;;  %v3535_v22 = vadd.f32 %v3530_v8, %v3423_v26  ;;  %v3465_v21 = vadd.f32 %v3460_v35, %v8129_v51 }
 0x539   : > { %v3532_v63 = vpop.permute.xlu1 %3531  ;;  %v3544_v42 = vpop.permute.xlu0 %3543 }
 0x53a   : > { %v3536_v27 = vadd.f32 %v3532_v63, %v3424_v32  ;;  %v3549_v52 = vadd.f32 %v3544_v42, %v3437_v16  ;;  %v3466_v42 = vadd.f32 %v8147_v61, %v8132_v49  ;;  %v3493_v49 = vadd.f32 %v8153_v31, %v8139_v37 }
 0x53b   : > { %v3507_v37 = vadd.f32 %v8157_v28, %v8143_v18 }
 0x53d   : > { %v3546_v40 = vpop.permute.xlu1 %3545  ;;  %v3558_v14 = vpop.permute.xlu0 %3557 }
 0x53e   : > { %v3550_v46 = vadd.f32 %v3546_v40, %v3438_v57  ;;  %v3563_v3 = vadd.f32 %v3558_v14, %v3451_v45 }
 0x541   : > { %v3560_v38 = vpop.permute.xlu1 %3559  ;;  %v3572_v29 = vpop.permute.xlu0 %3571 }
 0x542   : > { %v3564_v25 = vadd.f32 %v3560_v38, %v3452_v48  ;;  %v3577_v6 = vadd.f32 %v3572_v29, %v3465_v21  ;;  %v3480_v29 = vadd.f32 %v8151_v30, %v8137_v4  ;;  %v3494_v4 = vadd.f32 %v8155_v24, %v8141_v2 }
 0x543   : > { %v3508_v2 = vadd.f32 %v8159_v33, %v8145_v39 }
 0x545   : > { %v3574_v43 = vpop.permute.xlu1 %3573  ;;  %v3586_v13 = vpop.permute.xlu0 %3585 }
 0x546   : > { %v3578_v35 = vadd.f32 %v3574_v43, %v3466_v42  ;;  %v3591_v40 = vadd.f32 %v3586_v13, %v3479_v44 }
 0x549   : > { %v8161_v9 = vpop.permute.xlu1 %3587  ;;  %v8163_v11 = vpop.permute.xlu0 %3599 }
 0x54a   : > { %v3592_v19 = vadd.f32 %v8161_v9, %v3480_v29  ;;  %v3605_v43 = vadd.f32 %v8163_v11, %v3493_v49 }
 0x54d   : > { %v8165_v15 = vpop.permute.xlu1 %3601  ;;  %v8167_v7 = vpop.permute.xlu0 %3613 }
 0x54e   : > { %v3606_v9 = vadd.f32 %v8165_v15, %v3494_v4  ;;  %v3619_v11 = vadd.f32 %v8167_v7, %v3507_v37 }
 0x551   : > { %v8171_v59 = vpop.permute.xlu1 %3615  ;;  %v3628_v54 = vpop.permute.xlu0 %3627 }
 0x552   : > { %v3633_v17 = vadd.f32 %v3628_v54, %v3521_v41  ;;  %v3620_v28 = vadd.f32 %v8171_v59, %v3508_v2 }
 0x554   : > { %3734 = vst.msk [vmem:[%s8175_s26] sm:$0xff] %vm3733_vm7, %v3633_v17 }
 0x555   : > { %v3630_v10 = vpop.permute.xlu1 %3629  ;;  %v3642_v47 = vpop.permute.xlu0 %3641 }
 0x556   : > { %v3634_v36 = vadd.f32 %v3630_v10, %v3522_v62  ;;  %v3647_v58 = vadd.f32 %v3642_v47, %v3535_v22 }
 0x558   : > { %3735 = vst.msk [vmem:[%s8175_s26 + $0x8] sm:$0xff] %vm3733_vm7, %v3634_v36  ;;  %3736 = vst.msk [vmem:[%s8175_s26 + $0x10] sm:$0xff] %vm3733_vm7, %v3647_v58 }
 0x559   : > { %v3644_v5 = vpop.permute.xlu1 %3643  ;;  %v3656_v53 = vpop.permute.xlu0 %3655 }
 0x55a   : > { %v3648_v50 = vadd.f32 %v3644_v5, %v3536_v27  ;;  %v3661_v12 = vadd.f32 %v3656_v53, %v3549_v52 }
 0x55c   : > { %3737 = vst.msk [vmem:[%s8175_s26 + $0x18] sm:$0xff] %vm3733_vm7, %v3648_v50  ;;  %3738 = vst.msk [vmem:[%s8175_s26 + $0x20] sm:$0xff] %vm3733_vm7, %v3661_v12 }
 0x55d   : > { %v3658_v60 = vpop.permute.xlu1 %3657  ;;  %v3670_v20 = vpop.permute.xlu0 %3669 }
 0x55e   : > { %v3662_v1 = vadd.f32 %v3658_v60, %v3550_v46  ;;  %v3675_v23 = vadd.f32 %v3670_v20, %v3563_v3 }
 0x560   : > { %3739 = vst.msk [vmem:[%s8175_s26 + $0x28] sm:$0xff] %vm3733_vm7, %v3662_v1  ;;  %3740 = vst.msk [vmem:[%s8175_s26 + $0x30] sm:$0xff] %vm3733_vm7, %v3675_v23 }
 0x561   : > { %v3672_v8 = vpop.permute.xlu1 %3671  ;;  %v3684_v63 = vpop.permute.xlu0 %3683 }
 0x562   : > { %v3676_v51 = vadd.f32 %v3672_v8, %v3564_v25  ;;  %v3689_v56 = vadd.f32 %v3684_v63, %v3577_v6 }
 0x564   : > { %3741 = vst.msk [vmem:[%s8175_s26 + $0x38] sm:$0xff] %vm3733_vm7, %v3676_v51  ;;  %3742 = vst.msk [vmem:[%s8175_s26 + $0x40] sm:$0xff] %vm3733_vm7, %v3689_v56 }
 0x565   : > { %v3686_v14 = vpop.permute.xlu1 %3685  ;;  %v3698_v38 = vpop.permute.xlu0 %3697 }
 0x566   : > { %v3690_v0 = vadd.f32 %v3686_v14, %v3578_v35  ;;  %v3703_v61 = vadd.f32 %v3698_v38, %v3591_v40 }
 0x568   : > { %3743 = vst.msk [vmem:[%s8175_s26 + $0x48] sm:$0xff] %vm3733_vm7, %v3690_v0  ;;  %3744 = vst.msk [vmem:[%s8175_s26 + $0x50] sm:$0xff] %vm3733_vm7, %v3703_v61 }
 0x569   : > { %v3700_v13 = vpop.permute.xlu1 %3699  ;;  %v3712_v34 = vpop.permute.xlu0 %3711 }
 0x56a   : > { %v3704_v30 = vadd.f32 %v3700_v13, %v3592_v19  ;;  %v3717_v31 = vadd.f32 %v3712_v34, %v3605_v43 }
 0x56c   : > { %3745 = vst.msk [vmem:[%s8175_s26 + $0x58] sm:$0xff] %vm3733_vm7, %v3704_v30  ;;  %3746 = vst.msk [vmem:[%s8175_s26 + $0x60] sm:$0xff] %vm3733_vm7, %v3717_v31 }
 0x56d   : > { %v3714_v41 = vpop.permute.xlu1 %3713  ;;  %v3726_v54 = vpop.permute.xlu0 %3725 }
 0x56e   : > { %v3718_v18 = vadd.f32 %v3714_v41, %v3606_v9  ;;  %v3731_v24 = vadd.f32 %v3726_v54, %v3619_v11 }
 0x570   : > { %3747 = vst.msk [vmem:[%s8175_s26 + $0x68] sm:$0xff] %vm3733_vm7, %v3718_v18  ;;  %3748 = vst.msk [vmem:[%s8175_s26 + $0x70] sm:$0xff] %vm3733_vm7, %v3731_v24 }
 0x571   : > { %v3728_v15 = vpop.permute.xlu1 %3727 }
 0x572   : > { %v3732_v39 = vadd.f32 %v3728_v15, %v3620_v28 }
 0x574   : > { %3749 = vst.msk [vmem:[%s8175_s26 + $0x78] sm:$0xff] %vm3733_vm7, %v3732_v39 }
 0x575   : > { %4339 = shalt.err (!%p4336_p7)
}
 0x576   : > { %s4340_s14 = scalar_lea.hbm %s8237_s15, 2048  ;;  %s4344_s11 = scalar_lea.hbm %s9104_s25, 4096 }
 0x577   : > { %p4341_p11 = scmp.ne.s32.totalorder %s8237_s15, %s4340_s14  ;;  %p4345_p3 = scmp.lt.u32.totalorder %s8237_s15, %s9104_s25 }
 0x578   : > { %p4346_p2 = scmp.lt.u32.totalorder %s4344_s11, %s4340_s14  ;;  %p4348_p0 = scmp.lt.u32.totalorder %s4340_s14, %s8237_s15 }
 0x579   : > { %p4342_p13 = pnand %p4341_p11, %p9105_p8 }
 0x57a   : > { %p4347_p5 = por %p4346_p2, %p4345_p3 }
 0x57b   : > { %p4343_p9 = pneg %p4342_p13 }
 0x57c   : > { %p4349_p10 = por %p4348_p0, %p4347_p5 }
 0x57e   : > { %p4350_p4 = pnand %p4349_p10, %p4343_p9 }
 0x580   : > { %4353 = shalt.err (!%p4350_p4)
}
 0x581   : > { %s4412_s18 = smov 128   ;;  %s4413_s17 = smov 8  }
 0x582   : > { %4185 = dma.vmem_to_hbm [thread:$0]  (%p9105_p8), %s8239_s12, 2048, %s8237_s15, %s3751_s4, %s4412_s18, %s4412_s18, %s4413_s17  }
 0x583 PF: > { %s9106_s3 = sld [smem:[#allocation15_spill]]  ;;  %s9107_s7 = sld [smem:[#allocation23_spill]] }
 0x584   : > { %s9108_s28 = sld [smem:[#allocation18_spill]] }
 0x589   : > { %s3779_s24 = sand.u32 1, %s9106_s3   ;;  %p9109_p6 = scmp.ne.s32.totalorder %s9107_s7, 0 }
 0x58a   : > { %p9110_p12 = scmp.ge.s32.totalorder %s9108_s28, 2  ;;  %s3780_s9 = scalar_lea.sflag [#allocation5], %s3779_s24 }
 0x58c   : > { %p4199_p1 = pnand %p9110_p12, %p9109_p6 }
 0x58e   : > { %4383 = dma.done.wait (!%p4199_p1), %s3780_s9, 2048  }
 0x58f   : > { %4385 = vsyncadd (!%p4199_p1), %s3780_s9, 4294965248  ;;  %s9111_s15 = sld [smem:[#allocation20_spill]]  ;;  %s9112_s12 = sld [smem:[#allocation16_spill]] }
 0x590   : > { %s9113_s13 = sld [smem:[#allocation17_spill]]  ;;  %s9114_s14 = sld [smem:[#allocation21_spill]] }
 0x595   : > { %p18_p7 = scmp.ge.s32.totalorder %s9111_s15, 4  }
 0x597   :  { %20 = sbr.rel (!%p18_p7) target bundleno = 12 (0xc), region = 87 }
 0x59e   :  { %3785 = vsyncpa [#allocation4], 1 }
 0x59f   :  { %3787 = vsyncpa [#allocation4 + $0x1], 1 }
 0x5a0   :  { %3788 = vsyncpa [#allocation5], 1 }
 0x5a1   :  { %3790 = vsyncpa [#allocation5 + $0x1], 1 }
 0x5a2   :  { %3791 = vsyncpa [#allocation6], 1 }
 0x5a3   :  { %3793 = vsyncpa [#allocation6 + $0x1], 1 }
 0x5a4   :  { %3794 = vsyncpa [#allocation7], 1 }
 0x5a5   :  { %3796 = vsyncpa [#allocation7 + $0x1], 1 }

</bundles_post_ra>
